<compile_context>
chip_gen: v7x
topology: tpu7x:2x2x1
jax: 0.10.0
libtpu: 0.0.40
codegen_flags: <defaults>
</compile_context>

<pallas_src>
import functools

import jax
import jax.numpy as jnp
from jax import lax
from jax.experimental import pallas as pl
from jax.experimental.pallas import tpu as pltpu


# -----------------------------------------------------------------------------
# Config
# -----------------------------------------------------------------------------
CFG = ((8, 8), (16, 16), (32, 32))   # conv channels per block; MaxPool2d(2) after each
IN_CHANNELS = 3
CP = 128                              # lane-padded channel count (TPU lane width)


# -----------------------------------------------------------------------------
# Fused whole-network kernel (one batch element per grid step)
# -----------------------------------------------------------------------------
def _fused_feature_net_kernel(x_ref, w_ref, b_ref, o_ref, pad_ref, *, cfg, h0, w0):
    """Conv/ReLU/MaxPool stack + global average for ONE image, all in VMEM.

    x_ref  : (1, H0, W0, CP)   channel-padded NHWC input tile
    w_ref  : (L, 9*CP, CP)     im2col-packed, channel-padded conv weights
    b_ref  : (L, CP)           channel-padded biases
    o_ref  : (1, 1, CP)        global-average feature vector (lane-padded)
    pad_ref: (H0+2, W0+2, CP)  VMEM scratch: zero-padded activation buffer
    """
    cp = x_ref.shape[-1]

    def write_padded(val, h, w):
        # Place `val` (h, w, cp) in pad_ref with a 1-pixel zero border.
        pad_ref[...] = jnp.zeros_like(pad_ref)
        pad_ref[1:h + 1, 1:w + 1, :] = val

    def conv3x3_relu(layer, h, w):
        # Single im2col GEMM: K = 9*CP (one MXU call / one result drain) rather
        # than nine tiny dots. The 9 taps concatenate on the lane axis at
        # 128-aligned offsets, so no intra-vreg lane shuffling is needed.
        taps = []
        for kh in range(3):
            for kw in range(3):
                taps.append(pad_ref[kh:kh + h, kw:kw + w, :])       # (h, w, cp)
        patches = jnp.concatenate(taps, axis=-1).reshape(h * w, 9 * cp)
        wmat = w_ref[layer]                       # (9*cp, cp)
        bias = b_ref[layer:layer + 1, :]          # (1, cp)
        acc = jnp.dot(patches, wmat, preferred_element_type=jnp.float32)
        y = jnp.maximum(acc + bias, 0.0)
        return y.reshape(h, w, cp)

    def maxpool2x2_write(y, h, w):
        # 2x2 / stride-2 max pool of `y` (h, w, cp); the pooled result is
        # written straight into pad_ref's interior (with a fresh zero border)
        # as the input of the next block. Row pairs reduce via a free
        # leading-dim reshape; column pairs via a short static unrolled loop
        # (only certain-to-lower ops: static slices + elementwise max).
        ho, wo = h // 2, w // 2
        pad_ref[...] = jnp.zeros_like(pad_ref)
        yr = y.reshape(ho, 2, w, cp)
        rows = jnp.maximum(yr[:, 0], yr[:, 1])                      # (ho, w, cp)
        for j in range(wo):
            col = jnp.maximum(rows[:, 2 * j:2 * j + 1, :],
                              rows[:, 2 * j + 1:2 * j + 2, :])      # (ho, 1, cp)
            pad_ref[1:ho + 1, 1 + j:2 + j, :] = col

    # ---- trace the whole network (all-static Python control flow) ----
    h, w = h0, w0
    write_padded(x_ref[0], h, w)
    layer = 0
    for block in cfg:
        for j in range(len(block)):
            y = conv3x3_relu(layer, h, w)
            layer += 1
            if j + 1 < len(block):
                write_padded(y, h, w)          # feed the next conv of the block
        maxpool2x2_write(y, h, w)
        h, w = h // 2, w // 2

    # Global average pool (AvgPool2d over the remaining h x w), fused here so
    # the final activation never leaves VMEM.
    z = pad_ref[1:h + 1, 1:w + 1, :]           # (h, w, cp)
    s = z[0]
    for r in range(1, h):
        s = s + z[r]                           # (w, cp)
    o_ref[0] = jnp.sum(s, axis=0, keepdims=True) * (1.0 / (h * w))


# -----------------------------------------------------------------------------
# Parameter packing: PyTorch OIHW -> stacked, channel-padded im2col weights
# -----------------------------------------------------------------------------
def _pack_params(params, cfg, in_ch, cp):
    ws, bs = [], []
    c_in, idx = in_ch, 0
    for block in cfg:
        for c_out in block:
            w_oihw, b = params[idx]
            idx += 1
            w_hwio = jnp.transpose(w_oihw, (2, 3, 1, 0))           # (3,3,ci,co)
            w_pad = jnp.zeros((3, 3, cp, cp), jnp.float32)
            w_pad = w_pad.at[:, :, :c_in, :c_out].set(w_hwio)
            ws.append(w_pad.reshape(9 * cp, cp))                   # rows: (kh,kw,ci)
            b_pad = jnp.zeros((cp,), jnp.float32).at[:c_out].set(b)
            bs.append(b_pad)
            c_in = c_out
    return jnp.stack(ws), jnp.stack(bs)        # (L, 9*cp, cp), (L, cp)


# -----------------------------------------------------------------------------
# Public forward (PyTorch-style NCHW in, (N, C_last) out)
# -----------------------------------------------------------------------------
@functools.partial(jax.jit, static_argnums=(2,))
def feature_net_forward(params, x_nchw, cfg=CFG):
    n, c_in, h, w = x_nchw.shape
    assert h % (2 ** len(cfg)) == 0 and w % (2 ** len(cfg)) == 0, \
        "spatial dims must be divisible by 2**num_blocks (MaxPool2d(2) chain)"
    n_layers = sum(len(b) for b in cfg)
    c_last = cfg[-1][-1]

    # NCHW -> NHWC, zero-pad channels to the 128-lane width (lane-dense DMA /
    # vregs; padded lanes stay exactly 0 through the whole network).
    x = jnp.transpose(x_nchw, (0, 2, 3, 1)).astype(jnp.float32)
    xp = jnp.zeros((n, h, w, CP), jnp.float32).at[..., :c_in].set(x)

    w_all, b_all = _pack_params(params, cfg, c_in, CP)

    kernel = functools.partial(_fused_feature_net_kernel, cfg=cfg, h0=h, w0=w)
    out = pl.pallas_call(
        kernel,
        out_shape=jax.ShapeDtypeStruct((n, 1, CP), jnp.float32),
        grid=(n,),
        in_specs=[
            pl.BlockSpec((1, h, w, CP), lambda i: (i, 0, 0, 0)),
            # Constant block index -> weights/biases are DMA'd to VMEM once and
            # reused across all grid steps (no per-step re-fetch).
            pl.BlockSpec((n_layers, 9 * CP, CP), lambda i: (0, 0, 0)),
            pl.BlockSpec((n_layers, CP), lambda i: (0, 0)),
        ],
        out_specs=pl.BlockSpec((1, 1, CP), lambda i: (i, 0, 0)),
        scratch_shapes=[pltpu.VMEM((h + 2, w + 2, CP), jnp.float32)],
        compiler_params=pltpu.CompilerParams(
            dimension_semantics=("parallel",),     # megacore: one image per core
            vmem_limit_bytes=32 * 1024 * 1024,
        ),
    )(xp, w_all, b_all)

    return out[:, 0, :c_last]                     # drop lane padding -> (N, C_last)


# -----------------------------------------------------------------------------
# Synthetic parameters + pure-JAX reference (for validation)
# -----------------------------------------------------------------------------
def init_params(key, cfg=CFG, in_ch=IN_CHANNELS):
    """Deterministic Kaiming-style init. Weights kept in PyTorch OIHW layout."""
    params = []
    c_in = in_ch
    for block in cfg:
        for c_out in block:
            key, kw = jax.random.split(key)
            std = jnp.sqrt(2.0 / (c_in * 9))
            wgt = jax.random.normal(kw, (c_out, c_in, 3, 3), jnp.float32) * std
            b = jnp.zeros((c_out,), jnp.float32)
            params.append((wgt, b))
            c_in = c_out
    return params


def feature_net_reference(params, x_nchw, cfg=CFG):
    """Pure-JAX (XLA) reference with PyTorch Conv2d/MaxPool2d/AvgPool2d semantics."""
    x = x_nchw.astype(jnp.float32)
    idx = 0
    for block in cfg:
        for _ in block:
            wgt, b = params[idx]
            idx += 1
            x = lax.conv_general_dilated(
                x, wgt, window_strides=(1, 1), padding=((1, 1), (1, 1)),
                dimension_numbers=("NCHW", "OIHW", "NCHW"))
            x = jnp.maximum(x + b.reshape(1, -1, 1, 1), 0.0)
        x = lax.reduce_window(x, -jnp.inf, lax.max,
                              (1, 1, 2, 2), (1, 1, 2, 2), "VALID")
    return jnp.mean(x, axis=(2, 3))


if __name__ == "__main__":
    key = jax.random.PRNGKey(0)
    k_x, k_p = jax.random.split(key)
    x = jax.random.normal(k_x, (2, IN_CHANNELS, 16, 16), jnp.float32)   # NCHW
    params = init_params(k_p)

    out = feature_net_forward(params, x, CFG)
    out = jax.block_until_ready(out)

    assert out.shape == (2, CFG[-1][-1]), out.shape
    assert bool(jnp.all(jnp.isfinite(out)))

    ref = feature_net_reference(params, x, CFG)
    rel = float(jnp.linalg.norm(out - ref) / (jnp.linalg.norm(ref) + 1e-9))
    assert rel < 0.05, f"kernel/reference relative error too high: {rel}"

    print("KERNEL_OK")
</pallas_src>

<mosaic_0001>
module attributes {stable_mosaic.version = 11 : i64} {
  func.func @_fused_feature_net_kernel(%arg0: i32, %arg1: memref<1x16x16x128xf32, #tpu.memory_space<vmem>>, %arg2: memref<6x1152x128xf32, #tpu.memory_space<vmem>>, %arg3: memref<6x128xf32, #tpu.memory_space<vmem>>, %arg4: memref<1x1x128xf32, #tpu.memory_space<vmem>>, %arg5: memref<18x18x128xf32, #tpu.memory_space<vmem>>) attributes {dimension_semantics = [#tpu.dimension_semantics<parallel>], iteration_bounds = array<i64: 2>, scalar_prefetch = 0 : i64, scratch_operands = 1 : i64, tpu.core_type = #tpu.core_type<tc>, window_params = [{transform_indices = @transform_0, window_bounds = array<i64: 1, 16, 16, 128>}, {pipeline_mode = #tpu.pipeline_mode<synchronous>, transform_indices = @transform_1, window_bounds = array<i64: 6, 1152, 128>}, {pipeline_mode = #tpu.pipeline_mode<synchronous>, transform_indices = @transform_2, window_bounds = array<i64: 6, 128>}, {transform_indices = @transform_3, window_bounds = array<i64: 1, 1, 128>}]} {
    %c0 = arith.constant 0 : index
    %c0_0 = arith.constant 0 : index
    %c0_1 = arith.constant 0 : index
    %c0_2 = arith.constant 0 : index
    %0 = vector.load %arg1[%c0, %c0_0, %c0_1, %c0_2] : memref<1x16x16x128xf32, #tpu.memory_space<vmem>>, vector<1x16x16x128xf32>
    %1 = vector.shape_cast %0 : vector<1x16x16x128xf32> to vector<16x16x128xf32>
    %cst = arith.constant 0.000000e+00 : f32
    %2 = vector.broadcast %cst : f32 to vector<18x18x128xf32>
    %c0_3 = arith.constant 0 : index
    %c0_4 = arith.constant 0 : index
    %c0_5 = arith.constant 0 : index
    %3 = vector.load %arg5[%c0_3, %c0_4, %c0_5] : memref<18x18x128xf32, #tpu.memory_space<vmem>>, vector<18x18x128xf32>
    tpu.vector_store %arg5[%c0_3, %c0_4, %c0_5], %2 {strides = array<i32>} : memref<18x18x128xf32, #tpu.memory_space<vmem>>, vector<18x18x128xf32>,
    %c1 = arith.constant 1 : index
    %c1_6 = arith.constant 1 : index
    %c0_7 = arith.constant 0 : index
    %4 = vector.load %arg5[%c1, %c1_6, %c0_7] : memref<18x18x128xf32, #tpu.memory_space<vmem>>, vector<16x16x128xf32>
    tpu.vector_store %arg5[%c1, %c1_6, %c0_7], %1 {strides = array<i32>} : memref<18x18x128xf32, #tpu.memory_space<vmem>>, vector<16x16x128xf32>,
    %c0_8 = arith.constant 0 : index
    %c0_9 = arith.constant 0 : index
    %c0_10 = arith.constant 0 : index
    %5 = vector.load %arg5[%c0_8, %c0_9, %c0_10] : memref<18x18x128xf32, #tpu.memory_space<vmem>>, vector<16x16x128xf32>
    %c0_11 = arith.constant 0 : index
    %c1_12 = arith.constant 1 : index
    %c0_13 = arith.constant 0 : index
    %6 = vector.load %arg5[%c0_11, %c1_12, %c0_13] : memref<18x18x128xf32, #tpu.memory_space<vmem>>, vector<16x16x128xf32>
    %c0_14 = arith.constant 0 : index
    %c2 = arith.constant 2 : index
    %c0_15 = arith.constant 0 : index
    %7 = vector.load %arg5[%c0_14, %c2, %c0_15] : memref<18x18x128xf32, #tpu.memory_space<vmem>>, vector<16x16x128xf32>
    %c1_16 = arith.constant 1 : index
    %c0_17 = arith.constant 0 : index
    %c0_18 = arith.constant 0 : index
    %8 = vector.load %arg5[%c1_16, %c0_17, %c0_18] : memref<18x18x128xf32, #tpu.memory_space<vmem>>, vector<16x16x128xf32>
    %c1_19 = arith.constant 1 : index
    %c1_20 = arith.constant 1 : index
    %c0_21 = arith.constant 0 : index
    %9 = vector.load %arg5[%c1_19, %c1_20, %c0_21] : memref<18x18x128xf32, #tpu.memory_space<vmem>>, vector<16x16x128xf32>
    %c1_22 = arith.constant 1 : index
    %c2_23 = arith.constant 2 : index
    %c0_24 = arith.constant 0 : index
    %10 = vector.load %arg5[%c1_22, %c2_23, %c0_24] : memref<18x18x128xf32, #tpu.memory_space<vmem>>, vector<16x16x128xf32>
    %c2_25 = arith.constant 2 : index
    %c0_26 = arith.constant 0 : index
    %c0_27 = arith.constant 0 : index
    %11 = vector.load %arg5[%c2_25, %c0_26, %c0_27] : memref<18x18x128xf32, #tpu.memory_space<vmem>>, vector<16x16x128xf32>
    %c2_28 = arith.constant 2 : index
    %c1_29 = arith.constant 1 : index
    %c0_30 = arith.constant 0 : index
    %12 = vector.load %arg5[%c2_28, %c1_29, %c0_30] : memref<18x18x128xf32, #tpu.memory_space<vmem>>, vector<16x16x128xf32>
    %c2_31 = arith.constant 2 : index
    %c2_32 = arith.constant 2 : index
    %c0_33 = arith.constant 0 : index
    %13 = vector.load %arg5[%c2_31, %c2_32, %c0_33] : memref<18x18x128xf32, #tpu.memory_space<vmem>>, vector<16x16x128xf32>
    %14 = tpu.concatenate %5, %6, %7, %8, %9, %10, %11, %12, %13 in 2 : vector<16x16x128xf32>, vector<16x16x128xf32>, vector<16x16x128xf32>, vector<16x16x128xf32>, vector<16x16x128xf32>, vector<16x16x128xf32>, vector<16x16x128xf32>, vector<16x16x128xf32>, vector<16x16x128xf32> -> vector<16x16x1152xf32>
    %15 = vector.shape_cast %14 : vector<16x16x1152xf32> to vector<256x1152xf32>
    %c0_34 = arith.constant 0 : index
    %c0_35 = arith.constant 0 : index
    %c0_36 = arith.constant 0 : index
    %16 = vector.load %arg2[%c0_34, %c0_35, %c0_36] : memref<6x1152x128xf32, #tpu.memory_space<vmem>>, vector<1x1152x128xf32>
    %17 = vector.shape_cast %16 : vector<1x1152x128xf32> to vector<1152x128xf32>
    %c0_37 = arith.constant 0 : index
    %c0_38 = arith.constant 0 : index
    %18 = vector.load %arg3[%c0_37, %c0_38] : memref<6x128xf32, #tpu.memory_space<vmem>>, vector<1x128xf32>
    %cst_39 = arith.constant dense<0.000000e+00> : vector<256x128xf32>
    %19 = tpu.matmul %15, %17, %cst_39 {dimension_numbers = #tpu.dot_dimension_numbers<[1], [0], [0], [1], [0, 0, 1, 1], [], []>} : vector<256x1152xf32>, vector<1152x128xf32>, vector<256x128xf32> -> vector<256x128xf32>
    %20 = vector.broadcast %18 : vector<1x128xf32> to vector<256x128xf32>
    %21 = arith.addf %19, %20 : vector<256x128xf32>
    %cst_40 = arith.constant 0.000000e+00 : f32
    %22 = vector.broadcast %cst_40 : f32 to vector<256x128xf32>
    %23 = arith.maximumf %21, %22 : vector<256x128xf32>
    %24 = vector.shape_cast %23 : vector<256x128xf32> to vector<16x16x128xf32>
    %cst_41 = arith.constant 0.000000e+00 : f32
    %25 = vector.broadcast %cst_41 : f32 to vector<18x18x128xf32>
    %c0_42 = arith.constant 0 : index
    %c0_43 = arith.constant 0 : index
    %c0_44 = arith.constant 0 : index
    %26 = vector.load %arg5[%c0_42, %c0_43, %c0_44] : memref<18x18x128xf32, #tpu.memory_space<vmem>>, vector<18x18x128xf32>
    tpu.vector_store %arg5[%c0_42, %c0_43, %c0_44], %25 {strides = array<i32>} : memref<18x18x128xf32, #tpu.memory_space<vmem>>, vector<18x18x128xf32>,
    %c1_45 = arith.constant 1 : index
    %c1_46 = arith.constant 1 : index
    %c0_47 = arith.constant 0 : index
    %27 = vector.load %arg5[%c1_45, %c1_46, %c0_47] : memref<18x18x128xf32, #tpu.memory_space<vmem>>, vector<16x16x128xf32>
    tpu.vector_store %arg5[%c1_45, %c1_46, %c0_47], %24 {strides = array<i32>} : memref<18x18x128xf32, #tpu.memory_space<vmem>>, vector<16x16x128xf32>,
    %c0_48 = arith.constant 0 : index
    %c0_49 = arith.constant 0 : index
    %c0_50 = arith.constant 0 : index
    %28 = vector.load %arg5[%c0_48, %c0_49, %c0_50] : memref<18x18x128xf32, #tpu.memory_space<vmem>>, vector<16x16x128xf32>
    %c0_51 = arith.constant 0 : index
    %c1_52 = arith.constant 1 : index
    %c0_53 = arith.constant 0 : index
    %29 = vector.load %arg5[%c0_51, %c1_52, %c0_53] : memref<18x18x128xf32, #tpu.memory_space<vmem>>, vector<16x16x128xf32>
    %c0_54 = arith.constant 0 : index
    %c2_55 = arith.constant 2 : index
    %c0_56 = arith.constant 0 : index
    %30 = vector.load %arg5[%c0_54, %c2_55, %c0_56] : memref<18x18x128xf32, #tpu.memory_space<vmem>>, vector<16x16x128xf32>
    %c1_57 = arith.constant 1 : index
    %c0_58 = arith.constant 0 : index
    %c0_59 = arith.constant 0 : index
    %31 = vector.load %arg5[%c1_57, %c0_58, %c0_59] : memref<18x18x128xf32, #tpu.memory_space<vmem>>, vector<16x16x128xf32>
    %c1_60 = arith.constant 1 : index
    %c1_61 = arith.constant 1 : index
    %c0_62 = arith.constant 0 : index
    %32 = vector.load %arg5[%c1_60, %c1_61, %c0_62] : memref<18x18x128xf32, #tpu.memory_space<vmem>>, vector<16x16x128xf32>
    %c1_63 = arith.constant 1 : index
    %c2_64 = arith.constant 2 : index
    %c0_65 = arith.constant 0 : index
    %33 = vector.load %arg5[%c1_63, %c2_64, %c0_65] : memref<18x18x128xf32, #tpu.memory_space<vmem>>, vector<16x16x128xf32>
    %c2_66 = arith.constant 2 : index
    %c0_67 = arith.constant 0 : index
    %c0_68 = arith.constant 0 : index
    %34 = vector.load %arg5[%c2_66, %c0_67, %c0_68] : memref<18x18x128xf32, #tpu.memory_space<vmem>>, vector<16x16x128xf32>
    %c2_69 = arith.constant 2 : index
    %c1_70 = arith.constant 1 : index
    %c0_71 = arith.constant 0 : index
    %35 = vector.load %arg5[%c2_69, %c1_70, %c0_71] : memref<18x18x128xf32, #tpu.memory_space<vmem>>, vector<16x16x128xf32>
    %c2_72 = arith.constant 2 : index
    %c2_73 = arith.constant 2 : index
    %c0_74 = arith.constant 0 : index
    %36 = vector.load %arg5[%c2_72, %c2_73, %c0_74] : memref<18x18x128xf32, #tpu.memory_space<vmem>>, vector<16x16x128xf32>
    %37 = tpu.concatenate %28, %29, %30, %31, %32, %33, %34, %35, %36 in 2 : vector<16x16x128xf32>, vector<16x16x128xf32>, vector<16x16x128xf32>, vector<16x16x128xf32>, vector<16x16x128xf32>, vector<16x16x128xf32>, vector<16x16x128xf32>, vector<16x16x128xf32>, vector<16x16x128xf32> -> vector<16x16x1152xf32>
    %38 = vector.shape_cast %37 : vector<16x16x1152xf32> to vector<256x1152xf32>
    %c1_75 = arith.constant 1 : index
    %c0_76 = arith.constant 0 : index
    %c0_77 = arith.constant 0 : index
    %39 = vector.load %arg2[%c1_75, %c0_76, %c0_77] : memref<6x1152x128xf32, #tpu.memory_space<vmem>>, vector<1x1152x128xf32>
    %40 = vector.shape_cast %39 : vector<1x1152x128xf32> to vector<1152x128xf32>
    %c1_78 = arith.constant 1 : index
    %c0_79 = arith.constant 0 : index
    %41 = vector.load %arg3[%c1_78, %c0_79] : memref<6x128xf32, #tpu.memory_space<vmem>>, vector<1x128xf32>
    %cst_80 = arith.constant dense<0.000000e+00> : vector<256x128xf32>
    %42 = tpu.matmul %38, %40, %cst_80 {dimension_numbers = #tpu.dot_dimension_numbers<[1], [0], [0], [1], [0, 0, 1, 1], [], []>} : vector<256x1152xf32>, vector<1152x128xf32>, vector<256x128xf32> -> vector<256x128xf32>
    %43 = vector.broadcast %41 : vector<1x128xf32> to vector<256x128xf32>
    %44 = arith.addf %42, %43 : vector<256x128xf32>
    %cst_81 = arith.constant 0.000000e+00 : f32
    %45 = vector.broadcast %cst_81 : f32 to vector<256x128xf32>
    %46 = arith.maximumf %44, %45 : vector<256x128xf32>
    %47 = vector.shape_cast %46 : vector<256x128xf32> to vector<16x16x128xf32>
    %cst_82 = arith.constant 0.000000e+00 : f32
    %48 = vector.broadcast %cst_82 : f32 to vector<18x18x128xf32>
    %c0_83 = arith.constant 0 : index
    %c0_84 = arith.constant 0 : index
    %c0_85 = arith.constant 0 : index
    %49 = vector.load %arg5[%c0_83, %c0_84, %c0_85] : memref<18x18x128xf32, #tpu.memory_space<vmem>>, vector<18x18x128xf32>
    tpu.vector_store %arg5[%c0_83, %c0_84, %c0_85], %48 {strides = array<i32>} : memref<18x18x128xf32, #tpu.memory_space<vmem>>, vector<18x18x128xf32>,
    %50 = vector.shape_cast %47 : vector<16x16x128xf32> to vector<8x2x16x128xf32>
    %51 = vector.extract_strided_slice %50 {offsets = [0, 0, 0, 0], sizes = [8, 1, 16, 128], strides = [1, 1, 1, 1]} : vector<8x2x16x128xf32> to vector<8x1x16x128xf32>
    %52 = vector.shape_cast %51 : vector<8x1x16x128xf32> to vector<8x16x128xf32>
    %53 = vector.extract_strided_slice %50 {offsets = [0, 1, 0, 0], sizes = [8, 1, 16, 128], strides = [1, 1, 1, 1]} : vector<8x2x16x128xf32> to vector<8x1x16x128xf32>
    %54 = vector.shape_cast %53 : vector<8x1x16x128xf32> to vector<8x16x128xf32>
    %55 = arith.maximumf %52, %54 : vector<8x16x128xf32>
    %56 = vector.extract_strided_slice %55 {offsets = [0, 0, 0], sizes = [8, 1, 128], strides = [1, 1, 1]} : vector<8x16x128xf32> to vector<8x1x128xf32>
    %57 = vector.extract_strided_slice %55 {offsets = [0, 1, 0], sizes = [8, 1, 128], strides = [1, 1, 1]} : vector<8x16x128xf32> to vector<8x1x128xf32>
    %58 = arith.maximumf %56, %57 : vector<8x1x128xf32>
    %c1_86 = arith.constant 1 : index
    %c1_87 = arith.constant 1 : index
    %c0_88 = arith.constant 0 : index
    %59 = vector.load %arg5[%c1_86, %c1_87, %c0_88] : memref<18x18x128xf32, #tpu.memory_space<vmem>>, vector<8x1x128xf32>
    tpu.vector_store %arg5[%c1_86, %c1_87, %c0_88], %58 {strides = array<i32>} : memref<18x18x128xf32, #tpu.memory_space<vmem>>, vector<8x1x128xf32>,
    %60 = vector.extract_strided_slice %55 {offsets = [0, 2, 0], sizes = [8, 1, 128], strides = [1, 1, 1]} : vector<8x16x128xf32> to vector<8x1x128xf32>
    %61 = vector.extract_strided_slice %55 {offsets = [0, 3, 0], sizes = [8, 1, 128], strides = [1, 1, 1]} : vector<8x16x128xf32> to vector<8x1x128xf32>
    %62 = arith.maximumf %60, %61 : vector<8x1x128xf32>
    %c1_89 = arith.constant 1 : index
    %c2_90 = arith.constant 2 : index
    %c0_91 = arith.constant 0 : index
    %63 = vector.load %arg5[%c1_89, %c2_90, %c0_91] : memref<18x18x128xf32, #tpu.memory_space<vmem>>, vector<8x1x128xf32>
    tpu.vector_store %arg5[%c1_89, %c2_90, %c0_91], %62 {strides = array<i32>} : memref<18x18x128xf32, #tpu.memory_space<vmem>>, vector<8x1x128xf32>,
    %64 = vector.extract_strided_slice %55 {offsets = [0, 4, 0], sizes = [8, 1, 128], strides = [1, 1, 1]} : vector<8x16x128xf32> to vector<8x1x128xf32>
    %65 = vector.extract_strided_slice %55 {offsets = [0, 5, 0], sizes = [8, 1, 128], strides = [1, 1, 1]} : vector<8x16x128xf32> to vector<8x1x128xf32>
    %66 = arith.maximumf %64, %65 : vector<8x1x128xf32>
    %c1_92 = arith.constant 1 : index
    %c3 = arith.constant 3 : index
    %c0_93 = arith.constant 0 : index
    %67 = vector.load %arg5[%c1_92, %c3, %c0_93] : memref<18x18x128xf32, #tpu.memory_space<vmem>>, vector<8x1x128xf32>
    tpu.vector_store %arg5[%c1_92, %c3, %c0_93], %66 {strides = array<i32>} : memref<18x18x128xf32, #tpu.memory_space<vmem>>, vector<8x1x128xf32>,
    %68 = vector.extract_strided_slice %55 {offsets = [0, 6, 0], sizes = [8, 1, 128], strides = [1, 1, 1]} : vector<8x16x128xf32> to vector<8x1x128xf32>
    %69 = vector.extract_strided_slice %55 {offsets = [0, 7, 0], sizes = [8, 1, 128], strides = [1, 1, 1]} : vector<8x16x128xf32> to vector<8x1x128xf32>
    %70 = arith.maximumf %68, %69 : vector<8x1x128xf32>
    %c1_94 = arith.constant 1 : index
    %c4 = arith.constant 4 : index
    %c0_95 = arith.constant 0 : index
    %71 = vector.load %arg5[%c1_94, %c4, %c0_95] : memref<18x18x128xf32, #tpu.memory_space<vmem>>, vector<8x1x128xf32>
    tpu.vector_store %arg5[%c1_94, %c4, %c0_95], %70 {strides = array<i32>} : memref<18x18x128xf32, #tpu.memory_space<vmem>>, vector<8x1x128xf32>,
    %72 = vector.extract_strided_slice %55 {offsets = [0, 8, 0], sizes = [8, 1, 128], strides = [1, 1, 1]} : vector<8x16x128xf32> to vector<8x1x128xf32>
    %73 = vector.extract_strided_slice %55 {offsets = [0, 9, 0], sizes = [8, 1, 128], strides = [1, 1, 1]} : vector<8x16x128xf32> to vector<8x1x128xf32>
    %74 = arith.maximumf %72, %73 : vector<8x1x128xf32>
    %c1_96 = arith.constant 1 : index
    %c5 = arith.constant 5 : index
    %c0_97 = arith.constant 0 : index
    %75 = vector.load %arg5[%c1_96, %c5, %c0_97] : memref<18x18x128xf32, #tpu.memory_space<vmem>>, vector<8x1x128xf32>
    tpu.vector_store %arg5[%c1_96, %c5, %c0_97], %74 {strides = array<i32>} : memref<18x18x128xf32, #tpu.memory_space<vmem>>, vector<8x1x128xf32>,
    %76 = vector.extract_strided_slice %55 {offsets = [0, 10, 0], sizes = [8, 1, 128], strides = [1, 1, 1]} : vector<8x16x128xf32> to vector<8x1x128xf32>
    %77 = vector.extract_strided_slice %55 {offsets = [0, 11, 0], sizes = [8, 1, 128], strides = [1, 1, 1]} : vector<8x16x128xf32> to vector<8x1x128xf32>
    %78 = arith.maximumf %76, %77 : vector<8x1x128xf32>
    %c1_98 = arith.constant 1 : index
    %c6 = arith.constant 6 : index
    %c0_99 = arith.constant 0 : index
    %79 = vector.load %arg5[%c1_98, %c6, %c0_99] : memref<18x18x128xf32, #tpu.memory_space<vmem>>, vector<8x1x128xf32>
    tpu.vector_store %arg5[%c1_98, %c6, %c0_99], %78 {strides = array<i32>} : memref<18x18x128xf32, #tpu.memory_space<vmem>>, vector<8x1x128xf32>,
    %80 = vector.extract_strided_slice %55 {offsets = [0, 12, 0], sizes = [8, 1, 128], strides = [1, 1, 1]} : vector<8x16x128xf32> to vector<8x1x128xf32>
    %81 = vector.extract_strided_slice %55 {offsets = [0, 13, 0], sizes = [8, 1, 128], strides = [1, 1, 1]} : vector<8x16x128xf32> to vector<8x1x128xf32>
    %82 = arith.maximumf %80, %81 : vector<8x1x128xf32>
    %c1_100 = arith.constant 1 : index
    %c7 = arith.constant 7 : index
    %c0_101 = arith.constant 0 : index
    %83 = vector.load %arg5[%c1_100, %c7, %c0_101] : memref<18x18x128xf32, #tpu.memory_space<vmem>>, vector<8x1x128xf32>
    tpu.vector_store %arg5[%c1_100, %c7, %c0_101], %82 {strides = array<i32>} : memref<18x18x128xf32, #tpu.memory_space<vmem>>, vector<8x1x128xf32>,
    %84 = vector.extract_strided_slice %55 {offsets = [0, 14, 0], sizes = [8, 1, 128], strides = [1, 1, 1]} : vector<8x16x128xf32> to vector<8x1x128xf32>
    %85 = vector.extract_strided_slice %55 {offsets = [0, 15, 0], sizes = [8, 1, 128], strides = [1, 1, 1]} : vector<8x16x128xf32> to vector<8x1x128xf32>
    %86 = arith.maximumf %84, %85 : vector<8x1x128xf32>
    %c1_102 = arith.constant 1 : index
    %c8 = arith.constant 8 : index
    %c0_103 = arith.constant 0 : index
    %87 = vector.load %arg5[%c1_102, %c8, %c0_103] : memref<18x18x128xf32, #tpu.memory_space<vmem>>, vector<8x1x128xf32>
    tpu.vector_store %arg5[%c1_102, %c8, %c0_103], %86 {strides = array<i32>} : memref<18x18x128xf32, #tpu.memory_space<vmem>>, vector<8x1x128xf32>,
    %c0_104 = arith.constant 0 : index
    %c0_105 = arith.constant 0 : index
    %c0_106 = arith.constant 0 : index
    %88 = vector.load %arg5[%c0_104, %c0_105, %c0_106] : memref<18x18x128xf32, #tpu.memory_space<vmem>>, vector<8x8x128xf32>
    %c0_107 = arith.constant 0 : index
    %c1_108 = arith.constant 1 : index
    %c0_109 = arith.constant 0 : index
    %89 = vector.load %arg5[%c0_107, %c1_108, %c0_109] : memref<18x18x128xf32, #tpu.memory_space<vmem>>, vector<8x8x128xf32>
    %c0_110 = arith.constant 0 : index
    %c2_111 = arith.constant 2 : index
    %c0_112 = arith.constant 0 : index
    %90 = vector.load %arg5[%c0_110, %c2_111, %c0_112] : memref<18x18x128xf32, #tpu.memory_space<vmem>>, vector<8x8x128xf32>
    %c1_113 = arith.constant 1 : index
    %c0_114 = arith.constant 0 : index
    %c0_115 = arith.constant 0 : index
    %91 = vector.load %arg5[%c1_113, %c0_114, %c0_115] : memref<18x18x128xf32, #tpu.memory_space<vmem>>, vector<8x8x128xf32>
    %c1_116 = arith.constant 1 : index
    %c1_117 = arith.constant 1 : index
    %c0_118 = arith.constant 0 : index
    %92 = vector.load %arg5[%c1_116, %c1_117, %c0_118] : memref<18x18x128xf32, #tpu.memory_space<vmem>>, vector<8x8x128xf32>
    %c1_119 = arith.constant 1 : index
    %c2_120 = arith.constant 2 : index
    %c0_121 = arith.constant 0 : index
    %93 = vector.load %arg5[%c1_119, %c2_120, %c0_121] : memref<18x18x128xf32, #tpu.memory_space<vmem>>, vector<8x8x128xf32>
    %c2_122 = arith.constant 2 : index
    %c0_123 = arith.constant 0 : index
    %c0_124 = arith.constant 0 : index
    %94 = vector.load %arg5[%c2_122, %c0_123, %c0_124] : memref<18x18x128xf32, #tpu.memory_space<vmem>>, vector<8x8x128xf32>
    %c2_125 = arith.constant 2 : index
    %c1_126 = arith.constant 1 : index
    %c0_127 = arith.constant 0 : index
    %95 = vector.load %arg5[%c2_125, %c1_126, %c0_127] : memref<18x18x128xf32, #tpu.memory_space<vmem>>, vector<8x8x128xf32>
    %c2_128 = arith.constant 2 : index
    %c2_129 = arith.constant 2 : index
    %c0_130 = arith.constant 0 : index
    %96 = vector.load %arg5[%c2_128, %c2_129, %c0_130] : memref<18x18x128xf32, #tpu.memory_space<vmem>>, vector<8x8x128xf32>
    %97 = tpu.concatenate %88, %89, %90, %91, %92, %93, %94, %95, %96 in 2 : vector<8x8x128xf32>, vector<8x8x128xf32>, vector<8x8x128xf32>, vector<8x8x128xf32>, vector<8x8x128xf32>, vector<8x8x128xf32>, vector<8x8x128xf32>, vector<8x8x128xf32>, vector<8x8x128xf32> -> vector<8x8x1152xf32>
    %98 = vector.shape_cast %97 : vector<8x8x1152xf32> to vector<64x1152xf32>
    %c2_131 = arith.constant 2 : index
    %c0_132 = arith.constant 0 : index
    %c0_133 = arith.constant 0 : index
    %99 = vector.load %arg2[%c2_131, %c0_132, %c0_133] : memref<6x1152x128xf32, #tpu.memory_space<vmem>>, vector<1x1152x128xf32>
    %100 = vector.shape_cast %99 : vector<1x1152x128xf32> to vector<1152x128xf32>
    %c2_134 = arith.constant 2 : index
    %c0_135 = arith.constant 0 : index
    %101 = vector.load %arg3[%c2_134, %c0_135] : memref<6x128xf32, #tpu.memory_space<vmem>>, vector<1x128xf32>
    %cst_136 = arith.constant dense<0.000000e+00> : vector<64x128xf32>
    %102 = tpu.matmul %98, %100, %cst_136 {dimension_numbers = #tpu.dot_dimension_numbers<[1], [0], [0], [1], [0, 0, 1, 1], [], []>} : vector<64x1152xf32>, vector<1152x128xf32>, vector<64x128xf32> -> vector<64x128xf32>
    %103 = vector.broadcast %101 : vector<1x128xf32> to vector<64x128xf32>
    %104 = arith.addf %102, %103 : vector<64x128xf32>
    %cst_137 = arith.constant 0.000000e+00 : f32
    %105 = vector.broadcast %cst_137 : f32 to vector<64x128xf32>
    %106 = arith.maximumf %104, %105 : vector<64x128xf32>
    %107 = vector.shape_cast %106 : vector<64x128xf32> to vector<8x8x128xf32>
    %cst_138 = arith.constant 0.000000e+00 : f32
    %108 = vector.broadcast %cst_138 : f32 to vector<18x18x128xf32>
    %c0_139 = arith.constant 0 : index
    %c0_140 = arith.constant 0 : index
    %c0_141 = arith.constant 0 : index
    %109 = vector.load %arg5[%c0_139, %c0_140, %c0_141] : memref<18x18x128xf32, #tpu.memory_space<vmem>>, vector<18x18x128xf32>
    tpu.vector_store %arg5[%c0_139, %c0_140, %c0_141], %108 {strides = array<i32>} : memref<18x18x128xf32, #tpu.memory_space<vmem>>, vector<18x18x128xf32>,
    %c1_142 = arith.constant 1 : index
    %c1_143 = arith.constant 1 : index
    %c0_144 = arith.constant 0 : index
    %110 = vector.load %arg5[%c1_142, %c1_143, %c0_144] : memref<18x18x128xf32, #tpu.memory_space<vmem>>, vector<8x8x128xf32>
    tpu.vector_store %arg5[%c1_142, %c1_143, %c0_144], %107 {strides = array<i32>} : memref<18x18x128xf32, #tpu.memory_space<vmem>>, vector<8x8x128xf32>,
    %c0_145 = arith.constant 0 : index
    %c0_146 = arith.constant 0 : index
    %c0_147 = arith.constant 0 : index
    %111 = vector.load %arg5[%c0_145, %c0_146, %c0_147] : memref<18x18x128xf32, #tpu.memory_space<vmem>>, vector<8x8x128xf32>
    %c0_148 = arith.constant 0 : index
    %c1_149 = arith.constant 1 : index
    %c0_150 = arith.constant 0 : index
    %112 = vector.load %arg5[%c0_148, %c1_149, %c0_150] : memref<18x18x128xf32, #tpu.memory_space<vmem>>, vector<8x8x128xf32>
    %c0_151 = arith.constant 0 : index
    %c2_152 = arith.constant 2 : index
    %c0_153 = arith.constant 0 : index
    %113 = vector.load %arg5[%c0_151, %c2_152, %c0_153] : memref<18x18x128xf32, #tpu.memory_space<vmem>>, vector<8x8x128xf32>
    %c1_154 = arith.constant 1 : index
    %c0_155 = arith.constant 0 : index
    %c0_156 = arith.constant 0 : index
    %114 = vector.load %arg5[%c1_154, %c0_155, %c0_156] : memref<18x18x128xf32, #tpu.memory_space<vmem>>, vector<8x8x128xf32>
    %c1_157 = arith.constant 1 : index
    %c1_158 = arith.constant 1 : index
    %c0_159 = arith.constant 0 : index
    %115 = vector.load %arg5[%c1_157, %c1_158, %c0_159] : memref<18x18x128xf32, #tpu.memory_space<vmem>>, vector<8x8x128xf32>
    %c1_160 = arith.constant 1 : index
    %c2_161 = arith.constant 2 : index
    %c0_162 = arith.constant 0 : index
    %116 = vector.load %arg5[%c1_160, %c2_161, %c0_162] : memref<18x18x128xf32, #tpu.memory_space<vmem>>, vector<8x8x128xf32>
    %c2_163 = arith.constant 2 : index
    %c0_164 = arith.constant 0 : index
    %c0_165 = arith.constant 0 : index
    %117 = vector.load %arg5[%c2_163, %c0_164, %c0_165] : memref<18x18x128xf32, #tpu.memory_space<vmem>>, vector<8x8x128xf32>
    %c2_166 = arith.constant 2 : index
    %c1_167 = arith.constant 1 : index
    %c0_168 = arith.constant 0 : index
    %118 = vector.load %arg5[%c2_166, %c1_167, %c0_168] : memref<18x18x128xf32, #tpu.memory_space<vmem>>, vector<8x8x128xf32>
    %c2_169 = arith.constant 2 : index
    %c2_170 = arith.constant 2 : index
    %c0_171 = arith.constant 0 : index
    %119 = vector.load %arg5[%c2_169, %c2_170, %c0_171] : memref<18x18x128xf32, #tpu.memory_space<vmem>>, vector<8x8x128xf32>
    %120 = tpu.concatenate %111, %112, %113, %114, %115, %116, %117, %118, %119 in 2 : vector<8x8x128xf32>, vector<8x8x128xf32>, vector<8x8x128xf32>, vector<8x8x128xf32>, vector<8x8x128xf32>, vector<8x8x128xf32>, vector<8x8x128xf32>, vector<8x8x128xf32>, vector<8x8x128xf32> -> vector<8x8x1152xf32>
    %121 = vector.shape_cast %120 : vector<8x8x1152xf32> to vector<64x1152xf32>
    %c3_172 = arith.constant 3 : index
    %c0_173 = arith.constant 0 : index
    %c0_174 = arith.constant 0 : index
    %122 = vector.load %arg2[%c3_172, %c0_173, %c0_174] : memref<6x1152x128xf32, #tpu.memory_space<vmem>>, vector<1x1152x128xf32>
    %123 = vector.shape_cast %122 : vector<1x1152x128xf32> to vector<1152x128xf32>
    %c3_175 = arith.constant 3 : index
    %c0_176 = arith.constant 0 : index
    %124 = vector.load %arg3[%c3_175, %c0_176] : memref<6x128xf32, #tpu.memory_space<vmem>>, vector<1x128xf32>
    %cst_177 = arith.constant dense<0.000000e+00> : vector<64x128xf32>
    %125 = tpu.matmul %121, %123, %cst_177 {dimension_numbers = #tpu.dot_dimension_numbers<[1], [0], [0], [1], [0, 0, 1, 1], [], []>} : vector<64x1152xf32>, vector<1152x128xf32>, vector<64x128xf32> -> vector<64x128xf32>
    %126 = vector.broadcast %124 : vector<1x128xf32> to vector<64x128xf32>
    %127 = arith.addf %125, %126 : vector<64x128xf32>
    %cst_178 = arith.constant 0.000000e+00 : f32
    %128 = vector.broadcast %cst_178 : f32 to vector<64x128xf32>
    %129 = arith.maximumf %127, %128 : vector<64x128xf32>
    %130 = vector.shape_cast %129 : vector<64x128xf32> to vector<8x8x128xf32>
    %cst_179 = arith.constant 0.000000e+00 : f32
    %131 = vector.broadcast %cst_179 : f32 to vector<18x18x128xf32>
    %c0_180 = arith.constant 0 : index
    %c0_181 = arith.constant 0 : index
    %c0_182 = arith.constant 0 : index
    %132 = vector.load %arg5[%c0_180, %c0_181, %c0_182] : memref<18x18x128xf32, #tpu.memory_space<vmem>>, vector<18x18x128xf32>
    tpu.vector_store %arg5[%c0_180, %c0_181, %c0_182], %131 {strides = array<i32>} : memref<18x18x128xf32, #tpu.memory_space<vmem>>, vector<18x18x128xf32>,
    %133 = vector.shape_cast %130 : vector<8x8x128xf32> to vector<4x2x8x128xf32>
    %134 = vector.extract_strided_slice %133 {offsets = [0, 0, 0, 0], sizes = [4, 1, 8, 128], strides = [1, 1, 1, 1]} : vector<4x2x8x128xf32> to vector<4x1x8x128xf32>
    %135 = vector.shape_cast %134 : vector<4x1x8x128xf32> to vector<4x8x128xf32>
    %136 = vector.extract_strided_slice %133 {offsets = [0, 1, 0, 0], sizes = [4, 1, 8, 128], strides = [1, 1, 1, 1]} : vector<4x2x8x128xf32> to vector<4x1x8x128xf32>
    %137 = vector.shape_cast %136 : vector<4x1x8x128xf32> to vector<4x8x128xf32>
    %138 = arith.maximumf %135, %137 : vector<4x8x128xf32>
    %139 = vector.extract_strided_slice %138 {offsets = [0, 0, 0], sizes = [4, 1, 128], strides = [1, 1, 1]} : vector<4x8x128xf32> to vector<4x1x128xf32>
    %140 = vector.extract_strided_slice %138 {offsets = [0, 1, 0], sizes = [4, 1, 128], strides = [1, 1, 1]} : vector<4x8x128xf32> to vector<4x1x128xf32>
    %141 = arith.maximumf %139, %140 : vector<4x1x128xf32>
    %c1_183 = arith.constant 1 : index
    %c1_184 = arith.constant 1 : index
    %c0_185 = arith.constant 0 : index
    %142 = vector.load %arg5[%c1_183, %c1_184, %c0_185] : memref<18x18x128xf32, #tpu.memory_space<vmem>>, vector<4x1x128xf32>
    tpu.vector_store %arg5[%c1_183, %c1_184, %c0_185], %141 {strides = array<i32>} : memref<18x18x128xf32, #tpu.memory_space<vmem>>, vector<4x1x128xf32>,
    %143 = vector.extract_strided_slice %138 {offsets = [0, 2, 0], sizes = [4, 1, 128], strides = [1, 1, 1]} : vector<4x8x128xf32> to vector<4x1x128xf32>
    %144 = vector.extract_strided_slice %138 {offsets = [0, 3, 0], sizes = [4, 1, 128], strides = [1, 1, 1]} : vector<4x8x128xf32> to vector<4x1x128xf32>
    %145 = arith.maximumf %143, %144 : vector<4x1x128xf32>
    %c1_186 = arith.constant 1 : index
    %c2_187 = arith.constant 2 : index
    %c0_188 = arith.constant 0 : index
    %146 = vector.load %arg5[%c1_186, %c2_187, %c0_188] : memref<18x18x128xf32, #tpu.memory_space<vmem>>, vector<4x1x128xf32>
    tpu.vector_store %arg5[%c1_186, %c2_187, %c0_188], %145 {strides = array<i32>} : memref<18x18x128xf32, #tpu.memory_space<vmem>>, vector<4x1x128xf32>,
    %147 = vector.extract_strided_slice %138 {offsets = [0, 4, 0], sizes = [4, 1, 128], strides = [1, 1, 1]} : vector<4x8x128xf32> to vector<4x1x128xf32>
    %148 = vector.extract_strided_slice %138 {offsets = [0, 5, 0], sizes = [4, 1, 128], strides = [1, 1, 1]} : vector<4x8x128xf32> to vector<4x1x128xf32>
    %149 = arith.maximumf %147, %148 : vector<4x1x128xf32>
    %c1_189 = arith.constant 1 : index
    %c3_190 = arith.constant 3 : index
    %c0_191 = arith.constant 0 : index
    %150 = vector.load %arg5[%c1_189, %c3_190, %c0_191] : memref<18x18x128xf32, #tpu.memory_space<vmem>>, vector<4x1x128xf32>
    tpu.vector_store %arg5[%c1_189, %c3_190, %c0_191], %149 {strides = array<i32>} : memref<18x18x128xf32, #tpu.memory_space<vmem>>, vector<4x1x128xf32>,
    %151 = vector.extract_strided_slice %138 {offsets = [0, 6, 0], sizes = [4, 1, 128], strides = [1, 1, 1]} : vector<4x8x128xf32> to vector<4x1x128xf32>
    %152 = vector.extract_strided_slice %138 {offsets = [0, 7, 0], sizes = [4, 1, 128], strides = [1, 1, 1]} : vector<4x8x128xf32> to vector<4x1x128xf32>
    %153 = arith.maximumf %151, %152 : vector<4x1x128xf32>
    %c1_192 = arith.constant 1 : index
    %c4_193 = arith.constant 4 : index
    %c0_194 = arith.constant 0 : index
    %154 = vector.load %arg5[%c1_192, %c4_193, %c0_194] : memref<18x18x128xf32, #tpu.memory_space<vmem>>, vector<4x1x128xf32>
    tpu.vector_store %arg5[%c1_192, %c4_193, %c0_194], %153 {strides = array<i32>} : memref<18x18x128xf32, #tpu.memory_space<vmem>>, vector<4x1x128xf32>,
    %c0_195 = arith.constant 0 : index
    %c0_196 = arith.constant 0 : index
    %c0_197 = arith.constant 0 : index
    %155 = vector.load %arg5[%c0_195, %c0_196, %c0_197] : memref<18x18x128xf32, #tpu.memory_space<vmem>>, vector<4x4x128xf32>
    %c0_198 = arith.constant 0 : index
    %c1_199 = arith.constant 1 : index
    %c0_200 = arith.constant 0 : index
    %156 = vector.load %arg5[%c0_198, %c1_199, %c0_200] : memref<18x18x128xf32, #tpu.memory_space<vmem>>, vector<4x4x128xf32>
    %c0_201 = arith.constant 0 : index
    %c2_202 = arith.constant 2 : index
    %c0_203 = arith.constant 0 : index
    %157 = vector.load %arg5[%c0_201, %c2_202, %c0_203] : memref<18x18x128xf32, #tpu.memory_space<vmem>>, vector<4x4x128xf32>
    %c1_204 = arith.constant 1 : index
    %c0_205 = arith.constant 0 : index
    %c0_206 = arith.constant 0 : index
    %158 = vector.load %arg5[%c1_204, %c0_205, %c0_206] : memref<18x18x128xf32, #tpu.memory_space<vmem>>, vector<4x4x128xf32>
    %c1_207 = arith.constant 1 : index
    %c1_208 = arith.constant 1 : index
    %c0_209 = arith.constant 0 : index
    %159 = vector.load %arg5[%c1_207, %c1_208, %c0_209] : memref<18x18x128xf32, #tpu.memory_space<vmem>>, vector<4x4x128xf32>
    %c1_210 = arith.constant 1 : index
    %c2_211 = arith.constant 2 : index
    %c0_212 = arith.constant 0 : index
    %160 = vector.load %arg5[%c1_210, %c2_211, %c0_212] : memref<18x18x128xf32, #tpu.memory_space<vmem>>, vector<4x4x128xf32>
    %c2_213 = arith.constant 2 : index
    %c0_214 = arith.constant 0 : index
    %c0_215 = arith.constant 0 : index
    %161 = vector.load %arg5[%c2_213, %c0_214, %c0_215] : memref<18x18x128xf32, #tpu.memory_space<vmem>>, vector<4x4x128xf32>
    %c2_216 = arith.constant 2 : index
    %c1_217 = arith.constant 1 : index
    %c0_218 = arith.constant 0 : index
    %162 = vector.load %arg5[%c2_216, %c1_217, %c0_218] : memref<18x18x128xf32, #tpu.memory_space<vmem>>, vector<4x4x128xf32>
    %c2_219 = arith.constant 2 : index
    %c2_220 = arith.constant 2 : index
    %c0_221 = arith.constant 0 : index
    %163 = vector.load %arg5[%c2_219, %c2_220, %c0_221] : memref<18x18x128xf32, #tpu.memory_space<vmem>>, vector<4x4x128xf32>
    %164 = tpu.concatenate %155, %156, %157, %158, %159, %160, %161, %162, %163 in 2 : vector<4x4x128xf32>, vector<4x4x128xf32>, vector<4x4x128xf32>, vector<4x4x128xf32>, vector<4x4x128xf32>, vector<4x4x128xf32>, vector<4x4x128xf32>, vector<4x4x128xf32>, vector<4x4x128xf32> -> vector<4x4x1152xf32>
    %165 = vector.shape_cast %164 : vector<4x4x1152xf32> to vector<16x1152xf32>
    %c4_222 = arith.constant 4 : index
    %c0_223 = arith.constant 0 : index
    %c0_224 = arith.constant 0 : index
    %166 = vector.load %arg2[%c4_222, %c0_223, %c0_224] : memref<6x1152x128xf32, #tpu.memory_space<vmem>>, vector<1x1152x128xf32>
    %167 = vector.shape_cast %166 : vector<1x1152x128xf32> to vector<1152x128xf32>
    %c4_225 = arith.constant 4 : index
    %c0_226 = arith.constant 0 : index
    %168 = vector.load %arg3[%c4_225, %c0_226] : memref<6x128xf32, #tpu.memory_space<vmem>>, vector<1x128xf32>
    %cst_227 = arith.constant dense<0.000000e+00> : vector<16x128xf32>
    %169 = tpu.matmul %165, %167, %cst_227 {dimension_numbers = #tpu.dot_dimension_numbers<[1], [0], [0], [1], [0, 0, 1, 1], [], []>} : vector<16x1152xf32>, vector<1152x128xf32>, vector<16x128xf32> -> vector<16x128xf32>
    %170 = vector.broadcast %168 : vector<1x128xf32> to vector<16x128xf32>
    %171 = arith.addf %169, %170 : vector<16x128xf32>
    %cst_228 = arith.constant 0.000000e+00 : f32
    %172 = vector.broadcast %cst_228 : f32 to vector<16x128xf32>
    %173 = arith.maximumf %171, %172 : vector<16x128xf32>
    %174 = vector.shape_cast %173 : vector<16x128xf32> to vector<4x4x128xf32>
    %cst_229 = arith.constant 0.000000e+00 : f32
    %175 = vector.broadcast %cst_229 : f32 to vector<18x18x128xf32>
    %c0_230 = arith.constant 0 : index
    %c0_231 = arith.constant 0 : index
    %c0_232 = arith.constant 0 : index
    %176 = vector.load %arg5[%c0_230, %c0_231, %c0_232] : memref<18x18x128xf32, #tpu.memory_space<vmem>>, vector<18x18x128xf32>
    tpu.vector_store %arg5[%c0_230, %c0_231, %c0_232], %175 {strides = array<i32>} : memref<18x18x128xf32, #tpu.memory_space<vmem>>, vector<18x18x128xf32>,
    %c1_233 = arith.constant 1 : index
    %c1_234 = arith.constant 1 : index
    %c0_235 = arith.constant 0 : index
    %177 = vector.load %arg5[%c1_233, %c1_234, %c0_235] : memref<18x18x128xf32, #tpu.memory_space<vmem>>, vector<4x4x128xf32>
    tpu.vector_store %arg5[%c1_233, %c1_234, %c0_235], %174 {strides = array<i32>} : memref<18x18x128xf32, #tpu.memory_space<vmem>>, vector<4x4x128xf32>,
    %c0_236 = arith.constant 0 : index
    %c0_237 = arith.constant 0 : index
    %c0_238 = arith.constant 0 : index
    %178 = vector.load %arg5[%c0_236, %c0_237, %c0_238] : memref<18x18x128xf32, #tpu.memory_space<vmem>>, vector<4x4x128xf32>
    %c0_239 = arith.constant 0 : index
    %c1_240 = arith.constant 1 : index
    %c0_241 = arith.constant 0 : index
    %179 = vector.load %arg5[%c0_239, %c1_240, %c0_241] : memref<18x18x128xf32, #tpu.memory_space<vmem>>, vector<4x4x128xf32>
    %c0_242 = arith.constant 0 : index
    %c2_243 = arith.constant 2 : index
    %c0_244 = arith.constant 0 : index
    %180 = vector.load %arg5[%c0_242, %c2_243, %c0_244] : memref<18x18x128xf32, #tpu.memory_space<vmem>>, vector<4x4x128xf32>
    %c1_245 = arith.constant 1 : index
    %c0_246 = arith.constant 0 : index
    %c0_247 = arith.constant 0 : index
    %181 = vector.load %arg5[%c1_245, %c0_246, %c0_247] : memref<18x18x128xf32, #tpu.memory_space<vmem>>, vector<4x4x128xf32>
    %c1_248 = arith.constant 1 : index
    %c1_249 = arith.constant 1 : index
    %c0_250 = arith.constant 0 : index
    %182 = vector.load %arg5[%c1_248, %c1_249, %c0_250] : memref<18x18x128xf32, #tpu.memory_space<vmem>>, vector<4x4x128xf32>
    %c1_251 = arith.constant 1 : index
    %c2_252 = arith.constant 2 : index
    %c0_253 = arith.constant 0 : index
    %183 = vector.load %arg5[%c1_251, %c2_252, %c0_253] : memref<18x18x128xf32, #tpu.memory_space<vmem>>, vector<4x4x128xf32>
    %c2_254 = arith.constant 2 : index
    %c0_255 = arith.constant 0 : index
    %c0_256 = arith.constant 0 : index
    %184 = vector.load %arg5[%c2_254, %c0_255, %c0_256] : memref<18x18x128xf32, #tpu.memory_space<vmem>>, vector<4x4x128xf32>
    %c2_257 = arith.constant 2 : index
    %c1_258 = arith.constant 1 : index
    %c0_259 = arith.constant 0 : index
    %185 = vector.load %arg5[%c2_257, %c1_258, %c0_259] : memref<18x18x128xf32, #tpu.memory_space<vmem>>, vector<4x4x128xf32>
    %c2_260 = arith.constant 2 : index
    %c2_261 = arith.constant 2 : index
    %c0_262 = arith.constant 0 : index
    %186 = vector.load %arg5[%c2_260, %c2_261, %c0_262] : memref<18x18x128xf32, #tpu.memory_space<vmem>>, vector<4x4x128xf32>
    %187 = tpu.concatenate %178, %179, %180, %181, %182, %183, %184, %185, %186 in 2 : vector<4x4x128xf32>, vector<4x4x128xf32>, vector<4x4x128xf32>, vector<4x4x128xf32>, vector<4x4x128xf32>, vector<4x4x128xf32>, vector<4x4x128xf32>, vector<4x4x128xf32>, vector<4x4x128xf32> -> vector<4x4x1152xf32>
    %188 = vector.shape_cast %187 : vector<4x4x1152xf32> to vector<16x1152xf32>
    %c5_263 = arith.constant 5 : index
    %c0_264 = arith.constant 0 : index
    %c0_265 = arith.constant 0 : index
    %189 = vector.load %arg2[%c5_263, %c0_264, %c0_265] : memref<6x1152x128xf32, #tpu.memory_space<vmem>>, vector<1x1152x128xf32>
    %190 = vector.shape_cast %189 : vector<1x1152x128xf32> to vector<1152x128xf32>
    %c5_266 = arith.constant 5 : index
    %c0_267 = arith.constant 0 : index
    %191 = vector.load %arg3[%c5_266, %c0_267] : memref<6x128xf32, #tpu.memory_space<vmem>>, vector<1x128xf32>
    %cst_268 = arith.constant dense<0.000000e+00> : vector<16x128xf32>
    %192 = tpu.matmul %188, %190, %cst_268 {dimension_numbers = #tpu.dot_dimension_numbers<[1], [0], [0], [1], [0, 0, 1, 1], [], []>} : vector<16x1152xf32>, vector<1152x128xf32>, vector<16x128xf32> -> vector<16x128xf32>
    %193 = vector.broadcast %191 : vector<1x128xf32> to vector<16x128xf32>
    %194 = arith.addf %192, %193 : vector<16x128xf32>
    %cst_269 = arith.constant 0.000000e+00 : f32
    %195 = vector.broadcast %cst_269 : f32 to vector<16x128xf32>
    %196 = arith.maximumf %194, %195 : vector<16x128xf32>
    %197 = vector.shape_cast %196 : vector<16x128xf32> to vector<4x4x128xf32>
    %cst_270 = arith.constant 0.000000e+00 : f32
    %198 = vector.broadcast %cst_270 : f32 to vector<18x18x128xf32>
    %c0_271 = arith.constant 0 : index
    %c0_272 = arith.constant 0 : index
    %c0_273 = arith.constant 0 : index
    %199 = vector.load %arg5[%c0_271, %c0_272, %c0_273] : memref<18x18x128xf32, #tpu.memory_space<vmem>>, vector<18x18x128xf32>
    tpu.vector_store %arg5[%c0_271, %c0_272, %c0_273], %198 {strides = array<i32>} : memref<18x18x128xf32, #tpu.memory_space<vmem>>, vector<18x18x128xf32>,
    %200 = vector.shape_cast %197 : vector<4x4x128xf32> to vector<2x2x4x128xf32>
    %201 = vector.extract_strided_slice %200 {offsets = [0, 0, 0, 0], sizes = [2, 1, 4, 128], strides = [1, 1, 1, 1]} : vector<2x2x4x128xf32> to vector<2x1x4x128xf32>
    %202 = vector.shape_cast %201 : vector<2x1x4x128xf32> to vector<2x4x128xf32>
    %203 = vector.extract_strided_slice %200 {offsets = [0, 1, 0, 0], sizes = [2, 1, 4, 128], strides = [1, 1, 1, 1]} : vector<2x2x4x128xf32> to vector<2x1x4x128xf32>
    %204 = vector.shape_cast %203 : vector<2x1x4x128xf32> to vector<2x4x128xf32>
    %205 = arith.maximumf %202, %204 : vector<2x4x128xf32>
    %206 = vector.extract_strided_slice %205 {offsets = [0, 0, 0], sizes = [2, 1, 128], strides = [1, 1, 1]} : vector<2x4x128xf32> to vector<2x1x128xf32>
    %207 = vector.extract_strided_slice %205 {offsets = [0, 1, 0], sizes = [2, 1, 128], strides = [1, 1, 1]} : vector<2x4x128xf32> to vector<2x1x128xf32>
    %208 = arith.maximumf %206, %207 : vector<2x1x128xf32>
    %c1_274 = arith.constant 1 : index
    %c1_275 = arith.constant 1 : index
    %c0_276 = arith.constant 0 : index
    %209 = vector.load %arg5[%c1_274, %c1_275, %c0_276] : memref<18x18x128xf32, #tpu.memory_space<vmem>>, vector<2x1x128xf32>
    tpu.vector_store %arg5[%c1_274, %c1_275, %c0_276], %208 {strides = array<i32>} : memref<18x18x128xf32, #tpu.memory_space<vmem>>, vector<2x1x128xf32>,
    %210 = vector.extract_strided_slice %205 {offsets = [0, 2, 0], sizes = [2, 1, 128], strides = [1, 1, 1]} : vector<2x4x128xf32> to vector<2x1x128xf32>
    %211 = vector.extract_strided_slice %205 {offsets = [0, 3, 0], sizes = [2, 1, 128], strides = [1, 1, 1]} : vector<2x4x128xf32> to vector<2x1x128xf32>
    %212 = arith.maximumf %210, %211 : vector<2x1x128xf32>
    %c1_277 = arith.constant 1 : index
    %c2_278 = arith.constant 2 : index
    %c0_279 = arith.constant 0 : index
    %213 = vector.load %arg5[%c1_277, %c2_278, %c0_279] : memref<18x18x128xf32, #tpu.memory_space<vmem>>, vector<2x1x128xf32>
    tpu.vector_store %arg5[%c1_277, %c2_278, %c0_279], %212 {strides = array<i32>} : memref<18x18x128xf32, #tpu.memory_space<vmem>>, vector<2x1x128xf32>,
    %c1_280 = arith.constant 1 : index
    %c1_281 = arith.constant 1 : index
    %c0_282 = arith.constant 0 : index
    %214 = vector.load %arg5[%c1_280, %c1_281, %c0_282] : memref<18x18x128xf32, #tpu.memory_space<vmem>>, vector<2x2x128xf32>
    %215 = vector.extract_strided_slice %214 {offsets = [0, 0, 0], sizes = [1, 2, 128], strides = [1, 1, 1]} : vector<2x2x128xf32> to vector<1x2x128xf32>
    %216 = vector.shape_cast %215 : vector<1x2x128xf32> to vector<2x128xf32>
    %217 = vector.extract_strided_slice %214 {offsets = [1, 0, 0], sizes = [1, 2, 128], strides = [1, 1, 1]} : vector<2x2x128xf32> to vector<1x2x128xf32>
    %218 = vector.shape_cast %217 : vector<1x2x128xf32> to vector<2x128xf32>
    %219 = arith.addf %216, %218 : vector<2x128xf32>
    %cst_283 = arith.constant dense<0.000000e+00> : vector<128xf32>
    %220 = vector.multi_reduction <add>, %219, %cst_283 [0] : vector<2x128xf32> to vector<128xf32>
    %221 = vector.shape_cast %220 : vector<128xf32> to vector<1x128xf32>
    %cst_284 = arith.constant 2.500000e-01 : f32
    %222 = vector.broadcast %cst_284 : f32 to vector<1x128xf32>
    %223 = arith.mulf %221, %222 : vector<1x128xf32>
    %c0_285 = arith.constant 0 : index
    %c0_286 = arith.constant 0 : index
    %c0_287 = arith.constant 0 : index
    %224 = vector.load %arg4[%c0_285, %c0_286, %c0_287] : memref<1x1x128xf32, #tpu.memory_space<vmem>>, vector<1x1x128xf32>
    %225 = vector.shape_cast %224 : vector<1x1x128xf32> to vector<1x128xf32>
    %226 = vector.shape_cast %223 : vector<1x128xf32> to vector<1x1x128xf32>
    tpu.vector_store %arg4[%c0_285, %c0_286, %c0_287], %226 {strides = array<i32>} : memref<1x1x128xf32, #tpu.memory_space<vmem>>, vector<1x1x128xf32>,
    return
  }
  func.func @transform_0(%arg0: i32) -> (i32, i32, i32, i32) {
    %c0_i32 = arith.constant 0 : i32
    %c0_i32_0 = arith.constant 0 : i32
    %c0_i32_1 = arith.constant 0 : i32
    %c0_i32_2 = arith.constant 0 : i32
    return %arg0, %c0_i32, %c0_i32_0, %c0_i32_1 : i32, i32, i32, i32
  }
  func.func @transform_1(%arg0: i32) -> (i32, i32, i32) {
    %c0_i32 = arith.constant 0 : i32
    %c0_i32_0 = arith.constant 0 : i32
    %c0_i32_1 = arith.constant 0 : i32
    %c0_i32_2 = arith.constant 0 : i32
    return %c0_i32, %c0_i32_0, %c0_i32_1 : i32, i32, i32
  }
  func.func @transform_2(%arg0: i32) -> (i32, i32) {
    %c0_i32 = arith.constant 0 : i32
    %c0_i32_0 = arith.constant 0 : i32
    %c0_i32_1 = arith.constant 0 : i32
    return %c0_i32, %c0_i32_0 : i32, i32
  }
  func.func @transform_3(%arg0: i32) -> (i32, i32, i32) {
    %c0_i32 = arith.constant 0 : i32
    %c0_i32_0 = arith.constant 0 : i32
    %c0_i32_1 = arith.constant 0 : i32
    return %arg0, %c0_i32, %c0_i32_0 : i32, i32, i32
  }
}

</mosaic_0001>

<bundles_post_ra>
// kernel: feature_net_forward.1
= control target key start
LH: loop header
LB: loop body
LE: loop exit
PB: predicated region body
PF: predicated region fallthrough
CT: control target
= control target key end

     0   :  { %8 = vsyncpa [#allocation4], 0  ;;  %s15630_s0 = inlined_call_operand.vmem [shape: f32[2,16,16,128], index: 0, kind: input, shape index: {}]   ;;  %s15631_s1 = inlined_call_operand.vmem [shape: f32[6,1152,128], index: 1, kind: input, shape index: {}]   ;;  %s15632_s2 = inlined_call_operand.vmem [shape: f32[6,128], index: 2, kind: input, shape index: {}]   ;;  %s15633_s3 = inlined_call_operand.hbm [shape: f32[2,1,128], index: 3, kind: output, shape index: {}]  }
   0x1   :  { %10 = vsyncpa [#allocation4 + $0x1], 0  ;;  %s10673_s12 = smov 0   ;;  %s10675_s13 = smov 0  }
   0x2   :  { %s10677_s14 = smov 0   ;;  %s10679_s15 = smov 0  }
   0x3 LB: > { %s10694_s16 = sadd.s32 4294967295, %s10648_s15   ;;  %s6946_s17 = sadd.s32 4294967294, %s10648_s15   ;;  %s10648_s15 = sphi %s10679_s15, %s15933_s15   ;;  %s10644_s14 = sphi %s10677_s14, %s15932_s14   ;;  %s10640_s13 = sphi %s10675_s13, %s15931_s13   ;;  %s10636_s12 = sphi %s10673_s12, %s15930_s12  }
   0x4   : > { %s10698_s18 = sadd.s32 1, %s10648_s15   ;;  %s91_s19 = sadd.s32 1, %s10644_s14 }
   0x5   : > { %s88_s20 = ssub.s32 %s10648_s15, %s10698_s18  ;;  %p101_p0 = scmp.ne.s32.totalorder %s10644_s14, %s10640_s13 }
   0x6   : > { %p89_p1 = scmp.eq.s32.totalorder %s88_s20, 0  ;;  %p102_p2 = scmp.eq.s32.totalorder %s10694_s16, 1 }
   0x7   : > { %p107_p3 = scmp.ne.s32.totalorder %s10640_s13, %s10636_s12  ;;  %p108_p4 = scmp.eq.s32.totalorder %s6946_s17, 1 }
   0x8   : > { %s10709_s21 = scalar_select %p89_p1, %s10644_s14, %s91_s19  }
   0x9   : > { %p10711_p5 = por %p102_p2, %p101_p0  ;;  %p10715_p6 = por %p108_p4, %p107_p3 }
   0xa   : > { %p6949_p7 = scmp.ge.s32.totalorder %s10648_s15, 1  ;;  %p140_p8 = scmp.lt.s32.totalorder %s10648_s15, 3 }
   0xc   : > { %p141_p9 = pnand %p6949_p7, %p140_p8 }
   0xe   : > { %144 = sbr.rel (%p141_p9) target bundleno = 2599 (0xa27), region = 32 }
  0x15   : > { %v10724_v0 = vld [vmem:[%s15631_s1] sm:$0xff]  ;;  %v10729_v1 = vld [vmem:[%s15631_s1 + $0x8] sm:$0xff]  ;;  %v10734_v2 = vld [vmem:[%s15631_s1 + $0x10] sm:$0xff]  ;;  %p163_p10 = scmp.lt.s32.totalorder %s10694_s16, 1  ;;  %v15634_v3 = vmov 0.0|0.0   ;;  %v15636_v6 = vmov 0.0  }
  0x16   : > { %8966 = vmatprep.subr.bf16.mxu0 %v15634_v3  ;;  %v8967_v4 = vpack.c.bf16 %v10729_v1, %v10724_v0  ;;  %v10743_v5 = vld [vmem:[%s15631_s1 + $0x18] sm:$0xff]  ;;  %200 = vst [vmem:[#allocation2] sm:$0xff] %v15636_v6  ;;  %201 = vst [vmem:[#allocation2 + $0x8] sm:$0xff] %v15636_v6  ;;  %v580_v8 = vld [vmem:[%s15631_s1 + $0x20] sm:$0xff]  ;;  %vm6868_vm0 = vcmask 1041408   ;;  %s161_s29 = sand.u32 1, %s10640_s13  }
  0x17   : > { %202 = vst [vmem:[#allocation2 + $0x10] sm:$0x3] %v15636_v6  ;;  %203 = vst [vmem:[#allocation2 + $0x18] sm:$0xff] %v15636_v6  ;;  %s164_s5 = scalar_select %p163_p10, %s10694_s16, 1  ;;  %v8970_v7 = vpack.c.bf16 %v10743_v5, %v10734_v2  ;;  %v581_v9 = vld [vmem:[%s15631_s1 + $0x28] sm:$0xff]  ;;  %v582_v11 = vld [vmem:[%s15631_s1 + $0x30] sm:$0xff] }
  0x18   : > { %204 = vst [vmem:[#allocation2 + $0x20] sm:$0xff] %v15636_v6  ;;  %205 = vst [vmem:[#allocation2 + $0x28] sm:$0x3] %v15636_v6  ;;  %8968 = vmatpush1.bf16.msra.mxu0 %v8967_v4  ;;  %v8973_v10 = vpack.c.bf16 %v581_v9, %v580_v8  ;;  %v583_v12 = vld [vmem:[%s15631_s1 + $0x38] sm:$0xff]  ;;  %v584_v15 = vld [vmem:[%s15631_s1 + $0x40] sm:$0xff]  ;;  %s7712_s30 = sshll.u32 %s10694_s16, 4 }
  0x19   : > { %206 = vst [vmem:[#allocation2 + $0x30] sm:$0xff] %v15636_v6  ;;  %207 = vst [vmem:[#allocation2 + $0x38] sm:$0xff] %v15636_v6  ;;  %8969 = vmatprep.subr.bf16.mxu0 %v15634_v3  ;;  %s7715_s10 = sshll.u32 %s164_s5, 8  ;;  %v8976_v14 = vpack.c.bf16 %v583_v12, %v582_v11  ;;  %v585_v16 = vld [vmem:[%s15631_s1 + $0x48] sm:$0xff]  ;;  %v586_v24 = vld [vmem:[%s15631_s1 + $0x50] sm:$0xff]  ;;  %s162_s4 = scalar_lea.vmem [#allocation3], %s161_s29 }
  0x1a   : > { %208 = vst [vmem:[#allocation2 + $0x40] sm:$0x3] %v15636_v6  ;;  %209 = vst [vmem:[#allocation2 + $0x48] sm:$0xff] %v15636_v6  ;;  %s10821_s26 = scalar_lea.vmem %s15630_s0, %s7715_s10  ;;  %v8979_v23 = vpack.c.bf16 %v585_v16, %v584_v15  ;;  %v587_v27 = vld [vmem:[%s15631_s1 + $0x58] sm:$0xff]  ;;  %v588_v35 = vld [vmem:[%s15631_s1 + $0x60] sm:$0xff]  ;;  %s6891_s5 = sshll.u32 %s162_s4, 4  ;;  %s15590_s5 = int_to_ptr.vmem [resolvable:$true] %s6891_s5 }
  0x1b   : > { %210 = vst [vmem:[#allocation2 + $0x50] sm:$0xff] %v15636_v6  ;;  %211 = vst [vmem:[#allocation2 + $0x58] sm:$0x3] %v15636_v6  ;;  %v10838_v20 = vld [vmem:[%s10821_s26] sm:$0xff]  ;;  %v10844_v21 = vld [vmem:[%s10821_s26 + $0x8] sm:$0xff]  ;;  %v8982_v32 = vpack.c.bf16 %v587_v27, %v586_v24  ;;  %s15588_s8 = scalar_lea.hbm %s15633_s3, %s7712_s30  ;;  %s6879_s9 = scalar_lea.sflag [#allocation4], %s161_s29 }
  0x1c   : > { %212 = vst [vmem:[#allocation2 + $0x60] sm:$0xff] %v15636_v6  ;;  %213 = vst [vmem:[#allocation2 + $0x68] sm:$0xff] %v15636_v6  ;;  %8971 = vmatpush1.bf16.msra.mxu0 %v8970_v7  ;;  %v10848_v22 = vld [vmem:[%s10821_s26 + $0x10] sm:$0xff]  ;;  %v10855_v25 = vld [vmem:[%s10821_s26 + $0x18] sm:$0xff]  ;;  %s10586_s10 = scalar_lea.vmem %s15590_s5, 16  ;;  %s10652_s16 = smov [#allocation3]  }
  0x1d   : > { %214 = vst [vmem:[#allocation2 + $0x70] sm:$0x3] %v15636_v6  ;;  %215 = vst [vmem:[#allocation2 + $0x78] sm:$0xff] %v15636_v6  ;;  %8972 = vmatprep.subr.bf16.mxu0 %v15634_v3  ;;  %v319_v13 = vld [vmem:[#allocation2 + $0x1] sm:$0xff]  ;;  %v10870_v29 = vld [vmem:[%s10821_s26 + $0x30] sm:$0xff]  ;;  %p10587_p11 = scmp.ne.s32.totalorder %s15590_s5, %s10586_s10  ;;  %s10590_s11 = sshll.u32 %s10652_s16, 4  ;;  %s10591_s11 = int_to_ptr.vmem [resolvable:$false] %s10590_s11 }
  0x1e   : > { %216 = vst [vmem:[#allocation2 + $0x80] sm:$0xff] %v15636_v6  ;;  %217 = vst [vmem:[#allocation2 + $0x88] sm:$0x3] %v15636_v6  ;;  %789 = vmatprep.mubr.f32.mxu0 %v319_v13  ;;  %v10829_v17 = vld [vmem:[#allocation2 + $0x2] sm:$0xff]  ;;  %v10835_v19 = vld [vmem:[#allocation2 + $0xa] sm:$0xff]  ;;  %p10593_p0 = scmp.lt.s32.totalorder %s15590_s5, %s10591_s11 }
  0x1f   : > { %218 = vst [vmem:[#allocation2 + $0x90] sm:$0xff] %v15636_v6  ;;  %219 = vst [vmem:[#allocation2 + $0x98] sm:$0xff] %v15636_v6  ;;  %v10833_v18 = vld [vmem:[#allocation2 + $0x9] sm:$0xff]  ;;  %v10858_v26 = vld [vmem:[%s10821_s26 + $0x20] sm:$0xff]  ;;  %p10588_p12 = pnand %p10587_p11, %p10711_p5 }
  0x20   : > { %220 = vst [vmem:[#allocation2 + $0xa0] sm:$0x3] %v15636_v6  ;;  %221 = vst [vmem:[#allocation2 + $0xa8] sm:$0xff] %v15636_v6  ;;  %8974 = vmatpush1.bf16.msra.mxu0 %v8973_v10  ;;  %v10867_v28 = vld [vmem:[%s10821_s26 + $0x28] sm:$0xff]  ;;  %v10875_v30 = vld [vmem:[%s10821_s26 + $0x38] sm:$0xff] }
  0x21   : > { %222 = vst [vmem:[#allocation2 + $0xb0] sm:$0xff] %v15636_v6  ;;  %223 = vst [vmem:[#allocation2 + $0xb8] sm:$0x3] %v15636_v6  ;;  %8975 = vmatprep.subr.bf16.mxu0 %v15634_v3  ;;  %v10879_v31 = vld [vmem:[%s10821_s26 + $0x40] sm:$0xff]  ;;  %v10883_v33 = vld [vmem:[%s10821_s26 + $0x48] sm:$0xff]  ;;  %p10589_p13 = pneg %p10588_p12 }
  0x22   : > { %224 = vst [vmem:[#allocation2 + $0xc0] sm:$0xff] %v15636_v6  ;;  %225 = vst [vmem:[#allocation2 + $0xc8] sm:$0xff] %v15636_v6  ;;  %v10886_v34 = vld [vmem:[%s10821_s26 + $0x50] sm:$0xff]  ;;  %v589_v36 = vld [vmem:[%s15631_s1 + $0x68] sm:$0xff] }
  0x23   : > { %226 = vst [vmem:[#allocation2 + $0xd0] sm:$0x3] %v15636_v6  ;;  %227 = vst [vmem:[#allocation2 + $0xd8] sm:$0xff] %v15636_v6  ;;  %v10902_v39 = vld [vmem:[%s10821_s26 + $0x58] sm:$0xff]  ;;  %v10906_v40 = vld [vmem:[%s10821_s26 + $0x60] sm:$0xff]  ;;  %v8985_v41 = vpack.c.bf16 %v589_v36, %v588_v35 }
  0x24   : > { %228 = vst [vmem:[#allocation2 + $0xe0] sm:$0xff] %v15636_v6  ;;  %229 = vst [vmem:[#allocation2 + $0xe8] sm:$0x3] %v15636_v6  ;;  %8977 = vmatpush1.bf16.msra.mxu0 %v8976_v14  ;;  %v590_v43 = vld [vmem:[%s15631_s1 + $0x70] sm:$0xff]  ;;  %v591_v44 = vld [vmem:[%s15631_s1 + $0x78] sm:$0xff] }
  0x25   : > { %230 = vst [vmem:[#allocation2 + $0xf0] sm:$0xff] %v15636_v6  ;;  %231 = vst [vmem:[#allocation2 + $0xf8] sm:$0xff] %v15636_v6  ;;  %8978 = vmatprep.subr.bf16.mxu0 %v15634_v3  ;;  %v10921_v45 = vld [vmem:[%s10821_s26 + $0x68] sm:$0xff]  ;;  %v10924_v46 = vld [vmem:[%s10821_s26 + $0x70] sm:$0xff]  ;;  %v8988_v47 = vpack.c.bf16 %v591_v44, %v590_v43 }
  0x26   : > { %232 = vst [vmem:[#allocation2 + $0x100] sm:$0x3] %v15636_v6  ;;  %233 = vst [vmem:[#allocation2 + $0x108] sm:$0xff] %v15636_v6  ;;  %v592_v48 = vld [vmem:[%s15631_s1 + $0x80] sm:$0xff]  ;;  %v593_v49 = vld [vmem:[%s15631_s1 + $0x88] sm:$0xff] }
  0x27   : > { %234 = vst [vmem:[#allocation2 + $0x110] sm:$0xff] %v15636_v6  ;;  %235 = vst [vmem:[#allocation2 + $0x118] sm:$0x3] %v15636_v6  ;;  %v10936_v50 = vld [vmem:[%s10821_s26 + $0x78] sm:$0xff]  ;;  %v10940_v51 = vld [vmem:[%s10821_s26 + $0x80] sm:$0xff]  ;;  %v8991_v52 = vpack.c.bf16 %v593_v49, %v592_v48 }
  0x28   : > { %236 = vst [vmem:[#allocation2 + $0x120] sm:$0xff] %v15636_v6  ;;  %237 = vst [vmem:[#allocation2 + $0x128] sm:$0xff] %v15636_v6  ;;  %8980 = vmatpush1.bf16.msra.mxu0 %v8979_v23  ;;  %v594_v53 = vld [vmem:[%s15631_s1 + $0x90] sm:$0xff]  ;;  %v10947_v54 = vld [vmem:[%s10821_s26 + $0x88] sm:$0xff] }
  0x29   : > { %238 = vst [vmem:[#allocation2 + $0x130] sm:$0x3] %v15636_v6  ;;  %239 = vst [vmem:[#allocation2 + $0x138] sm:$0xff] %v15636_v6  ;;  %8981 = vmatprep.subr.bf16.mxu0 %v15634_v3  ;;  %v10950_v55 = vld [vmem:[%s10821_s26 + $0x90] sm:$0xff]  ;;  %v595_v56 = vld [vmem:[%s15631_s1 + $0x98] sm:$0xff] }
  0x2a   : > { %240 = vst [vmem:[#allocation2 + $0x140] sm:$0xff] %v15636_v6  ;;  %241 = vst [vmem:[#allocation2 + $0x148] sm:$0x3] %v15636_v6  ;;  %v10959_v57 = vld [vmem:[%s10821_s26 + $0x98] sm:$0xff]  ;;  %v10962_v58 = vld [vmem:[%s10821_s26 + $0xa0] sm:$0xff]  ;;  %v8994_v60 = vpack.c.bf16 %v595_v56, %v594_v53 }
  0x2b   : > { %242 = vst [vmem:[#allocation2 + $0x150] sm:$0xff] %v15636_v6  ;;  %243 = vst [vmem:[#allocation2 + $0x158] sm:$0xff] %v15636_v6  ;;  %v10967_v59 = vld [vmem:[%s10821_s26 + $0xa8] sm:$0xff]  ;;  %v10971_v61 = vld [vmem:[%s10821_s26 + $0xb0] sm:$0xff] }
  0x2c   : > { %244 = vst [vmem:[#allocation2 + $0x160] sm:$0x3] %v15636_v6  ;;  %245 = vst [vmem:[#allocation2 + $0x168] sm:$0xff] %v15636_v6  ;;  %8983 = vmatpush1.bf16.msra.mxu0 %v8982_v32  ;;  %v596_v62 = vld [vmem:[%s15631_s1 + $0xa0] sm:$0xff]  ;;  %v597_v63 = vld [vmem:[%s15631_s1 + $0xa8] sm:$0xff] }
  0x2d   : > { %246 = vst [vmem:[#allocation2 + $0x170] sm:$0xff] %v15636_v6  ;;  %247 = vst [vmem:[#allocation2 + $0x178] sm:$0x3] %v15636_v6  ;;  %8984 = vmatprep.subr.bf16.mxu0 %v15634_v3  ;;  %v10982_v0 = vld [vmem:[%s10821_s26 + $0xb8] sm:$0xff]  ;;  %v10986_v1 = vld [vmem:[%s10821_s26 + $0xc0] sm:$0xff]  ;;  %v8997_v4 = vpack.c.bf16 %v597_v63, %v596_v62 }
  0x2e   : > { %248 = vst [vmem:[#allocation2 + $0x180] sm:$0xff] %v15636_v6  ;;  %249 = vst [vmem:[#allocation2 + $0x188] sm:$0xff] %v15636_v6  ;;  %v10989_v2 = vld [vmem:[%s10821_s26 + $0xc8] sm:$0xff]  ;;  %v598_v5 = vld [vmem:[%s15631_s1 + $0xb0] sm:$0xff] }
  0x2f   : > { %250 = vst [vmem:[#allocation2 + $0x190] sm:$0x3] %v15636_v6  ;;  %251 = vst [vmem:[#allocation2 + $0x198] sm:$0xff] %v15636_v6  ;;  %v599_v7 = vld [vmem:[%s15631_s1 + $0xb8] sm:$0xff]  ;;  %v11001_v8 = vld [vmem:[%s10821_s26 + $0xd0] sm:$0xff] }
  0x30   : > { %252 = vst [vmem:[#allocation2 + $0x1a0] sm:$0xff] %v15636_v6  ;;  %253 = vst [vmem:[#allocation2 + $0x1a8] sm:$0x3] %v15636_v6  ;;  %8986 = vmatpush1.bf16.msra.mxu0 %v8985_v41  ;;  %v9000_v9 = vpack.c.bf16 %v599_v7, %v598_v5  ;;  %v600_v10 = vld [vmem:[%s15631_s1 + $0xc0] sm:$0xff]  ;;  %v601_v11 = vld [vmem:[%s15631_s1 + $0xc8] sm:$0xff] }
  0x31   : > { %1882 = vst [vmem:[#allocation2] sm:$0xff] %v15636_v6  ;;  %1883 = vst [vmem:[#allocation2 + $0x8] sm:$0xff] %v15636_v6  ;;  %8987 = vmatprep.subr.bf16.mxu0 %v15634_v3  ;;  %v11012_v12 = vld [vmem:[%s10821_s26 + $0xd8] sm:$0xff]  ;;  %v9003_v13 = vpack.c.bf16 %v601_v11, %v600_v10  ;;  %v602_v14 = vld [vmem:[%s15631_s1 + $0xd0] sm:$0xff] }
  0x32   : > { %1884 = vst [vmem:[#allocation2 + $0x10] sm:$0x3] %v15636_v6  ;;  %255 = vst [vmem:[#allocation2 + $0x19] sm:$0xff] %v10838_v20  ;;  %v603_v15 = vld [vmem:[%s15631_s1 + $0xd8] sm:$0xff]  ;;  %v11023_v16 = vld [vmem:[%s10821_s26 + $0xe0] sm:$0xff] }
  0x33   : > { %256 = vst [vmem:[#allocation2 + $0x21] sm:$0xff] %v10844_v21  ;;  %257 = vst [vmem:[#allocation2 + $0x31] sm:$0xff] %v10848_v22  ;;  %v9006_v23 = vpack.c.bf16 %v603_v15, %v602_v14  ;;  %v604_v24 = vld [vmem:[%s15631_s1 + $0xe0] sm:$0xff]  ;;  %v605_v27 = vld [vmem:[%s15631_s1 + $0xe8] sm:$0xff] }
  0x34   : > { %258 = vst [vmem:[#allocation2 + $0x39] sm:$0xff] %v10855_v25  ;;  %259 = vst [vmem:[#allocation2 + $0x49] sm:$0xff] %v10858_v26  ;;  %8989 = vmatpush1.bf16.msra.mxu0 %v8988_v47  ;;  %v11034_v32 = vld [vmem:[%s10821_s26 + $0xe8] sm:$0xff]  ;;  %v9009_v35 = vpack.c.bf16 %v605_v27, %v604_v24  ;;  %v606_v36 = vld [vmem:[%s15631_s1 + $0xf0] sm:$0xff] }
  0x35   : > { %260 = vst [vmem:[#allocation2 + $0x51] sm:$0xff] %v10867_v28  ;;  %261 = vst [vmem:[#allocation2 + $0x61] sm:$0xff] %v10870_v29  ;;  %8990 = vmatprep.subr.bf16.mxu0 %v15634_v3  ;;  %v607_v41 = vld [vmem:[%s15631_s1 + $0xf8] sm:$0xff]  ;;  %v608_v44 = vld [vmem:[%s15631_s1 + $0x100] sm:$0xff] }
  0x36   : > { %262 = vst [vmem:[#allocation2 + $0x69] sm:$0xff] %v10875_v30  ;;  %263 = vst [vmem:[#allocation2 + $0x79] sm:$0xff] %v10879_v31  ;;  %v9012_v43 = vpack.c.bf16 %v607_v41, %v606_v36  ;;  %v609_v47 = vld [vmem:[%s15631_s1 + $0x108] sm:$0xff]  ;;  %v610_v49 = vld [vmem:[%s15631_s1 + $0x110] sm:$0xff] }
  0x37   : > { %264 = vst [vmem:[#allocation2 + $0x81] sm:$0xff] %v10883_v33  ;;  %265 = vst [vmem:[#allocation2 + $0x91] sm:$0xff] %v10886_v34  ;;  %v9015_v48 = vpack.c.bf16 %v609_v47, %v608_v44  ;;  %v612_v56 = vld [vmem:[%s15631_s1 + $0x120] sm:$0xff]  ;;  %v615_v63 = vld [vmem:[%s15631_s1 + $0x138] sm:$0xff] }
  0x38   : > { %266 = vst [vmem:[#allocation2 + $0x99] sm:$0xff] %v10902_v39  ;;  %267 = vst [vmem:[#allocation2 + $0xa9] sm:$0xff] %v10906_v40  ;;  %8992 = vmatpush1.bf16.msra.mxu0 %v8991_v52  ;;  %v611_v52 = vld [vmem:[%s15631_s1 + $0x118] sm:$0xff]  ;;  %v617_v10 = vld [vmem:[%s15631_s1 + $0x148] sm:$0xff] }
  0x39   : > { %v10897_v37 = vld [vmem:[#allocation2 + $0x18] sm:$0xff]  ;;  %268 = vst [vmem:[#allocation2 + $0xb1] sm:$0xff] %v10921_v45  ;;  %269 = vst [vmem:[#allocation2 + $0xc1] sm:$0xff] %v10924_v46  ;;  %8993 = vmatprep.subr.bf16.mxu0 %v15634_v3  ;;  %v9018_v53 = vpack.c.bf16 %v611_v52, %v610_v49  ;;  %v618_v14 = vld [vmem:[%s15631_s1 + $0x150] sm:$0xff] }
  0x3a   : > { %v10899_v38 = vld [vmem:[#allocation2 + $0x1a] sm:$0xff]  ;;  %270 = vst [vmem:[#allocation2 + $0xc9] sm:$0xff] %v10936_v50  ;;  %271 = vst [vmem:[#allocation2 + $0xd9] sm:$0xff] %v10940_v51  ;;  %v11080_v7 = vld [vmem:[#allocation2 + $0x22] sm:$0xff] }
  0x3b   : > { %1885 = vst [vmem:[#allocation2 + $0x18] sm:$0xff] %v15636_v6  ;;  %v10909_v42 = vld [vmem:[#allocation2 + $0x32] sm:$0xff]  ;;  %272 = vst [vmem:[#allocation2 + $0xe1] sm:$0xff] %v10947_v54  ;;  %v620_v27 = vld [vmem:[%s15631_s1 + $0x160] sm:$0xff] }
  0x3c   : > { %8680 = vmatprep.mubr.f32.mxu1 %v10909_v42  ;;  %273 = vst [vmem:[#allocation2 + $0xf1] sm:$0xff] %v10950_v55  ;;  %15702 = vst [vmem:[#allocation6_spill] sm:$0xff] %v10962_v58  ;;  %8995 = vmatpush1.bf16.msra.mxu0 %v8994_v60  ;;  %v613_v60 = vld [vmem:[%s15631_s1 + $0x128] sm:$0xff]  ;;  %v11093_v11 = vld [vmem:[#allocation2 + $0x30] sm:$0xff] }
  0x3d   : > { %274 = vst [vmem:[#allocation2 + $0xf9] sm:$0xff] %v10959_v57  ;;  %275 = vst [vmem:[#allocation2 + $0x109] sm:$0xff] %v10962_v58  ;;  %8996 = vmatprep.subr.bf16.mxu0 %v15634_v3  ;;  %v9021_v62 = vpack.c.bf16 %v613_v60, %v612_v56  ;;  %v619_v15 = vld [vmem:[%s15631_s1 + $0x158] sm:$0xff]  ;;  %v11115_v36 = vld [vmem:[#allocation2 + $0x48] sm:$0xff] }
  0x3e   : > { %15703 = vst [vmem:[#allocation7_spill] sm:$0xff] %v10967_v59  ;;  %276 = vst [vmem:[#allocation2 + $0x111] sm:$0xff] %v10967_v59  ;;  %v9030_v24 = vpack.c.bf16 %v619_v15, %v618_v14  ;;  %v623_v44 = vld [vmem:[%s15631_s1 + $0x178] sm:$0xff]  ;;  %v11126_v47 = vld [vmem:[#allocation2 + $0x50] sm:$0xff] }
  0x3f   : > { %15704 = vst [vmem:[#allocation8_spill] sm:$0xff] %v10971_v61  ;;  %277 = vst [vmem:[#allocation2 + $0x121] sm:$0xff] %v10971_v61  ;;  %v624_v49 = vld [vmem:[%s15631_s1 + $0x180] sm:$0xff]  ;;  %v625_v52 = vld [vmem:[%s15631_s1 + $0x188] sm:$0xff] }
  0x40   : > { %15705 = vst [vmem:[#allocation9_spill] sm:$0xff] %v10982_v0  ;;  %278 = vst [vmem:[#allocation2 + $0x129] sm:$0xff] %v10982_v0  ;;  %8998 = vmatpush1.bf16.msra.mxu0 %v8997_v4  ;;  %v11078_v4 = vld [vmem:[#allocation2 + $0x20] sm:$0xff]  ;;  %v9039_v56 = vpack.c.bf16 %v625_v52, %v624_v49  ;;  %v626_v60 = vld [vmem:[%s15631_s1 + $0x190] sm:$0xff] }
  0x41   : > { %15706 = vst [vmem:[#allocation10_spill] sm:$0xff] %v10986_v1  ;;  %15707 = vst [vmem:[#allocation11_spill] sm:$0xff] %v10989_v2  ;;  %8999 = vmatprep.subr.bf16.mxu0 %v15634_v3  ;;  %v630_v14 = vld [vmem:[%s15631_s1 + $0x1b0] sm:$0xff]  ;;  %v631_v15 = vld [vmem:[%s15631_s1 + $0x1b8] sm:$0xff] }
  0x42   : > { %279 = vst [vmem:[#allocation2 + $0x139] sm:$0xff] %v10986_v1  ;;  %280 = vst [vmem:[#allocation2 + $0x141] sm:$0xff] %v10989_v2  ;;  %v635_v49 = vld [vmem:[%s15631_s1 + $0x1d8] sm:$0xff] }
  0x43   : > { %15708 = vst [vmem:[#allocation12_spill] sm:$0xff] %v11001_v8  ;;  %281 = vst [vmem:[#allocation2 + $0x151] sm:$0xff] %v11001_v8  ;;  %v11192_v52 = vld [vmem:[#allocation2 + $0x98] sm:$0xff] }
  0x44   : > { %15709 = vst [vmem:[#allocation13_spill] sm:$0xff] %v11012_v12  ;;  %9001 = vmatpush1.bf16.msra.mxu0 %v9000_v9  ;;  %282 = vst [vmem:[#allocation2 + $0x159] sm:$0xff] %v11012_v12  ;;  %v616_v9 = vld [vmem:[%s15631_s1 + $0x140] sm:$0xff] }
  0x45   : > { %9002 = vmatprep.subr.bf16.mxu0 %v15634_v3  ;;  %15710 = vst [vmem:[#allocation14_spill] sm:$0xff] %v11023_v16  ;;  %283 = vst [vmem:[#allocation2 + $0x169] sm:$0xff] %v11023_v16 }
  0x46   : > { %15711 = vst [vmem:[#allocation15_spill] sm:$0xff] %v11034_v32  ;;  %284 = vst [vmem:[#allocation2 + $0x171] sm:$0xff] %v11034_v32 }
  0x47   : > { %1887 = vst [vmem:[#allocation2 + $0x28] sm:$0x3] %v15636_v6  ;;  %1886 = vst [vmem:[#allocation2 + $0x20] sm:$0xff] %v15636_v6 }
  0x48   : > { %9004 = vmatpush1.bf16.msra.mxu0 %v9003_v13  ;;  %v9027_v13 = vpack.c.bf16 %v617_v10, %v616_v9  ;;  %v629_v9 = vld [vmem:[%s15631_s1 + $0x1a8] sm:$0xff]  ;;  %v11159_v10 = vld [vmem:[#allocation2 + $0x78] sm:$0xff] }
  0x49   : > { %9005 = vmatprep.subr.bf16.mxu0 %v15634_v3 }
  0x4c   : > { %9007 = vmatpush1.bf16.msra.mxu0 %v9006_v23  ;;  %v11104_v23 = vld [vmem:[#allocation2 + $0x38] sm:$0xff] }
  0x4d   : > { %9008 = vmatprep.subr.bf16.mxu0 %v15634_v3 }
  0x50   : > { %9010 = vmatpush1.bf16.msra.mxu0 %v9009_v35  ;;  %v621_v35 = vld [vmem:[%s15631_s1 + $0x168] sm:$0xff] }
  0x51   : > { %9011 = vmatprep.subr.bf16.mxu0 %v15634_v3  ;;  %v9033_v41 = vpack.c.bf16 %v621_v35, %v620_v27  ;;  %v9048_v27 = vpack.c.bf16 %v631_v15, %v630_v14  ;;  %v632_v35 = vld [vmem:[%s15631_s1 + $0x1c0] sm:$0xff]  ;;  %v11214_v14 = vld [vmem:[#allocation2 + $0xb0] sm:$0xff] }
  0x54   : > { %9013 = vmatpush1.bf16.msra.mxu0 %v9012_v43  ;;  %v622_v43 = vld [vmem:[%s15631_s1 + $0x170] sm:$0xff] }
  0x55   : > { %9014 = vmatprep.subr.bf16.mxu0 %v15634_v3 }
  0x57   : > { %790 = vmatmul.mubr.f32.vlgmr.msra.gmra.mrb[0].mxu0 %v15636_v6 }
  0x58   : > { %9016 = vmatpush1.bf16.msra.mxu0 %v9015_v48  ;;  %794 = vmatprep.mubr.f32.mxu0 %v10833_v18  ;;  %v614_v18 = vld [vmem:[%s15631_s1 + $0x130] sm:$0xff]  ;;  %v9036_v48 = vpack.c.bf16 %v623_v44, %v622_v43 }
  0x59   : > { %9017 = vmatprep.subr.bf16.mxu0 %v15634_v3  ;;  %v9024_v5 = vpack.c.bf16 %v615_v63, %v614_v18  ;;  %v11148_v18 = vld [vmem:[#allocation2 + $0x68] sm:$0xff]  ;;  %v11181_v43 = vld [vmem:[#allocation2 + $0x90] sm:$0xff] }
  0x5b   : > { %795 = vmatmul.mubr.f32.gmra.mrb[2].mxu0 %v15636_v6  ;;  %v11276_v6 = vld [vmem:[#allocation2 + $0x158] sm:$0xff] }
  0x5c   : > { %799 = vmatprep.mubr.f32.mxu0 %v10838_v20  ;;  %9019 = vmatpush1.bf16.msra.mxu0 %v9018_v53  ;;  %v11137_v53 = vld [vmem:[#allocation2 + $0x60] sm:$0xff] }
  0x5d   : > { %9020 = vmatprep.subr.bf16.mxu0 %v15634_v3 }
  0x5f   : > { %800 = vmatmul.mubr.f32.gmra.mrb[4].mxu0 %v10897_v37 }
  0x60   : > { %804 = vmatprep.mubr.f32.mxu0 %v10844_v21  ;;  %9022 = vmatpush1.bf16.msra.mxu0 %v9021_v62  ;;  %v627_v62 = vld [vmem:[%s15631_s1 + $0x198] sm:$0xff] }
  0x61   : > { %9023 = vmatprep.subr.bf16.mxu0 %v15634_v3  ;;  %v9042_v63 = vpack.c.bf16 %v627_v62, %v626_v60  ;;  %v636_v60 = vld [vmem:[%s15631_s1 + $0x1e0] sm:$0xff]  ;;  %v637_v62 = vld [vmem:[%s15631_s1 + $0x1e8] sm:$0xff] }
  0x63   : > { %805 = vmatmul.mubr.f32.gmra.mrb[6].mxu0 %v11078_v4 }
  0x64   : > { %809 = vmatprep.mubr.f32.mxu0 %v10848_v22  ;;  %9025 = vmatpush1.bf16.msra.mxu0 %v9024_v5  ;;  %v628_v5 = vld [vmem:[%s15631_s1 + $0x1a0] sm:$0xff] }
  0x65   : > { %9026 = vmatprep.subr.bf16.mxu0 %v15634_v3 }
  0x67   : > { %810 = vmatmul.mubr.f32.gmra.mrb[8].mxu0 %v11093_v11 }
  0x68   : > { %814 = vmatprep.mubr.f32.mxu0 %v10855_v25  ;;  %9028 = vmatpush1.bf16.msra.mxu0 %v9027_v13  ;;  %v9045_v13 = vpack.c.bf16 %v629_v9, %v628_v5  ;;  %v9057_v5 = vpack.c.bf16 %v637_v62, %v636_v60  ;;  %v638_v9 = vld [vmem:[%s15631_s1 + $0x1f0] sm:$0xff]  ;;  %v11252_v62 = vld [vmem:[#allocation2 + $0x120] sm:$0xff] }
  0x69   : > { %9029 = vmatprep.subr.bf16.mxu0 %v15634_v3  ;;  %v11248_v60 = vld [vmem:[#allocation2 + $0x110] sm:$0xff] }
  0x6b   : > { %815 = vmatmul.mubr.f32.gmra.mrb[10].mxu0 %v11104_v23 }
  0x6c   : > { %819 = vmatprep.mubr.f32.mxu0 %v10858_v26  ;;  %9031 = vmatpush1.bf16.msra.mxu0 %v9030_v24  ;;  %v11170_v24 = vld [vmem:[#allocation2 + $0x80] sm:$0xff] }
  0x6d   : > { %9032 = vmatprep.subr.bf16.mxu0 %v15634_v3 }
  0x6f   : > { %820 = vmatmul.mubr.f32.gmra.mrb[12].mxu0 %v11115_v36 }
  0x70   : > { %824 = vmatprep.mubr.f32.mxu0 %v10867_v28  ;;  %9034 = vmatpush1.bf16.msra.mxu0 %v9033_v41  ;;  %v633_v41 = vld [vmem:[%s15631_s1 + $0x1c8] sm:$0xff] }
  0x71   : > { %9035 = vmatprep.subr.bf16.mxu0 %v15634_v3  ;;  %v9051_v44 = vpack.c.bf16 %v633_v41, %v632_v35  ;;  %v11224_v35 = vld [vmem:[#allocation2 + $0xc8] sm:$0xff]  ;;  %v11228_v41 = vld [vmem:[#allocation2 + $0xd8] sm:$0xff] }
  0x73   : > { %825 = vmatmul.mubr.f32.gmra.mrb[14].mxu0 %v11126_v47 }
  0x74   : > { %829 = vmatprep.mubr.f32.mxu0 %v10870_v29  ;;  %9037 = vmatpush1.bf16.msra.mxu0 %v9036_v48  ;;  %v634_v48 = vld [vmem:[%s15631_s1 + $0x1d0] sm:$0xff] }
  0x75   : > { %9038 = vmatprep.subr.bf16.mxu0 %v15634_v3 }
  0x77   : > { %830 = vmatmul.mubr.f32.gmra.mrb[16].mxu0 %v11137_v53 }
  0x78   : > { %834 = vmatprep.mubr.f32.mxu0 %v10875_v30  ;;  %9040 = vmatpush1.bf16.msra.mxu0 %v9039_v56  ;;  %v9054_v56 = vpack.c.bf16 %v635_v49, %v634_v48  ;;  %v11236_v48 = vld [vmem:[#allocation2 + $0xf0] sm:$0xff]  ;;  %v11240_v49 = vld [vmem:[#allocation2 + $0xf8] sm:$0xff] }
  0x79   : > { %9041 = vmatprep.subr.bf16.mxu0 %v15634_v3 }
  0x7b   : > { %835 = vmatmul.mubr.f32.gmra.mrb[18].mxu0 %v11148_v18 }
  0x7c   : > { %839 = vmatprep.mubr.f32.mxu0 %v10879_v31  ;;  %9043 = vmatpush1.bf16.msra.mxu0 %v9042_v63  ;;  %v11203_v63 = vld [vmem:[#allocation2 + $0xa8] sm:$0xff] }
  0x7d   : > { %9044 = vmatprep.subr.bf16.mxu0 %v15634_v3 }
  0x7f   : > { %840 = vmatmul.mubr.f32.gmra.mrb[20].mxu0 %v11159_v10 }
  0x80   : > { %844 = vmatprep.mubr.f32.mxu0 %v10883_v33  ;;  %9046 = vmatpush1.bf16.msra.mxu0 %v9045_v13  ;;  %v639_v13 = vld [vmem:[%s15631_s1 + $0x1f8] sm:$0xff] }
  0x81   : > { %9047 = vmatprep.subr.bf16.mxu0 %v15634_v3  ;;  %v9060_v15 = vpack.c.bf16 %v639_v13, %v638_v9  ;;  %v11260_v9 = vld [vmem:[#allocation2 + $0x138] sm:$0xff]  ;;  %v11264_v13 = vld [vmem:[#allocation2 + $0x140] sm:$0xff] }
  0x83   : > { %845 = vmatmul.mubr.f32.gmra.mrb[22].mxu0 %v11170_v24 }
  0x84   : > { %849 = vmatprep.mubr.f32.mxu0 %v10886_v34  ;;  %9049 = vmatpush1.bf16.msra.mxu0 %v9048_v27  ;;  %v11219_v27 = vld [vmem:[#allocation2 + $0xc0] sm:$0xff] }
  0x85   : > { %9050 = vmatprep.subr.bf16.mxu0 %v15634_v3 }
  0x87   : > { %850 = vmatmul.mubr.f32.gmra.mrb[24].mxu0 %v11181_v43 }
  0x88   : > { %854 = vmatprep.mubr.f32.mxu0 %v10902_v39  ;;  %9052 = vmatpush1.bf16.msra.mxu0 %v9051_v44  ;;  %v11232_v44 = vld [vmem:[#allocation2 + $0xe0] sm:$0xff] }
  0x89   : > { %9053 = vmatprep.subr.bf16.mxu0 %v15634_v3 }
  0x8b   : > { %855 = vmatmul.mubr.f32.gmra.mrb[26].mxu0 %v11192_v52 }
  0x8c   : > { %859 = vmatprep.mubr.f32.mxu0 %v10906_v40  ;;  %9055 = vmatpush1.bf16.msra.mxu0 %v9054_v56  ;;  %v11244_v56 = vld [vmem:[#allocation2 + $0x108] sm:$0xff] }
  0x8d   : > { %9056 = vmatprep.subr.bf16.mxu0 %v15634_v3 }
  0x8f   : > { %860 = vmatmul.mubr.f32.gmra.mrb[28].mxu0 %v11203_v63 }
  0x90   : > { %864 = vmatprep.mubr.f32.mxu0 %v10921_v45  ;;  %9058 = vmatpush1.bf16.msra.mxu0 %v9057_v5  ;;  %v11256_v5 = vld [vmem:[#allocation2 + $0x128] sm:$0xff] }
  0x91   : > { %9059 = vmatprep.subr.bf16.mxu0 %v15634_v3 }
  0x93   : > { %865 = vmatmul.mubr.f32.gmra.mrb[30].mxu0 %v11214_v14 }
  0x94   : > { %869 = vmatprep.mubr.f32.mxu0 %v10924_v46  ;;  %9061 = vmatpush1.bf16.msra.mxu0 %v9060_v15  ;;  %v11268_v15 = vld [vmem:[#allocation2 + $0x150] sm:$0xff] }
  0x95   : > { %9062 = vmatprep.subr.bf16.mxu0 %v15634_v3  ;;  %v11271_v3 = vld [vmem:[%s10821_s26 + $0xf0] sm:$0xff] }
  0x96   : > { %15712 = vst [vmem:[#allocation16_spill] sm:$0xff] %v11271_v3  ;;  %285 = vst [vmem:[#allocation2 + $0x181] sm:$0xff] %v11271_v3  ;;  %v11288_v3 = vld [vmem:[#allocation2 + $0x170] sm:$0xff] }
  0x97   : > { %870 = vmatmul.mubr.f32.gmra.mrb[32].mxu0 %v11219_v27 }
  0x98   : > { %874 = vmatprep.mubr.f32.mxu0 %v10936_v50 }
  0x9b   : > { %875 = vmatmul.mubr.f32.gmra.mrb[34].mxu0 %v11224_v35 }
  0x9c   : > { %879 = vmatprep.mubr.f32.mxu0 %v10940_v51 }
  0x9f   : > { %880 = vmatmul.mubr.f32.gmra.mrb[36].mxu0 %v11228_v41 }
  0xa0   : > { %884 = vmatprep.mubr.f32.mxu0 %v10947_v54 }
  0xa3   : > { %885 = vmatmul.mubr.f32.gmra.mrb[38].mxu0 %v11232_v44 }
  0xa4   : > { %889 = vmatprep.mubr.f32.mxu0 %v10950_v55 }
  0xa7   : > { %890 = vmatmul.mubr.f32.gmra.mrb[40].mxu0 %v11236_v48 }
  0xa8   : > { %894 = vmatprep.mubr.f32.mxu0 %v10959_v57 }
  0xab   : > { %895 = vmatmul.mubr.f32.gmra.mrb[42].mxu0 %v11240_v49 }
  0xac   : > { %899 = vmatprep.mubr.f32.mxu0 %v10962_v58 }
  0xaf   : > { %900 = vmatmul.mubr.f32.gmra.mrb[44].mxu0 %v11244_v56 }
  0xb0   : > { %904 = vmatprep.mubr.f32.mxu0 %v10967_v59  ;;  %v643_v59 = vld [vmem:[%s15631_s1 + $0x218] sm:$0xff] }
  0xb3   : > { %905 = vmatmul.mubr.f32.gmra.mrb[46].mxu0 %v11248_v60 }
  0xb4   : > { %909 = vmatprep.mubr.f32.mxu0 %v10971_v61  ;;  %v642_v61 = vld [vmem:[%s15631_s1 + $0x210] sm:$0xff] }
  0xb5   : > { %v9066_v58 = vpack.c.bf16 %v643_v59, %v642_v61  ;;  %v646_v59 = vld [vmem:[%s15631_s1 + $0x230] sm:$0xff]  ;;  %v647_v61 = vld [vmem:[%s15631_s1 + $0x238] sm:$0xff] }
  0xb7   : > { %910 = vmatmul.mubr.f32.gmra.mrb[48].mxu0 %v11252_v62 }
  0xb8   : > { %914 = vmatprep.mubr.f32.mxu0 %v10982_v0 }
  0xbb   : > { %915 = vmatmul.mubr.f32.gmra.mrb[50].mxu0 %v11256_v5 }
  0xbc   : > { %919 = vmatprep.mubr.f32.mxu0 %v10986_v1  ;;  %v11279_v1 = vld [vmem:[%s10821_s26 + $0xf8] sm:$0xff]  ;;  %s10592_s26 = scalar_lea.vmem %s10591_s11, 32 }
  0xbd   : > { %15713 = vst [vmem:[#allocation17_spill] sm:$0xff] %v11279_v1  ;;  %286 = vst [vmem:[#allocation2 + $0x189] sm:$0xff] %v11279_v1  ;;  %v641_v1 = vld [vmem:[%s15631_s1 + $0x208] sm:$0xff]  ;;  %p10594_p1 = scmp.lt.s32.totalorder %s10592_s26, %s10586_s10 }
  0xbf   : > { %920 = vmatmul.mubr.f32.gmra.mrb[52].mxu0 %v11260_v9  ;;  %p10595_p2 = por %p10594_p1, %p10593_p0 }
  0xc0   : > { %924 = vmatprep.mubr.f32.mxu0 %v10989_v2  ;;  %v11296_v2 = vld [vmem:[#allocation2 + $0x180] sm:$0xff] }
  0xc1   : > { %15714 = vst [vmem:[#allocation18_spill] sm:$0xff] %v11296_v2  ;;  %p10596_p3 = pnand %p10595_p2, %p10589_p13 }
  0xc3   : > { %925 = vmatmul.mubr.f32.gmra.mrb[54].mxu0 %v11264_v13 }
  0xc4   : > { %929 = vmatprep.mubr.f32.mxu0 %v11001_v8  ;;  %v11284_v8 = vld [vmem:[#allocation2 + $0x168] sm:$0xff] }
  0xc5   : > { %v11298_v0 = vld [vmem:[#allocation2 + $0x182] sm:$0xff] }
  0xc7   : > { %930 = vmatmul.mubr.f32.gmra.mrb[56].mxu0 %v11268_v15 }
  0xc8   : > { %934 = vmatprep.mubr.f32.mxu0 %v11012_v12  ;;  %v640_v12 = vld [vmem:[%s15631_s1 + $0x200] sm:$0xff] }
  0xcb   : > { %935 = vmatmul.mubr.f32.gmra.mrb[58].mxu0 %v11276_v6 }
  0xcc   : > { %939 = vmatprep.mubr.f32.mxu0 %v11023_v16  ;;  %v15715_v16 = vmov 0.0  }
  0xcd   : > { %1930 = vst [vmem:[#allocation2 + $0x180] sm:$0xff] %v15715_v16  ;;  %v15716_v16 = vmov 0.0|0.0  }
  0xcf   : > { %940 = vmatmul.mubr.f32.gmra.mrb[60].mxu0 %v11284_v8 }
  0xd0   : > { %944 = vmatprep.mubr.f32.mxu0 %v11034_v32  ;;  %v9063_v32 = vpack.c.bf16 %v641_v1, %v640_v12  ;;  %v645_v1 = vld [vmem:[%s15631_s1 + $0x228] sm:$0xff] }
  0xd1   : > { %v649_v12 = vld [vmem:[%s15631_s1 + $0x248] sm:$0xff] }
  0xd3   : > { %945 = vmatmul.mubr.f32.gmra.mrb[62].mxu0 %v11288_v3 }
  0xd4   : > { %1014 = vmatprep.mubr.f32.mxu0 %v10897_v37  ;;  %v644_v37 = vld [vmem:[%s15631_s1 + $0x220] sm:$0xff] }
  0xd7   : > { %1015 = vmatmul.mubr.f32.vlgmr.msra.gmra.mrb[0].mxu0 %v10829_v17  ;;  %v9069_v17 = vpack.c.bf16 %v645_v1, %v644_v37  ;;  %v652_v37 = vld [vmem:[%s15631_s1 + $0x260] sm:$0xff]  ;;  %v653_v1 = vld [vmem:[%s15631_s1 + $0x268] sm:$0xff] }
  0xd8   : > { %9064 = vmatpush1.bf16.msra.mxu0 %v9063_v32  ;;  %1019 = vmatprep.mubr.f32.mxu0 %v11078_v4  ;;  %v650_v4 = vld [vmem:[%s15631_s1 + $0x250] sm:$0xff] }
  0xd9   : > { %9065 = vmatprep.subr.bf16.mxu0 %v15716_v16 }
  0xdb   : > { %1020 = vmatmul.mubr.f32.gmra.mrb[2].mxu0 %v10835_v19  ;;  %v9072_v19 = vpack.c.bf16 %v647_v61, %v646_v59  ;;  %v654_v59 = vld [vmem:[%s15631_s1 + $0x270] sm:$0xff]  ;;  %v655_v61 = vld [vmem:[%s15631_s1 + $0x278] sm:$0xff] }
  0xdc   : > { %1024 = vmatprep.mubr.f32.mxu0 %v11093_v11  ;;  %9067 = vmatpush1.bf16.msra.mxu0 %v9066_v58  ;;  %v648_v58 = vld [vmem:[%s15631_s1 + $0x240] sm:$0xff]  ;;  %v651_v11 = vld [vmem:[%s15631_s1 + $0x258] sm:$0xff] }
  0xdd   : > { %9068 = vmatprep.subr.bf16.mxu0 %v15716_v16  ;;  %v9075_v32 = vpack.c.bf16 %v649_v12, %v648_v58  ;;  %v656_v58 = vld [vmem:[%s15631_s1 + $0x280] sm:$0xff]  ;;  %v657_v12 = vld [vmem:[%s15631_s1 + $0x288] sm:$0xff] }
  0xdf   : > { %1025 = vmatmul.mubr.f32.gmra.mrb[4].mxu0 %v10899_v38 }
  0xe0   : > { %1029 = vmatprep.mubr.f32.mxu0 %v11104_v23  ;;  %9070 = vmatpush1.bf16.msra.mxu0 %v9069_v17  ;;  %v11347_v23 = vld [vmem:[#allocation2 + $0x3a] sm:$0xff]  ;;  %v11357_v17 = vld [vmem:[#allocation2 + $0x4a] sm:$0xff] }
  0xe1   : > { %9071 = vmatprep.subr.bf16.mxu0 %v15716_v16 }
  0xe3   : > { %1030 = vmatmul.mubr.f32.gmra.mrb[6].mxu0 %v11080_v7 }
  0xe4   : > { %1034 = vmatprep.mubr.f32.mxu0 %v11115_v36  ;;  %9073 = vmatpush1.bf16.msra.mxu0 %v9072_v19  ;;  %v9078_v36 = vpack.c.bf16 %v651_v11, %v650_v4  ;;  %v11369_v19 = vld [vmem:[#allocation2 + $0x52] sm:$0xff] }
  0xe5   : > { %9074 = vmatprep.subr.bf16.mxu0 %v15716_v16  ;;  %v658_v4 = vld [vmem:[%s15631_s1 + $0x290] sm:$0xff]  ;;  %v659_v11 = vld [vmem:[%s15631_s1 + $0x298] sm:$0xff] }
  0xe7   : > { %1035 = vmatmul.mubr.f32.gmra.mrb[8].mxu0 %v10909_v42 }
  0xe8   : > { %1039 = vmatprep.mubr.f32.mxu0 %v11126_v47  ;;  %9076 = vmatpush1.bf16.msra.mxu0 %v9075_v32  ;;  %v9081_v47 = vpack.c.bf16 %v653_v1, %v652_v37  ;;  %v11379_v32 = vld [vmem:[#allocation2 + $0x62] sm:$0xff] }
  0xe9   : > { %9077 = vmatprep.subr.bf16.mxu0 %v15716_v16  ;;  %v660_v37 = vld [vmem:[%s15631_s1 + $0x2a0] sm:$0xff]  ;;  %v661_v1 = vld [vmem:[%s15631_s1 + $0x2a8] sm:$0xff] }
  0xeb   : > { %1040 = vmatmul.mubr.f32.gmra.mrb[10].mxu0 %v11347_v23 }
  0xec   : > { %1044 = vmatprep.mubr.f32.mxu0 %v11137_v53  ;;  %9079 = vmatpush1.bf16.msra.mxu0 %v9078_v36  ;;  %v9084_v53 = vpack.c.bf16 %v655_v61, %v654_v59  ;;  %v11391_v36 = vld [vmem:[#allocation2 + $0x6a] sm:$0xff]  ;;  %v663_v61 = vld [vmem:[%s15631_s1 + $0x2b8] sm:$0xff] }
  0xed   : > { %9080 = vmatprep.subr.bf16.mxu0 %v15716_v16  ;;  %v662_v59 = vld [vmem:[%s15631_s1 + $0x2b0] sm:$0xff] }
  0xef   : > { %1045 = vmatmul.mubr.f32.gmra.mrb[12].mxu0 %v11357_v17 }
  0xf0   : > { %1049 = vmatprep.mubr.f32.mxu0 %v11148_v18  ;;  %9082 = vmatpush1.bf16.msra.mxu0 %v9081_v47  ;;  %v9087_v18 = vpack.c.bf16 %v657_v12, %v656_v58  ;;  %v11401_v47 = vld [vmem:[#allocation2 + $0x7a] sm:$0xff]  ;;  %v665_v12 = vld [vmem:[%s15631_s1 + $0x2c8] sm:$0xff] }
  0xf1   : > { %9083 = vmatprep.subr.bf16.mxu0 %v15716_v16  ;;  %v664_v58 = vld [vmem:[%s15631_s1 + $0x2c0] sm:$0xff] }
  0xf3   : > { %1050 = vmatmul.mubr.f32.gmra.mrb[14].mxu0 %v11369_v19 }
  0xf4   : > { %1054 = vmatprep.mubr.f32.mxu0 %v11159_v10  ;;  %9085 = vmatpush1.bf16.msra.mxu0 %v9084_v53  ;;  %v9090_v10 = vpack.c.bf16 %v659_v11, %v658_v4  ;;  %v11413_v53 = vld [vmem:[#allocation2 + $0x82] sm:$0xff]  ;;  %v666_v4 = vld [vmem:[%s15631_s1 + $0x2d0] sm:$0xff]  ;;  %v667_v11 = vld [vmem:[%s15631_s1 + $0x2d8] sm:$0xff] }
  0xf5   : > { %9086 = vmatprep.subr.bf16.mxu0 %v15716_v16 }
  0xf7   : > { %1055 = vmatmul.mubr.f32.gmra.mrb[16].mxu0 %v11379_v32 }
  0xf8   : > { %1059 = vmatprep.mubr.f32.mxu0 %v11170_v24  ;;  %9088 = vmatpush1.bf16.msra.mxu0 %v9087_v18  ;;  %v9093_v24 = vpack.c.bf16 %v661_v1, %v660_v37  ;;  %v11423_v18 = vld [vmem:[#allocation2 + $0x92] sm:$0xff]  ;;  %v668_v37 = vld [vmem:[%s15631_s1 + $0x2e0] sm:$0xff]  ;;  %v669_v1 = vld [vmem:[%s15631_s1 + $0x2e8] sm:$0xff] }
  0xf9   : > { %9089 = vmatprep.subr.bf16.mxu0 %v15716_v16 }
  0xfb   : > { %1060 = vmatmul.mubr.f32.gmra.mrb[18].mxu0 %v11391_v36 }
  0xfc   : > { %1064 = vmatprep.mubr.f32.mxu0 %v11181_v43  ;;  %9091 = vmatpush1.bf16.msra.mxu0 %v9090_v10  ;;  %v9096_v43 = vpack.c.bf16 %v663_v61, %v662_v59  ;;  %v11435_v10 = vld [vmem:[#allocation2 + $0x9a] sm:$0xff]  ;;  %v670_v59 = vld [vmem:[%s15631_s1 + $0x2f0] sm:$0xff] }
  0xfd   : > { %9092 = vmatprep.subr.bf16.mxu0 %v15716_v16  ;;  %v671_v61 = vld [vmem:[%s15631_s1 + $0x2f8] sm:$0xff] }
  0xff   : > { %1065 = vmatmul.mubr.f32.gmra.mrb[20].mxu0 %v11401_v47 }
 0x100   : > { %1069 = vmatprep.mubr.f32.mxu0 %v11192_v52  ;;  %9094 = vmatpush1.bf16.msra.mxu0 %v9093_v24  ;;  %v9099_v52 = vpack.c.bf16 %v665_v12, %v664_v58  ;;  %v11445_v24 = vld [vmem:[#allocation2 + $0xaa] sm:$0xff]  ;;  %v11461_v58 = vld [vmem:[#allocation2 + $0xc2] sm:$0xff]  ;;  %v11470_v12 = vld [vmem:[#allocation2 + $0xda] sm:$0xff] }
 0x101   : > { %9095 = vmatprep.subr.bf16.mxu0 %v15716_v16 }
 0x103   : > { %1070 = vmatmul.mubr.f32.gmra.mrb[22].mxu0 %v11413_v53 }
 0x104   : > { %1074 = vmatprep.mubr.f32.mxu0 %v11203_v63  ;;  %9097 = vmatpush1.bf16.msra.mxu0 %v9096_v43  ;;  %v9102_v63 = vpack.c.bf16 %v667_v11, %v666_v4  ;;  %v11457_v43 = vld [vmem:[#allocation2 + $0xb2] sm:$0xff] }
 0x105   : > { %9098 = vmatprep.subr.bf16.mxu0 %v15716_v16  ;;  %v707_v11 = vld [vmem:[%s15631_s1 + $0x418] sm:$0xff] }
 0x107   : > { %1075 = vmatmul.mubr.f32.gmra.mrb[24].mxu0 %v11423_v18 }
 0x108   : > { %1079 = vmatprep.mubr.f32.mxu0 %v11214_v14  ;;  %9100 = vmatpush1.bf16.msra.mxu0 %v9099_v52  ;;  %v9105_v14 = vpack.c.bf16 %v669_v1, %v668_v37  ;;  %v11478_v52 = vld [vmem:[#allocation2 + $0xf2] sm:$0xff]  ;;  %v11514_v37 = vld [vmem:[#allocation2 + $0x13a] sm:$0xff]  ;;  %v709_v1 = vld [vmem:[%s15631_s1 + $0x428] sm:$0xff] }
 0x109   : > { %9101 = vmatprep.subr.bf16.mxu0 %v15716_v16 }
 0x10b   : > { %1080 = vmatmul.mubr.f32.gmra.mrb[26].mxu0 %v11435_v10 }
 0x10c   : > { %1084 = vmatprep.mubr.f32.mxu0 %v11219_v27  ;;  %9103 = vmatpush1.bf16.msra.mxu0 %v9102_v63  ;;  %v9108_v27 = vpack.c.bf16 %v671_v61, %v670_v59  ;;  %v11525_v59 = vld [vmem:[#allocation2 + $0x142] sm:$0xff]  ;;  %v711_v61 = vld [vmem:[%s15631_s1 + $0x438] sm:$0xff] }
 0x10d   : > { %9104 = vmatprep.subr.bf16.mxu0 %v15716_v16 }
 0x10f   : > { %1085 = vmatmul.mubr.f32.gmra.mrb[28].mxu0 %v11445_v24 }
 0x110   : > { %1089 = vmatprep.mubr.f32.mxu0 %v11224_v35  ;;  %9106 = vmatpush1.bf16.msra.mxu0 %v9105_v14  ;;  %v11467_v35 = vld [vmem:[#allocation2 + $0xca] sm:$0xff] }
 0x111   : > { %9107 = vmatprep.subr.bf16.mxu0 %v15716_v16 }
 0x113   : > { %1090 = vmatmul.mubr.f32.gmra.mrb[30].mxu0 %v11457_v43 }
 0x114   : > { %1094 = vmatprep.mubr.f32.mxu0 %v11228_v41  ;;  %9109 = vmatpush1.bf16.msra.mxu0 %v9108_v27  ;;  %v11475_v41 = vld [vmem:[#allocation2 + $0xe2] sm:$0xff] }
 0x115   : > { %9110 = vmatprep.subr.bf16.mxu0 %v15716_v16 }
 0x117   : > { %1095 = vmatmul.mubr.f32.gmra.mrb[32].mxu0 %v11461_v58 }
 0x118   : > { %1099 = vmatprep.mubr.f32.mxu0 %v11232_v44  ;;  %v11483_v44 = vld [vmem:[#allocation2 + $0xfa] sm:$0xff] }
 0x11b   : > { %1100 = vmatmul.mubr.f32.gmra.mrb[34].mxu0 %v11467_v35 }
 0x11c   : > { %1104 = vmatprep.mubr.f32.mxu0 %v11236_v48  ;;  %v11486_v48 = vld [vmem:[#allocation2 + $0x10a] sm:$0xff] }
 0x11f   : > { %1105 = vmatmul.mubr.f32.gmra.mrb[36].mxu0 %v11470_v12 }
 0x120   : > { %1109 = vmatprep.mubr.f32.mxu0 %v11240_v49  ;;  %v11491_v49 = vld [vmem:[#allocation2 + $0x112] sm:$0xff] }
 0x123   : > { %1110 = vmatmul.mubr.f32.gmra.mrb[38].mxu0 %v11475_v41 }
 0x124   : > { %1114 = vmatprep.mubr.f32.mxu0 %v11244_v56  ;;  %v11494_v56 = vld [vmem:[#allocation2 + $0x122] sm:$0xff] }
 0x127   : > { %1115 = vmatmul.mubr.f32.gmra.mrb[40].mxu0 %v11478_v52 }
 0x128   : > { %1119 = vmatprep.mubr.f32.mxu0 %v11248_v60  ;;  %v704_v60 = vld [vmem:[%s15631_s1 + $0x400] sm:$0xff] }
 0x12b   : > { %1120 = vmatmul.mubr.f32.gmra.mrb[42].mxu0 %v11483_v44 }
 0x12c   : > { %1124 = vmatprep.mubr.f32.mxu0 %v11252_v62  ;;  %v705_v62 = vld [vmem:[%s15631_s1 + $0x408] sm:$0xff] }
 0x12d   : > { %v9158_v4 = vpack.c.bf16 %v705_v62, %v704_v60  ;;  %v11534_v60 = vld [vmem:[#allocation2 + $0x152] sm:$0xff]  ;;  %v713_v62 = vld [vmem:[%s15631_s1 + $0x448] sm:$0xff] }
 0x12f   : > { %1125 = vmatmul.mubr.f32.gmra.mrb[44].mxu0 %v11486_v48  ;;  %9159 = vmatprep.subr.bf16.mxu1 %v9158_v4 }
 0x130   : > { %1129 = vmatprep.mubr.f32.mxu0 %v11256_v5  ;;  %v11505_v5 = vld [vmem:[#allocation2 + $0x12a] sm:$0xff]  ;;  %9161 = vmatpush3.bf16.msra.mxu1 %v9158_v4 }
 0x133   : > { %1130 = vmatmul.mubr.f32.gmra.mrb[46].mxu0 %v11491_v49 }
 0x134   : > { %1134 = vmatprep.mubr.f32.mxu0 %v11260_v9  ;;  %v706_v9 = vld [vmem:[%s15631_s1 + $0x410] sm:$0xff] }
 0x135   : > { %v9162_v63 = vpack.c.bf16 %v707_v11, %v706_v9  ;;  %v11545_v9 = vld [vmem:[#allocation2 + $0x15a] sm:$0xff] }
 0x136   : > { %v715_v11 = vld [vmem:[%s15631_s1 + $0x458] sm:$0xff] }
 0x137   : > { %1135 = vmatmul.mubr.f32.gmra.mrb[48].mxu0 %v11494_v56  ;;  %9163 = vmatprep.subr.bf16.mxu1 %v9162_v63 }
 0x138   : > { %1139 = vmatprep.mubr.f32.mxu0 %v11264_v13  ;;  %9165 = vmatpush3.bf16.msra.mxu1 %v9162_v63  ;;  %v708_v13 = vld [vmem:[%s15631_s1 + $0x420] sm:$0xff] }
 0x139   : > { %v9166_v14 = vpack.c.bf16 %v709_v1, %v708_v13  ;;  %v11554_v13 = vld [vmem:[#allocation2 + $0x16a] sm:$0xff] }
 0x13a   : > { %v717_v1 = vld [vmem:[%s15631_s1 + $0x468] sm:$0xff] }
 0x13b   : > { %1140 = vmatmul.mubr.f32.gmra.mrb[50].mxu0 %v11505_v5  ;;  %9167 = vmatprep.subr.bf16.mxu1 %v9166_v14 }
 0x13c   : > { %1144 = vmatprep.mubr.f32.mxu0 %v11268_v15  ;;  %9169 = vmatpush3.bf16.msra.mxu1 %v9166_v14  ;;  %v710_v15 = vld [vmem:[%s15631_s1 + $0x430] sm:$0xff]  ;;  %v11563_v14 = vld [vmem:[#allocation2 + $0x188] sm:$0xff] }
 0x13d   : > { %v9170_v27 = vpack.c.bf16 %v711_v61, %v710_v15  ;;  %15717 = vst [vmem:[#allocation19_spill] sm:$0xff] %v11563_v14  ;;  %v11566_v61 = vld [vmem:[#allocation2 + $0x18a] sm:$0xff] }
 0x13f   : > { %1145 = vmatmul.mubr.f32.gmra.mrb[52].mxu0 %v11514_v37  ;;  %9171 = vmatprep.subr.bf16.mxu1 %v9170_v27 }
 0x140   : > { %1149 = vmatprep.mubr.f32.mxu0 %v11276_v6  ;;  %9173 = vmatpush3.bf16.msra.mxu1 %v9170_v27  ;;  %v712_v6 = vld [vmem:[%s15631_s1 + $0x440] sm:$0xff]  ;;  %v11569_v27 = vld [vmem:[#allocation2 + $0x172] sm:$0xff] }
 0x141   : > { %v9174_v4 = vpack.c.bf16 %v713_v62, %v712_v6  ;;  %v718_v6 = vld [vmem:[%s15631_s1 + $0x470] sm:$0xff]  ;;  %v719_v62 = vld [vmem:[%s15631_s1 + $0x478] sm:$0xff] }
 0x143   : > { %1150 = vmatmul.mubr.f32.gmra.mrb[54].mxu0 %v11525_v59  ;;  %9175 = vmatprep.subr.bf16.mxu1 %v9174_v4 }
 0x144   : > { %1154 = vmatprep.mubr.f32.mxu0 %v11284_v8  ;;  %9177 = vmatpush3.bf16.msra.mxu1 %v9174_v4  ;;  %v714_v8 = vld [vmem:[%s15631_s1 + $0x450] sm:$0xff]  ;;  %v11577_v4 = vld [vmem:[#allocation2 + $0x198] sm:$0xff] }
 0x145   : > { %v9178_v63 = vpack.c.bf16 %v715_v11, %v714_v8  ;;  %1932 = vst [vmem:[#allocation2 + $0x190] sm:$0x3] %v11577_v4  ;;  %1931 = vst [vmem:[#allocation2 + $0x188] sm:$0xff] %v11577_v4  ;;  %v672_v8 = vld [vmem:[%s15631_s1 + $0x300] sm:$0xff]  ;;  %v673_v11 = vld [vmem:[%s15631_s1 + $0x308] sm:$0xff] }
 0x147   : > { %1155 = vmatmul.mubr.f32.gmra.mrb[56].mxu0 %v11534_v60  ;;  %9179 = vmatprep.subr.bf16.mxu1 %v9178_v63 }
 0x148   : > { %1159 = vmatprep.mubr.f32.mxu0 %v11288_v3  ;;  %9181 = vmatpush3.bf16.msra.mxu1 %v9178_v63  ;;  %v716_v3 = vld [vmem:[%s15631_s1 + $0x460] sm:$0xff]  ;;  %v9186_v63 = vpack.c.bf16 %v719_v62, %v718_v6  ;;  %v11607_v62 = vld [vmem:[#allocation2 + $0x38] sm:$0xff] }
 0x149   : > { %v9182_v15 = vpack.c.bf16 %v717_v1, %v716_v3  ;;  %v9111_v3 = vpack.c.bf16 %v673_v11, %v672_v8  ;;  %v11589_v1 = vld [vmem:[#allocation2 + $0x31] sm:$0xff]  ;;  %v676_v8 = vld [vmem:[%s15631_s1 + $0x320] sm:$0xff] }
 0x14a   : > { %v678_v11 = vld [vmem:[%s15631_s1 + $0x330] sm:$0xff] }
 0x14b   : > { %1160 = vmatmul.mubr.f32.gmra.mrb[58].mxu0 %v11545_v9  ;;  %9183 = vmatprep.subr.bf16.mxu1 %v9182_v15 }
 0x14c   : > { %1164 = vmatprep.mubr.f32.mxu0 %v11296_v2  ;;  %9185 = vmatpush3.bf16.msra.mxu1 %v9182_v15  ;;  %v11591_v15 = vld [vmem:[#allocation2 + $0x30] sm:$0xff]  ;;  %v675_v2 = vld [vmem:[%s15631_s1 + $0x318] sm:$0xff] }
 0x14d   : > { %9187 = vmatprep.subr.bf16.mxu1 %v9186_v63  ;;  %1888 = vst [vmem:[#allocation2 + $0x30] sm:$0xff] %v11577_v4 }
 0x14f   : > { %1165 = vmatmul.mubr.f32.gmra.mrb[60].mxu0 %v11554_v13 }
 0x150   : > { %1169 = vmatprep.mubr.f32.mxu0 %v11563_v14  ;;  %9189 = vmatpush3.bf16.msra.mxu1 %v9186_v63  ;;  %v674_v14 = vld [vmem:[%s15631_s1 + $0x310] sm:$0xff] }
 0x151   : > { %9190 = vmatprep.subr.bf16.mxu1 %v15716_v16  ;;  %v9114_v6 = vpack.c.bf16 %v675_v2, %v674_v14  ;;  %v11623_v14 = vld [vmem:[#allocation2 + $0x48] sm:$0xff] }
 0x153   : > { %1170 = vmatmul.mubr.f32.gmra.mrb[62].mxu0 %v11569_v27  ;;  %8681 = vmatmul.mubr.f32.vlgmr.msra.gmra.mrb[0].mxu1 %v11347_v23 }
 0x154   : > { %1239 = vmatprep.mubr.f32.mxu0 %v10899_v38  ;;  %v11603_v38 = vld [vmem:[#allocation2 + $0x39] sm:$0xff]  ;;  %8683 = vmatprep.mubr.f32.mxu1 %v11357_v17 }
 0x155   : > { %1890 = vst [vmem:[#allocation2 + $0x40] sm:$0x3] %v11577_v4  ;;  %1889 = vst [vmem:[#allocation2 + $0x38] sm:$0xff] %v11577_v4 }
 0x157   : > { %1240 = vmatmul.mubr.f32.vlgmr.msra.gmra.mrb[0].mxu0 %v10838_v20  ;;  %v677_v20 = vld [vmem:[%s15631_s1 + $0x328] sm:$0xff]  ;;  %8684 = vmatmul.mubr.f32.gmra.mrb[2].mxu1 %v11369_v19 }
 0x158   : > { %9112 = vmatpush1.bf16.msra.mxu0 %v9111_v3  ;;  %1244 = vmatprep.mubr.f32.mxu0 %v11080_v7  ;;  %v9117_v2 = vpack.c.bf16 %v677_v20, %v676_v8  ;;  %v11621_v7 = vld [vmem:[#allocation2 + $0x49] sm:$0xff]  ;;  %v11654_v8 = vld [vmem:[#allocation2 + $0x61] sm:$0xff] }
 0x159   : > { %9113 = vmatprep.subr.bf16.mxu0 %v15716_v16  ;;  %1891 = vst [vmem:[#allocation2 + $0x48] sm:$0xff] %v11577_v4  ;;  %8686 = vmatprep.mubr.f32.mxu1 %v11379_v32  ;;  %v11640_v3 = vld [vmem:[#allocation2 + $0x50] sm:$0xff]  ;;  %v11656_v20 = vld [vmem:[#allocation2 + $0x60] sm:$0xff] }
 0x15a   : > { %1894 = vst [vmem:[#allocation2 + $0x60] sm:$0xff] %v11577_v4 }
 0x15b   : > { %1245 = vmatmul.mubr.f32.gmra.mrb[2].mxu0 %v10844_v21  ;;  %v679_v21 = vld [vmem:[%s15631_s1 + $0x338] sm:$0xff]  ;;  %8687 = vmatmul.mubr.f32.gmra.mrb[4].mxu1 %v11391_v36 }
 0x15c   : > { %1249 = vmatprep.mubr.f32.mxu0 %v10909_v42  ;;  %9115 = vmatpush1.bf16.msra.mxu0 %v9114_v6  ;;  %v11635_v42 = vld [vmem:[#allocation2 + $0x51] sm:$0xff]  ;;  %v9120_v63 = vpack.c.bf16 %v679_v21, %v678_v11  ;;  %v680_v6 = vld [vmem:[%s15631_s1 + $0x340] sm:$0xff]  ;;  %v11673_v21 = vld [vmem:[#allocation2 + $0x68] sm:$0xff] }
 0x15d   : > { %9116 = vmatprep.subr.bf16.mxu0 %v15716_v16  ;;  %1893 = vst [vmem:[#allocation2 + $0x58] sm:$0x3] %v11577_v4  ;;  %1892 = vst [vmem:[#allocation2 + $0x50] sm:$0xff] %v11577_v4  ;;  %8689 = vmatprep.mubr.f32.mxu1 %v11401_v47 }
 0x15f   : > { %1250 = vmatmul.mubr.f32.gmra.mrb[4].mxu0 %v10848_v22  ;;  %v681_v22 = vld [vmem:[%s15631_s1 + $0x348] sm:$0xff]  ;;  %8690 = vmatmul.mubr.f32.gmra.mrb[6].mxu1 %v11413_v53 }
 0x160   : > { %1254 = vmatprep.mubr.f32.mxu0 %v11347_v23  ;;  %9118 = vmatpush1.bf16.msra.mxu0 %v9117_v2  ;;  %v9123_v23 = vpack.c.bf16 %v681_v22, %v680_v6  ;;  %v682_v2 = vld [vmem:[%s15631_s1 + $0x350] sm:$0xff]  ;;  %v11687_v6 = vld [vmem:[#allocation2 + $0x79] sm:$0xff] }
 0x161   : > { %9119 = vmatprep.subr.bf16.mxu0 %v15716_v16  ;;  %8692 = vmatprep.mubr.f32.mxu1 %v11423_v18  ;;  %v11689_v22 = vld [vmem:[#allocation2 + $0x78] sm:$0xff] }
 0x162   : > { %1897 = vst [vmem:[#allocation2 + $0x78] sm:$0xff] %v11577_v4 }
 0x163   : > { %1255 = vmatmul.mubr.f32.gmra.mrb[6].mxu0 %v10855_v25  ;;  %v683_v25 = vld [vmem:[%s15631_s1 + $0x358] sm:$0xff]  ;;  %8693 = vmatmul.mubr.f32.gmra.mrb[8].mxu1 %v11435_v10 }
 0x164   : > { %1259 = vmatprep.mubr.f32.mxu0 %v11357_v17  ;;  %9121 = vmatpush1.bf16.msra.mxu0 %v9120_v63  ;;  %v11668_v17 = vld [vmem:[#allocation2 + $0x69] sm:$0xff]  ;;  %v9126_v11 = vpack.c.bf16 %v683_v25, %v682_v2  ;;  %v684_v63 = vld [vmem:[%s15631_s1 + $0x360] sm:$0xff] }
 0x165   : > { %9122 = vmatprep.subr.bf16.mxu0 %v15716_v16  ;;  %1896 = vst [vmem:[#allocation2 + $0x70] sm:$0x3] %v11577_v4  ;;  %1895 = vst [vmem:[#allocation2 + $0x68] sm:$0xff] %v11577_v4  ;;  %8695 = vmatprep.mubr.f32.mxu1 %v11445_v24  ;;  %v11706_v25 = vld [vmem:[#allocation2 + $0x80] sm:$0xff] }
 0x167   : > { %1260 = vmatmul.mubr.f32.gmra.mrb[8].mxu0 %v10858_v26  ;;  %v685_v26 = vld [vmem:[%s15631_s1 + $0x368] sm:$0xff]  ;;  %8696 = vmatmul.mubr.f32.gmra.mrb[10].mxu1 %v11457_v43 }
 0x168   : > { %1264 = vmatprep.mubr.f32.mxu0 %v11369_v19  ;;  %9124 = vmatpush1.bf16.msra.mxu0 %v9123_v23  ;;  %v9129_v19 = vpack.c.bf16 %v685_v26, %v684_v63  ;;  %v686_v23 = vld [vmem:[%s15631_s1 + $0x370] sm:$0xff] }
 0x169   : > { %9125 = vmatprep.subr.bf16.mxu0 %v15716_v16  ;;  %8698 = vmatprep.mubr.f32.mxu1 %v11461_v58  ;;  %v11720_v63 = vld [vmem:[#allocation2 + $0x91] sm:$0xff] }
 0x16a   : > { %v11722_v26 = vld [vmem:[#allocation2 + $0x90] sm:$0xff] }
 0x16b   : > { %1265 = vmatmul.mubr.f32.gmra.mrb[10].mxu0 %v10867_v28  ;;  %v687_v28 = vld [vmem:[%s15631_s1 + $0x378] sm:$0xff]  ;;  %8699 = vmatmul.mubr.f32.gmra.mrb[12].mxu1 %v11467_v35  ;;  %1900 = vst [vmem:[#allocation2 + $0x90] sm:$0xff] %v11577_v4 }
 0x16c   : > { %1269 = vmatprep.mubr.f32.mxu0 %v11379_v32  ;;  %9127 = vmatpush1.bf16.msra.mxu0 %v9126_v11  ;;  %v11701_v32 = vld [vmem:[#allocation2 + $0x81] sm:$0xff]  ;;  %v9132_v2 = vpack.c.bf16 %v687_v28, %v686_v23  ;;  %v11739_v28 = vld [vmem:[#allocation2 + $0x98] sm:$0xff] }
 0x16d   : > { %9128 = vmatprep.subr.bf16.mxu0 %v15716_v16  ;;  %1899 = vst [vmem:[#allocation2 + $0x88] sm:$0x3] %v11577_v4  ;;  %v688_v11 = vld [vmem:[%s15631_s1 + $0x380] sm:$0xff]  ;;  %1898 = vst [vmem:[#allocation2 + $0x80] sm:$0xff] %v11577_v4  ;;  %8701 = vmatprep.mubr.f32.mxu1 %v11470_v12 }
 0x16f   : > { %1270 = vmatmul.mubr.f32.gmra.mrb[12].mxu0 %v10870_v29  ;;  %v689_v29 = vld [vmem:[%s15631_s1 + $0x388] sm:$0xff]  ;;  %8702 = vmatmul.mubr.f32.gmra.mrb[14].mxu1 %v11475_v41 }
 0x170   : > { %1274 = vmatprep.mubr.f32.mxu0 %v11391_v36  ;;  %9130 = vmatpush1.bf16.msra.mxu0 %v9129_v19  ;;  %v9135_v36 = vpack.c.bf16 %v689_v29, %v688_v11  ;;  %v690_v19 = vld [vmem:[%s15631_s1 + $0x390] sm:$0xff]  ;;  %v11755_v29 = vld [vmem:[#allocation2 + $0xa8] sm:$0xff] }
 0x171   : > { %9131 = vmatprep.subr.bf16.mxu0 %v15716_v16  ;;  %8704 = vmatprep.mubr.f32.mxu1 %v11478_v52  ;;  %v11753_v11 = vld [vmem:[#allocation2 + $0xa9] sm:$0xff] }
 0x172   : > { %1903 = vst [vmem:[#allocation2 + $0xa8] sm:$0xff] %v11577_v4 }
 0x173   : > { %1275 = vmatmul.mubr.f32.gmra.mrb[14].mxu0 %v10875_v30  ;;  %v691_v30 = vld [vmem:[%s15631_s1 + $0x398] sm:$0xff]  ;;  %8705 = vmatmul.mubr.f32.gmra.mrb[16].mxu1 %v11483_v44 }
 0x174   : > { %1279 = vmatprep.mubr.f32.mxu0 %v11401_v47  ;;  %9133 = vmatpush1.bf16.msra.mxu0 %v9132_v2  ;;  %v11734_v47 = vld [vmem:[#allocation2 + $0x99] sm:$0xff]  ;;  %v9138_v23 = vpack.c.bf16 %v691_v30, %v690_v19  ;;  %v11772_v30 = vld [vmem:[#allocation2 + $0xb0] sm:$0xff] }
 0x175   : > { %9134 = vmatprep.subr.bf16.mxu0 %v15716_v16  ;;  %1902 = vst [vmem:[#allocation2 + $0xa0] sm:$0x3] %v11577_v4  ;;  %v692_v2 = vld [vmem:[%s15631_s1 + $0x3a0] sm:$0xff]  ;;  %1901 = vst [vmem:[#allocation2 + $0x98] sm:$0xff] %v11577_v4  ;;  %8707 = vmatprep.mubr.f32.mxu1 %v11486_v48 }
 0x177   : > { %1280 = vmatmul.mubr.f32.gmra.mrb[16].mxu0 %v10879_v31  ;;  %v693_v31 = vld [vmem:[%s15631_s1 + $0x3a8] sm:$0xff]  ;;  %8708 = vmatmul.mubr.f32.gmra.mrb[18].mxu1 %v11491_v49 }
 0x178   : > { %1284 = vmatprep.mubr.f32.mxu0 %v11413_v53  ;;  %9136 = vmatpush1.bf16.msra.mxu0 %v9135_v36  ;;  %v9141_v53 = vpack.c.bf16 %v693_v31, %v692_v2  ;;  %v694_v36 = vld [vmem:[%s15631_s1 + $0x3b0] sm:$0xff]  ;;  %v11786_v2 = vld [vmem:[#allocation2 + $0xc1] sm:$0xff] }
 0x179   : > { %9137 = vmatprep.subr.bf16.mxu0 %v15716_v16  ;;  %8710 = vmatprep.mubr.f32.mxu1 %v11494_v56  ;;  %v11788_v31 = vld [vmem:[#allocation2 + $0xc0] sm:$0xff] }
 0x17a   : > { %1906 = vst [vmem:[#allocation2 + $0xc0] sm:$0xff] %v11577_v4 }
 0x17b   : > { %1285 = vmatmul.mubr.f32.gmra.mrb[18].mxu0 %v10883_v33  ;;  %v695_v33 = vld [vmem:[%s15631_s1 + $0x3b8] sm:$0xff]  ;;  %8711 = vmatmul.mubr.f32.gmra.mrb[20].mxu1 %v11505_v5 }
 0x17c   : > { %1289 = vmatprep.mubr.f32.mxu0 %v11423_v18  ;;  %9139 = vmatpush1.bf16.msra.mxu0 %v9138_v23  ;;  %v11767_v18 = vld [vmem:[#allocation2 + $0xb1] sm:$0xff]  ;;  %v9144_v19 = vpack.c.bf16 %v695_v33, %v694_v36  ;;  %v696_v23 = vld [vmem:[%s15631_s1 + $0x3c0] sm:$0xff]  ;;  %v11805_v33 = vld [vmem:[#allocation2 + $0xc8] sm:$0xff] }
 0x17d   : > { %9140 = vmatprep.subr.bf16.mxu0 %v15716_v16  ;;  %1905 = vst [vmem:[#allocation2 + $0xb8] sm:$0x3] %v11577_v4  ;;  %1904 = vst [vmem:[#allocation2 + $0xb0] sm:$0xff] %v11577_v4  ;;  %8713 = vmatprep.mubr.f32.mxu1 %v11514_v37 }
 0x17f   : > { %1290 = vmatmul.mubr.f32.gmra.mrb[20].mxu0 %v10886_v34  ;;  %v697_v34 = vld [vmem:[%s15631_s1 + $0x3c8] sm:$0xff]  ;;  %8714 = vmatmul.mubr.f32.gmra.mrb[22].mxu1 %v11525_v59 }
 0x180   : > { %1294 = vmatprep.mubr.f32.mxu0 %v11435_v10  ;;  %9142 = vmatpush1.bf16.msra.mxu0 %v9141_v53  ;;  %v9147_v10 = vpack.c.bf16 %v697_v34, %v696_v23  ;;  %v698_v53 = vld [vmem:[%s15631_s1 + $0x3d0] sm:$0xff]  ;;  %v11819_v23 = vld [vmem:[#allocation2 + $0xd9] sm:$0xff] }
 0x181   : > { %9143 = vmatprep.subr.bf16.mxu0 %v15716_v16  ;;  %8716 = vmatprep.mubr.f32.mxu1 %v11534_v60  ;;  %v11821_v34 = vld [vmem:[#allocation2 + $0xd8] sm:$0xff] }
 0x182   : > { %1909 = vst [vmem:[#allocation2 + $0xd8] sm:$0xff] %v11577_v4 }
 0x183   : > { %1295 = vmatmul.mubr.f32.gmra.mrb[22].mxu0 %v10902_v39  ;;  %v699_v39 = vld [vmem:[%s15631_s1 + $0x3d8] sm:$0xff]  ;;  %8717 = vmatmul.mubr.f32.gmra.mrb[24].mxu1 %v11545_v9 }
 0x184   : > { %1299 = vmatprep.mubr.f32.mxu0 %v11445_v24  ;;  %9145 = vmatpush1.bf16.msra.mxu0 %v9144_v19  ;;  %v11800_v24 = vld [vmem:[#allocation2 + $0xc9] sm:$0xff]  ;;  %v9150_v36 = vpack.c.bf16 %v699_v39, %v698_v53  ;;  %v700_v19 = vld [vmem:[%s15631_s1 + $0x3e0] sm:$0xff] }
 0x185   : > { %9146 = vmatprep.subr.bf16.mxu0 %v15716_v16  ;;  %1908 = vst [vmem:[#allocation2 + $0xd0] sm:$0x3] %v11577_v4  ;;  %1907 = vst [vmem:[#allocation2 + $0xc8] sm:$0xff] %v11577_v4  ;;  %8719 = vmatprep.mubr.f32.mxu1 %v11554_v13  ;;  %v11838_v39 = vld [vmem:[#allocation2 + $0xe0] sm:$0xff] }
 0x187   : > { %1300 = vmatmul.mubr.f32.gmra.mrb[24].mxu0 %v10906_v40  ;;  %v701_v40 = vld [vmem:[%s15631_s1 + $0x3e8] sm:$0xff]  ;;  %8720 = vmatmul.mubr.f32.gmra.mrb[26].mxu1 %v11569_v27 }
 0x188   : > { %1304 = vmatprep.mubr.f32.mxu0 %v11457_v43  ;;  %9148 = vmatpush1.bf16.msra.mxu0 %v9147_v10  ;;  %v9153_v43 = vpack.c.bf16 %v701_v40, %v700_v19  ;;  %v702_v10 = vld [vmem:[%s15631_s1 + $0x3f0] sm:$0xff]  ;;  %v11854_v19 = vld [vmem:[#allocation2 + $0xf8] sm:$0xff] }
 0x189   : > { %9149 = vmatprep.subr.bf16.mxu0 %v15716_v16  ;;  %8722 = vmatprep.mubr.f32.mxu1 %v11298_v0  ;;  %v11880_v40 = vld [vmem:[#allocation2 + $0x129] sm:$0xff] }
 0x18a   : > { %1920 = vst [vmem:[#allocation2 + $0x130] sm:$0x3] %v11577_v4 }
 0x18b   : > { %1305 = vmatmul.mubr.f32.gmra.mrb[26].mxu0 %v10921_v45  ;;  %v703_v45 = vld [vmem:[%s15631_s1 + $0x3f8] sm:$0xff]  ;;  %8723 = vmatmul.mubr.f32.gmra.mrb[28].mxu1 %v11566_v61 }
 0x18c   : > { %1309 = vmatprep.mubr.f32.mxu0 %v11461_v58  ;;  %9151 = vmatpush1.bf16.msra.mxu0 %v9150_v36  ;;  %v11833_v58 = vld [vmem:[#allocation2 + $0xe1] sm:$0xff]  ;;  %v9156_v53 = vpack.c.bf16 %v703_v45, %v702_v10  ;;  %v11846_v36 = vld [vmem:[#allocation2 + $0xf0] sm:$0xff] }
 0x18d   : > { %9152 = vmatprep.subr.bf16.mxu0 %v15716_v16  ;;  %1911 = vst [vmem:[#allocation2 + $0xe8] sm:$0x3] %v11577_v4  ;;  %1910 = vst [vmem:[#allocation2 + $0xe0] sm:$0xff] %v11577_v4  ;;  %v15720_v10 = vld [vmem:[#allocation8_spill] sm:$0xff] }
 0x18e   : > { %v11895_v45 = vld [vmem:[#allocation2 + $0x141] sm:$0xff] }
 0x18f   : > { %1310 = vmatmul.mubr.f32.gmra.mrb[28].mxu0 %v10924_v46  ;;  %v11844_v46 = vld [vmem:[#allocation2 + $0xf1] sm:$0xff]  ;;  %1923 = vst [vmem:[#allocation2 + $0x148] sm:$0x3] %v11577_v4 }
 0x190   : > { %1314 = vmatprep.mubr.f32.mxu0 %v11467_v35  ;;  %9154 = vmatpush1.bf16.msra.mxu0 %v9153_v43  ;;  %1912 = vst [vmem:[#allocation2 + $0xf0] sm:$0xff] %v11577_v4  ;;  %v11850_v35 = vld [vmem:[#allocation2 + $0xf9] sm:$0xff] }
 0x191   : > { %9155 = vmatprep.subr.bf16.mxu0 %v15716_v16  ;;  %1914 = vst [vmem:[#allocation2 + $0x100] sm:$0x3] %v11577_v4  ;;  %1913 = vst [vmem:[#allocation2 + $0xf8] sm:$0xff] %v11577_v4  ;;  %v11891_v43 = vld [vmem:[#allocation2 + $0x138] sm:$0xff] }
 0x193   : > { %1315 = vmatmul.mubr.f32.gmra.mrb[30].mxu0 %v10936_v50  ;;  %v11859_v50 = vld [vmem:[#allocation2 + $0x109] sm:$0xff] }
 0x194   : > { %1319 = vmatprep.mubr.f32.mxu0 %v11470_v12  ;;  %9157 = vmatpush1.bf16.msra.mxu0 %v9156_v53  ;;  %v11861_v12 = vld [vmem:[#allocation2 + $0x108] sm:$0xff] }
 0x195   : > { %1915 = vst [vmem:[#allocation2 + $0x108] sm:$0xff] %v11577_v4  ;;  %v15721_v53 = vld [vmem:[#allocation9_spill] sm:$0xff] }
 0x197   : > { %1320 = vmatmul.mubr.f32.gmra.mrb[32].mxu0 %v10940_v51  ;;  %v11865_v51 = vld [vmem:[#allocation2 + $0x111] sm:$0xff] }
 0x198   : > { %1324 = vmatprep.mubr.f32.mxu0 %v11475_v41  ;;  %1917 = vst [vmem:[#allocation2 + $0x118] sm:$0x3] %v11577_v4  ;;  %v11869_v41 = vld [vmem:[#allocation2 + $0x110] sm:$0xff] }
 0x199   : > { %1916 = vst [vmem:[#allocation2 + $0x110] sm:$0xff] %v11577_v4 }
 0x19b   : > { %1325 = vmatmul.mubr.f32.gmra.mrb[34].mxu0 %v10947_v54  ;;  %v11874_v54 = vld [vmem:[#allocation2 + $0x121] sm:$0xff] }
 0x19c   : > { %1329 = vmatprep.mubr.f32.mxu0 %v11478_v52  ;;  %v11876_v52 = vld [vmem:[#allocation2 + $0x120] sm:$0xff] }
 0x19d   : > { %1918 = vst [vmem:[#allocation2 + $0x120] sm:$0xff] %v11577_v4 }
 0x19f   : > { %1330 = vmatmul.mubr.f32.gmra.mrb[36].mxu0 %v10950_v55  ;;  %v15718_v55 = vld [vmem:[#allocation6_spill] sm:$0xff] }
 0x1a0   : > { %1334 = vmatprep.mubr.f32.mxu0 %v11483_v44  ;;  %v11884_v44 = vld [vmem:[#allocation2 + $0x128] sm:$0xff] }
 0x1a1   : > { %1919 = vst [vmem:[#allocation2 + $0x128] sm:$0xff] %v11577_v4 }
 0x1a3   : > { %1335 = vmatmul.mubr.f32.gmra.mrb[38].mxu0 %v10959_v57  ;;  %v15719_v57 = vld [vmem:[#allocation7_spill] sm:$0xff] }
 0x1a4   : > { %1339 = vmatprep.mubr.f32.mxu0 %v11486_v48  ;;  %v11889_v48 = vld [vmem:[#allocation2 + $0x139] sm:$0xff] }
 0x1a5   : > { %1921 = vst [vmem:[#allocation2 + $0x138] sm:$0xff] %v11577_v4 }
 0x1a7   : > { %1340 = vmatmul.mubr.f32.gmra.mrb[40].mxu0 %v15718_v55  ;;  %v11906_v55 = vld [vmem:[#allocation2 + $0x150] sm:$0xff] }
 0x1a8   : > { %1344 = vmatprep.mubr.f32.mxu0 %v11491_v49  ;;  %v11899_v49 = vld [vmem:[#allocation2 + $0x140] sm:$0xff]  ;;  %15722 = vst [vmem:[#allocation6_spill] sm:$0xff] %v11906_v55  ;;  %v11921_v55 = vld [vmem:[#allocation2 + $0x168] sm:$0xff] }
 0x1a9   : > { %1922 = vst [vmem:[#allocation2 + $0x140] sm:$0xff] %v11577_v4  ;;  %15726 = vst [vmem:[#allocation8_spill] sm:$0xff] %v11921_v55  ;;  %v15732_v55 = vld [vmem:[#allocation15_spill] sm:$0xff] }
 0x1ab   : > { %1345 = vmatmul.mubr.f32.gmra.mrb[42].mxu0 %v15719_v57  ;;  %v15723_v57 = vld [vmem:[#allocation10_spill] sm:$0xff] }
 0x1ac   : > { %1349 = vmatprep.mubr.f32.mxu0 %v11494_v56  ;;  %v11904_v56 = vld [vmem:[#allocation2 + $0x151] sm:$0xff] }
 0x1ad   : > { %1924 = vst [vmem:[#allocation2 + $0x150] sm:$0xff] %v11577_v4 }
 0x1af   : > { %1350 = vmatmul.mubr.f32.gmra.mrb[44].mxu0 %v15720_v10  ;;  %v11910_v10 = vld [vmem:[#allocation2 + $0x159] sm:$0xff] }
 0x1b0   : > { %1354 = vmatprep.mubr.f32.mxu0 %v11505_v5  ;;  %15724 = vst [vmem:[#allocation7_spill] sm:$0xff] %v11910_v10  ;;  %1926 = vst [vmem:[#allocation2 + $0x160] sm:$0x3] %v11577_v4  ;;  %v11914_v5 = vld [vmem:[#allocation2 + $0x158] sm:$0xff] }
 0x1b1   : > { %1925 = vst [vmem:[#allocation2 + $0x158] sm:$0xff] %v11577_v4  ;;  %v11925_v10 = vld [vmem:[#allocation2 + $0x171] sm:$0xff] }
 0x1b2   : > { %15728 = vst [vmem:[#allocation9_spill] sm:$0xff] %v11925_v10  ;;  %1929 = vst [vmem:[#allocation2 + $0x178] sm:$0x3] %v11577_v4  ;;  %v575_v10 = vld [vmem:[#allocation2 + $0x1a2] sm:$0xff] }
 0x1b3   : > { %1355 = vmatmul.mubr.f32.gmra.mrb[46].mxu0 %v15721_v53  ;;  %v15725_v53 = vld [vmem:[#allocation11_spill] sm:$0xff] }
 0x1b4   : > { %1359 = vmatprep.mubr.f32.mxu0 %v11514_v37  ;;  %v11919_v37 = vld [vmem:[#allocation2 + $0x169] sm:$0xff] }
 0x1b5   : > { %1927 = vst [vmem:[#allocation2 + $0x168] sm:$0xff] %v11577_v4 }
 0x1b7   : > { %1360 = vmatmul.mubr.f32.gmra.mrb[48].mxu0 %v15723_v57  ;;  %v15727_v57 = vld [vmem:[#allocation12_spill] sm:$0xff] }
 0x1b8   : > { %1364 = vmatprep.mubr.f32.mxu0 %v11525_v59  ;;  %v11929_v59 = vld [vmem:[#allocation2 + $0x170] sm:$0xff] }
 0x1b9   : > { %15729 = vst [vmem:[#allocation10_spill] sm:$0xff] %v11929_v59  ;;  %1928 = vst [vmem:[#allocation2 + $0x170] sm:$0xff] %v11577_v4  ;;  %v15733_v59 = vld [vmem:[#allocation16_spill] sm:$0xff] }
 0x1bb   : > { %1365 = vmatmul.mubr.f32.gmra.mrb[50].mxu0 %v15725_v53  ;;  %v15730_v53 = vld [vmem:[#allocation13_spill] sm:$0xff] }
 0x1bc   : > { %1369 = vmatprep.mubr.f32.mxu0 %v11534_v60  ;;  %v15731_v60 = vld [vmem:[#allocation14_spill] sm:$0xff] }
 0x1bf   : > { %1370 = vmatmul.mubr.f32.gmra.mrb[52].mxu0 %v15727_v57  ;;  %v11938_v57 = vld [vmem:[#allocation2 + $0x199] sm:$0xff] }
 0x1c0   : > { %1374 = vmatprep.mubr.f32.mxu0 %v11545_v9  ;;  %v574_v9 = vld [vmem:[#allocation2 + $0x19a] sm:$0xff] }
 0x1c1   : > { %1933 = vst [vmem:[#allocation2 + $0x198] sm:$0xff] %v11577_v4  ;;  %8725 = vmatprep.mubr.f32.mxu1 %v574_v9  ;;  %v6957_v9 = vld [vmem:[%s15631_s1 + $0x4a0] sm:$0xff] }
 0x1c2   : > { %8726 = vmatmul.mubr.f32.gmra.mrb[30].mxu1 %v575_v10  ;;  %v6956_v10 = vld [vmem:[%s15631_s1 + $0x498] sm:$0xff] }
 0x1c3   : > { %1375 = vmatmul.mubr.f32.gmra.mrb[54].mxu0 %v15730_v53  ;;  %v11942_v53 = vld [vmem:[#allocation2 + $0x1a1] sm:$0xff] }
 0x1c4   : > { %1379 = vmatprep.mubr.f32.mxu0 %v11554_v13  ;;  %15734 = vst [vmem:[#allocation11_spill] sm:$0xff] %v11942_v53  ;;  %1935 = vst [vmem:[#allocation2 + $0x1a8] sm:$0x3] %v11577_v4  ;;  %v15735_v13 = vld [vmem:[#allocation17_spill] sm:$0xff] }
 0x1c5   : > { %1934 = vst [vmem:[#allocation2 + $0x1a0] sm:$0xff] %v11577_v4  ;;  %v6958_v53 = vld [vmem:[%s15631_s1 + $0x4a8] sm:$0xff] }
 0x1c7   : > { %1380 = vmatmul.mubr.f32.gmra.mrb[56].mxu0 %v15731_v60 }
 0x1c8   : > { %1384 = vmatprep.mubr.f32.mxu0 %v11569_v27  ;;  %v6954_v27 = vld [vmem:[%s15631_s1 + $0x488] sm:$0xff] }
 0x1cb   : > { %1385 = vmatmul.mubr.f32.gmra.mrb[58].mxu0 %v15732_v55  ;;  %v6955_v55 = vld [vmem:[%s15631_s1 + $0x490] sm:$0xff] }
 0x1cc   : > { %1389 = vmatprep.mubr.f32.mxu0 %v11298_v0  ;;  %v6953_v0 = vld [vmem:[%s15631_s1 + $0x480] sm:$0xff]  ;;  %v9194_v60 = vpack.c.bf16 %v6956_v10, %v6955_v55  ;;  %v6964_v10 = vld [vmem:[%s15631_s1 + $0x4d8] sm:$0xff] }
 0x1cd   : > { %v6961_v55 = vld [vmem:[%s15631_s1 + $0x4c0] sm:$0xff] }
 0x1cf   : > { %1390 = vmatmul.mubr.f32.gmra.mrb[60].mxu0 %v15733_v59 }
 0x1d0   : > { %1394 = vmatprep.mubr.f32.mxu0 %v11566_v61  ;;  %v9191_v61 = vpack.c.bf16 %v6954_v27, %v6953_v0  ;;  %v6960_v0 = vld [vmem:[%s15631_s1 + $0x4b8] sm:$0xff]  ;;  %v7081_v27 = vld [vmem:[%s15631_s1 + $0x880] sm:$0xff] }
 0x1d2   : > { %9192 = vmatpush1.bf16.msra.mxu1 %v9191_v61  ;;  %v6962_v61 = vld [vmem:[%s15631_s1 + $0x4c8] sm:$0xff] }
 0x1d3   : > { %1395 = vmatmul.mubr.f32.gmra.mrb[62].mxu0 %v15735_v13  ;;  %9193 = vmatprep.subr.bf16.mxu1 %v15716_v16 }
 0x1d4   : > { %1464 = vmatprep.mubr.f32.mxu0 %v11589_v1  ;;  %v9197_v1 = vpack.c.bf16 %v6958_v53, %v6957_v9 }
 0x1d6   : > { %9195 = vmatpush1.bf16.msra.mxu1 %v9194_v60  ;;  %v6966_v60 = vld [vmem:[%s15631_s1 + $0x4e8] sm:$0xff] }
 0x1d7   : > { %1465 = vmatmul.mubr.f32.vlgmr.msra.gmra.mrb[0].mxu0 %v11591_v15  ;;  %9196 = vmatprep.subr.bf16.mxu1 %v15716_v16  ;;  %v6959_v15 = vld [vmem:[%s15631_s1 + $0x4b0] sm:$0xff] }
 0x1d8   : > { %1469 = vmatprep.mubr.f32.mxu0 %v11603_v38  ;;  %v7082_v38 = vld [vmem:[%s15631_s1 + $0x888] sm:$0xff]  ;;  %v9200_v53 = vpack.c.bf16 %v6960_v0, %v6959_v15 }
 0x1da   : > { %9198 = vmatpush1.bf16.msra.mxu1 %v9197_v1 }
 0x1db   : > { %1470 = vmatmul.mubr.f32.gmra.mrb[2].mxu0 %v11607_v62  ;;  %v9382_v62 = vpack.c.bf16 %v7082_v38, %v7081_v27  ;;  %9199 = vmatprep.subr.bf16.mxu1 %v15716_v16 }
 0x1dc   : > { %1474 = vmatprep.mubr.f32.mxu0 %v11621_v7  ;;  %v9203_v7 = vpack.c.bf16 %v6962_v61, %v6961_v55  ;;  %v15736_v55 = vld [vmem:[#allocation6_spill] sm:$0xff] }
 0x1dd   : > { %9383 = vmatprep.subr.bf16.mxu0 %v9382_v62  ;;  %v7092_v61 = vld [vmem:[%s15631_s1 + $0x8d8] sm:$0xff] }
 0x1de   : > { %9385 = vmatpush3.bf16.msra.mxu0 %v9382_v62  ;;  %9201 = vmatpush1.bf16.msra.mxu1 %v9200_v53 }
 0x1df   : > { %1475 = vmatmul.mubr.f32.gmra.mrb[4].mxu0 %v11623_v14  ;;  %9202 = vmatprep.subr.bf16.mxu1 %v15716_v16  ;;  %v6963_v14 = vld [vmem:[%s15631_s1 + $0x4d0] sm:$0xff] }
 0x1e0   : > { %1479 = vmatprep.mubr.f32.mxu0 %v11635_v42  ;;  %v9206_v42 = vpack.c.bf16 %v6964_v10, %v6963_v14 }
 0x1e2   : > { %9204 = vmatpush1.bf16.msra.mxu1 %v9203_v7  ;;  %v15737_v7 = vld [vmem:[#allocation7_spill] sm:$0xff] }
 0x1e3   : > { %1480 = vmatmul.mubr.f32.gmra.mrb[6].mxu0 %v11640_v3  ;;  %9205 = vmatprep.subr.bf16.mxu1 %v15716_v16  ;;  %v6965_v3 = vld [vmem:[%s15631_s1 + $0x4e0] sm:$0xff] }
 0x1e4   : > { %1484 = vmatprep.mubr.f32.mxu0 %v11654_v8  ;;  %v9209_v9 = vpack.c.bf16 %v6966_v60, %v6965_v3  ;;  %v6967_v8 = vld [vmem:[%s15631_s1 + $0x4f0] sm:$0xff]  ;;  %v7094_v3 = vld [vmem:[%s15631_s1 + $0x8e8] sm:$0xff]  ;;  %v6985_v60 = vld [vmem:[%s15631_s1 + $0x580] sm:$0xff] }
 0x1e6   : > { %9207 = vmatpush1.bf16.msra.mxu1 %v9206_v42  ;;  %v7093_v42 = vld [vmem:[%s15631_s1 + $0x8e0] sm:$0xff] }
 0x1e7   : > { %1485 = vmatmul.mubr.f32.gmra.mrb[8].mxu0 %v11656_v20  ;;  %9208 = vmatprep.subr.bf16.mxu1 %v15716_v16  ;;  %v6968_v20 = vld [vmem:[%s15631_s1 + $0x4f8] sm:$0xff] }
 0x1e8   : > { %1489 = vmatprep.mubr.f32.mxu0 %v11668_v17  ;;  %v9212_v1 = vpack.c.bf16 %v6968_v20, %v6967_v8  ;;  %v6969_v17 = vld [vmem:[%s15631_s1 + $0x500] sm:$0xff] }
 0x1e9   : > { %v15738_v20 = vld [vmem:[#allocation8_spill] sm:$0xff] }
 0x1ea   : > { %9210 = vmatpush1.bf16.msra.mxu1 %v9209_v9  ;;  %v9406_v9 = vpack.c.bf16 %v7094_v3, %v7093_v42  ;;  %v7004_v42 = vld [vmem:[%s15631_s1 + $0x618] sm:$0xff] }
 0x1eb   : > { %1490 = vmatmul.mubr.f32.gmra.mrb[10].mxu0 %v11673_v21  ;;  %9211 = vmatprep.subr.bf16.mxu1 %v15716_v16  ;;  %v6970_v21 = vld [vmem:[%s15631_s1 + $0x508] sm:$0xff] }
 0x1ec   : > { %1494 = vmatprep.mubr.f32.mxu0 %v11687_v6  ;;  %v9215_v15 = vpack.c.bf16 %v6970_v21, %v6969_v17  ;;  %v6971_v6 = vld [vmem:[%s15631_s1 + $0x510] sm:$0xff] }
 0x1ed   : > { %v15739_v17 = vld [vmem:[#allocation9_spill] sm:$0xff] }
 0x1ee   : > { %9213 = vmatpush1.bf16.msra.mxu1 %v9212_v1  ;;  %v7095_v1 = vld [vmem:[%s15631_s1 + $0x8f0] sm:$0xff] }
 0x1ef   : > { %1495 = vmatmul.mubr.f32.gmra.mrb[12].mxu0 %v11689_v22  ;;  %9214 = vmatprep.subr.bf16.mxu1 %v15716_v16  ;;  %v6972_v22 = vld [vmem:[%s15631_s1 + $0x518] sm:$0xff] }
 0x1f0   : > { %1499 = vmatprep.mubr.f32.mxu0 %v11701_v32  ;;  %v9218_v0 = vpack.c.bf16 %v6972_v22, %v6971_v6  ;;  %v6973_v32 = vld [vmem:[%s15631_s1 + $0x520] sm:$0xff]  ;;  %v15740_v6 = vld [vmem:[#allocation10_spill] sm:$0xff] }
 0x1f2   : > { %9216 = vmatpush1.bf16.msra.mxu1 %v9215_v15 }
 0x1f3   : > { %1500 = vmatmul.mubr.f32.gmra.mrb[14].mxu0 %v11706_v25  ;;  %9217 = vmatprep.subr.bf16.mxu1 %v15716_v16  ;;  %v6974_v25 = vld [vmem:[%s15631_s1 + $0x528] sm:$0xff] }
 0x1f4   : > { %1504 = vmatprep.mubr.f32.mxu0 %v11720_v63  ;;  %v9221_v27 = vpack.c.bf16 %v6974_v25, %v6973_v32  ;;  %v6975_v63 = vld [vmem:[%s15631_s1 + $0x530] sm:$0xff]  ;;  %v6988_v32 = vld [vmem:[%s15631_s1 + $0x598] sm:$0xff] }
 0x1f6   : > { %9219 = vmatpush1.bf16.msra.mxu1 %v9218_v0  ;;  %v6987_v0 = vld [vmem:[%s15631_s1 + $0x590] sm:$0xff] }
 0x1f7   : > { %1505 = vmatmul.mubr.f32.gmra.mrb[16].mxu0 %v11722_v26  ;;  %9220 = vmatprep.subr.bf16.mxu1 %v15716_v16  ;;  %v6976_v26 = vld [vmem:[%s15631_s1 + $0x538] sm:$0xff]  ;;  %v9242_v25 = vpack.c.bf16 %v6988_v32, %v6987_v0 }
 0x1f8   : > { %1509 = vmatprep.mubr.f32.mxu0 %v11734_v47  ;;  %v9224_v38 = vpack.c.bf16 %v6976_v26, %v6975_v63  ;;  %v6977_v47 = vld [vmem:[%s15631_s1 + $0x540] sm:$0xff] }
 0x1fa   : > { %9222 = vmatpush1.bf16.msra.mxu1 %v9221_v27  ;;  %v15741_v27 = vld [vmem:[#allocation18_spill] sm:$0xff] }
 0x1fb   : > { %1510 = vmatmul.mubr.f32.gmra.mrb[18].mxu0 %v11739_v28  ;;  %9223 = vmatprep.subr.bf16.mxu1 %v15716_v16  ;;  %v6978_v28 = vld [vmem:[%s15631_s1 + $0x548] sm:$0xff] }
 0x1fc   : > { %1514 = vmatprep.mubr.f32.mxu0 %v11753_v11  ;;  %v9227_v62 = vpack.c.bf16 %v6978_v28, %v6977_v47  ;;  %v6979_v11 = vld [vmem:[%s15631_s1 + $0x550] sm:$0xff]  ;;  %v6990_v47 = vld [vmem:[%s15631_s1 + $0x5a8] sm:$0xff] }
 0x1fe   : > { %9225 = vmatpush1.bf16.msra.mxu1 %v9224_v38  ;;  %v6989_v38 = vld [vmem:[%s15631_s1 + $0x5a0] sm:$0xff] }
 0x1ff   : > { %1515 = vmatmul.mubr.f32.gmra.mrb[20].mxu0 %v11755_v29  ;;  %9226 = vmatprep.subr.bf16.mxu1 %v15716_v16  ;;  %v6980_v29 = vld [vmem:[%s15631_s1 + $0x558] sm:$0xff]  ;;  %v9245_v28 = vpack.c.bf16 %v6990_v47, %v6989_v38 }
 0x200   : > { %1519 = vmatprep.mubr.f32.mxu0 %v11767_v18  ;;  %v9230_v53 = vpack.c.bf16 %v6980_v29, %v6979_v11  ;;  %v6981_v18 = vld [vmem:[%s15631_s1 + $0x560] sm:$0xff]  ;;  %v6991_v11 = vld [vmem:[%s15631_s1 + $0x5b0] sm:$0xff]  ;;  %v6992_v29 = vld [vmem:[%s15631_s1 + $0x5b8] sm:$0xff] }
 0x202   : > { %9228 = vmatpush1.bf16.msra.mxu1 %v9227_v62 }
 0x203   : > { %1520 = vmatmul.mubr.f32.gmra.mrb[22].mxu0 %v11772_v30  ;;  %9229 = vmatprep.subr.bf16.mxu1 %v15716_v16  ;;  %v6982_v30 = vld [vmem:[%s15631_s1 + $0x568] sm:$0xff] }
 0x204   : > { %1524 = vmatprep.mubr.f32.mxu0 %v11786_v2  ;;  %v9233_v2 = vpack.c.bf16 %v6982_v30, %v6981_v18  ;;  %v6993_v18 = vld [vmem:[%s15631_s1 + $0x5c0] sm:$0xff]  ;;  %v6994_v30 = vld [vmem:[%s15631_s1 + $0x5c8] sm:$0xff] }
 0x206   : > { %9231 = vmatpush1.bf16.msra.mxu1 %v9230_v53  ;;  %v9248_v53 = vpack.c.bf16 %v6992_v29, %v6991_v11 }
 0x207   : > { %1525 = vmatmul.mubr.f32.gmra.mrb[24].mxu0 %v11788_v31  ;;  %9232 = vmatprep.subr.bf16.mxu1 %v15716_v16  ;;  %v6983_v31 = vld [vmem:[%s15631_s1 + $0x570] sm:$0xff] }
 0x208   : > { %1529 = vmatprep.mubr.f32.mxu0 %v11800_v24  ;;  %v6984_v24 = vld [vmem:[%s15631_s1 + $0x578] sm:$0xff] }
 0x20a   : > { %9234 = vmatpush1.bf16.msra.mxu1 %v9233_v2 }
 0x20b   : > { %1530 = vmatmul.mubr.f32.gmra.mrb[26].mxu0 %v11805_v33  ;;  %9235 = vmatprep.subr.bf16.mxu1 %v15716_v16  ;;  %v7083_v33 = vld [vmem:[%s15631_s1 + $0x890] sm:$0xff] }
 0x20c   : > { %1534 = vmatprep.mubr.f32.mxu0 %v11819_v23  ;;  %v7084_v23 = vld [vmem:[%s15631_s1 + $0x898] sm:$0xff] }
 0x20f   : > { %1535 = vmatmul.mubr.f32.gmra.mrb[28].mxu0 %v11821_v34  ;;  %v9236_v34 = vpack.c.bf16 %v6984_v24, %v6983_v31  ;;  %v6995_v24 = vld [vmem:[%s15631_s1 + $0x5d0] sm:$0xff] }
 0x210   : > { %1539 = vmatprep.mubr.f32.mxu0 %v11833_v58  ;;  %v9386_v58 = vpack.c.bf16 %v7084_v23, %v7083_v33  ;;  %v6996_v33 = vld [vmem:[%s15631_s1 + $0x5d8] sm:$0xff] }
 0x211   : > { %9237 = vmatpush1.bf16.msra.mxu1 %v9236_v34  ;;  %v9254_v23 = vpack.c.bf16 %v6996_v33, %v6995_v24  ;;  %v12348_v24 = vld [vmem:[%s15632_s2] ss:$0 sm:$0xff] }
 0x212   : > { %9387 = vmatprep.subr.bf16.mxu0 %v9386_v58  ;;  %9238 = vmatprep.subr.bf16.mxu1 %v15716_v16 }
 0x213   : > { %1540 = vmatmul.mubr.f32.gmra.mrb[30].mxu0 %v11838_v39  ;;  %v12114_v39 = vld [vmem:[#allocation2 + $0x2] sm:$0xff] }
 0x214   : > { %1544 = vmatprep.mubr.f32.mxu0 %v11844_v46  ;;  %9389 = vmatpush3.bf16.msra.mxu0 %v9386_v58 }
 0x217   : > { %1545 = vmatmul.mubr.f32.gmra.mrb[32].mxu0 %v11846_v36  ;;  %v2000_v36 = vld [vmem:[#allocation2 + $0x1] sm:$0xff] }
 0x218   : > { %1549 = vmatprep.mubr.f32.mxu0 %v11850_v35  ;;  %2470 = vmatprep.mubr.f32.mxu1 %v2000_v36  ;;  %3563 = vst [vmem:[#allocation2] sm:$0xff] %v11577_v4  ;;  %v6997_v36 = vld [vmem:[%s15631_s1 + $0x5e0] sm:$0xff] }
 0x219   : > { %2471 = vmatmul.mubr.f32.vlgmr.msra.gmra.mrb[32].mxu1 %v11577_v4 }
 0x21b   : > { %1550 = vmatmul.mubr.f32.gmra.mrb[34].mxu0 %v11854_v19  ;;  %v7085_v19 = vld [vmem:[%s15631_s1 + $0x8a0] sm:$0xff] }
 0x21c   : > { %1554 = vmatprep.mubr.f32.mxu0 %v11859_v50  ;;  %v7086_v50 = vld [vmem:[%s15631_s1 + $0x8a8] sm:$0xff] }
 0x21f   : > { %1555 = vmatmul.mubr.f32.gmra.mrb[36].mxu0 %v11861_v12  ;;  %v9390_v12 = vpack.c.bf16 %v7086_v50, %v7085_v19  ;;  %v6998_v19 = vld [vmem:[%s15631_s1 + $0x5e8] sm:$0xff] }
 0x220   : > { %1559 = vmatprep.mubr.f32.mxu0 %v11865_v51  ;;  %v2001_v51 = vld [vmem:[#allocation2 + $0x9] sm:$0xff]  ;;  %v9257_v50 = vpack.c.bf16 %v6998_v19, %v6997_v36 }
 0x221   : > { %9391 = vmatprep.subr.bf16.mxu0 %v9390_v12  ;;  %2475 = vmatprep.mubr.f32.mxu1 %v2001_v51  ;;  %v7015_v19 = vld [vmem:[%s15631_s1 + $0x670] sm:$0xff] }
 0x222   : > { %9393 = vmatpush3.bf16.msra.mxu0 %v9390_v12  ;;  %2476 = vmatmul.mubr.f32.gmra.mrb[34].mxu1 %v11577_v4 }
 0x223   : > { %1560 = vmatmul.mubr.f32.gmra.mrb[38].mxu0 %v11869_v41  ;;  %v7087_v41 = vld [vmem:[%s15631_s1 + $0x8b0] sm:$0xff] }
 0x224   : > { %1564 = vmatprep.mubr.f32.mxu0 %v11874_v54  ;;  %v7088_v54 = vld [vmem:[%s15631_s1 + $0x8b8] sm:$0xff] }
 0x226   : > { %v12116_v46 = vpop.f32.mrb[0].mxu1 }
 0x227   : > { %1565 = vmatmul.mubr.f32.gmra.mrb[40].mxu0 %v11876_v52  ;;  %v12120_v35 = vpop.f32.mrb[1].mxu1  ;;  %v9394_v52 = vpack.c.bf16 %v7088_v54, %v7087_v41  ;;  %v6999_v41 = vld [vmem:[%s15631_s1 + $0x5f0] sm:$0xff]  ;;  %v7000_v54 = vld [vmem:[%s15631_s1 + $0x5f8] sm:$0xff] }
 0x228   : > { %1569 = vmatprep.mubr.f32.mxu0 %v11880_v40 }
 0x229   : > { %9395 = vmatprep.subr.bf16.mxu0 %v9394_v52 }
 0x22a   : > { %v12140_v40 = vpop.f32.mrb[2].mxu1  ;;  %9397 = vmatpush3.bf16.msra.mxu0 %v9394_v52  ;;  %v9260_v52 = vpack.c.bf16 %v7000_v54, %v6999_v41 }
 0x22b   : > { %1570 = vmatmul.mubr.f32.gmra.mrb[42].mxu0 %v11884_v44  ;;  %v12143_v44 = vpop.f32.mrb[3].mxu1 }
 0x22c   : > { %1574 = vmatprep.mubr.f32.mxu0 %v11889_v48  ;;  %v7089_v48 = vld [vmem:[%s15631_s1 + $0x8c0] sm:$0xff] }
 0x22e   : > { %v12160_v10 = vpop.f32.mrb[4].mxu1 }
 0x22f   : > { %1575 = vmatmul.mubr.f32.gmra.mrb[44].mxu0 %v11891_v43  ;;  %v7090_v43 = vld [vmem:[%s15631_s1 + $0x8c8] sm:$0xff] }
 0x230   : > { %1579 = vmatprep.mubr.f32.mxu0 %v11895_v45  ;;  %v9398_v45 = vpack.c.bf16 %v7090_v43, %v7089_v48 }
 0x232   : > { %9399 = vmatprep.subr.bf16.mxu0 %v9398_v45 }
 0x233   : > { %1580 = vmatmul.mubr.f32.gmra.mrb[46].mxu0 %v11899_v49  ;;  %v7091_v49 = vld [vmem:[%s15631_s1 + $0x8d0] sm:$0xff] }
 0x234   : > { %1584 = vmatprep.mubr.f32.mxu0 %v11904_v56  ;;  %9401 = vmatpush3.bf16.msra.mxu0 %v9398_v45  ;;  %v9402_v14 = vpack.c.bf16 %v7092_v61, %v7091_v49  ;;  %v12163_v56 = vpop.f32.mrb[5].mxu1  ;;  %v7001_v45 = vld [vmem:[%s15631_s1 + $0x600] sm:$0xff] }
 0x235   : > { %v12187_v15 = vpop.f32.mrb[6].mxu1 }
 0x236   : > { %9403 = vmatprep.subr.bf16.mxu0 %v9402_v14  ;;  %v12190_v22 = vpop.f32.mrb[7].mxu1 }
 0x237   : > { %1585 = vmatmul.mubr.f32.gmra.mrb[48].mxu0 %v15736_v55  ;;  %v12202_v63 = vpop.f32.mrb[8].mxu1  ;;  %v7002_v55 = vld [vmem:[%s15631_s1 + $0x608] sm:$0xff] }
 0x238   : > { %1589 = vmatprep.mubr.f32.mxu0 %v15737_v7  ;;  %9405 = vmatpush3.bf16.msra.mxu0 %v9402_v14  ;;  %v12205_v26 = vpop.f32.mrb[9].mxu1  ;;  %v9263_v49 = vpack.c.bf16 %v7002_v55, %v7001_v45  ;;  %v7003_v14 = vld [vmem:[%s15631_s1 + $0x610] sm:$0xff] }
 0x239   : > { %9407 = vmatprep.subr.bf16.mxu0 %v9406_v9  ;;  %v9266_v3 = vpack.c.bf16 %v7004_v42, %v7003_v14 }
 0x23a   : > { %v12217_v62 = vpop.f32.mrb[10].mxu1 }
 0x23b   : > { %1590 = vmatmul.mubr.f32.gmra.mrb[50].mxu0 %v11914_v5  ;;  %v6986_v5 = vld [vmem:[%s15631_s1 + $0x588] sm:$0xff] }
 0x23c   : > { %1594 = vmatprep.mubr.f32.mxu0 %v11919_v37  ;;  %v9239_v8 = vpack.c.bf16 %v6986_v5, %v6985_v60  ;;  %v7096_v37 = vld [vmem:[%s15631_s1 + $0x8f8] sm:$0xff]  ;;  %9409 = vmatpush3.bf16.msra.mxu0 %v9406_v9  ;;  %v7005_v9 = vld [vmem:[%s15631_s1 + $0x620] sm:$0xff] }
 0x23d   : > { %v9410_v21 = vpack.c.bf16 %v7096_v37, %v7095_v1 }
 0x23e   : > { %9240 = vmatpush1.bf16.msra.mxu1 %v9239_v8  ;;  %v7006_v8 = vld [vmem:[%s15631_s1 + $0x628] sm:$0xff] }
 0x23f   : > { %1595 = vmatmul.mubr.f32.gmra.mrb[52].mxu0 %v15738_v20  ;;  %9241 = vmatprep.subr.bf16.mxu1 %v15716_v16  ;;  %v9269_v20 = vpack.c.bf16 %v7006_v8, %v7005_v9  ;;  %v12367_v8 = vld [vmem:[#allocation2 + $0xa] sm:$0xff] }
 0x240   : > { %1599 = vmatprep.mubr.f32.mxu0 %v15739_v17  ;;  %9411 = vmatprep.subr.bf16.mxu0 %v9410_v21  ;;  %v7007_v17 = vld [vmem:[%s15631_s1 + $0x630] sm:$0xff] }
 0x241   : > { %9413 = vmatpush3.bf16.msra.mxu0 %v9410_v21  ;;  %v7008_v21 = vld [vmem:[%s15631_s1 + $0x638] sm:$0xff] }
 0x242   : > { %9243 = vmatpush1.bf16.msra.mxu1 %v9242_v25  ;;  %v7009_v25 = vld [vmem:[%s15631_s1 + $0x640] sm:$0xff] }
 0x243   : > { %1600 = vmatmul.mubr.f32.gmra.mrb[54].mxu0 %v15740_v6  ;;  %9244 = vmatprep.subr.bf16.mxu1 %v15716_v16  ;;  %v9272_v6 = vpack.c.bf16 %v7008_v21, %v7007_v17  ;;  %v12370_v17 = vld [vmem:[#allocation2 + $0x8] sm:$0xff] }
 0x244   : > { %1604 = vmatprep.mubr.f32.mxu0 %v15733_v59  ;;  %v15742_v59 = vld [vmem:[#allocation19_spill] sm:$0xff]  ;;  %3565 = vst [vmem:[#allocation2 + $0x10] sm:$0x3] %v12370_v17  ;;  %3564 = vst [vmem:[#allocation2 + $0x8] sm:$0xff] %v12370_v17 }
 0x245   : > { %4518 = vst [vmem:[#allocation2 + $0x10] sm:$0x3] %v12370_v17 }
 0x246   : > { %9246 = vmatpush1.bf16.msra.mxu1 %v9245_v28  ;;  %v7011_v28 = vld [vmem:[%s15631_s1 + $0x650] sm:$0xff]  ;;  %5335 = vst [vmem:[#allocation2 + $0x10] sm:$0x3] %v12370_v17 }
 0x247   : > { %1605 = vmatmul.mubr.f32.gmra.mrb[56].mxu0 %v15741_v27  ;;  %9247 = vmatprep.subr.bf16.mxu1 %v15716_v16  ;;  %v7010_v27 = vld [vmem:[%s15631_s1 + $0x648] sm:$0xff]  ;;  %6082 = vst [vmem:[#allocation2 + $0x10] sm:$0x3] %v12370_v17 }
 0x248   : > { %1609 = vmatprep.mubr.f32.mxu0 %v15735_v13  ;;  %v15743_v13 = vld [vmem:[#allocation11_spill] sm:$0xff]  ;;  %6791 = vst [vmem:[#allocation2 + $0x10] sm:$0x3] %v12370_v17 }
 0x24a   : > { %9249 = vmatpush1.bf16.msra.mxu1 %v9248_v53 }
 0x24b   : > { %1610 = vmatmul.mubr.f32.gmra.mrb[58].mxu0 %v15742_v59  ;;  %9250 = vmatprep.subr.bf16.mxu1 %v15716_v16  ;;  %v9275_v59 = vpack.c.bf16 %v7010_v27, %v7009_v25 }
 0x24c   : > { %1614 = vmatprep.mubr.f32.mxu0 %v11938_v57  ;;  %v12220_v57 = vpop.f32.mrb[11].mxu1 }
 0x24d   : > { %v12235_v2 = vpop.f32.mrb[12].mxu1 }
 0x24e   : > { %v12237_v31 = vpop.f32.mrb[13].mxu1 }
 0x24f   : > { %1615 = vmatmul.mubr.f32.gmra.mrb[60].mxu0 %v11577_v4  ;;  %v12247_v34 = vpop.f32.mrb[14].mxu1 }
 0x250   : > { %1619 = vmatprep.mubr.f32.mxu0 %v15743_v13  ;;  %v12249_v58 = vpop.f32.mrb[15].mxu1  ;;  %v7012_v13 = vld [vmem:[%s15631_s1 + $0x658] sm:$0xff] }
 0x251   : > { %v12258_v12 = vpop.f32.mrb[16].mxu1  ;;  %v9278_v11 = vpack.c.bf16 %v7012_v13, %v7011_v28 }
 0x252   : > { %v12260_v51 = vpop.f32.mrb[17].mxu1 }
 0x253   : > { %1620 = vmatmul.mubr.f32.gmra.mrb[62].mxu0 %v11577_v4  ;;  %v9251_v4 = vpack.c.bf16 %v6994_v30, %v6993_v18  ;;  %v12269_v48 = vpop.f32.mrb[18].mxu1  ;;  %v7013_v18 = vld [vmem:[%s15631_s1 + $0x660] sm:$0xff]  ;;  %v7014_v30 = vld [vmem:[%s15631_s1 + $0x668] sm:$0xff] }
 0x254   : > { %v12271_v43 = vpop.f32.mrb[19].mxu1 }
 0x255   : > { %9252 = vmatpush1.bf16.msra.mxu1 %v9251_v4  ;;  %v12280_v61 = vpop.f32.mrb[20].mxu1  ;;  %v9281_v4 = vpack.c.bf16 %v7014_v30, %v7013_v18 }
 0x256   : > { %9253 = vmatprep.subr.bf16.mxu1 %v15716_v16  ;;  %v12282_v7 = vpop.f32.mrb[21].mxu1 }
 0x257   : > { %v12291_v60 = vpop.f32.mrb[22].mxu1 }
 0x258   : > { %v12293_v5 = vpop.f32.mrb[23].mxu1 }
 0x259   : > { %9255 = vmatpush1.bf16.msra.mxu1 %v9254_v23  ;;  %v12302_v1 = vpop.f32.mrb[24].mxu1 }
 0x25a   : > { %9256 = vmatprep.subr.bf16.mxu1 %v15716_v16  ;;  %v12304_v37 = vpop.f32.mrb[25].mxu1 }
 0x25b   : > { %v12313_v0 = vpop.f32.mrb[26].mxu1 }
 0x25c   : > { %v12315_v32 = vpop.f32.mrb[27].mxu1 }
 0x25d   : > { %9258 = vmatpush1.bf16.msra.mxu1 %v9257_v50  ;;  %v7016_v50 = vld [vmem:[%s15631_s1 + $0x678] sm:$0xff] }
 0x25e   : > { %9259 = vmatprep.subr.bf16.mxu1 %v15716_v16  ;;  %v12324_v38 = vpop.f32.mrb[28].mxu1  ;;  %v9284_v41 = vpack.c.bf16 %v7016_v50, %v7015_v19 }
 0x25f   : > { %v12326_v47 = vpop.f32.mrb[29].mxu1 }
 0x261   : > { %9261 = vmatpush1.bf16.msra.mxu1 %v9260_v52 }
 0x262   : > { %9262 = vmatprep.subr.bf16.mxu1 %v15716_v16 }
 0x265   : > { %9264 = vmatpush1.bf16.msra.mxu1 %v9263_v49 }
 0x266   : > { %9265 = vmatprep.subr.bf16.mxu1 %v15716_v16 }
 0x269   : > { %9267 = vmatpush1.bf16.msra.mxu1 %v9266_v3 }
 0x26a   : > { %9268 = vmatprep.subr.bf16.mxu1 %v15716_v16 }
 0x26d   : > { %9270 = vmatpush1.bf16.msra.mxu1 %v9269_v20 }
 0x26e   : > { %9271 = vmatprep.subr.bf16.mxu1 %v15716_v16 }
 0x271   : > { %9273 = vmatpush1.bf16.msra.mxu1 %v9272_v6 }
 0x272   : > { %9274 = vmatprep.subr.bf16.mxu1 %v15716_v16 }
 0x275   : > { %9276 = vmatpush1.bf16.msra.mxu1 %v9275_v59 }
 0x276   : > { %9277 = vmatprep.subr.bf16.mxu1 %v15716_v16 }
 0x279   : > { %9279 = vmatpush1.bf16.msra.mxu1 %v9278_v11 }
 0x27a   : > { %9280 = vmatprep.subr.bf16.mxu1 %v15716_v16 }
 0x27d   : > { %9282 = vmatpush1.bf16.msra.mxu1 %v9281_v4 }
 0x27e   : > { %9283 = vmatprep.subr.bf16.mxu1 %v15716_v16 }
 0x281   : > { %9285 = vmatpush1.bf16.msra.mxu1 %v9284_v41 }
 0x282   : > { %9286 = vmatprep.subr.bf16.mxu1 %v15716_v16 }
 0x295   : > { %v12335_v29 = vpop.f32.mrb[30].mxu1 }
 0x296   : > { %v12337_v53 = vpop.f32.mrb[31].mxu1 }
 0x2aa   : > { %v1466_v33 = vpop.f32.mrb[0].mxu0 }
 0x2ab   : > { %v10054_v23 = vadd.f32 %v12348_v24, %v1466_v33  ;;  %v1468_v36 = vpop.f32.mrb[1].mxu0 }
 0x2ad   : > { %v1692_v54 = vadd.f32 %v10054_v23, %v12120_v35 }
 0x2ae   : > { %v1471_v52 = vpop.f32.mrb[2].mxu0 }
 0x2af   : > { %v12359_v45 = vmax.f32 %v1692_v54, 0.0  ;;  %v10055_v55 = vadd.f32 %v12348_v24, %v1471_v52  ;;  %v1473_v49 = vpop.f32.mrb[3].mxu0 }
 0x2b1   : > { %15744 = vst [vmem:[#allocation12_spill] sm:$0xff] %v12359_v45  ;;  %1936 = vst [vmem:[#allocation2 + $0x19] sm:$0xff] %v12359_v45  ;;  %v1697_v14 = vadd.f32 %v10055_v55, %v12116_v46  ;;  %2480 = vmatprep.mubr.f32.mxu1 %v12359_v45 }
 0x2b2   : > { %v1476_v42 = vpop.f32.mrb[4].mxu0 }
 0x2b3   : > { %v1851_v3 = vmax.f32 %v1697_v14, 0.0  ;;  %v10056_v9 = vadd.f32 %v12348_v24, %v1476_v42  ;;  %v1478_v35 = vpop.f32.mrb[5].mxu0 }
 0x2b5   : > { %1937 = vst [vmem:[#allocation2 + $0x21] sm:$0xff] %v1851_v3  ;;  %v1702_v20 = vadd.f32 %v10056_v9, %v12143_v44 }
 0x2b6   : > { %v1481_v21 = vpop.f32.mrb[6].mxu0 }
 0x2b7   : > { %v1852_v46 = vmax.f32 %v1702_v20, 0.0  ;;  %v10057_v6 = vadd.f32 %v12348_v24, %v1481_v21  ;;  %v1483_v25 = vpop.f32.mrb[7].mxu0 }
 0x2b8   : > { %v12377_v27 = vld [vmem:[#allocation2 + $0x18] sm:$0xff] }
 0x2b9   : > { %1938 = vst [vmem:[#allocation2 + $0x31] sm:$0xff] %v1852_v46  ;;  %v1707_v44 = vadd.f32 %v10057_v6, %v12140_v40  ;;  %2481 = vmatmul.mubr.f32.gmra.mrb[36].mxu1 %v12377_v27 }
 0x2ba   : > { %v1486_v59 = vpop.f32.mrb[8].mxu0  ;;  %2485 = vmatprep.mubr.f32.mxu1 %v1851_v3 }
 0x2bb   : > { %v1853_v28 = vmax.f32 %v1707_v44, 0.0  ;;  %v10058_v13 = vadd.f32 %v12348_v24, %v1486_v59  ;;  %v1488_v11 = vpop.f32.mrb[9].mxu0 }
 0x2bc   : > { %v12384_v18 = vld [vmem:[#allocation2 + $0x1a] sm:$0xff]  ;;  %v12391_v40 = vld [vmem:[#allocation2 + $0x22] sm:$0xff] }
 0x2bd   : > { %v12386_v30 = vld [vmem:[#allocation2 + $0x20] sm:$0xff]  ;;  %1939 = vst [vmem:[#allocation2 + $0x39] sm:$0xff] %v1853_v28  ;;  %v1712_v4 = vadd.f32 %v10058_v13, %v12163_v56  ;;  %3566 = vst [vmem:[#allocation2 + $0x18] sm:$0xff] %v12370_v17 }
 0x2be   : > { %2486 = vmatmul.mubr.f32.gmra.mrb[38].mxu1 %v12386_v30  ;;  %v12393_v33 = vld [vmem:[#allocation2 + $0x21] sm:$0xff]  ;;  %v1491_v23 = vpop.f32.mrb[10].mxu0 }
 0x2bf   : > { %15745 = vst [vmem:[#allocation13_spill] sm:$0xff] %v12393_v33  ;;  %2490 = vmatprep.mubr.f32.mxu1 %v1852_v46  ;;  %3568 = vst [vmem:[#allocation2 + $0x28] sm:$0x3] %v12370_v17  ;;  %v1854_v36 = vmax.f32 %v1712_v4, 0.0  ;;  %v10059_v19 = vadd.f32 %v12348_v24, %v1491_v23  ;;  %v1493_v50 = vpop.f32.mrb[11].mxu0 }
 0x2c0   : > { %3567 = vst [vmem:[#allocation2 + $0x20] sm:$0xff] %v12370_v17  ;;  %4521 = vst [vmem:[#allocation2 + $0x28] sm:$0x3] %v12370_v17  ;;  %v12399_v56 = vld [vmem:[#allocation2 + $0x30] sm:$0xff] }
 0x2c1   : > { %5338 = vst [vmem:[#allocation2 + $0x28] sm:$0x3] %v12370_v17  ;;  %1940 = vst [vmem:[#allocation2 + $0x49] sm:$0xff] %v1854_v36  ;;  %v1717_v41 = vadd.f32 %v10059_v19, %v12160_v10  ;;  %v12407_v14 = vld [vmem:[#allocation2 + $0x31] sm:$0xff] }
 0x2c2   : > { %2491 = vmatmul.mubr.f32.gmra.mrb[40].mxu1 %v12399_v56  ;;  %6085 = vst [vmem:[#allocation2 + $0x28] sm:$0x3] %v12370_v17  ;;  %v1496_v54 = vpop.f32.mrb[12].mxu0  ;;  %15746 = vst [vmem:[#allocation14_spill] sm:$0xff] %v12407_v14  ;;  %v12409_v42 = vld [vmem:[#allocation2 + $0x30] sm:$0xff] }
 0x2c3   : > { %2495 = vmatprep.mubr.f32.mxu1 %v1853_v28  ;;  %6794 = vst [vmem:[#allocation2 + $0x28] sm:$0x3] %v12370_v17  ;;  %v1855_v52 = vmax.f32 %v1717_v41, 0.0  ;;  %v10060_v55 = vadd.f32 %v12348_v24, %v1496_v54  ;;  %v1498_v49 = vpop.f32.mrb[13].mxu0  ;;  %15747 = vst [vmem:[#allocation15_spill] sm:$0xff] %v12409_v42 }
 0x2c4   : > { %v12411_v3 = vld [vmem:[#allocation2 + $0x32] sm:$0xff]  ;;  %v12415_v10 = vld [vmem:[#allocation2 + $0x3a] sm:$0xff] }
 0x2c5   : > { %v12413_v9 = vld [vmem:[#allocation2 + $0x38] sm:$0xff]  ;;  %1941 = vst [vmem:[#allocation2 + $0x51] sm:$0xff] %v1855_v52  ;;  %v1722_v35 = vadd.f32 %v10060_v55, %v12190_v22  ;;  %8760 = vmatprep.mubr.f32.mxu0 %v12411_v3  ;;  %3569 = vst [vmem:[#allocation2 + $0x30] sm:$0xff] %v12370_v17 }
 0x2c6   : > { %2496 = vmatmul.mubr.f32.gmra.mrb[42].mxu1 %v12413_v9  ;;  %v12420_v20 = vld [vmem:[#allocation2 + $0x3a] sm:$0xff]  ;;  %v1501_v6 = vpop.f32.mrb[14].mxu0  ;;  %8761 = vmatmul.mubr.f32.vlgmr.msra.gmra.mrb[64].mxu0 %v12415_v10 }
 0x2c7   : > { %15748 = vst [vmem:[#allocation16_spill] sm:$0xff] %v12420_v20  ;;  %v12422_v21 = vld [vmem:[#allocation2 + $0x39] sm:$0xff]  ;;  %2500 = vmatprep.mubr.f32.mxu1 %v1854_v36  ;;  %v1856_v22 = vmax.f32 %v1722_v35, 0.0  ;;  %v10061_v25 = vadd.f32 %v12348_v24, %v1501_v6  ;;  %v1503_v44 = vpop.f32.mrb[15].mxu0 }
 0x2c8   : > { %15749 = vst [vmem:[#allocation17_spill] sm:$0xff] %v12422_v21  ;;  %v12425_v46 = vld [vmem:[#allocation2 + $0x38] sm:$0xff]  ;;  %3571 = vst [vmem:[#allocation2 + $0x40] sm:$0x3] %v12370_v17  ;;  %v12432_v59 = vld [vmem:[#allocation2 + $0x48] sm:$0xff] }
 0x2c9   : > { %15750 = vst [vmem:[#allocation6_spill] sm:$0xff] %v12425_v46  ;;  %3570 = vst [vmem:[#allocation2 + $0x38] sm:$0xff] %v12370_v17  ;;  %v1727_v28 = vadd.f32 %v10061_v25, %v12187_v15  ;;  %v12440_v36 = vld [vmem:[#allocation2 + $0x49] sm:$0xff] }
 0x2ca   : > { %4524 = vst [vmem:[#allocation2 + $0x40] sm:$0x3] %v12370_v17  ;;  %1942 = vst [vmem:[#allocation2 + $0x61] sm:$0xff] %v1856_v22  ;;  %2501 = vmatmul.mubr.f32.gmra.mrb[44].mxu1 %v12432_v59  ;;  %v1506_v13 = vpop.f32.mrb[16].mxu0  ;;  %v12442_v19 = vld [vmem:[#allocation2 + $0x48] sm:$0xff] }
 0x2cb   : > { %5341 = vst [vmem:[#allocation2 + $0x40] sm:$0x3] %v12370_v17  ;;  %2505 = vmatprep.mubr.f32.mxu1 %v1855_v52  ;;  %v1857_v11 = vmax.f32 %v1727_v28, 0.0  ;;  %v10062_v4 = vadd.f32 %v12348_v24, %v1506_v13  ;;  %v1508_v23 = vpop.f32.mrb[17].mxu0  ;;  %15751 = vst [vmem:[#allocation7_spill] sm:$0xff] %v12440_v36 }
 0x2cc   : > { %6088 = vst [vmem:[#allocation2 + $0x40] sm:$0x3] %v12370_v17  ;;  %15752 = vst [vmem:[#allocation8_spill] sm:$0xff] %v12442_v19  ;;  %v12444_v50 = vld [vmem:[#allocation2 + $0x4a] sm:$0xff]  ;;  %v12448_v15 = vld [vmem:[#allocation2 + $0x52] sm:$0xff] }
 0x2cd   : > { %6797 = vst [vmem:[#allocation2 + $0x40] sm:$0x3] %v12370_v17  ;;  %v12446_v41 = vld [vmem:[#allocation2 + $0x50] sm:$0xff]  ;;  %1943 = vst [vmem:[#allocation2 + $0x69] sm:$0xff] %v1857_v11  ;;  %v1732_v54 = vadd.f32 %v10062_v4, %v12205_v26  ;;  %8763 = vmatprep.mubr.f32.mxu0 %v12444_v50 }
 0x2ce   : > { %2506 = vmatmul.mubr.f32.gmra.mrb[46].mxu1 %v12446_v41  ;;  %v12453_v52 = vld [vmem:[#allocation2 + $0x52] sm:$0xff]  ;;  %3572 = vst [vmem:[#allocation2 + $0x48] sm:$0xff] %v12370_v17  ;;  %v1511_v35 = vpop.f32.mrb[18].mxu0  ;;  %8764 = vmatmul.mubr.f32.gmra.mrb[66].mxu0 %v12448_v15 }
 0x2cf   : > { %15753 = vst [vmem:[#allocation9_spill] sm:$0xff] %v12453_v52  ;;  %v12455_v55 = vld [vmem:[#allocation2 + $0x51] sm:$0xff]  ;;  %2510 = vmatprep.mubr.f32.mxu1 %v1856_v22  ;;  %v1858_v26 = vmax.f32 %v1732_v54, 0.0  ;;  %v10063_v6 = vadd.f32 %v12348_v24, %v1511_v35  ;;  %v1513_v25 = vpop.f32.mrb[19].mxu0 }
 0x2d0   : > { %15754 = vst [vmem:[#allocation10_spill] sm:$0xff] %v12455_v55  ;;  %v12458_v49 = vld [vmem:[#allocation2 + $0x50] sm:$0xff]  ;;  %3574 = vst [vmem:[#allocation2 + $0x58] sm:$0x3] %v12370_v17 }
 0x2d1   : > { %15755 = vst [vmem:[#allocation18_spill] sm:$0xff] %v12458_v49  ;;  %3573 = vst [vmem:[#allocation2 + $0x50] sm:$0xff] %v12370_v17  ;;  %v12465_v44 = vld [vmem:[#allocation2 + $0x60] sm:$0xff]  ;;  %v1737_v28 = vadd.f32 %v10063_v6, %v12202_v63 }
 0x2d2   : > { %4527 = vst [vmem:[#allocation2 + $0x58] sm:$0x3] %v12370_v17  ;;  %1944 = vst [vmem:[#allocation2 + $0x79] sm:$0xff] %v1858_v26  ;;  %2511 = vmatmul.mubr.f32.gmra.mrb[48].mxu1 %v12465_v44  ;;  %v1516_v22 = vpop.f32.mrb[20].mxu0  ;;  %v12473_v54 = vld [vmem:[#allocation2 + $0x61] sm:$0xff] }
 0x2d3   : > { %5344 = vst [vmem:[#allocation2 + $0x58] sm:$0x3] %v12370_v17  ;;  %2515 = vmatprep.mubr.f32.mxu1 %v1857_v11  ;;  %v1859_v13 = vmax.f32 %v1737_v28, 0.0  ;;  %v10064_v4 = vadd.f32 %v12348_v24, %v1516_v22  ;;  %v1518_v23 = vpop.f32.mrb[21].mxu0  ;;  %15756 = vst [vmem:[#allocation19_spill] sm:$0xff] %v12473_v54  ;;  %v12475_v35 = vld [vmem:[#allocation2 + $0x60] sm:$0xff] }
 0x2d4   : > { %6091 = vst [vmem:[#allocation2 + $0x58] sm:$0x3] %v12370_v17  ;;  %15757 = vst [vmem:[#allocation11_spill] sm:$0xff] %v12475_v35  ;;  %v12477_v25 = vld [vmem:[#allocation2 + $0x62] sm:$0xff]  ;;  %v12481_v63 = vld [vmem:[#allocation2 + $0x6a] sm:$0xff] }
 0x2d5   : > { %6800 = vst [vmem:[#allocation2 + $0x58] sm:$0x3] %v12370_v17  ;;  %v12479_v49 = vld [vmem:[#allocation2 + $0x68] sm:$0xff]  ;;  %1945 = vst [vmem:[#allocation2 + $0x81] sm:$0xff] %v1859_v13  ;;  %v1742_v6 = vadd.f32 %v10064_v4, %v12220_v57  ;;  %8766 = vmatprep.mubr.f32.mxu0 %v12477_v25 }
 0x2d6   : > { %2516 = vmatmul.mubr.f32.gmra.mrb[50].mxu1 %v12479_v49  ;;  %v12486_v11 = vld [vmem:[#allocation2 + $0x6a] sm:$0xff]  ;;  %3575 = vst [vmem:[#allocation2 + $0x60] sm:$0xff] %v12370_v17  ;;  %v1521_v23 = vpop.f32.mrb[22].mxu0  ;;  %8767 = vmatmul.mubr.f32.gmra.mrb[68].mxu0 %v12481_v63 }
 0x2d7   : > { %15758 = vst [vmem:[#allocation20_spill] sm:$0xff] %v12486_v11  ;;  %v12488_v28 = vld [vmem:[#allocation2 + $0x69] sm:$0xff]  ;;  %2520 = vmatprep.mubr.f32.mxu1 %v1858_v26  ;;  %v1860_v57 = vmax.f32 %v1742_v6, 0.0  ;;  %v10065_v4 = vadd.f32 %v12348_v24, %v1521_v23  ;;  %v1523_v35 = vpop.f32.mrb[23].mxu0 }
 0x2d8   : > { %15759 = vst [vmem:[#allocation21_spill] sm:$0xff] %v12488_v28  ;;  %v12491_v22 = vld [vmem:[#allocation2 + $0x68] sm:$0xff]  ;;  %3577 = vst [vmem:[#allocation2 + $0x70] sm:$0x3] %v12370_v17 }
 0x2d9   : > { %15760 = vst [vmem:[#allocation22_spill] sm:$0xff] %v12491_v22  ;;  %3576 = vst [vmem:[#allocation2 + $0x68] sm:$0xff] %v12370_v17  ;;  %v12498_v19 = vld [vmem:[#allocation2 + $0x78] sm:$0xff]  ;;  %v1747_v22 = vadd.f32 %v10065_v4, %v12217_v62 }
 0x2da   : > { %4530 = vst [vmem:[#allocation2 + $0x70] sm:$0x3] %v12370_v17  ;;  %1946 = vst [vmem:[#allocation2 + $0x91] sm:$0xff] %v1860_v57  ;;  %2521 = vmatmul.mubr.f32.gmra.mrb[52].mxu1 %v12498_v19  ;;  %v1526_v26 = vpop.f32.mrb[24].mxu0  ;;  %v12506_v46 = vld [vmem:[#allocation2 + $0x79] sm:$0xff] }
 0x2db   : > { %5347 = vst [vmem:[#allocation2 + $0x70] sm:$0x3] %v12370_v17  ;;  %2525 = vmatprep.mubr.f32.mxu1 %v1859_v13  ;;  %v1861_v6 = vmax.f32 %v1747_v22, 0.0  ;;  %v10066_v35 = vadd.f32 %v12348_v24, %v1526_v26  ;;  %v1528_v23 = vpop.f32.mrb[25].mxu0  ;;  %15761 = vst [vmem:[#allocation23_spill] sm:$0xff] %v12506_v46  ;;  %v12508_v42 = vld [vmem:[#allocation2 + $0x78] sm:$0xff] }
 0x2dc   : > { %6094 = vst [vmem:[#allocation2 + $0x70] sm:$0x3] %v12370_v17  ;;  %15762 = vst [vmem:[#allocation24_spill] sm:$0xff] %v12508_v42  ;;  %v12510_v28 = vld [vmem:[#allocation2 + $0x7a] sm:$0xff]  ;;  %v12514_v62 = vld [vmem:[#allocation2 + $0x82] sm:$0xff] }
 0x2dd   : > { %6803 = vst [vmem:[#allocation2 + $0x70] sm:$0x3] %v12370_v17  ;;  %v12512_v11 = vld [vmem:[#allocation2 + $0x80] sm:$0xff]  ;;  %1947 = vst [vmem:[#allocation2 + $0x99] sm:$0xff] %v1861_v6  ;;  %v1752_v4 = vadd.f32 %v10066_v35, %v12237_v31  ;;  %8769 = vmatprep.mubr.f32.mxu0 %v12510_v28 }
 0x2de   : > { %2526 = vmatmul.mubr.f32.gmra.mrb[54].mxu1 %v12512_v11  ;;  %v12519_v13 = vld [vmem:[#allocation2 + $0x7a] sm:$0xff]  ;;  %v12521_v22 = vld [vmem:[#allocation2 + $0x82] sm:$0xff]  ;;  %v1531_v23 = vpop.f32.mrb[26].mxu0  ;;  %8770 = vmatmul.mubr.f32.gmra.mrb[70].mxu0 %v12514_v62 }
 0x2df   : > { %15763 = vst [vmem:[#allocation25_spill] sm:$0xff] %v12519_v13  ;;  %15764 = vst [vmem:[#allocation26_spill] sm:$0xff] %v12521_v22  ;;  %v12523_v26 = vld [vmem:[#allocation2 + $0x81] sm:$0xff]  ;;  %2530 = vmatprep.mubr.f32.mxu1 %v1860_v57  ;;  %v1862_v31 = vmax.f32 %v1752_v4, 0.0  ;;  %v10067_v35 = vadd.f32 %v12348_v24, %v1531_v23  ;;  %v1533_v46 = vpop.f32.mrb[27].mxu0 }
 0x2e0   : > { %15765 = vst [vmem:[#allocation27_spill] sm:$0xff] %v12523_v26  ;;  %3578 = vst [vmem:[#allocation2 + $0x78] sm:$0xff] %v12370_v17  ;;  %v12528_v42 = vld [vmem:[#allocation2 + $0x80] sm:$0xff] }
 0x2e1   : > { %3580 = vst [vmem:[#allocation2 + $0x88] sm:$0x3] %v12370_v17  ;;  %15766 = vst [vmem:[#allocation28_spill] sm:$0xff] %v12528_v42  ;;  %v12533_v22 = vld [vmem:[#allocation2 + $0x90] sm:$0xff]  ;;  %v1757_v57 = vadd.f32 %v10067_v35, %v12235_v2 }
 0x2e2   : > { %4533 = vst [vmem:[#allocation2 + $0x88] sm:$0x3] %v12370_v17  ;;  %3579 = vst [vmem:[#allocation2 + $0x80] sm:$0xff] %v12370_v17  ;;  %2531 = vmatmul.mubr.f32.gmra.mrb[56].mxu1 %v12533_v22  ;;  %v1536_v42 = vpop.f32.mrb[28].mxu0  ;;  %v12541_v26 = vld [vmem:[#allocation2 + $0x91] sm:$0xff] }
 0x2e3   : > { %5350 = vst [vmem:[#allocation2 + $0x88] sm:$0x3] %v12370_v17  ;;  %1948 = vst [vmem:[#allocation2 + $0xa9] sm:$0xff] %v1862_v31  ;;  %2535 = vmatprep.mubr.f32.mxu1 %v1861_v6  ;;  %v1863_v46 = vmax.f32 %v1757_v57, 0.0  ;;  %v10068_v4 = vadd.f32 %v12348_v24, %v1536_v42  ;;  %v1538_v23 = vpop.f32.mrb[29].mxu0  ;;  %v12543_v13 = vld [vmem:[#allocation2 + $0x90] sm:$0xff] }
 0x2e4   : > { %6097 = vst [vmem:[#allocation2 + $0x88] sm:$0x3] %v12370_v17  ;;  %15767 = vst [vmem:[#allocation29_spill] sm:$0xff] %v12541_v26  ;;  %v12545_v54 = vld [vmem:[#allocation2 + $0x92] sm:$0xff]  ;;  %v12549_v2 = vld [vmem:[#allocation2 + $0x9a] sm:$0xff] }
 0x2e5   : > { %6806 = vst [vmem:[#allocation2 + $0x88] sm:$0x3] %v12370_v17  ;;  %15768 = vst [vmem:[#allocation30_spill] sm:$0xff] %v12543_v13  ;;  %v12547_v55 = vld [vmem:[#allocation2 + $0x98] sm:$0xff]  ;;  %v1762_v35 = vadd.f32 %v10068_v4, %v12249_v58  ;;  %8772 = vmatprep.mubr.f32.mxu0 %v12545_v54 }
 0x2e6   : > { %1949 = vst [vmem:[#allocation2 + $0xb1] sm:$0xff] %v1863_v46  ;;  %2536 = vmatmul.mubr.f32.gmra.mrb[58].mxu1 %v12547_v55  ;;  %v12554_v6 = vld [vmem:[#allocation2 + $0x92] sm:$0xff]  ;;  %v12556_v42 = vld [vmem:[#allocation2 + $0x9a] sm:$0xff]  ;;  %v1541_v23 = vpop.f32.mrb[30].mxu0  ;;  %8773 = vmatmul.mubr.f32.gmra.mrb[72].mxu0 %v12549_v2 }
 0x2e7   : > { %15769 = vst [vmem:[#allocation31_spill] sm:$0xff] %v12554_v6  ;;  %15770 = vst [vmem:[#allocation32_spill] sm:$0xff] %v12556_v42  ;;  %v12558_v57 = vld [vmem:[#allocation2 + $0x99] sm:$0xff]  ;;  %2540 = vmatprep.mubr.f32.mxu1 %v1862_v31  ;;  %v1864_v58 = vmax.f32 %v1762_v35, 0.0  ;;  %v10069_v4 = vadd.f32 %v12348_v24, %v1541_v23  ;;  %v1543_v26 = vpop.f32.mrb[31].mxu0 }
 0x2e8   : > { %15771 = vst [vmem:[#allocation33_spill] sm:$0xff] %v12558_v57  ;;  %3581 = vst [vmem:[#allocation2 + $0x90] sm:$0xff] %v12370_v17  ;;  %v12563_v13 = vld [vmem:[#allocation2 + $0x98] sm:$0xff] }
 0x2e9   : > { %3583 = vst [vmem:[#allocation2 + $0xa0] sm:$0x3] %v12370_v17  ;;  %15772 = vst [vmem:[#allocation34_spill] sm:$0xff] %v12563_v13  ;;  %v1767_v31 = vadd.f32 %v10069_v4, %v12247_v34 }
 0x2ea   : > { %4536 = vst [vmem:[#allocation2 + $0xa0] sm:$0x3] %v12370_v17  ;;  %3582 = vst [vmem:[#allocation2 + $0x98] sm:$0xff] %v12370_v17  ;;  %v12568_v42 = vld [vmem:[#allocation2 + $0xa8] sm:$0xff]  ;;  %v1546_v13 = vpop.f32.mrb[32].mxu0 }
 0x2eb   : > { %5353 = vst [vmem:[#allocation2 + $0xa0] sm:$0x3] %v12370_v17  ;;  %1950 = vst [vmem:[#allocation2 + $0xc1] sm:$0xff] %v1864_v58  ;;  %2541 = vmatmul.mubr.f32.gmra.mrb[60].mxu1 %v12568_v42  ;;  %v1865_v26 = vmax.f32 %v1767_v31, 0.0  ;;  %v10070_v35 = vadd.f32 %v12348_v24, %v1546_v13  ;;  %v1548_v23 = vpop.f32.mrb[33].mxu0  ;;  %v12576_v57 = vld [vmem:[#allocation2 + $0xa9] sm:$0xff] }
 0x2ec   : > { %6100 = vst [vmem:[#allocation2 + $0xa0] sm:$0x3] %v12370_v17  ;;  %2545 = vmatprep.mubr.f32.mxu1 %v1863_v46  ;;  %15773 = vst [vmem:[#allocation35_spill] sm:$0xff] %v12576_v57  ;;  %v12578_v6 = vld [vmem:[#allocation2 + $0xa8] sm:$0xff] }
 0x2ed   : > { %6809 = vst [vmem:[#allocation2 + $0xa0] sm:$0x3] %v12370_v17  ;;  %15774 = vst [vmem:[#allocation36_spill] sm:$0xff] %v12578_v6  ;;  %v12580_v52 = vld [vmem:[#allocation2 + $0xaa] sm:$0xff]  ;;  %v12584_v34 = vld [vmem:[#allocation2 + $0xb2] sm:$0xff]  ;;  %v1772_v4 = vadd.f32 %v10070_v35, %v12260_v51 }
 0x2ee   : > { %v12582_v36 = vld [vmem:[#allocation2 + $0xb0] sm:$0xff]  ;;  %1951 = vst [vmem:[#allocation2 + $0xc9] sm:$0xff] %v1865_v26  ;;  %8775 = vmatprep.mubr.f32.mxu0 %v12580_v52  ;;  %v1551_v23 = vpop.f32.mrb[34].mxu0 }
 0x2ef   : > { %2546 = vmatmul.mubr.f32.gmra.mrb[62].mxu1 %v12582_v36  ;;  %v12589_v46 = vld [vmem:[#allocation2 + $0xaa] sm:$0xff]  ;;  %v12591_v13 = vld [vmem:[#allocation2 + $0xb2] sm:$0xff]  ;;  %8776 = vmatmul.mubr.f32.gmra.mrb[74].mxu0 %v12584_v34  ;;  %v1866_v51 = vmax.f32 %v1772_v4, 0.0  ;;  %v10071_v35 = vadd.f32 %v12348_v24, %v1551_v23  ;;  %v1553_v57 = vpop.f32.mrb[35].mxu0 }
 0x2f0   : > { %15775 = vst [vmem:[#allocation37_spill] sm:$0xff] %v12589_v46  ;;  %15776 = vst [vmem:[#allocation38_spill] sm:$0xff] %v12591_v13  ;;  %v12593_v31 = vld [vmem:[#allocation2 + $0xb1] sm:$0xff]  ;;  %2550 = vmatprep.mubr.f32.mxu1 %v1864_v58 }
 0x2f1   : > { %15777 = vst [vmem:[#allocation39_spill] sm:$0xff] %v12593_v31  ;;  %3584 = vst [vmem:[#allocation2 + $0xa8] sm:$0xff] %v12370_v17  ;;  %v12598_v6 = vld [vmem:[#allocation2 + $0xb0] sm:$0xff]  ;;  %v1777_v58 = vadd.f32 %v10071_v35, %v12258_v12 }
 0x2f2   : > { %3586 = vst [vmem:[#allocation2 + $0xb8] sm:$0x3] %v12370_v17  ;;  %15778 = vst [vmem:[#allocation40_spill] sm:$0xff] %v12598_v6  ;;  %v12603_v13 = vld [vmem:[#allocation2 + $0xc0] sm:$0xff]  ;;  %v1556_v6 = vpop.f32.mrb[36].mxu0 }
 0x2f3   : > { %4539 = vst [vmem:[#allocation2 + $0xb8] sm:$0x3] %v12370_v17  ;;  %3585 = vst [vmem:[#allocation2 + $0xb0] sm:$0xff] %v12370_v17  ;;  %2551 = vmatmul.mubr.f32.gmra.mrb[64].mxu1 %v12603_v13  ;;  %v1867_v57 = vmax.f32 %v1777_v58, 0.0  ;;  %v10072_v4 = vadd.f32 %v12348_v24, %v1556_v6  ;;  %v1558_v23 = vpop.f32.mrb[37].mxu0  ;;  %v12611_v31 = vld [vmem:[#allocation2 + $0xc1] sm:$0xff] }
 0x2f4   : > { %5356 = vst [vmem:[#allocation2 + $0xb8] sm:$0x3] %v12370_v17  ;;  %1952 = vst [vmem:[#allocation2 + $0xd9] sm:$0xff] %v1866_v51  ;;  %2555 = vmatprep.mubr.f32.mxu1 %v1865_v26  ;;  %v12613_v46 = vld [vmem:[#allocation2 + $0xc0] sm:$0xff] }
 0x2f5   : > { %6103 = vst [vmem:[#allocation2 + $0xb8] sm:$0x3] %v12370_v17  ;;  %15779 = vst [vmem:[#allocation41_spill] sm:$0xff] %v12611_v31  ;;  %v12615_v21 = vld [vmem:[#allocation2 + $0xc2] sm:$0xff]  ;;  %v12619_v12 = vld [vmem:[#allocation2 + $0xca] sm:$0xff]  ;;  %v1782_v35 = vadd.f32 %v10072_v4, %v12271_v43 }
 0x2f6   : > { %6812 = vst [vmem:[#allocation2 + $0xb8] sm:$0x3] %v12370_v17  ;;  %15780 = vst [vmem:[#allocation42_spill] sm:$0xff] %v12613_v46  ;;  %v12617_v20 = vld [vmem:[#allocation2 + $0xc8] sm:$0xff]  ;;  %8778 = vmatprep.mubr.f32.mxu0 %v12615_v21  ;;  %v1561_v23 = vpop.f32.mrb[38].mxu0 }
 0x2f7   : > { %1953 = vst [vmem:[#allocation2 + $0xe1] sm:$0xff] %v1867_v57  ;;  %2556 = vmatmul.mubr.f32.gmra.mrb[66].mxu1 %v12617_v20  ;;  %v12624_v26 = vld [vmem:[#allocation2 + $0xc2] sm:$0xff]  ;;  %v12626_v6 = vld [vmem:[#allocation2 + $0xca] sm:$0xff]  ;;  %8779 = vmatmul.mubr.f32.gmra.mrb[76].mxu0 %v12619_v12  ;;  %v1868_v43 = vmax.f32 %v1782_v35, 0.0  ;;  %v10073_v4 = vadd.f32 %v12348_v24, %v1561_v23  ;;  %v1563_v31 = vpop.f32.mrb[39].mxu0 }
 0x2f8   : > { %15781 = vst [vmem:[#allocation43_spill] sm:$0xff] %v12624_v26  ;;  %15782 = vst [vmem:[#allocation44_spill] sm:$0xff] %v12626_v6  ;;  %v12628_v58 = vld [vmem:[#allocation2 + $0xc9] sm:$0xff]  ;;  %2560 = vmatprep.mubr.f32.mxu1 %v1866_v51 }
 0x2f9   : > { %15783 = vst [vmem:[#allocation45_spill] sm:$0xff] %v12628_v58  ;;  %3587 = vst [vmem:[#allocation2 + $0xc0] sm:$0xff] %v12370_v17  ;;  %v12633_v46 = vld [vmem:[#allocation2 + $0xc8] sm:$0xff]  ;;  %v1787_v51 = vadd.f32 %v10073_v4, %v12269_v48 }
 0x2fa   : > { %3589 = vst [vmem:[#allocation2 + $0xd0] sm:$0x3] %v12370_v17  ;;  %15784 = vst [vmem:[#allocation46_spill] sm:$0xff] %v12633_v46  ;;  %v1566_v46 = vpop.f32.mrb[40].mxu0 }
 0x2fb   : > { %4542 = vst [vmem:[#allocation2 + $0xd0] sm:$0x3] %v12370_v17  ;;  %3588 = vst [vmem:[#allocation2 + $0xc8] sm:$0xff] %v12370_v17  ;;  %v12638_v6 = vld [vmem:[#allocation2 + $0xd8] sm:$0xff]  ;;  %v1869_v31 = vmax.f32 %v1787_v51, 0.0  ;;  %v10074_v35 = vadd.f32 %v12348_v24, %v1566_v46  ;;  %v1568_v23 = vpop.f32.mrb[41].mxu0 }
 0x2fc   : > { %5359 = vst [vmem:[#allocation2 + $0xd0] sm:$0x3] %v12370_v17  ;;  %1954 = vst [vmem:[#allocation2 + $0xf1] sm:$0xff] %v1868_v43  ;;  %2561 = vmatmul.mubr.f32.gmra.mrb[68].mxu1 %v12638_v6  ;;  %v12646_v58 = vld [vmem:[#allocation2 + $0xd9] sm:$0xff] }
 0x2fd   : > { %6106 = vst [vmem:[#allocation2 + $0xd0] sm:$0x3] %v12370_v17  ;;  %2565 = vmatprep.mubr.f32.mxu1 %v1867_v57  ;;  %15785 = vst [vmem:[#allocation47_spill] sm:$0xff] %v12646_v58  ;;  %v12648_v26 = vld [vmem:[#allocation2 + $0xd8] sm:$0xff]  ;;  %v1792_v4 = vadd.f32 %v10074_v35, %v12282_v7 }
 0x2fe   : > { %6815 = vst [vmem:[#allocation2 + $0xd0] sm:$0x3] %v12370_v17  ;;  %15786 = vst [vmem:[#allocation48_spill] sm:$0xff] %v12648_v26  ;;  %v12650_v14 = vld [vmem:[#allocation2 + $0xda] sm:$0xff]  ;;  %v12654_v48 = vld [vmem:[#allocation2 + $0xe2] sm:$0xff]  ;;  %v1571_v23 = vpop.f32.mrb[42].mxu0 }
 0x2ff   : > { %v12652_v33 = vld [vmem:[#allocation2 + $0xe0] sm:$0xff]  ;;  %15787 = vst [vmem:[#allocation49_spill] sm:$0xff] %v12654_v48  ;;  %1955 = vst [vmem:[#allocation2 + $0xf9] sm:$0xff] %v1869_v31  ;;  %8781 = vmatprep.mubr.f32.mxu0 %v12650_v14  ;;  %v1870_v7 = vmax.f32 %v1792_v4, 0.0  ;;  %v10075_v35 = vadd.f32 %v12348_v24, %v1571_v23  ;;  %v1573_v58 = vpop.f32.mrb[43].mxu0 }
 0x300   : > { %2566 = vmatmul.mubr.f32.gmra.mrb[70].mxu1 %v12652_v33  ;;  %v12659_v57 = vld [vmem:[#allocation2 + $0xda] sm:$0xff]  ;;  %v12661_v46 = vld [vmem:[#allocation2 + $0xe2] sm:$0xff]  ;;  %8782 = vmatmul.mubr.f32.gmra.mrb[78].mxu0 %v12654_v48 }
 0x301   : > { %15788 = vst [vmem:[#allocation50_spill] sm:$0xff] %v12659_v57  ;;  %15789 = vst [vmem:[#allocation51_spill] sm:$0xff] %v12661_v46  ;;  %v12663_v51 = vld [vmem:[#allocation2 + $0xe1] sm:$0xff]  ;;  %2570 = vmatprep.mubr.f32.mxu1 %v1868_v43  ;;  %v1797_v43 = vadd.f32 %v10075_v35, %v12280_v61 }
 0x302   : > { %15790 = vst [vmem:[#allocation52_spill] sm:$0xff] %v12663_v51  ;;  %3590 = vst [vmem:[#allocation2 + $0xd8] sm:$0xff] %v12370_v17  ;;  %v12668_v26 = vld [vmem:[#allocation2 + $0xe0] sm:$0xff] }
 0x303   : > { %3592 = vst [vmem:[#allocation2 + $0xe8] sm:$0x3] %v12370_v17  ;;  %15791 = vst [vmem:[#allocation53_spill] sm:$0xff] %v12668_v26  ;;  %v12673_v46 = vld [vmem:[#allocation2 + $0xf0] sm:$0xff]  ;;  %v1576_v26 = vpop.f32.mrb[44].mxu0  ;;  %v1871_v58 = vmax.f32 %v1797_v43, 0.0 }
 0x304   : > { %4545 = vst [vmem:[#allocation2 + $0xe8] sm:$0x3] %v12370_v17  ;;  %3591 = vst [vmem:[#allocation2 + $0xe0] sm:$0xff] %v12370_v17  ;;  %2571 = vmatmul.mubr.f32.gmra.mrb[72].mxu1 %v12673_v46  ;;  %v10076_v4 = vadd.f32 %v12348_v24, %v1576_v26  ;;  %v1578_v23 = vpop.f32.mrb[45].mxu0  ;;  %v12681_v51 = vld [vmem:[#allocation2 + $0xf1] sm:$0xff] }
 0x305   : > { %5362 = vst [vmem:[#allocation2 + $0xe8] sm:$0x3] %v12370_v17  ;;  %1956 = vst [vmem:[#allocation2 + $0x109] sm:$0xff] %v1870_v7  ;;  %2575 = vmatprep.mubr.f32.mxu1 %v1869_v31  ;;  %v12683_v57 = vld [vmem:[#allocation2 + $0xf0] sm:$0xff] }
 0x306   : > { %6109 = vst [vmem:[#allocation2 + $0xe8] sm:$0x3] %v12370_v17  ;;  %15792 = vst [vmem:[#allocation54_spill] sm:$0xff] %v12681_v51  ;;  %v12685_v45 = vld [vmem:[#allocation2 + $0xf2] sm:$0xff]  ;;  %v12689_v61 = vld [vmem:[#allocation2 + $0xfa] sm:$0xff]  ;;  %v1802_v35 = vadd.f32 %v10076_v4, %v12293_v5  ;;  %v1581_v43 = vpop.f32.mrb[46].mxu0 }
 0x307   : > { %6818 = vst [vmem:[#allocation2 + $0xe8] sm:$0x3] %v12370_v17  ;;  %15793 = vst [vmem:[#allocation55_spill] sm:$0xff] %v12683_v57  ;;  %v12687_v48 = vld [vmem:[#allocation2 + $0xf8] sm:$0xff]  ;;  %8784 = vmatprep.mubr.f32.mxu0 %v12685_v45  ;;  %v10077_v5 = vadd.f32 %v12348_v24, %v1581_v43  ;;  %v1583_v4 = vpop.f32.mrb[47].mxu0 }
 0x308   : > { %15794 = vst [vmem:[#allocation56_spill] sm:$0xff] %v12685_v45  ;;  %15795 = vst [vmem:[#allocation57_spill] sm:$0xff] %v12689_v61  ;;  %2576 = vmatmul.mubr.f32.gmra.mrb[74].mxu1 %v12687_v48  ;;  %v12694_v31 = vld [vmem:[#allocation2 + $0xf9] sm:$0xff]  ;;  %8785 = vmatmul.mubr.f32.gmra.mrb[80].mxu0 %v12689_v61  ;;  %v1872_v23 = vmax.f32 %v1802_v35, 0.0 }
 0x309   : > { %1957 = vst [vmem:[#allocation2 + $0x111] sm:$0xff] %v1871_v58  ;;  %15796 = vst [vmem:[#allocation58_spill] sm:$0xff] %v12694_v31  ;;  %v12697_v26 = vld [vmem:[#allocation2 + $0xf8] sm:$0xff]  ;;  %2580 = vmatprep.mubr.f32.mxu1 %v1870_v7 }
 0x30a   : > { %6819 = vst [vmem:[#allocation2 + $0xf0] sm:$0xff] %v12370_v17  ;;  %15797 = vst [vmem:[#allocation59_spill] sm:$0xff] %v12697_v26  ;;  %v1807_v26 = vadd.f32 %v10077_v5, %v12291_v60  ;;  %v1586_v7 = vpop.f32.mrb[48].mxu0 }
 0x30b   : > { %3595 = vst [vmem:[#allocation2 + $0x100] sm:$0x3] %v12370_v17  ;;  %6820 = vst [vmem:[#allocation2 + $0xf8] sm:$0xff] %v12370_v17  ;;  %v10078_v43 = vadd.f32 %v12348_v24, %v1586_v7  ;;  %v1588_v4 = vpop.f32.mrb[49].mxu0 }
 0x30c   : > { %4548 = vst [vmem:[#allocation2 + $0x100] sm:$0x3] %v12370_v17  ;;  %v12704_v57 = vld [vmem:[#allocation2 + $0x108] sm:$0xff]  ;;  %1958 = vst [vmem:[#allocation2 + $0x121] sm:$0xff] %v1872_v23  ;;  %v1873_v35 = vmax.f32 %v1807_v26, 0.0 }
 0x30d   : > { %5365 = vst [vmem:[#allocation2 + $0x100] sm:$0x3] %v12370_v17  ;;  %2581 = vmatmul.mubr.f32.gmra.mrb[76].mxu1 %v12704_v57  ;;  %v12712_v31 = vld [vmem:[#allocation2 + $0x109] sm:$0xff]  ;;  %v1812_v5 = vadd.f32 %v10078_v43, %v12304_v37 }
 0x30e   : > { %6112 = vst [vmem:[#allocation2 + $0x100] sm:$0x3] %v12370_v17  ;;  %2585 = vmatprep.mubr.f32.mxu1 %v1871_v58  ;;  %15798 = vst [vmem:[#allocation60_spill] sm:$0xff] %v12712_v31  ;;  %v12714_v51 = vld [vmem:[#allocation2 + $0x108] sm:$0xff]  ;;  %v1591_v7 = vpop.f32.mrb[50].mxu0 }
 0x30f   : > { %6821 = vst [vmem:[#allocation2 + $0x100] sm:$0x3] %v12370_v17  ;;  %15799 = vst [vmem:[#allocation61_spill] sm:$0xff] %v12714_v51  ;;  %v1874_v4 = vmax.f32 %v1812_v5, 0.0  ;;  %v10079_v37 = vadd.f32 %v12348_v24, %v1591_v7  ;;  %v1593_v43 = vpop.f32.mrb[51].mxu0 }
 0x310   : > { %v12716_v61 = vld [vmem:[#allocation2 + $0x10a] sm:$0xff]  ;;  %v12720_v60 = vld [vmem:[#allocation2 + $0x112] sm:$0xff]  ;;  %1959 = vst [vmem:[#allocation2 + $0x129] sm:$0xff] %v1873_v35 }
 0x311   : > { %15800 = vst [vmem:[#allocation62_spill] sm:$0xff] %v12716_v61  ;;  %v12718_v45 = vld [vmem:[#allocation2 + $0x110] sm:$0xff]  ;;  %15801 = vst [vmem:[#allocation63_spill] sm:$0xff] %v12720_v60  ;;  %8787 = vmatprep.mubr.f32.mxu0 %v12716_v61 }
 0x312   : > { %2586 = vmatmul.mubr.f32.gmra.mrb[78].mxu1 %v12718_v45  ;;  %v12725_v58 = vld [vmem:[#allocation2 + $0x111] sm:$0xff]  ;;  %6822 = vst [vmem:[#allocation2 + $0x108] sm:$0xff] %v12370_v17  ;;  %8788 = vmatmul.mubr.f32.gmra.mrb[82].mxu0 %v12720_v60  ;;  %1960 = vst [vmem:[#allocation2 + $0x139] sm:$0xff] %v1874_v4 }
 0x313   : > { %15802 = vst [vmem:[#allocation64_spill] sm:$0xff] %v12725_v58  ;;  %v12728_v26 = vld [vmem:[#allocation2 + $0x110] sm:$0xff]  ;;  %2590 = vmatprep.mubr.f32.mxu1 %v1872_v23  ;;  %3598 = vst [vmem:[#allocation2 + $0x118] sm:$0x3] %v12370_v17  ;;  %v12735_v51 = vld [vmem:[#allocation2 + $0x120] sm:$0xff]  ;;  %v1596_v23 = vpop.f32.mrb[52].mxu0 }
 0x314   : > { %15803 = vst [vmem:[#allocation65_spill] sm:$0xff] %v12728_v26  ;;  %6823 = vst [vmem:[#allocation2 + $0x110] sm:$0xff] %v12370_v17  ;;  %v1817_v26 = vadd.f32 %v10079_v37, %v12302_v1  ;;  %v10080_v7 = vadd.f32 %v12348_v24, %v1596_v23  ;;  %v1598_v43 = vpop.f32.mrb[53].mxu0  ;;  %v12743_v58 = vld [vmem:[#allocation2 + $0x121] sm:$0xff] }
 0x315   : > { %4551 = vst [vmem:[#allocation2 + $0x118] sm:$0x3] %v12370_v17  ;;  %15804 = vst [vmem:[#allocation66_spill] sm:$0xff] %v12743_v58  ;;  %v12745_v31 = vld [vmem:[#allocation2 + $0x120] sm:$0xff] }
 0x316   : > { %5368 = vst [vmem:[#allocation2 + $0x118] sm:$0x3] %v12370_v17  ;;  %2591 = vmatmul.mubr.f32.gmra.mrb[80].mxu1 %v12735_v51  ;;  %v1875_v5 = vmax.f32 %v1817_v26, 0.0  ;;  %15805 = vst [vmem:[#allocation67_spill] sm:$0xff] %v12745_v31  ;;  %v1822_v37 = vadd.f32 %v10080_v7, %v12315_v32  ;;  %v1601_v23 = vpop.f32.mrb[54].mxu0 }
 0x317   : > { %6115 = vst [vmem:[#allocation2 + $0x118] sm:$0x3] %v12370_v17  ;;  %2595 = vmatprep.mubr.f32.mxu1 %v1873_v35  ;;  %v12747_v60 = vld [vmem:[#allocation2 + $0x122] sm:$0xff]  ;;  %v12751_v1 = vld [vmem:[#allocation2 + $0x12a] sm:$0xff]  ;;  %v10081_v32 = vadd.f32 %v12348_v24, %v1601_v23  ;;  %v1603_v7 = vpop.f32.mrb[55].mxu0 }
 0x318   : > { %6824 = vst [vmem:[#allocation2 + $0x118] sm:$0x3] %v12370_v17  ;;  %v12749_v61 = vld [vmem:[#allocation2 + $0x128] sm:$0xff]  ;;  %15806 = vst [vmem:[#allocation68_spill] sm:$0xff] %v12751_v1  ;;  %8790 = vmatprep.mubr.f32.mxu0 %v12747_v60  ;;  %v12764_v43 = vmax.f32 %v1822_v37, 0.0 }
 0x319   : > { %1961 = vst [vmem:[#allocation2 + $0x141] sm:$0xff] %v1875_v5  ;;  %v12756_v35 = vld [vmem:[#allocation2 + $0x129] sm:$0xff]  ;;  %6825 = vst [vmem:[#allocation2 + $0x120] sm:$0xff] %v12370_v17  ;;  %8791 = vmatmul.mubr.f32.gmra.mrb[84].mxu0 %v12751_v1  ;;  %v12768_v31 = vld [vmem:[#allocation2 + $0x138] sm:$0xff] }
 0x31a   : > { %2596 = vmatmul.mubr.f32.gmra.mrb[82].mxu1 %v12749_v61  ;;  %15807 = vst [vmem:[#allocation69_spill] sm:$0xff] %v12756_v35  ;;  %v12759_v26 = vld [vmem:[#allocation2 + $0x128] sm:$0xff]  ;;  %3601 = vst [vmem:[#allocation2 + $0x130] sm:$0x3] %v12370_v17  ;;  %v12779_v35 = vld [vmem:[#allocation2 + $0x139] sm:$0xff] }
 0x31b   : > { %15808 = vst [vmem:[#allocation70_spill] sm:$0xff] %v12759_v26  ;;  %2600 = vmatprep.mubr.f32.mxu1 %v1874_v4  ;;  %6826 = vst [vmem:[#allocation2 + $0x128] sm:$0xff] %v12370_v17  ;;  %v1827_v26 = vadd.f32 %v10081_v32, %v12313_v0  ;;  %v1606_v4 = vpop.f32.mrb[56].mxu0  ;;  %v12781_v58 = vld [vmem:[#allocation2 + $0x138] sm:$0xff] }
 0x31c   : > { %15809 = vst [vmem:[#allocation71_spill] sm:$0xff] %v12764_v43  ;;  %4554 = vst [vmem:[#allocation2 + $0x130] sm:$0x3] %v12370_v17  ;;  %v10082_v23 = vadd.f32 %v12348_v24, %v1606_v4  ;;  %v1608_v7 = vpop.f32.mrb[57].mxu0 }
 0x31d   : > { %5371 = vst [vmem:[#allocation2 + $0x130] sm:$0x3] %v12370_v17  ;;  %1962 = vst [vmem:[#allocation2 + $0x151] sm:$0xff] %v12764_v43  ;;  %v12776_v37 = vmax.f32 %v1827_v26, 0.0 }
 0x31e   : > { %2601 = vmatmul.mubr.f32.gmra.mrb[84].mxu1 %v12768_v31  ;;  %6118 = vst [vmem:[#allocation2 + $0x130] sm:$0x3] %v12370_v17  ;;  %15811 = vst [vmem:[#allocation73_spill] sm:$0xff] %v12779_v35  ;;  %v1611_v7 = vpop.f32.mrb[58].mxu0 }
 0x31f   : > { %2605 = vmatprep.mubr.f32.mxu1 %v1875_v5  ;;  %6827 = vst [vmem:[#allocation2 + $0x130] sm:$0x3] %v12370_v17  ;;  %15810 = vst [vmem:[#allocation72_spill] sm:$0xff] %v12776_v37  ;;  %v1832_v5 = vadd.f32 %v10082_v23, %v12326_v47  ;;  %v10083_v23 = vadd.f32 %v12348_v24, %v1611_v7 }
 0x320   : > { %15812 = vst [vmem:[#allocation74_spill] sm:$0xff] %v12781_v58  ;;  %v12783_v1 = vld [vmem:[#allocation2 + $0x13a] sm:$0xff]  ;;  %v12787_v32 = vld [vmem:[#allocation2 + $0x142] sm:$0xff]  ;;  %1963 = vst [vmem:[#allocation2 + $0x159] sm:$0xff] %v12776_v37  ;;  %v1613_v58 = vpop.f32.mrb[59].mxu0 }
 0x321   : > { %15813 = vst [vmem:[#allocation75_spill] sm:$0xff] %v12783_v1  ;;  %v12785_v0 = vld [vmem:[#allocation2 + $0x140] sm:$0xff]  ;;  %15814 = vst [vmem:[#allocation76_spill] sm:$0xff] %v12787_v32  ;;  %8793 = vmatprep.mubr.f32.mxu0 %v12783_v1  ;;  %v12802_v47 = vmax.f32 %v1832_v5, 0.0 }
 0x322   : > { %2606 = vmatmul.mubr.f32.gmra.mrb[86].mxu1 %v12785_v0  ;;  %v12793_v26 = vld [vmem:[#allocation2 + $0x141] sm:$0xff]  ;;  %6828 = vst [vmem:[#allocation2 + $0x138] sm:$0xff] %v12370_v17  ;;  %8794 = vmatmul.mubr.f32.gmra.mrb[86].mxu0 %v12787_v32 }
 0x323   : > { %15815 = vst [vmem:[#allocation77_spill] sm:$0xff] %v12793_v26  ;;  %v12796_v4 = vld [vmem:[#allocation2 + $0x140] sm:$0xff]  ;;  %2610 = vmatprep.mubr.f32.mxu1 %v12764_v43  ;;  %3604 = vst [vmem:[#allocation2 + $0x148] sm:$0x3] %v12370_v17  ;;  %v1616_v43 = vpop.f32.mrb[60].mxu0 }
 0x324   : > { %15816 = vst [vmem:[#allocation78_spill] sm:$0xff] %v12796_v4  ;;  %6829 = vst [vmem:[#allocation2 + $0x140] sm:$0xff] %v12370_v17  ;;  %v12806_v26 = vld [vmem:[#allocation2 + $0x150] sm:$0xff]  ;;  %v1837_v4 = vadd.f32 %v10083_v23, %v12324_v38  ;;  %v10084_v5 = vadd.f32 %v12348_v24, %v1616_v43  ;;  %v1618_v7 = vpop.f32.mrb[61].mxu0 }
 0x325   : > { %4557 = vst [vmem:[#allocation2 + $0x148] sm:$0x3] %v12370_v17  ;;  %1964 = vst [vmem:[#allocation2 + $0x169] sm:$0xff] %v12802_v47  ;;  %v12818_v35 = vld [vmem:[#allocation2 + $0x151] sm:$0xff] }
 0x326   : > { %5374 = vst [vmem:[#allocation2 + $0x148] sm:$0x3] %v12370_v17  ;;  %2611 = vmatmul.mubr.f32.gmra.mrb[88].mxu1 %v12806_v26  ;;  %v12815_v58 = vmax.f32 %v1837_v4, 0.0  ;;  %15818 = vst [vmem:[#allocation80_spill] sm:$0xff] %v12818_v35  ;;  %v12820_v32 = vld [vmem:[#allocation2 + $0x150] sm:$0xff]  ;;  %v1621_v7 = vpop.f32.mrb[62].mxu0 }
 0x327   : > { %6121 = vst [vmem:[#allocation2 + $0x148] sm:$0x3] %v12370_v17  ;;  %2615 = vmatprep.mubr.f32.mxu1 %v12776_v37  ;;  %15819 = vst [vmem:[#allocation81_spill] sm:$0xff] %v12820_v32  ;;  %v12822_v1 = vld [vmem:[#allocation2 + $0x152] sm:$0xff]  ;;  %v12826_v23 = vld [vmem:[#allocation2 + $0x15a] sm:$0xff]  ;;  %v12830_v37 = vadd.f32 %v10084_v5, %v12337_v53  ;;  %v10085_v5 = vadd.f32 %v12348_v24, %v1621_v7  ;;  %v1623_v32 = vpop.f32.mrb[63].mxu0 }
 0x328   : > { %6830 = vst [vmem:[#allocation2 + $0x148] sm:$0x3] %v12370_v17  ;;  %15817 = vst [vmem:[#allocation79_spill] sm:$0xff] %v12815_v58  ;;  %v12824_v38 = vld [vmem:[#allocation2 + $0x158] sm:$0xff]  ;;  %8796 = vmatprep.mubr.f32.mxu0 %v12822_v1  ;;  %v7017_v24 = vld [vmem:[%s15631_s1 + $0x680] sm:$0xff] }
 0x329   : > { %1965 = vst [vmem:[#allocation2 + $0x171] sm:$0xff] %v12815_v58  ;;  %15820 = vst [vmem:[#allocation82_spill] sm:$0xff] %v12830_v37  ;;  %v12835_v43 = vld [vmem:[#allocation2 + $0x159] sm:$0xff]  ;;  %8797 = vmatmul.mubr.f32.gmra.mrb[88].mxu0 %v12826_v23  ;;  %v15695_v53 = vmax.f32 %v12830_v37, 0.0  ;;  %v7018_v7 = vld [vmem:[%s15631_s1 + $0x688] sm:$0xff] }
 0x32a   : > { %2616 = vmatmul.mubr.f32.gmra.mrb[90].mxu1 %v12824_v38  ;;  %6831 = vst [vmem:[#allocation2 + $0x150] sm:$0xff] %v12370_v17  ;;  %15821 = vst [vmem:[#allocation83_spill] sm:$0xff] %v12835_v43  ;;  %v12837_v4 = vld [vmem:[#allocation2 + $0x158] sm:$0xff] }
 0x32b   : > { %15822 = vst [vmem:[#allocation84_spill] sm:$0xff] %v12837_v4  ;;  %2620 = vmatprep.mubr.f32.mxu1 %v12802_v47  ;;  %3607 = vst [vmem:[#allocation2 + $0x160] sm:$0x3] %v12370_v17  ;;  %v12852_v4 = vadd.f32 %v10085_v5, %v12335_v29 }
 0x32c   : > { %6832 = vst [vmem:[#allocation2 + $0x158] sm:$0xff] %v12370_v17  ;;  %4560 = vst [vmem:[#allocation2 + $0x160] sm:$0x3] %v12370_v17  ;;  %v12846_v35 = vld [vmem:[#allocation2 + $0x168] sm:$0xff] }
 0x32d   : > { %5377 = vst [vmem:[#allocation2 + $0x160] sm:$0x3] %v12370_v17  ;;  %1966 = vst [vmem:[#allocation2 + $0x181] sm:$0xff] %v15695_v53  ;;  %v15698_v32 = vmax.f32 %v12852_v4, 0.0  ;;  %v12865_v29 = vld [vmem:[#allocation2 + $0x169] sm:$0xff] }
 0x32e   : > { %15823 = vst [vmem:[#allocation85_spill] sm:$0xff] %v12852_v4  ;;  %2621 = vmatmul.mubr.f32.gmra.mrb[92].mxu1 %v12846_v35  ;;  %6124 = vst [vmem:[#allocation2 + $0x160] sm:$0x3] %v12370_v17  ;;  %v12867_v5 = vld [vmem:[#allocation2 + $0x168] sm:$0xff] }
 0x32f   : > { %2625 = vmatprep.mubr.f32.mxu1 %v12815_v58  ;;  %6833 = vst [vmem:[#allocation2 + $0x160] sm:$0x3] %v12370_v17  ;;  %15824 = vst [vmem:[#allocation86_spill] sm:$0xff] %v12865_v29 }
 0x330   : > { %15825 = vst [vmem:[#allocation87_spill] sm:$0xff] %v12867_v5  ;;  %v12869_v53 = vld [vmem:[#allocation2 + $0x16a] sm:$0xff]  ;;  %v12873_v37 = vld [vmem:[#allocation2 + $0x172] sm:$0xff]  ;;  %1967 = vst [vmem:[#allocation2 + $0x189] sm:$0xff] %v15698_v32  ;;  %v9287_v5 = vpack.c.bf16 %v7018_v7, %v7017_v24 }
 0x331   : > { %v12871_v43 = vld [vmem:[#allocation2 + $0x170] sm:$0xff]  ;;  %8799 = vmatprep.mubr.f32.mxu0 %v12869_v53  ;;  %6834 = vst [vmem:[#allocation2 + $0x168] sm:$0xff] %v12370_v17  ;;  %v7021_v24 = vld [vmem:[%s15631_s1 + $0x6a0] sm:$0xff]  ;;  %v7022_v7 = vld [vmem:[%s15631_s1 + $0x6a8] sm:$0xff] }
 0x332   : > { %2626 = vmatmul.mubr.f32.gmra.mrb[94].mxu1 %v12871_v43  ;;  %v12880_v58 = vld [vmem:[#allocation2 + $0x171] sm:$0xff]  ;;  %8800 = vmatmul.mubr.f32.gmra.mrb[90].mxu0 %v12873_v37 }
 0x333   : > { %15826 = vst [vmem:[#allocation88_spill] sm:$0xff] %v12880_v58  ;;  %v12882_v29 = vld [vmem:[#allocation2 + $0x170] sm:$0xff]  ;;  %2695 = vmatprep.mubr.f32.mxu1 %v12377_v27  ;;  %3610 = vst [vmem:[#allocation2 + $0x178] sm:$0x3] %v12370_v17  ;;  %v7020_v58 = vld [vmem:[%s15631_s1 + $0x698] sm:$0xff] }
 0x334   : > { %15827 = vst [vmem:[#allocation89_spill] sm:$0xff] %v12882_v29  ;;  %6835 = vst [vmem:[#allocation2 + $0x170] sm:$0xff] %v12370_v17  ;;  %v7019_v32 = vld [vmem:[%s15631_s1 + $0x690] sm:$0xff]  ;;  %v12907_v29 = vld [vmem:[#allocation2 + $0x180] sm:$0xff] }
 0x335   : > { %4563 = vst [vmem:[#allocation2 + $0x178] sm:$0x3] %v12370_v17  ;;  %v9290_v27 = vpack.c.bf16 %v7020_v58, %v7019_v32 }
 0x336   : > { %5380 = vst [vmem:[#allocation2 + $0x178] sm:$0x3] %v12370_v17  ;;  %2696 = vmatmul.mubr.f32.vlgmr.msra.gmra.mrb[32].mxu1 %v12114_v39 }
 0x337   : > { %6127 = vst [vmem:[#allocation2 + $0x178] sm:$0x3] %v12370_v17  ;;  %2700 = vmatprep.mubr.f32.mxu1 %v12386_v30  ;;  %9288 = vmatpush1.bf16.msra.mxu1 %v9287_v5  ;;  %v12909_v39 = vld [vmem:[#allocation2 + $0x182] sm:$0xff]  ;;  %v12911_v4 = vld [vmem:[#allocation2 + $0x18a] sm:$0xff] }
 0x338   : > { %6836 = vst [vmem:[#allocation2 + $0x178] sm:$0x3] %v12370_v17  ;;  %9289 = vmatprep.subr.bf16.mxu1 %v15716_v16  ;;  %v12913_v30 = vld [vmem:[#allocation2 + $0x181] sm:$0xff]  ;;  %8802 = vmatprep.mubr.f32.mxu0 %v12909_v39  ;;  %v12920_v32 = vld [vmem:[#allocation2 + $0x189] sm:$0xff] }
 0x339   : > { %15828 = vst [vmem:[#allocation90_spill] sm:$0xff] %v12913_v30  ;;  %v12917_v58 = vld [vmem:[#allocation2 + $0x188] sm:$0xff]  ;;  %6837 = vst [vmem:[#allocation2 + $0x180] sm:$0xff] %v12370_v17  ;;  %8803 = vmatmul.mubr.f32.gmra.mrb[92].mxu0 %v12911_v4  ;;  %v9293_v30 = vpack.c.bf16 %v7022_v7, %v7021_v24  ;;  %v7027_v7 = vld [vmem:[%s15631_s1 + $0x6d0] sm:$0xff] }
 0x33a   : > { %2701 = vmatmul.mubr.f32.gmra.mrb[34].mxu1 %v12367_v8  ;;  %v12922_v5 = vld [vmem:[#allocation2 + $0x188] sm:$0xff]  ;;  %3613 = vst [vmem:[#allocation2 + $0x190] sm:$0x3] %v12370_v17  ;;  %v7023_v8 = vld [vmem:[%s15631_s1 + $0x6b0] sm:$0xff] }
 0x33b   : > { %15829 = vst [vmem:[#allocation91_spill] sm:$0xff] %v12922_v5  ;;  %2705 = vmatprep.mubr.f32.mxu1 %v12399_v56  ;;  %6838 = vst [vmem:[#allocation2 + $0x188] sm:$0xff] %v12370_v17  ;;  %9291 = vmatpush1.bf16.msra.mxu1 %v9290_v27  ;;  %v7024_v5 = vld [vmem:[%s15631_s1 + $0x6b8] sm:$0xff]  ;;  %v7025_v27 = vld [vmem:[%s15631_s1 + $0x6c0] sm:$0xff] }
 0x33c   : > { %4566 = vst [vmem:[#allocation2 + $0x190] sm:$0x3] %v12370_v17  ;;  %9292 = vmatprep.subr.bf16.mxu1 %v15716_v16  ;;  %v9296_v56 = vpack.c.bf16 %v7024_v5, %v7023_v8  ;;  %v7026_v24 = vld [vmem:[%s15631_s1 + $0x6c8] sm:$0xff] }
 0x33d   : > { %5383 = vst [vmem:[#allocation2 + $0x190] sm:$0x3] %v12370_v17  ;;  %v7030_v8 = vld [vmem:[%s15631_s1 + $0x6e8] sm:$0xff] }
 0x33e   : > { %2706 = vmatmul.mubr.f32.gmra.mrb[36].mxu1 %v12384_v18  ;;  %6130 = vst [vmem:[#allocation2 + $0x190] sm:$0x3] %v12370_v17 }
 0x33f   : > { %2710 = vmatprep.mubr.f32.mxu1 %v12413_v9  ;;  %6839 = vst [vmem:[#allocation2 + $0x190] sm:$0x3] %v12370_v17  ;;  %9294 = vmatpush1.bf16.msra.mxu1 %v9293_v30  ;;  %v9299_v9 = vpack.c.bf16 %v7026_v24, %v7025_v27  ;;  %v7028_v30 = vld [vmem:[%s15631_s1 + $0x6d8] sm:$0xff]  ;;  %v7034_v24 = vld [vmem:[%s15631_s1 + $0x708] sm:$0xff] }
 0x340   : > { %9295 = vmatprep.subr.bf16.mxu1 %v15716_v16  ;;  %v9302_v5 = vpack.c.bf16 %v7028_v30, %v7027_v7  ;;  %v7032_v27 = vld [vmem:[%s15631_s1 + $0x6f8] sm:$0xff]  ;;  %v7038_v30 = vld [vmem:[%s15631_s1 + $0x728] sm:$0xff] }
 0x341   : > { %v7036_v7 = vld [vmem:[%s15631_s1 + $0x718] sm:$0xff] }
 0x342   : > { %2711 = vmatmul.mubr.f32.gmra.mrb[38].mxu1 %v12391_v40 }
 0x343   : > { %2715 = vmatprep.mubr.f32.mxu1 %v12432_v59  ;;  %9297 = vmatpush1.bf16.msra.mxu1 %v9296_v56  ;;  %v7029_v59 = vld [vmem:[%s15631_s1 + $0x6e0] sm:$0xff] }
 0x344   : > { %9298 = vmatprep.subr.bf16.mxu1 %v15716_v16  ;;  %v9305_v56 = vpack.c.bf16 %v7030_v8, %v7029_v59  ;;  %v7040_v59 = vld [vmem:[%s15631_s1 + $0x738] sm:$0xff]  ;;  %v7042_v8 = vld [vmem:[%s15631_s1 + $0x748] sm:$0xff] }
 0x346   : > { %2716 = vmatmul.mubr.f32.gmra.mrb[40].mxu1 %v12411_v3 }
 0x347   : > { %2720 = vmatprep.mubr.f32.mxu1 %v12446_v41  ;;  %9300 = vmatpush1.bf16.msra.mxu1 %v9299_v9  ;;  %v7031_v41 = vld [vmem:[%s15631_s1 + $0x6f0] sm:$0xff] }
 0x348   : > { %9301 = vmatprep.subr.bf16.mxu1 %v15716_v16 }
 0x34a   : > { %2721 = vmatmul.mubr.f32.gmra.mrb[42].mxu1 %v12415_v10  ;;  %v9308_v10 = vpack.c.bf16 %v7032_v27, %v7031_v41  ;;  %v7046_v41 = vld [vmem:[%s15631_s1 + $0x768] sm:$0xff]  ;;  %v7048_v27 = vld [vmem:[%s15631_s1 + $0x778] sm:$0xff] }
 0x34b   : > { %2725 = vmatprep.mubr.f32.mxu1 %v12465_v44  ;;  %9303 = vmatpush1.bf16.msra.mxu1 %v9302_v5  ;;  %v7033_v44 = vld [vmem:[%s15631_s1 + $0x700] sm:$0xff] }
 0x34c   : > { %9304 = vmatprep.subr.bf16.mxu1 %v15716_v16  ;;  %v9311_v9 = vpack.c.bf16 %v7034_v24, %v7033_v44  ;;  %v7054_v44 = vld [vmem:[%s15631_s1 + $0x7a8] sm:$0xff] }
 0x34d   : > { %v15839_v24 = vld [vmem:[#allocation13_spill] sm:$0xff] }
 0x34e   : > { %2726 = vmatmul.mubr.f32.gmra.mrb[44].mxu1 %v12444_v50 }
 0x34f   : > { %2730 = vmatprep.mubr.f32.mxu1 %v12479_v49  ;;  %9306 = vmatpush1.bf16.msra.mxu1 %v9305_v56  ;;  %v7035_v49 = vld [vmem:[%s15631_s1 + $0x710] sm:$0xff]  ;;  %v7044_v56 = vld [vmem:[%s15631_s1 + $0x758] sm:$0xff] }
 0x350   : > { %9307 = vmatprep.subr.bf16.mxu1 %v15716_v16 }
 0x352   : > { %2731 = vmatmul.mubr.f32.gmra.mrb[46].mxu1 %v12448_v15  ;;  %v9314_v15 = vpack.c.bf16 %v7036_v7, %v7035_v49  ;;  %v7056_v49 = vld [vmem:[%s15631_s1 + $0x7b8] sm:$0xff] }
 0x353   : > { %2735 = vmatprep.mubr.f32.mxu1 %v12498_v19  ;;  %9309 = vmatpush1.bf16.msra.mxu1 %v9308_v10  ;;  %v7037_v19 = vld [vmem:[%s15631_s1 + $0x720] sm:$0xff] }
 0x354   : > { %9310 = vmatprep.subr.bf16.mxu1 %v15716_v16  ;;  %v9317_v5 = vpack.c.bf16 %v7038_v30, %v7037_v19  ;;  %v15841_v30 = vld [vmem:[#allocation16_spill] sm:$0xff] }
 0x356   : > { %2736 = vmatmul.mubr.f32.gmra.mrb[48].mxu1 %v12477_v25 }
 0x357   : > { %2740 = vmatprep.mubr.f32.mxu1 %v12512_v11  ;;  %9312 = vmatpush1.bf16.msra.mxu1 %v9311_v9  ;;  %v7039_v11 = vld [vmem:[%s15631_s1 + $0x730] sm:$0xff] }
 0x358   : > { %9313 = vmatprep.subr.bf16.mxu1 %v15716_v16 }
 0x35a   : > { %2741 = vmatmul.mubr.f32.gmra.mrb[50].mxu1 %v12481_v63  ;;  %v9320_v63 = vpack.c.bf16 %v7040_v59, %v7039_v11  ;;  %v7058_v11 = vld [vmem:[%s15631_s1 + $0x7c8] sm:$0xff] }
 0x35b   : > { %2745 = vmatprep.mubr.f32.mxu1 %v12533_v22  ;;  %9315 = vmatpush1.bf16.msra.mxu1 %v9314_v15  ;;  %v7041_v22 = vld [vmem:[%s15631_s1 + $0x740] sm:$0xff]  ;;  %v15840_v15 = vld [vmem:[#allocation14_spill] sm:$0xff]  ;;  %v15842_v59 = vld [vmem:[#allocation17_spill] sm:$0xff] }
 0x35c   : > { %9316 = vmatprep.subr.bf16.mxu1 %v15716_v16 }
 0x35e   : > { %2746 = vmatmul.mubr.f32.gmra.mrb[52].mxu1 %v12510_v28  ;;  %v9323_v28 = vpack.c.bf16 %v7042_v8, %v7041_v22  ;;  %v7059_v22 = vld [vmem:[%s15631_s1 + $0x7d0] sm:$0xff]  ;;  %v7060_v8 = vld [vmem:[%s15631_s1 + $0x7d8] sm:$0xff] }
 0x35f   : > { %2750 = vmatprep.mubr.f32.mxu1 %v12547_v55  ;;  %9318 = vmatpush1.bf16.msra.mxu1 %v9317_v5  ;;  %v7043_v55 = vld [vmem:[%s15631_s1 + $0x750] sm:$0xff]  ;;  %v7057_v5 = vld [vmem:[%s15631_s1 + $0x7c0] sm:$0xff] }
 0x360   : > { %9319 = vmatprep.subr.bf16.mxu1 %v15716_v16 }
 0x362   : > { %2751 = vmatmul.mubr.f32.gmra.mrb[54].mxu1 %v12514_v62  ;;  %v9326_v62 = vpack.c.bf16 %v7044_v56, %v7043_v55  ;;  %v15843_v55 = vld [vmem:[#allocation7_spill] sm:$0xff] }
 0x363   : > { %2755 = vmatprep.mubr.f32.mxu1 %v12568_v42  ;;  %9321 = vmatpush1.bf16.msra.mxu1 %v9320_v63  ;;  %v7045_v42 = vld [vmem:[%s15631_s1 + $0x760] sm:$0xff]  ;;  %v9347_v63 = vpack.c.bf16 %v7058_v11, %v7057_v5  ;;  %v7070_v11 = vld [vmem:[%s15631_s1 + $0x828] sm:$0xff] }
 0x364   : > { %9322 = vmatprep.subr.bf16.mxu1 %v15716_v16  ;;  %v7069_v5 = vld [vmem:[%s15631_s1 + $0x820] sm:$0xff] }
 0x366   : > { %2756 = vmatmul.mubr.f32.gmra.mrb[56].mxu1 %v12545_v54  ;;  %v9329_v54 = vpack.c.bf16 %v7046_v41, %v7045_v42  ;;  %v7061_v42 = vld [vmem:[%s15631_s1 + $0x7e0] sm:$0xff]  ;;  %v7062_v41 = vld [vmem:[%s15631_s1 + $0x7e8] sm:$0xff] }
 0x367   : > { %2760 = vmatprep.mubr.f32.mxu1 %v12582_v36  ;;  %9324 = vmatpush1.bf16.msra.mxu1 %v9323_v28  ;;  %v7047_v36 = vld [vmem:[%s15631_s1 + $0x770] sm:$0xff] }
 0x368   : > { %9325 = vmatprep.subr.bf16.mxu1 %v15716_v16 }
 0x36a   : > { %2761 = vmatmul.mubr.f32.gmra.mrb[58].mxu1 %v12549_v2  ;;  %v9332_v2 = vpack.c.bf16 %v7048_v27, %v7047_v36  ;;  %v9353_v36 = vpack.c.bf16 %v7062_v41, %v7061_v42  ;;  %v7063_v27 = vld [vmem:[%s15631_s1 + $0x7f0] sm:$0xff] }
 0x36b   : > { %2765 = vmatprep.mubr.f32.mxu1 %v12603_v13  ;;  %9327 = vmatpush1.bf16.msra.mxu1 %v9326_v62  ;;  %v15836_v13 = vld [vmem:[#allocation75_spill] sm:$0xff]  ;;  %v15844_v62 = vld [vmem:[#allocation9_spill] sm:$0xff] }
 0x36c   : > { %9328 = vmatprep.subr.bf16.mxu1 %v15716_v16  ;;  %v15854_v41 = vld [vmem:[#allocation29_spill] sm:$0xff] }
 0x36e   : > { %2766 = vmatmul.mubr.f32.gmra.mrb[60].mxu1 %v12580_v52  ;;  %v15831_v52 = vld [vmem:[#allocation56_spill] sm:$0xff] }
 0x36f   : > { %2770 = vmatprep.mubr.f32.mxu1 %v12617_v20  ;;  %9330 = vmatpush1.bf16.msra.mxu1 %v9329_v54  ;;  %v15830_v20 = vld [vmem:[#allocation49_spill] sm:$0xff]  ;;  %v15845_v54 = vld [vmem:[#allocation10_spill] sm:$0xff] }
 0x370   : > { %9331 = vmatprep.subr.bf16.mxu1 %v15716_v16 }
 0x372   : > { %2771 = vmatmul.mubr.f32.gmra.mrb[62].mxu1 %v12584_v34  ;;  %v15832_v34 = vld [vmem:[#allocation57_spill] sm:$0xff] }
 0x373   : > { %2775 = vmatprep.mubr.f32.mxu1 %v12638_v6  ;;  %9333 = vmatpush1.bf16.msra.mxu1 %v9332_v2  ;;  %v15837_v6 = vld [vmem:[#allocation76_spill] sm:$0xff]  ;;  %v7064_v2 = vld [vmem:[%s15631_s1 + $0x7f8] sm:$0xff] }
 0x374   : > { %9334 = vmatprep.subr.bf16.mxu1 %v15716_v16 }
 0x376   : > { %2776 = vmatmul.mubr.f32.gmra.mrb[64].mxu1 %v12615_v21  ;;  %v15834_v21 = vld [vmem:[#allocation63_spill] sm:$0xff] }
 0x377   : > { %2780 = vmatprep.mubr.f32.mxu1 %v12652_v33  ;;  %v15833_v33 = vld [vmem:[#allocation62_spill] sm:$0xff] }
 0x37a   : > { %2781 = vmatmul.mubr.f32.gmra.mrb[66].mxu1 %v12619_v12 }
 0x37b   : > { %2785 = vmatprep.mubr.f32.mxu1 %v12673_v46 }
 0x37e   : > { %2786 = vmatmul.mubr.f32.gmra.mrb[68].mxu1 %v12650_v14  ;;  %v15835_v14 = vld [vmem:[#allocation68_spill] sm:$0xff] }
 0x37f   : > { %2790 = vmatprep.mubr.f32.mxu1 %v12687_v48 }
 0x382   : > { %2791 = vmatmul.mubr.f32.gmra.mrb[70].mxu1 %v15830_v20 }
 0x383   : > { %2795 = vmatprep.mubr.f32.mxu1 %v12704_v57 }
 0x386   : > { %2796 = vmatmul.mubr.f32.gmra.mrb[72].mxu1 %v15831_v52 }
 0x387   : > { %2800 = vmatprep.mubr.f32.mxu1 %v12718_v45 }
 0x38a   : > { %2801 = vmatmul.mubr.f32.gmra.mrb[74].mxu1 %v15832_v34 }
 0x38b   : > { %2805 = vmatprep.mubr.f32.mxu1 %v12735_v51 }
 0x38e   : > { %2806 = vmatmul.mubr.f32.gmra.mrb[76].mxu1 %v15833_v33 }
 0x38f   : > { %2810 = vmatprep.mubr.f32.mxu1 %v12749_v61  ;;  %v7049_v61 = vld [vmem:[%s15631_s1 + $0x780] sm:$0xff] }
 0x392   : > { %2811 = vmatmul.mubr.f32.gmra.mrb[78].mxu1 %v15834_v21 }
 0x393   : > { %2815 = vmatprep.mubr.f32.mxu1 %v12768_v31  ;;  %v7050_v31 = vld [vmem:[%s15631_s1 + $0x788] sm:$0xff] }
 0x396   : > { %2816 = vmatmul.mubr.f32.gmra.mrb[80].mxu1 %v12747_v60 }
 0x397   : > { %2820 = vmatprep.mubr.f32.mxu1 %v12785_v0  ;;  %v7051_v0 = vld [vmem:[%s15631_s1 + $0x790] sm:$0xff] }
 0x399   : > { %v13073_v45 = vpop.f32.mrb[64].mxu0 }
 0x39a   : > { %2821 = vmatmul.mubr.f32.gmra.mrb[82].mxu1 %v15835_v14  ;;  %v13076_v12 = vpop.f32.mrb[65].mxu0 }
 0x39b   : > { %2825 = vmatprep.mubr.f32.mxu1 %v12806_v26  ;;  %v7052_v26 = vld [vmem:[%s15631_s1 + $0x798] sm:$0xff] }
 0x39c   : > { %v9338_v10 = vpack.c.bf16 %v7052_v26, %v7051_v0  ;;  %v7065_v0 = vld [vmem:[%s15631_s1 + $0x800] sm:$0xff]  ;;  %v7066_v26 = vld [vmem:[%s15631_s1 + $0x808] sm:$0xff] }
 0x39e   : > { %2826 = vmatmul.mubr.f32.gmra.mrb[84].mxu1 %v15836_v13 }
 0x39f   : > { %2830 = vmatprep.mubr.f32.mxu1 %v12824_v38 }
 0x3a1   : > { %v13081_v48 = vpop.f32.mrb[66].mxu0 }
 0x3a2   : > { %2831 = vmatmul.mubr.f32.gmra.mrb[86].mxu1 %v15837_v6  ;;  %v13084_v57 = vpop.f32.mrb[67].mxu0 }
 0x3a3   : > { %2835 = vmatprep.mubr.f32.mxu1 %v12846_v35  ;;  %v9335_v35 = vpack.c.bf16 %v7050_v31, %v7049_v61  ;;  %v15846_v61 = vld [vmem:[#allocation19_spill] sm:$0xff] }
 0x3a6   : > { %2836 = vmatmul.mubr.f32.gmra.mrb[88].mxu1 %v12822_v1 }
 0x3a7   : > { %2840 = vmatprep.mubr.f32.mxu1 %v12871_v43  ;;  %v15838_v43 = vld [vmem:[#allocation12_spill] sm:$0xff] }
 0x3a9   : > { %v13089_v46 = vpop.f32.mrb[68].mxu0 }
 0x3aa   : > { %2841 = vmatmul.mubr.f32.gmra.mrb[90].mxu1 %v12826_v23  ;;  %v13092_v51 = vpop.f32.mrb[69].mxu0 }
 0x3ab   : > { %2845 = vmatprep.mubr.f32.mxu1 %v12907_v29 }
 0x3ae   : > { %2846 = vmatmul.mubr.f32.gmra.mrb[92].mxu1 %v12869_v53 }
 0x3af   : > { %2850 = vmatprep.mubr.f32.mxu1 %v12917_v58 }
 0x3b1   : > { %v13109_v38 = vpop.f32.mrb[70].mxu0 }
 0x3b2   : > { %2851 = vmatmul.mubr.f32.gmra.mrb[94].mxu1 %v12873_v37  ;;  %v13112_v58 = vpop.f32.mrb[71].mxu0 }
 0x3b3   : > { %2920 = vmatprep.mubr.f32.mxu1 %v12384_v18  ;;  %v7053_v18 = vld [vmem:[%s15631_s1 + $0x7a0] sm:$0xff] }
 0x3b4   : > { %v9341_v9 = vpack.c.bf16 %v7054_v44, %v7053_v18  ;;  %v9359_v18 = vpack.c.bf16 %v7066_v26, %v7065_v0  ;;  %v7067_v44 = vld [vmem:[%s15631_s1 + $0x810] sm:$0xff] }
 0x3b5   : > { %v15856_v0 = vld [vmem:[#allocation33_spill] sm:$0xff] }
 0x3b6   : > { %2921 = vmatmul.mubr.f32.vlgmr.msra.gmra.mrb[32].mxu1 %v15838_v43  ;;  %v15848_v43 = vld [vmem:[#allocation21_spill] sm:$0xff] }
 0x3b7   : > { %2925 = vmatprep.mubr.f32.mxu1 %v12391_v40  ;;  %9336 = vmatpush1.bf16.msra.mxu1 %v9335_v35  ;;  %v7055_v40 = vld [vmem:[%s15631_s1 + $0x7b0] sm:$0xff]  ;;  %v15847_v35 = vld [vmem:[#allocation20_spill] sm:$0xff] }
 0x3b8   : > { %9337 = vmatprep.subr.bf16.mxu1 %v15716_v16  ;;  %v15857_v26 = vld [vmem:[#allocation37_spill] sm:$0xff] }
 0x3b9   : > { %v13131_v7 = vpop.f32.mrb[72].mxu0 }
 0x3ba   : > { %2926 = vmatmul.mubr.f32.gmra.mrb[34].mxu1 %v15839_v24  ;;  %v13134_v19 = vpop.f32.mrb[73].mxu0  ;;  %v7068_v24 = vld [vmem:[%s15631_s1 + $0x818] sm:$0xff] }
 0x3bb   : > { %2930 = vmatprep.mubr.f32.mxu1 %v12411_v3  ;;  %9339 = vmatpush1.bf16.msra.mxu1 %v9338_v10  ;;  %v9344_v3 = vpack.c.bf16 %v7056_v49, %v7055_v40  ;;  %v15849_v10 = vld [vmem:[#allocation25_spill] sm:$0xff]  ;;  %v15850_v40 = vld [vmem:[#allocation23_spill] sm:$0xff] }
 0x3bc   : > { %9340 = vmatprep.subr.bf16.mxu1 %v15716_v16 }
 0x3be   : > { %2931 = vmatmul.mubr.f32.gmra.mrb[36].mxu1 %v15840_v15 }
 0x3bf   : > { %2935 = vmatprep.mubr.f32.mxu1 %v15841_v30  ;;  %9342 = vmatpush1.bf16.msra.mxu1 %v9341_v9  ;;  %v15851_v30 = vld [vmem:[#allocation26_spill] sm:$0xff] }
 0x3c0   : > { %9343 = vmatprep.subr.bf16.mxu1 %v15716_v16 }
 0x3c2   : > { %2936 = vmatmul.mubr.f32.gmra.mrb[38].mxu1 %v15842_v59  ;;  %v13153_v28 = vpop.f32.mrb[74].mxu0 }
 0x3c3   : > { %2940 = vmatprep.mubr.f32.mxu1 %v12444_v50  ;;  %9345 = vmatpush1.bf16.msra.mxu1 %v9344_v3  ;;  %v13156_v56 = vpop.f32.mrb[75].mxu0  ;;  %v9350_v50 = vpack.c.bf16 %v7060_v8, %v7059_v22  ;;  %v9362_v3 = vpack.c.bf16 %v7068_v24, %v7067_v44  ;;  %v15853_v22 = vld [vmem:[#allocation31_spill] sm:$0xff]  ;;  %v9365_v8 = vpack.c.bf16 %v7070_v11, %v7069_v5  ;;  %v15859_v5 = vld [vmem:[#allocation38_spill] sm:$0xff] }
 0x3c4   : > { %9346 = vmatprep.subr.bf16.mxu1 %v15716_v16  ;;  %v7076_v44 = vld [vmem:[%s15631_s1 + $0x858] sm:$0xff] }
 0x3c6   : > { %2941 = vmatmul.mubr.f32.gmra.mrb[40].mxu1 %v15843_v55 }
 0x3c7   : > { %2945 = vmatprep.mubr.f32.mxu1 %v15844_v62  ;;  %9348 = vmatpush1.bf16.msra.mxu1 %v9347_v63  ;;  %v15852_v63 = vld [vmem:[#allocation27_spill] sm:$0xff]  ;;  %v7071_v62 = vld [vmem:[%s15631_s1 + $0x830] sm:$0xff] }
 0x3c8   : > { %9349 = vmatprep.subr.bf16.mxu1 %v15716_v16 }
 0x3ca   : > { %2946 = vmatmul.mubr.f32.gmra.mrb[42].mxu1 %v15845_v54  ;;  %v13175_v20 = vpop.f32.mrb[76].mxu0 }
 0x3cb   : > { %2950 = vmatprep.mubr.f32.mxu1 %v12477_v25  ;;  %9351 = vmatpush1.bf16.msra.mxu1 %v9350_v50  ;;  %v13178_v31 = vpop.f32.mrb[77].mxu0  ;;  %v9356_v25 = vpack.c.bf16 %v7064_v2, %v7063_v27  ;;  %v7072_v50 = vld [vmem:[%s15631_s1 + $0x838] sm:$0xff]  ;;  %v15855_v27 = vld [vmem:[#allocation32_spill] sm:$0xff] }
 0x3cc   : > { %9352 = vmatprep.subr.bf16.mxu1 %v15716_v16  ;;  %v9368_v2 = vpack.c.bf16 %v7072_v50, %v7071_v62  ;;  %v15860_v62 = vld [vmem:[#allocation39_spill] sm:$0xff] }
 0x3cd   : > { %v15861_v50 = vld [vmem:[#allocation43_spill] sm:$0xff] }
 0x3ce   : > { %2951 = vmatmul.mubr.f32.gmra.mrb[44].mxu1 %v15846_v61 }
 0x3cf   : > { %2955 = vmatprep.mubr.f32.mxu1 %v15847_v35  ;;  %9354 = vmatpush1.bf16.msra.mxu1 %v9353_v36  ;;  %v7073_v35 = vld [vmem:[%s15631_s1 + $0x840] sm:$0xff] }
 0x3d0   : > { %9355 = vmatprep.subr.bf16.mxu1 %v15716_v16 }
 0x3d2   : > { %2956 = vmatmul.mubr.f32.gmra.mrb[46].mxu1 %v15848_v43 }
 0x3d3   : > { %2960 = vmatprep.mubr.f32.mxu1 %v15849_v10  ;;  %9357 = vmatpush1.bf16.msra.mxu1 %v9356_v25  ;;  %v13197_v9 = vpop.f32.mrb[78].mxu0  ;;  %v7074_v25 = vld [vmem:[%s15631_s1 + $0x848] sm:$0xff] }
 0x3d4   : > { %9358 = vmatprep.subr.bf16.mxu1 %v15716_v16  ;;  %v13200_v49 = vpop.f32.mrb[79].mxu0  ;;  %v9371_v10 = vpack.c.bf16 %v7074_v25, %v7073_v35  ;;  %v7080_v35 = vld [vmem:[%s15631_s1 + $0x878] sm:$0xff] }
 0x3d6   : > { %2961 = vmatmul.mubr.f32.gmra.mrb[48].mxu1 %v15850_v40 }
 0x3d7   : > { %2965 = vmatprep.mubr.f32.mxu1 %v15851_v30  ;;  %9360 = vmatpush1.bf16.msra.mxu1 %v9359_v18  ;;  %v7075_v18 = vld [vmem:[%s15631_s1 + $0x850] sm:$0xff]  ;;  %v15858_v30 = vld [vmem:[#allocation35_spill] sm:$0xff] }
 0x3d8   : > { %9361 = vmatprep.subr.bf16.mxu1 %v15716_v16  ;;  %v9374_v11 = vpack.c.bf16 %v7076_v44, %v7075_v18  ;;  %v15865_v18 = vld [vmem:[#allocation44_spill] sm:$0xff] }
 0x3da   : > { %2966 = vmatmul.mubr.f32.gmra.mrb[50].mxu1 %v15852_v63 }
 0x3db   : > { %2970 = vmatprep.mubr.f32.mxu1 %v15853_v22  ;;  %9363 = vmatpush1.bf16.msra.mxu1 %v9362_v3  ;;  %v13219_v42 = vpop.f32.mrb[80].mxu0  ;;  %v7077_v22 = vld [vmem:[%s15631_s1 + $0x860] sm:$0xff] }
 0x3dc   : > { %9364 = vmatprep.subr.bf16.mxu1 %v15716_v16  ;;  %v13222_v36 = vpop.f32.mrb[81].mxu0 }
 0x3de   : > { %2971 = vmatmul.mubr.f32.gmra.mrb[52].mxu1 %v15854_v41 }
 0x3df   : > { %2975 = vmatprep.mubr.f32.mxu1 %v15855_v27  ;;  %9366 = vmatpush1.bf16.msra.mxu1 %v9365_v8  ;;  %v7078_v8 = vld [vmem:[%s15631_s1 + $0x868] sm:$0xff] }
 0x3e0   : > { %9367 = vmatprep.subr.bf16.mxu1 %v15716_v16  ;;  %v9377_v27 = vpack.c.bf16 %v7078_v8, %v7077_v22  ;;  %v15868_v8 = vld [vmem:[#allocation47_spill] sm:$0xff] }
 0x3e2   : > { %2976 = vmatmul.mubr.f32.gmra.mrb[54].mxu1 %v15856_v0 }
 0x3e3   : > { %2980 = vmatprep.mubr.f32.mxu1 %v15857_v26  ;;  %9369 = vmatpush1.bf16.msra.mxu1 %v9368_v2  ;;  %v7079_v2 = vld [vmem:[%s15631_s1 + $0x870] sm:$0xff] }
 0x3e4   : > { %9370 = vmatprep.subr.bf16.mxu1 %v15716_v16  ;;  %v15863_v26 = vld [vmem:[#allocation41_spill] sm:$0xff]  ;;  %v9380_v44 = vpack.c.bf16 %v7080_v35, %v7079_v2  ;;  %v15873_v35 = vld [vmem:[#allocation58_spill] sm:$0xff] }
 0x3e5   : > { %v13241_v24 = vpop.f32.mrb[82].mxu0 }
 0x3e6   : > { %2981 = vmatmul.mubr.f32.gmra.mrb[56].mxu1 %v15858_v30  ;;  %v13244_v3 = vpop.f32.mrb[83].mxu0 }
 0x3e7   : > { %2985 = vmatprep.mubr.f32.mxu1 %v15859_v5  ;;  %9372 = vmatpush1.bf16.msra.mxu1 %v9371_v10  ;;  %v15866_v5 = vld [vmem:[#allocation45_spill] sm:$0xff] }
 0x3e8   : > { %9373 = vmatprep.subr.bf16.mxu1 %v15716_v16 }
 0x3ea   : > { %2986 = vmatmul.mubr.f32.gmra.mrb[58].mxu1 %v15860_v62 }
 0x3eb   : > { %2990 = vmatprep.mubr.f32.mxu1 %v15861_v50  ;;  %9375 = vmatpush1.bf16.msra.mxu1 %v9374_v11  ;;  %v15867_v11 = vld [vmem:[#allocation50_spill] sm:$0xff] }
 0x3ec   : > { %9376 = vmatprep.subr.bf16.mxu1 %v15716_v16  ;;  %v13263_v25 = vpop.f32.mrb[84].mxu0 }
 0x3ed   : > { %15862 = vst [vmem:[#allocation49_spill] sm:$0xff] %v13263_v25  ;;  %v13266_v10 = vpop.f32.mrb[85].mxu0  ;;  %v15869_v25 = vld [vmem:[#allocation51_spill] sm:$0xff] }
 0x3ee   : > { %2991 = vmatmul.mubr.f32.gmra.mrb[60].mxu1 %v15863_v26  ;;  %15864 = vst [vmem:[#allocation56_spill] sm:$0xff] %v13266_v10  ;;  %v15870_v10 = vld [vmem:[#allocation52_spill] sm:$0xff] }
 0x3ef   : > { %2995 = vmatprep.mubr.f32.mxu1 %v15865_v18  ;;  %9378 = vmatpush1.bf16.msra.mxu1 %v9377_v27 }
 0x3f0   : > { %9379 = vmatprep.subr.bf16.mxu1 %v15716_v16  ;;  %v15872_v16 = vld [vmem:[#allocation54_spill] sm:$0xff] }
 0x3f2   : > { %2996 = vmatmul.mubr.f32.gmra.mrb[62].mxu1 %v15866_v5 }
 0x3f3   : > { %3000 = vmatprep.mubr.f32.mxu1 %v15867_v11  ;;  %9381 = vmatpush1.bf16.msra.mxu1 %v9380_v44  ;;  %v15875_v44 = vld [vmem:[#allocation60_spill] sm:$0xff] }
 0x3f5   : > { %v13272_v22 = vpop.f32.mrb[86].mxu0 }
 0x3f6   : > { %3001 = vmatmul.mubr.f32.gmra.mrb[64].mxu1 %v15868_v8  ;;  %v13275_v50 = vpop.f32.mrb[87].mxu0 }
 0x3f7   : > { %3005 = vmatprep.mubr.f32.mxu1 %v15869_v25 }
 0x3fa   : > { %3006 = vmatmul.mubr.f32.gmra.mrb[66].mxu1 %v15870_v10 }
 0x3fb   : > { %3010 = vmatprep.mubr.f32.mxu1 %v15831_v52  ;;  %v15876_v52 = vld [vmem:[#allocation64_spill] sm:$0xff] }
 0x3fc   : > { %v13280_v27 = vpop.f32.mrb[88].mxu0 }
 0x3fd   : > { %15871 = vst [vmem:[#allocation57_spill] sm:$0xff] %v13280_v27  ;;  %v13283_v2 = vpop.f32.mrb[89].mxu0  ;;  %v15878_v27 = vld [vmem:[#allocation66_spill] sm:$0xff] }
 0x3fe   : > { %3011 = vmatmul.mubr.f32.gmra.mrb[68].mxu1 %v15872_v16 }
 0x3ff   : > { %3015 = vmatprep.mubr.f32.mxu1 %v15832_v34 }
 0x402   : > { %3016 = vmatmul.mubr.f32.gmra.mrb[70].mxu1 %v15873_v35 }
 0x403   : > { %3020 = vmatprep.mubr.f32.mxu1 %v15833_v33  ;;  %v15880_v33 = vld [vmem:[#allocation69_spill] sm:$0xff] }
 0x405   : > { %v13288_v18 = vpop.f32.mrb[90].mxu0 }
 0x406   : > { %15874 = vst [vmem:[#allocation62_spill] sm:$0xff] %v13288_v18  ;;  %3021 = vmatmul.mubr.f32.gmra.mrb[72].mxu1 %v15875_v44  ;;  %v13291_v25 = vpop.f32.mrb[91].mxu0  ;;  %v15881_v18 = vld [vmem:[#allocation73_spill] sm:$0xff] }
 0x407   : > { %3025 = vmatprep.mubr.f32.mxu1 %v15834_v21  ;;  %v15882_v21 = vld [vmem:[#allocation77_spill] sm:$0xff] }
 0x40a   : > { %3026 = vmatmul.mubr.f32.gmra.mrb[74].mxu1 %v15876_v52 }
 0x40b   : > { %3030 = vmatprep.mubr.f32.mxu1 %v12747_v60  ;;  %v15883_v60 = vld [vmem:[#allocation71_spill] sm:$0xff] }
 0x40c   : > { %v13296_v11 = vpop.f32.mrb[92].mxu0 }
 0x40d   : > { %15877 = vst [vmem:[#allocation63_spill] sm:$0xff] %v13296_v11  ;;  %v13299_v34 = vpop.f32.mrb[93].mxu0  ;;  %v15884_v11 = vld [vmem:[#allocation72_spill] sm:$0xff] }
 0x40e   : > { %3031 = vmatmul.mubr.f32.gmra.mrb[76].mxu1 %v15878_v27  ;;  %15879 = vst [vmem:[#allocation68_spill] sm:$0xff] %v13299_v34  ;;  %v15891_v34 = vld [vmem:[#allocation6_spill] sm:$0xff] }
 0x40f   : > { %3035 = vmatprep.mubr.f32.mxu1 %v15835_v14  ;;  %v15885_v14 = vld [vmem:[#allocation79_spill] sm:$0xff] }
 0x412   : > { %3036 = vmatmul.mubr.f32.gmra.mrb[78].mxu1 %v15880_v33 }
 0x413   : > { %3040 = vmatprep.mubr.f32.mxu1 %v15836_v13  ;;  %v13316_v13 = vld [vmem:[#allocation2 + $0x199] sm:$0xff] }
 0x416   : > { %3041 = vmatmul.mubr.f32.gmra.mrb[80].mxu1 %v15881_v18 }
 0x417   : > { %3045 = vmatprep.mubr.f32.mxu1 %v15837_v6  ;;  %v2254_v6 = vld [vmem:[#allocation2 + $0x19a] sm:$0xff] }
 0x418   : > { %6840 = vst [vmem:[#allocation2 + $0x198] sm:$0xff] %v12370_v17  ;;  %8805 = vmatprep.mubr.f32.mxu0 %v2254_v6  ;;  %v7099_v6 = vld [vmem:[%s15631_s1 + $0x908] sm:$0xff] }
 0x41a   : > { %3046 = vmatmul.mubr.f32.gmra.mrb[82].mxu1 %v15882_v21 }
 0x41b   : > { %3050 = vmatprep.mubr.f32.mxu1 %v12822_v1  ;;  %v15886_v1 = vld [vmem:[#allocation82_spill] sm:$0xff] }
 0x41e   : > { %3051 = vmatmul.mubr.f32.gmra.mrb[84].mxu1 %v15883_v60  ;;  %v13321_v60 = vld [vmem:[#allocation2 + $0x1a1] sm:$0xff] }
 0x41f   : > { %3055 = vmatprep.mubr.f32.mxu1 %v12826_v23  ;;  %v15887_v23 = vmax.f32 %v15886_v1, 0.0  ;;  %v7116_v1 = vld [vmem:[%s15631_s1 + $0x990] sm:$0xff] }
 0x422   : > { %3056 = vmatmul.mubr.f32.gmra.mrb[86].mxu1 %v15884_v11  ;;  %v2255_v11 = vld [vmem:[#allocation2 + $0x1a2] sm:$0xff] }
 0x423   : > { %3060 = vmatprep.mubr.f32.mxu1 %v12869_v53  ;;  %8806 = vmatmul.mubr.f32.gmra.mrb[94].mxu0 %v2255_v11  ;;  %3616 = vst [vmem:[#allocation2 + $0x1a8] sm:$0x3] %v12370_v17  ;;  %6841 = vst [vmem:[#allocation2 + $0x1a0] sm:$0xff] %v12370_v17  ;;  %v7114_v53 = vld [vmem:[%s15631_s1 + $0x980] sm:$0xff] }
 0x424   : > { %4569 = vst [vmem:[#allocation2 + $0x1a8] sm:$0x3] %v12370_v17 }
 0x425   : > { %5386 = vst [vmem:[#allocation2 + $0x1a8] sm:$0x3] %v12370_v17 }
 0x426   : > { %3061 = vmatmul.mubr.f32.gmra.mrb[88].mxu1 %v12802_v47  ;;  %6133 = vst [vmem:[#allocation2 + $0x1a8] sm:$0x3] %v12370_v17 }
 0x427   : > { %3065 = vmatprep.mubr.f32.mxu1 %v12873_v37  ;;  %v15888_v37 = vld [vmem:[#allocation85_spill] sm:$0xff]  ;;  %6842 = vst [vmem:[#allocation2 + $0x1a8] sm:$0x3] %v12370_v17 }
 0x428   : > { %v15889_v47 = vmax.f32 %v15888_v37, 0.0 }
 0x42a   : > { %3066 = vmatmul.mubr.f32.gmra.mrb[90].mxu1 %v15885_v14 }
 0x42b   : > { %3070 = vmatprep.mubr.f32.mxu1 %v12909_v39  ;;  %v7098_v39 = vld [vmem:[%s15631_s1 + $0x900] sm:$0xff] }
 0x42c   : > { %v9416_v11 = vpack.c.bf16 %v7099_v6, %v7098_v39  ;;  %v15892_v39 = vld [vmem:[#allocation8_spill] sm:$0xff]  ;;  %v15893_v6 = vld [vmem:[#allocation18_spill] sm:$0xff] }
 0x42e   : > { %3071 = vmatmul.mubr.f32.gmra.mrb[92].mxu1 %v15887_v23  ;;  %v7117_v23 = vld [vmem:[%s15631_s1 + $0x998] sm:$0xff] }
 0x42f   : > { %3075 = vmatprep.mubr.f32.mxu1 %v12911_v4  ;;  %v7115_v4 = vld [vmem:[%s15631_s1 + $0x988] sm:$0xff]  ;;  %v9418_v37 = vpack.c.bf16 %v7117_v23, %v7116_v1  ;;  %v15913_v23 = vld [vmem:[#allocation78_spill] sm:$0xff] }
 0x430   : > { %v9414_v14 = vpack.c.bf16 %v7115_v4, %v7114_v53  ;;  %v15890_v53 = vld [vmem:[#allocation15_spill] sm:$0xff] }
 0x432   : > { %3076 = vmatmul.mubr.f32.gmra.mrb[94].mxu1 %v15889_v47  ;;  %v7101_v47 = vld [vmem:[%s15631_s1 + $0x918] sm:$0xff]  ;;  %9415 = vmatprep.subr.bf16.mxu1 %v9414_v14 }
 0x433   : > { %3145 = vmatprep.mubr.f32.mxu1 %v15840_v15  ;;  %v7100_v15 = vld [vmem:[%s15631_s1 + $0x910] sm:$0xff]  ;;  %v15894_v14 = vld [vmem:[#allocation11_spill] sm:$0xff] }
 0x434   : > { %v9420_v4 = vpack.c.bf16 %v7101_v47, %v7100_v15  ;;  %v7104_v47 = vld [vmem:[%s15631_s1 + $0x930] sm:$0xff] }
 0x436   : > { %3146 = vmatmul.mubr.f32.vlgmr.msra.gmra.mrb[32].mxu1 %v15890_v53  ;;  %v7105_v53 = vld [vmem:[%s15631_s1 + $0x938] sm:$0xff] }
 0x437   : > { %3150 = vmatprep.mubr.f32.mxu1 %v15842_v59  ;;  %9417 = vmatpush3.bf16.msra.mxu1 %v9416_v11  ;;  %v15895_v59 = vld [vmem:[#allocation22_spill] sm:$0xff] }
 0x438   : > { %9419 = vmatprep.subr.bf16.mxu1 %v9418_v37  ;;  %v7120_v11 = vld [vmem:[%s15631_s1 + $0x9b0] sm:$0xff]  ;;  %v15914_v37 = vld [vmem:[#allocation80_spill] sm:$0xff] }
 0x43a   : > { %3151 = vmatmul.mubr.f32.gmra.mrb[34].mxu1 %v15891_v34  ;;  %v15896_v34 = vld [vmem:[#allocation24_spill] sm:$0xff] }
 0x43b   : > { %3155 = vmatprep.mubr.f32.mxu1 %v15843_v55  ;;  %9421 = vmatpush3.bf16.msra.mxu1 %v9420_v4  ;;  %v15897_v55 = vld [vmem:[#allocation28_spill] sm:$0xff]  ;;  %v9428_v4 = vpack.c.bf16 %v7105_v53, %v7104_v47 }
 0x43c   : > { %v15920_v47 = vld [vmem:[#allocation88_spill] sm:$0xff] }
 0x43e   : > { %3156 = vmatmul.mubr.f32.gmra.mrb[36].mxu1 %v15892_v39  ;;  %v15915_v39 = vld [vmem:[#allocation81_spill] sm:$0xff] }
 0x43f   : > { %3160 = vmatprep.mubr.f32.mxu1 %v15845_v54  ;;  %v15898_v54 = vld [vmem:[#allocation30_spill] sm:$0xff] }
 0x442   : > { %3161 = vmatmul.mubr.f32.gmra.mrb[38].mxu1 %v15893_v6  ;;  %v7122_v6 = vld [vmem:[%s15631_s1 + $0x9c0] sm:$0xff] }
 0x443   : > { %3165 = vmatprep.mubr.f32.mxu1 %v15846_v61  ;;  %v15899_v61 = vld [vmem:[#allocation34_spill] sm:$0xff] }
 0x446   : > { %3166 = vmatmul.mubr.f32.gmra.mrb[40].mxu1 %v15894_v14  ;;  %v7123_v14 = vld [vmem:[%s15631_s1 + $0x9c8] sm:$0xff] }
 0x447   : > { %3170 = vmatprep.mubr.f32.mxu1 %v15848_v43  ;;  %v15900_v43 = vld [vmem:[#allocation36_spill] sm:$0xff] }
 0x44a   : > { %3171 = vmatmul.mubr.f32.gmra.mrb[42].mxu1 %v15895_v59  ;;  %v7146_v59 = vld [vmem:[%s15631_s1 + $0xa80] sm:$0xff] }
 0x44b   : > { %3175 = vmatprep.mubr.f32.mxu1 %v15850_v40  ;;  %v15901_v40 = vld [vmem:[#allocation40_spill] sm:$0xff] }
 0x44e   : > { %3176 = vmatmul.mubr.f32.gmra.mrb[44].mxu1 %v15896_v34  ;;  %v15916_v34 = vld [vmem:[#allocation83_spill] sm:$0xff] }
 0x44f   : > { %3180 = vmatprep.mubr.f32.mxu1 %v15852_v63  ;;  %v15902_v63 = vld [vmem:[#allocation42_spill] sm:$0xff] }
 0x452   : > { %3181 = vmatmul.mubr.f32.gmra.mrb[46].mxu1 %v15897_v55  ;;  %v9430_v55 = vpack.c.bf16 %v7123_v14, %v7122_v6  ;;  %v7111_v6 = vld [vmem:[%s15631_s1 + $0x968] sm:$0xff] }
 0x453   : > { %3185 = vmatprep.mubr.f32.mxu1 %v15854_v41  ;;  %v15903_v41 = vld [vmem:[#allocation46_spill] sm:$0xff] }
 0x456   : > { %3186 = vmatmul.mubr.f32.gmra.mrb[48].mxu1 %v15898_v54  ;;  %v7147_v54 = vld [vmem:[%s15631_s1 + $0xa88] sm:$0xff] }
 0x457   : > { %3190 = vmatprep.mubr.f32.mxu1 %v15856_v0  ;;  %v15904_v0 = vld [vmem:[#allocation48_spill] sm:$0xff] }
 0x45a   : > { %3191 = vmatmul.mubr.f32.gmra.mrb[50].mxu1 %v15899_v61  ;;  %v7106_v61 = vld [vmem:[%s15631_s1 + $0x940] sm:$0xff] }
 0x45b   : > { %3195 = vmatprep.mubr.f32.mxu1 %v15858_v30  ;;  %v15905_v30 = vld [vmem:[#allocation53_spill] sm:$0xff] }
 0x45e   : > { %3196 = vmatmul.mubr.f32.gmra.mrb[52].mxu1 %v15900_v43  ;;  %v7107_v43 = vld [vmem:[%s15631_s1 + $0x948] sm:$0xff] }
 0x45f   : > { %3200 = vmatprep.mubr.f32.mxu1 %v15860_v62  ;;  %v15906_v62 = vld [vmem:[#allocation55_spill] sm:$0xff] }
 0x462   : > { %3201 = vmatmul.mubr.f32.gmra.mrb[54].mxu1 %v15901_v40  ;;  %v9446_v40 = vpack.c.bf16 %v7147_v54, %v7146_v59 }
 0x463   : > { %3205 = vmatprep.mubr.f32.mxu1 %v15863_v26  ;;  %v15907_v26 = vld [vmem:[#allocation59_spill] sm:$0xff] }
 0x464   : > { %9447 = vmatprep.subr.bf16.mxu0 %v9446_v40  ;;  %v7129_v40 = vld [vmem:[%s15631_s1 + $0x9f8] sm:$0xff] }
 0x466   : > { %3206 = vmatmul.mubr.f32.gmra.mrb[56].mxu1 %v15902_v63  ;;  %v9432_v63 = vpack.c.bf16 %v7107_v43, %v7106_v61  ;;  %v15921_v61 = vld [vmem:[#allocation89_spill] sm:$0xff] }
 0x467   : > { %3210 = vmatprep.mubr.f32.mxu1 %v15866_v5  ;;  %v15908_v5 = vld [vmem:[#allocation61_spill] sm:$0xff] }
 0x468   : > { %v7128_v43 = vld [vmem:[%s15631_s1 + $0x9f0] sm:$0xff] }
 0x46a   : > { %3211 = vmatmul.mubr.f32.gmra.mrb[58].mxu1 %v15903_v41  ;;  %v7130_v41 = vld [vmem:[%s15631_s1 + $0xa00] sm:$0xff] }
 0x46b   : > { %3215 = vmatprep.mubr.f32.mxu1 %v15868_v8  ;;  %v15909_v8 = vld [vmem:[#allocation65_spill] sm:$0xff] }
 0x46e   : > { %3216 = vmatmul.mubr.f32.gmra.mrb[60].mxu1 %v15904_v0  ;;  %v7131_v0 = vld [vmem:[%s15631_s1 + $0xa08] sm:$0xff] }
 0x46f   : > { %3220 = vmatprep.mubr.f32.mxu1 %v15870_v10  ;;  %v15910_v10 = vld [vmem:[#allocation67_spill] sm:$0xff] }
 0x472   : > { %3221 = vmatmul.mubr.f32.gmra.mrb[62].mxu1 %v15905_v30  ;;  %v9448_v30 = vpack.c.bf16 %v7131_v0, %v7130_v41  ;;  %v15922_v41 = vld [vmem:[#allocation90_spill] sm:$0xff]  ;;  %v9442_v0 = vpack.c.bf16 %v7129_v40, %v7128_v43  ;;  %v13589_v43 = vld [vmem:[#allocation2 + $0x2] sm:$0xff] }
 0x473   : > { %3225 = vmatprep.mubr.f32.mxu1 %v15872_v16  ;;  %v15911_v16 = vld [vmem:[#allocation70_spill] sm:$0xff]  ;;  %v7178_v40 = vld [vmem:[%s15631_s1 + $0xb80] sm:$0xff] }
 0x474   : > { %9449 = vmatpush3.bf16.msra.mxu0 %v9448_v30  ;;  %v7153_v30 = vld [vmem:[%s15631_s1 + $0xab8] sm:$0xff] }
 0x476   : > { %3226 = vmatmul.mubr.f32.gmra.mrb[64].mxu1 %v15906_v62  ;;  %v15917_v62 = vld [vmem:[#allocation84_spill] sm:$0xff] }
 0x477   : > { %3230 = vmatprep.mubr.f32.mxu1 %v15873_v35  ;;  %v15912_v35 = vld [vmem:[#allocation74_spill] sm:$0xff] }
 0x47a   : > { %3231 = vmatmul.mubr.f32.gmra.mrb[66].mxu1 %v15907_v26  ;;  %v7124_v26 = vld [vmem:[%s15631_s1 + $0x9d0] sm:$0xff] }
 0x47b   : > { %3235 = vmatprep.mubr.f32.mxu1 %v15875_v44  ;;  %v7118_v44 = vld [vmem:[%s15631_s1 + $0x9a0] sm:$0xff] }
 0x47e   : > { %3236 = vmatmul.mubr.f32.gmra.mrb[68].mxu1 %v15908_v5  ;;  %v7125_v5 = vld [vmem:[%s15631_s1 + $0x9d8] sm:$0xff] }
 0x47f   : > { %3240 = vmatprep.mubr.f32.mxu1 %v15876_v52  ;;  %v7119_v52 = vld [vmem:[%s15631_s1 + $0x9a8] sm:$0xff] }
 0x482   : > { %3241 = vmatmul.mubr.f32.gmra.mrb[70].mxu1 %v15909_v8  ;;  %v7148_v8 = vld [vmem:[%s15631_s1 + $0xa90] sm:$0xff] }
 0x483   : > { %3245 = vmatprep.mubr.f32.mxu1 %v15878_v27  ;;  %v9422_v27 = vpack.c.bf16 %v7119_v52, %v7118_v44  ;;  %v7108_v44 = vld [vmem:[%s15631_s1 + $0x950] sm:$0xff]  ;;  %v7109_v52 = vld [vmem:[%s15631_s1 + $0x958] sm:$0xff] }
 0x485   : > { %9423 = vmatprep.subr.bf16.mxu1 %v9422_v27 }
 0x486   : > { %3246 = vmatmul.mubr.f32.gmra.mrb[72].mxu1 %v15910_v10  ;;  %v15918_v10 = vld [vmem:[#allocation86_spill] sm:$0xff] }
 0x487   : > { %3250 = vmatprep.mubr.f32.mxu1 %v15880_v33  ;;  %v7102_v33 = vld [vmem:[%s15631_s1 + $0x920] sm:$0xff] }
 0x48a   : > { %3251 = vmatmul.mubr.f32.gmra.mrb[74].mxu1 %v15911_v16  ;;  %v9434_v16 = vpack.c.bf16 %v7125_v5, %v7124_v26  ;;  %v7113_v26 = vld [vmem:[%s15631_s1 + $0x978] sm:$0xff] }
 0x48b   : > { %3255 = vmatprep.mubr.f32.mxu1 %v15881_v18  ;;  %v7103_v18 = vld [vmem:[%s15631_s1 + $0x928] sm:$0xff] }
 0x48c   : > { %v9424_v1 = vpack.c.bf16 %v7103_v18, %v7102_v33  ;;  %v9436_v33 = vpack.c.bf16 %v7109_v52, %v7108_v44  ;;  %v7132_v18 = vld [vmem:[%s15631_s1 + $0xa10] sm:$0xff]  ;;  %v7154_v44 = vld [vmem:[%s15631_s1 + $0xac0] sm:$0xff]  ;;  %v7155_v52 = vld [vmem:[%s15631_s1 + $0xac8] sm:$0xff] }
 0x48e   : > { %3256 = vmatmul.mubr.f32.gmra.mrb[76].mxu1 %v15912_v35  ;;  %v7149_v35 = vld [vmem:[%s15631_s1 + $0xa98] sm:$0xff] }
 0x48f   : > { %3260 = vmatprep.mubr.f32.mxu1 %v15882_v21  ;;  %v7121_v21 = vld [vmem:[%s15631_s1 + $0x9b8] sm:$0xff]  ;;  %9425 = vmatpush3.bf16.msra.mxu1 %v9424_v1  ;;  %v9450_v27 = vpack.c.bf16 %v7149_v35, %v7148_v8 }
 0x490   : > { %v9426_v15 = vpack.c.bf16 %v7121_v21, %v7120_v11  ;;  %v7133_v1 = vld [vmem:[%s15631_s1 + $0xa18] sm:$0xff]  ;;  %v7126_v21 = vld [vmem:[%s15631_s1 + $0x9e0] sm:$0xff] }
 0x491   : > { %v15919_v11 = vld [vmem:[#allocation87_spill] sm:$0xff]  ;;  %9451 = vmatprep.subr.bf16.mxu0 %v9450_v27  ;;  %v9462_v27 = vpack.c.bf16 %v7155_v52, %v7154_v44  ;;  %v7183_v52 = vld [vmem:[%s15631_s1 + $0xba8] sm:$0xff] }
 0x492   : > { %3261 = vmatmul.mubr.f32.gmra.mrb[78].mxu1 %v15913_v23  ;;  %9427 = vmatprep.subr.bf16.mxu1 %v9426_v15  ;;  %v9452_v23 = vpack.c.bf16 %v7133_v1, %v7132_v18  ;;  %v7150_v15 = vld [vmem:[%s15631_s1 + $0xaa0] sm:$0xff] }
 0x493   : > { %3265 = vmatprep.mubr.f32.mxu1 %v15914_v37  ;;  %9429 = vmatpush3.bf16.msra.mxu1 %v9428_v4  ;;  %v7127_v37 = vld [vmem:[%s15631_s1 + $0x9e8] sm:$0xff]  ;;  %v15923_v1 = vld [vmem:[#allocation91_spill] sm:$0xff] }
 0x494   : > { %9431 = vmatprep.subr.bf16.mxu1 %v9430_v55  ;;  %v9438_v53 = vpack.c.bf16 %v7127_v37, %v7126_v21  ;;  %v7151_v4 = vld [vmem:[%s15631_s1 + $0xaa8] sm:$0xff]  ;;  %9453 = vmatpush3.bf16.msra.mxu0 %v9452_v23  ;;  %v7156_v23 = vld [vmem:[%s15631_s1 + $0xad0] sm:$0xff]  ;;  %v7141_v37 = vld [vmem:[%s15631_s1 + $0xa58] sm:$0xff] }
 0x495   : > { %v9454_v14 = vpack.c.bf16 %v7151_v4, %v7150_v15  ;;  %v7135_v55 = vld [vmem:[%s15631_s1 + $0xa28] sm:$0xff]  ;;  %v7140_v21 = vld [vmem:[%s15631_s1 + $0xa50] sm:$0xff]  ;;  %v7142_v4 = vld [vmem:[%s15631_s1 + $0xa60] sm:$0xff] }
 0x496   : > { %3266 = vmatmul.mubr.f32.gmra.mrb[80].mxu1 %v15915_v39  ;;  %v7110_v39 = vld [vmem:[%s15631_s1 + $0x960] sm:$0xff]  ;;  %v9468_v15 = vpack.c.bf16 %v7141_v37, %v7140_v21  ;;  %v7169_v21 = vld [vmem:[%s15631_s1 + $0xb38] sm:$0xff] }
 0x497   : > { %3270 = vmatprep.mubr.f32.mxu1 %v15916_v34  ;;  %9433 = vmatpush3.bf16.msra.mxu1 %v9432_v63  ;;  %v9440_v59 = vpack.c.bf16 %v7111_v6, %v7110_v39  ;;  %v7134_v34 = vld [vmem:[%s15631_s1 + $0xa20] sm:$0xff]  ;;  %v7152_v63 = vld [vmem:[%s15631_s1 + $0xab0] sm:$0xff]  ;;  %v7143_v39 = vld [vmem:[%s15631_s1 + $0xa68] sm:$0xff] }
 0x498   : > { %9435 = vmatprep.subr.bf16.mxu1 %v9434_v16  ;;  %v9456_v54 = vpack.c.bf16 %v7135_v55, %v7134_v34  ;;  %9455 = vmatprep.subr.bf16.mxu0 %v9454_v14  ;;  %v9458_v5 = vpack.c.bf16 %v7153_v30, %v7152_v63  ;;  %v7137_v16 = vld [vmem:[%s15631_s1 + $0xa38] sm:$0xff]  ;;  %v3769_v6 = vld [vmem:[#allocation2 + $0x1] sm:$0xff]  ;;  %v9472_v14 = vpack.c.bf16 %v7143_v39, %v7142_v4  ;;  %v7144_v55 = vld [vmem:[%s15631_s1 + $0xa70] sm:$0xff] }
 0x499   : > { %4516 = vst [vmem:[#allocation2] sm:$0xff] %v12370_v17  ;;  %4517 = vst [vmem:[#allocation2 + $0x8] sm:$0xff] %v12370_v17  ;;  %v7179_v63 = vld [vmem:[%s15631_s1 + $0xb88] sm:$0xff]  ;;  %v7182_v44 = vld [vmem:[%s15631_s1 + $0xba0] sm:$0xff] }
 0x49a   : > { %3271 = vmatmul.mubr.f32.gmra.mrb[82].mxu1 %v15917_v62  ;;  %v7112_v62 = vld [vmem:[%s15631_s1 + $0x970] sm:$0xff]  ;;  %9457 = vmatpush3.bf16.msra.mxu0 %v9456_v54  ;;  %v7145_v54 = vld [vmem:[%s15631_s1 + $0xa78] sm:$0xff]  ;;  %v7163_v30 = vld [vmem:[%s15631_s1 + $0xb08] sm:$0xff] }
 0x49b   : > { %3275 = vmatprep.mubr.f32.mxu1 %v15918_v10  ;;  %9437 = vmatpush3.bf16.msra.mxu1 %v9436_v33  ;;  %v9444_v8 = vpack.c.bf16 %v7113_v26, %v7112_v62  ;;  %v7136_v10 = vld [vmem:[%s15631_s1 + $0xa30] sm:$0xff]  ;;  %v7138_v33 = vld [vmem:[%s15631_s1 + $0xa40] sm:$0xff]  ;;  %v7211_v4 = vld [vmem:[%s15631_s1 + $0xc88] sm:$0xff] }
 0x49c   : > { %9439 = vmatprep.subr.bf16.mxu1 %v9438_v53  ;;  %v9460_v35 = vpack.c.bf16 %v7137_v16, %v7136_v10  ;;  %9459 = vmatprep.subr.bf16.mxu0 %v9458_v5  ;;  %v7180_v26 = vld [vmem:[%s15631_s1 + $0xb90] sm:$0xff]  ;;  %v7181_v5 = vld [vmem:[%s15631_s1 + $0xb98] sm:$0xff]  ;;  %v7170_v39 = vld [vmem:[%s15631_s1 + $0xb40] sm:$0xff] }
 0x49d   : > { %v7164_v10 = vld [vmem:[%s15631_s1 + $0xb10] sm:$0xff]  ;;  %v7165_v16 = vld [vmem:[%s15631_s1 + $0xb18] sm:$0xff] }
 0x49e   : > { %3276 = vmatmul.mubr.f32.gmra.mrb[84].mxu1 %v15919_v11  ;;  %9461 = vmatpush3.bf16.msra.mxu0 %v9460_v35  ;;  %v9484_v35 = vpack.c.bf16 %v7165_v16, %v7164_v10 }
 0x49f   : > { %3280 = vmatprep.mubr.f32.mxu1 %v15920_v47  ;;  %9441 = vmatpush3.bf16.msra.mxu1 %v9440_v59  ;;  %v7158_v47 = vld [vmem:[%s15631_s1 + $0xae0] sm:$0xff]  ;;  %v7160_v59 = vld [vmem:[%s15631_s1 + $0xaf0] sm:$0xff] }
 0x4a0   : > { %9443 = vmatprep.subr.bf16.mxu1 %v9442_v0  ;;  %9463 = vmatprep.subr.bf16.mxu0 %v9462_v27  ;;  %v7162_v0 = vld [vmem:[%s15631_s1 + $0xb00] sm:$0xff]  ;;  %v9486_v27 = vpack.c.bf16 %v7183_v52, %v7182_v44  ;;  %v7192_v52 = vld [vmem:[%s15631_s1 + $0xbf0] sm:$0xff] }
 0x4a1   : > { %v9480_v62 = vpack.c.bf16 %v7163_v30, %v7162_v0  ;;  %v7190_v0 = vld [vmem:[%s15631_s1 + $0xbe0] sm:$0xff]  ;;  %v7191_v30 = vld [vmem:[%s15631_s1 + $0xbe8] sm:$0xff] }
 0x4a2   : > { %3281 = vmatmul.mubr.f32.gmra.mrb[86].mxu1 %v15921_v61  ;;  %v9476_v61 = vpack.c.bf16 %v7145_v54, %v7144_v55  ;;  %v7189_v55 = vld [vmem:[%s15631_s1 + $0xbd8] sm:$0xff] }
 0x4a3   : > { %3285 = vmatprep.mubr.f32.mxu1 %v15922_v41  ;;  %9445 = vmatpush3.bf16.msra.mxu1 %v9444_v8  ;;  %v9478_v41 = vpack.c.bf16 %v7179_v63, %v7178_v40  ;;  %v9482_v8 = vpack.c.bf16 %v7181_v5, %v7180_v26  ;;  %v7172_v40 = vld [vmem:[%s15631_s1 + $0xb50] sm:$0xff]  ;;  %v7173_v63 = vld [vmem:[%s15631_s1 + $0xb58] sm:$0xff]  ;;  %v9502_v26 = vpack.c.bf16 %v7191_v30, %v7190_v0  ;;  %v7174_v5 = vld [vmem:[%s15631_s1 + $0xb60] sm:$0xff] }
 0x4a5   : > { %9479 = vmatprep.subr.bf16.mxu1 %v9478_v41  ;;  %v9500_v41 = vpack.c.bf16 %v7173_v63, %v7172_v40 }
 0x4a6   : > { %3286 = vmatmul.mubr.f32.gmra.mrb[88].mxu1 %v12907_v29  ;;  %v7139_v29 = vld [vmem:[%s15631_s1 + $0xa48] sm:$0xff] }
 0x4a7   : > { %3290 = vmatprep.mubr.f32.mxu1 %v12920_v32  ;;  %v9464_v18 = vpack.c.bf16 %v7139_v29, %v7138_v33  ;;  %v7157_v32 = vld [vmem:[%s15631_s1 + $0xad8] sm:$0xff]  ;;  %v7166_v33 = vld [vmem:[%s15631_s1 + $0xb20] sm:$0xff]  ;;  %v7167_v29 = vld [vmem:[%s15631_s1 + $0xb28] sm:$0xff] }
 0x4a8   : > { %v9466_v11 = vpack.c.bf16 %v7157_v32, %v7156_v23  ;;  %v7185_v23 = vld [vmem:[%s15631_s1 + $0xbb8] sm:$0xff] }
 0x4a9   : > { %9465 = vmatpush3.bf16.msra.mxu0 %v9464_v18  ;;  %v9488_v18 = vpack.c.bf16 %v7167_v29, %v7166_v33  ;;  %v7176_v29 = vld [vmem:[%s15631_s1 + $0xb70] sm:$0xff] }
 0x4aa   : > { %3291 = vmatmul.mubr.f32.gmra.mrb[90].mxu1 %v15923_v1  ;;  %9467 = vmatprep.subr.bf16.mxu0 %v9466_v11  ;;  %v7184_v1 = vld [vmem:[%s15631_s1 + $0xbb0] sm:$0xff] }
 0x4ab   : > { %3295 = vmatprep.mubr.f32.mxu1 %v13316_v13  ;;  %v7159_v13 = vld [vmem:[%s15631_s1 + $0xae8] sm:$0xff]  ;;  %v9490_v32 = vpack.c.bf16 %v7185_v23, %v7184_v1  ;;  %v7168_v11 = vld [vmem:[%s15631_s1 + $0xb30] sm:$0xff] }
 0x4ac   : > { %v9470_v53 = vpack.c.bf16 %v7159_v13, %v7158_v47  ;;  %v9492_v37 = vpack.c.bf16 %v7169_v21, %v7168_v11  ;;  %v7187_v47 = vld [vmem:[%s15631_s1 + $0xbc8] sm:$0xff]  ;;  %v7210_v13 = vld [vmem:[%s15631_s1 + $0xc80] sm:$0xff] }
 0x4ad   : > { %9469 = vmatpush3.bf16.msra.mxu0 %v9468_v15  ;;  %v7186_v15 = vld [vmem:[%s15631_s1 + $0xbc0] sm:$0xff] }
 0x4ae   : > { %3296 = vmatmul.mubr.f32.gmra.mrb[92].mxu1 %v12370_v17  ;;  %9471 = vmatprep.subr.bf16.mxu0 %v9470_v53  ;;  %v9494_v53 = vpack.c.bf16 %v7187_v47, %v7186_v15  ;;  %v7227_v15 = vld [vmem:[%s15631_s1 + $0xd08] sm:$0xff] }
 0x4af   : > { %3300 = vmatprep.mubr.f32.mxu1 %v13321_v60  ;;  %v7161_v60 = vld [vmem:[%s15631_s1 + $0xaf8] sm:$0xff] }
 0x4b0   : > { %v9474_v34 = vpack.c.bf16 %v7161_v60, %v7160_v59 }
 0x4b1   : > { %9473 = vmatpush3.bf16.msra.mxu0 %v9472_v14  ;;  %v9510_v14 = vpack.c.bf16 %v7211_v4, %v7210_v13 }
 0x4b2   : > { %3301 = vmatmul.mubr.f32.gmra.mrb[94].mxu1 %v12370_v17  ;;  %9475 = vmatprep.subr.bf16.mxu0 %v9474_v34  ;;  %v7188_v34 = vld [vmem:[%s15631_s1 + $0xbd0] sm:$0xff] }
 0x4b3   : > { %4047 = vmatprep.mubr.f32.mxu1 %v3769_v6  ;;  %v7171_v6 = vld [vmem:[%s15631_s1 + $0xb48] sm:$0xff] }
 0x4b4   : > { %v9496_v59 = vpack.c.bf16 %v7171_v6, %v7170_v39 }
 0x4b5   : > { %9477 = vmatpush3.bf16.msra.mxu0 %v9476_v61  ;;  %v9498_v61 = vpack.c.bf16 %v7189_v55, %v7188_v34 }
 0x4b6   : > { %4048 = vmatmul.mubr.f32.vlgmr.msra.gmra.mrb[96].mxu1 %v12370_v17  ;;  %9511 = vmatprep.subr.bf16.mxu0 %v9510_v14 }
 0x4b7   : > { %9481 = vmatpush3.bf16.msra.mxu1 %v9480_v62  ;;  %v13684_v62 = vld [vmem:[%s15632_s2 + $0x1] ss:$0 sm:$0xff] }
 0x4b8   : > { %9483 = vmatprep.subr.bf16.mxu1 %v9482_v8  ;;  %v7175_v8 = vld [vmem:[%s15631_s1 + $0xb68] sm:$0xff] }
 0x4b9   : > { %v9504_v10 = vpack.c.bf16 %v7175_v8, %v7174_v5 }
 0x4bb   : > { %9485 = vmatpush3.bf16.msra.mxu1 %v9484_v35 }
 0x4bc   : > { %9487 = vmatprep.subr.bf16.mxu1 %v9486_v27  ;;  %v7193_v27 = vld [vmem:[%s15631_s1 + $0xbf8] sm:$0xff] }
 0x4bd   : > { %v9506_v33 = vpack.c.bf16 %v7193_v27, %v7192_v52 }
 0x4bf   : > { %9489 = vmatpush3.bf16.msra.mxu1 %v9488_v18  ;;  %v7177_v18 = vld [vmem:[%s15631_s1 + $0xb78] sm:$0xff] }
 0x4c0   : > { %9491 = vmatprep.subr.bf16.mxu1 %v9490_v32  ;;  %v9508_v23 = vpack.c.bf16 %v7177_v18, %v7176_v29 }
 0x4c3   : > { %9493 = vmatpush3.bf16.msra.mxu1 %v9492_v37  ;;  %v7226_v37 = vld [vmem:[%s15631_s1 + $0xd00] sm:$0xff] }
 0x4c4   : > { %9495 = vmatprep.subr.bf16.mxu1 %v9494_v53  ;;  %v13714_v13 = vpack.c.bf16 %v7227_v15, %v7226_v37  ;;  %v7212_v37 = vld [vmem:[%s15631_s1 + $0xc90] sm:$0xff] }
 0x4c7   : > { %9497 = vmatpush3.bf16.msra.mxu1 %v9496_v59 }
 0x4c8   : > { %9499 = vmatprep.subr.bf16.mxu1 %v9498_v61 }
 0x4cb   : > { %9501 = vmatpush3.bf16.msra.mxu1 %v9500_v41 }
 0x4cc   : > { %9503 = vmatprep.subr.bf16.mxu1 %v9502_v26 }
 0x4cf   : > { %9505 = vmatpush3.bf16.msra.mxu1 %v9504_v10 }
 0x4d0   : > { %9507 = vmatprep.subr.bf16.mxu1 %v9506_v33 }
 0x4d3   : > { %9509 = vmatpush3.bf16.msra.mxu1 %v9508_v23  ;;  %v7195_v23 = vld [vmem:[%s15631_s1 + $0xc08] sm:$0xff] }
 0x4d4   : > { %9543 = vmatprep.subr.bf16.mxu1 %v13714_v13 }
 0x4f6   : > { %v13659_v60 = vpop.f32.mrb[94].mxu0 }
 0x4f7   : > { %v13667_v54 = vpop.f32.mrb[95].mxu0 }
 0x509   : > { %v3147_v16 = vpop.f32.mrb[32].mxu1 }
 0x50a   : > { %v10086_v35 = vadd.f32 %v13684_v62, %v3147_v16  ;;  %v3149_v44 = vpop.f32.mrb[33].mxu1 }
 0x50c   : > { %v3373_v1 = vadd.f32 %v10086_v35, %v13076_v12 }
 0x50d   : > { %v3152_v32 = vpop.f32.mrb[34].mxu1 }
 0x50e   : > { %v10087_v11 = vadd.f32 %v13684_v62, %v3152_v32  ;;  %v3154_v21 = vpop.f32.mrb[35].mxu1  ;;  %v3531_v14 = vmax.f32 %v3373_v1, 0.0  ;;  %v7194_v1 = vld [vmem:[%s15631_s1 + $0xc00] sm:$0xff] }
 0x510   : > { %v3378_v47 = vadd.f32 %v10087_v11, %v13073_v45 }
 0x511   : > { %v3157_v12 = vpop.f32.mrb[36].mxu1 }
 0x512   : > { %v10088_v53 = vadd.f32 %v13684_v62, %v3157_v12  ;;  %v3159_v4 = vpop.f32.mrb[37].mxu1  ;;  %v3532_v63 = vmax.f32 %v3378_v47, 0.0  ;;  %v9512_v12 = vpack.c.bf16 %v7195_v23, %v7194_v1  ;;  %v7201_v1 = vld [vmem:[%s15631_s1 + $0xc38] sm:$0xff] }
 0x513   : > { %v7197_v4 = vld [vmem:[%s15631_s1 + $0xc18] sm:$0xff] }
 0x514   : > { %v3383_v39 = vadd.f32 %v10088_v53, %v13084_v57  ;;  %v7196_v53 = vld [vmem:[%s15631_s1 + $0xc10] sm:$0xff] }
 0x515   : > { %v3162_v6 = vpop.f32.mrb[38].mxu1 }
 0x516   : > { %v3533_v59 = vmax.f32 %v3383_v39, 0.0  ;;  %v10089_v34 = vadd.f32 %v13684_v62, %v3162_v6  ;;  %v3164_v55 = vpop.f32.mrb[39].mxu1 }
 0x518   : > { %v3617_v61 = vmax.f32 %v3531_v14, %v3533_v59  ;;  %v3388_v40 = vadd.f32 %v10089_v34, %v13081_v48 }
 0x519   : > { %v3167_v45 = vpop.f32.mrb[40].mxu1 }
 0x51a   : > { %v3641_v41 = vrot.slane %v3617_v61, 1  ;;  %v3534_v0 = vmax.f32 %v3388_v40, 0.0  ;;  %v10090_v30 = vadd.f32 %v13684_v62, %v3167_v45  ;;  %v3169_v26 = vpop.f32.mrb[41].mxu1 }
 0x51c   : > { %v3657_v5 = vmax.f32 %v3617_v61, %v3641_v41  ;;  %v3618_v8 = vmax.f32 %v3532_v63, %v3534_v0  ;;  %v3393_v57 = vadd.f32 %v10090_v30, %v13092_v51  ;;  %v7214_v63 = vld [vmem:[%s15631_s1 + $0xca0] sm:$0xff]  ;;  %v7215_v41 = vld [vmem:[%s15631_s1 + $0xca8] sm:$0xff] }
 0x51d   : > { %v3172_v10 = vpop.f32.mrb[42].mxu1 }
 0x51e   : > { %3665 = vst [vmem:[#allocation2 + $0x19] sm:$0x1] %v3657_v5  ;;  %3673 = vst [vmem:[#allocation2 + $0x18] sm:$0x4] %v3657_v5  ;;  %v3705_v16 = vrot.slane %v3618_v8, 1  ;;  %v10091_v35 = vadd.f32 %v13684_v62, %v3172_v10  ;;  %v3174_v48 = vpop.f32.mrb[43].mxu1 }
 0x51f   : > { %3681 = vst [vmem:[#allocation2 + $0x17] sm:$0x10] %v3657_v5  ;;  %3689 = vst [vmem:[#allocation2 + $0x16] sm:$0x40] %v3657_v5  ;;  %v9516_v5 = vpack.c.bf16 %v7197_v4, %v7196_v53  ;;  %v7198_v10 = vld [vmem:[%s15631_s1 + $0xc20] sm:$0xff]  ;;  %v7216_v48 = vld [vmem:[%s15631_s1 + $0xcb0] sm:$0xff] }
 0x520   : > { %v3721_v44 = vmax.f32 %v3618_v8, %v3705_v16  ;;  %v3398_v52 = vadd.f32 %v10091_v35, %v13089_v46  ;;  %v3535_v46 = vmax.f32 %v3393_v57, 0.0  ;;  %v9518_v57 = vpack.c.bf16 %v7215_v41, %v7214_v63  ;;  %v7199_v16 = vld [vmem:[%s15631_s1 + $0xc28] sm:$0xff] }
 0x521   : > { %v3177_v27 = vpop.f32.mrb[44].mxu1 }
 0x522   : > { %3729 = vst [vmem:[#allocation2 + $0x1d] sm:$0x1] %v3721_v44  ;;  %3737 = vst [vmem:[#allocation2 + $0x1c] sm:$0x4] %v3721_v44  ;;  %v10092_v33 = vadd.f32 %v13684_v62, %v3177_v27  ;;  %v3179_v51 = vpop.f32.mrb[45].mxu1  ;;  %v3536_v55 = vmax.f32 %v3398_v52, 0.0 }
 0x523   : > { %3745 = vst [vmem:[#allocation2 + $0x1b] sm:$0x10] %v3721_v44  ;;  %3753 = vst [vmem:[#allocation2 + $0x1a] sm:$0x40] %v3721_v44  ;;  %v7217_v44 = vld [vmem:[%s15631_s1 + $0xcb8] sm:$0xff] }
 0x524   : > { %v3403_v29 = vadd.f32 %v10092_v33, %v13112_v58  ;;  %v7213_v58 = vld [vmem:[%s15631_s1 + $0xc98] sm:$0xff]  ;;  %v9520_v33 = vpack.c.bf16 %v7199_v16, %v7198_v10  ;;  %v7222_v10 = vld [vmem:[%s15631_s1 + $0xce0] sm:$0xff]  ;;  %v7223_v16 = vld [vmem:[%s15631_s1 + $0xce8] sm:$0xff] }
 0x525   : > { %v3182_v18 = vpop.f32.mrb[46].mxu1  ;;  %v9514_v34 = vpack.c.bf16 %v7213_v58, %v7212_v37 }
 0x526   : > { %v3537_v32 = vmax.f32 %v3403_v29, 0.0  ;;  %v10093_v11 = vadd.f32 %v13684_v62, %v3182_v18  ;;  %v3184_v21 = vpop.f32.mrb[47].mxu1  ;;  %v9522_v29 = vpack.c.bf16 %v7217_v44, %v7216_v48  ;;  %v7200_v18 = vld [vmem:[%s15631_s1 + $0xc30] sm:$0xff] }
 0x527   : > { %v9524_v21 = vpack.c.bf16 %v7201_v1, %v7200_v18 }
 0x528   : > { %v3619_v15 = vmax.f32 %v3535_v46, %v3537_v32  ;;  %v3408_v47 = vadd.f32 %v10093_v11, %v13109_v38  ;;  %v7218_v46 = vld [vmem:[%s15631_s1 + $0xcc0] sm:$0xff]  ;;  %v7219_v32 = vld [vmem:[%s15631_s1 + $0xcc8] sm:$0xff] }
 0x529   : > { %v3187_v39 = vpop.f32.mrb[48].mxu1  ;;  %v9526_v58 = vpack.c.bf16 %v7219_v32, %v7218_v46 }
 0x52a   : > { %v13747_v6 = vld [vmem:[#allocation2 + $0x19] sm:$0xff]  ;;  %v3642_v61 = vrot.slane %v3619_v15, 1  ;;  %v3538_v40 = vmax.f32 %v3408_v47, 0.0  ;;  %v10094_v38 = vadd.f32 %v13684_v62, %v3187_v39  ;;  %v3189_v45 = vpop.f32.mrb[49].mxu1  ;;  %v7203_v47 = vld [vmem:[%s15631_s1 + $0xc48] sm:$0xff] }
 0x52b   : > { %v3785_v14 = vld [vmem:[#allocation2 + $0x18] sm:$0xff]  ;;  %4052 = vmatprep.mubr.f32.mxu1 %v13747_v6 }
 0x52c   : > { %v13749_v59 = vld [vmem:[#allocation2 + $0x1a] sm:$0xff]  ;;  %4152 = vmatprep.mubr.f32.mxu0 %v3785_v14  ;;  %4053 = vmatmul.mubr.f32.gmra.mrb[98].mxu1 %v3785_v14  ;;  %v3658_v0 = vmax.f32 %v3619_v15, %v3642_v61  ;;  %v3620_v30 = vmax.f32 %v3536_v55, %v3538_v40  ;;  %v3413_v26 = vadd.f32 %v10094_v38, %v13134_v19  ;;  %v7204_v40 = vld [vmem:[%s15631_s1 + $0xc50] sm:$0xff] }
 0x52d   : > { %4519 = vst [vmem:[#allocation2 + $0x18] sm:$0xff] %v12370_v17  ;;  %4520 = vst [vmem:[#allocation2 + $0x20] sm:$0xff] %v12370_v17  ;;  %4153 = vmatmul.mubr.f32.vlgmr.msra.gmra.mrb[96].mxu0 %v13589_v43  ;;  %v3192_v8 = vpop.f32.mrb[50].mxu1  ;;  %v7202_v15 = vld [vmem:[%s15631_s1 + $0xc40] sm:$0xff]  ;;  %v7221_v14 = vld [vmem:[%s15631_s1 + $0xcd8] sm:$0xff] }
 0x52e   : > { %9513 = vmatpush3.bf16.msra.mxu0 %v9512_v12  ;;  %3666 = vst [vmem:[#allocation2 + $0x31] sm:$0x1] %v3658_v0  ;;  %3674 = vst [vmem:[#allocation2 + $0x30] sm:$0x4] %v3658_v0  ;;  %v3706_v43 = vrot.slane %v3620_v30, 1  ;;  %v10095_v19 = vadd.f32 %v13684_v62, %v3192_v8  ;;  %v3194_v35 = vpop.f32.mrb[51].mxu1  ;;  %v9528_v61 = vpack.c.bf16 %v7203_v47, %v7202_v15 }
 0x52f   : > { %9515 = vmatprep.subr.bf16.mxu0 %v9514_v34  ;;  %3682 = vst [vmem:[#allocation2 + $0x2f] sm:$0x10] %v3658_v0  ;;  %3690 = vst [vmem:[#allocation2 + $0x2e] sm:$0x40] %v3658_v0  ;;  %v3539_v12 = vmax.f32 %v3413_v26, 0.0  ;;  %v7205_v38 = vld [vmem:[%s15631_s1 + $0xc58] sm:$0xff] }
 0x530   : > { %v3722_v52 = vmax.f32 %v3620_v30, %v3706_v43  ;;  %v3418_v27 = vadd.f32 %v10095_v19, %v13131_v7  ;;  %v13830_v43 = vld [vmem:[#allocation2 + $0xd9] sm:$0xff] }
 0x531   : > { %v3197_v51 = vpop.f32.mrb[52].mxu1  ;;  %v13832_v19 = vld [vmem:[#allocation2 + $0xda] sm:$0xff] }
 0x532   : > { %9517 = vmatpush3.bf16.msra.mxu0 %v9516_v5  ;;  %3730 = vst [vmem:[#allocation2 + $0x35] sm:$0x1] %v3722_v52  ;;  %3738 = vst [vmem:[#allocation2 + $0x34] sm:$0x4] %v3722_v52  ;;  %v10096_v23 = vadd.f32 %v13684_v62, %v3197_v51  ;;  %v3199_v7 = vpop.f32.mrb[53].mxu1  ;;  %v7206_v51 = vld [vmem:[%s15631_s1 + $0xc60] sm:$0xff] }
 0x533   : > { %9519 = vmatprep.subr.bf16.mxu0 %v9518_v57  ;;  %3746 = vst [vmem:[#allocation2 + $0x33] sm:$0x10] %v3722_v52  ;;  %3754 = vst [vmem:[#allocation2 + $0x32] sm:$0x40] %v3722_v52  ;;  %v9532_v52 = vpack.c.bf16 %v7205_v38, %v7204_v40  ;;  %v7225_v7 = vld [vmem:[%s15631_s1 + $0xcf8] sm:$0xff] }
 0x534   : > { %v3423_v11 = vadd.f32 %v10096_v23, %v13156_v56  ;;  %v7220_v56 = vld [vmem:[%s15631_s1 + $0xcd0] sm:$0xff]  ;;  %4543 = vst [vmem:[#allocation2 + $0xd8] sm:$0xff] %v12370_v17  ;;  %4544 = vst [vmem:[#allocation2 + $0xe0] sm:$0xff] %v12370_v17  ;;  %v7209_v15 = vld [vmem:[%s15631_s1 + $0xc78] sm:$0xff] }
 0x535   : > { %v3202_v37 = vpop.f32.mrb[54].mxu1  ;;  %v9530_v30 = vpack.c.bf16 %v7221_v14, %v7220_v56  ;;  %v7224_v23 = vld [vmem:[%s15631_s1 + $0xcf0] sm:$0xff] }
 0x536   : > { %9521 = vmatpush3.bf16.msra.mxu0 %v9520_v33  ;;  %v3541_v53 = vmax.f32 %v3423_v11, 0.0  ;;  %v10097_v4 = vadd.f32 %v13684_v62, %v3202_v37  ;;  %v3204_v39 = vpop.f32.mrb[55].mxu1  ;;  %v9534_v33 = vpack.c.bf16 %v7223_v16, %v7222_v10  ;;  %v9538_v37 = vpack.c.bf16 %v7225_v7, %v7224_v23 }
 0x537   : > { %9523 = vmatprep.subr.bf16.mxu0 %v9522_v29  ;;  %v7207_v29 = vld [vmem:[%s15631_s1 + $0xc68] sm:$0xff] }
 0x538   : > { %v3621_v34 = vmax.f32 %v3539_v12, %v3541_v53  ;;  %v3428_v55 = vadd.f32 %v10097_v4, %v13153_v28  ;;  %v3540_v28 = vmax.f32 %v3418_v27, 0.0  ;;  %v9536_v11 = vpack.c.bf16 %v7207_v29, %v7206_v51 }
 0x539   : > { %v3207_v45 = vpop.f32.mrb[56].mxu1 }
 0x53a   : > { %9525 = vmatpush3.bf16.msra.mxu0 %v9524_v21  ;;  %v13811_v63 = vld [vmem:[#allocation2 + $0x31] sm:$0xff]  ;;  %v3643_v26 = vrot.slane %v3621_v34, 1  ;;  %v3542_v5 = vmax.f32 %v3428_v55, 0.0  ;;  %v10098_v8 = vadd.f32 %v13684_v62, %v3207_v45  ;;  %v3209_v57 = vpop.f32.mrb[57].mxu1 }
 0x53b   : > { %v13813_v41 = vld [vmem:[#allocation2 + $0x30] sm:$0xff]  ;;  %9527 = vmatprep.subr.bf16.mxu0 %v9526_v58  ;;  %4057 = vmatprep.mubr.f32.mxu1 %v13811_v63 }
 0x53c   : > { %v13815_v0 = vld [vmem:[#allocation2 + $0x32] sm:$0xff]  ;;  %4157 = vmatprep.mubr.f32.mxu0 %v13813_v41  ;;  %4058 = vmatmul.mubr.f32.gmra.mrb[100].mxu1 %v13813_v41  ;;  %v3659_v35 = vmax.f32 %v3621_v34, %v3643_v26  ;;  %v3622_v48 = vmax.f32 %v3540_v28, %v3542_v5  ;;  %v3433_v44 = vadd.f32 %v10098_v8, %v13178_v31 }
 0x53d   : > { %4522 = vst [vmem:[#allocation2 + $0x30] sm:$0xff] %v12370_v17  ;;  %4523 = vst [vmem:[#allocation2 + $0x38] sm:$0xff] %v12370_v17  ;;  %4158 = vmatmul.mubr.f32.gmra.mrb[98].mxu0 %v13749_v59  ;;  %v3212_v27 = vpop.f32.mrb[58].mxu1  ;;  %v7208_v58 = vld [vmem:[%s15631_s1 + $0xc70] sm:$0xff] }
 0x53e   : > { %9529 = vmatpush3.bf16.msra.mxu0 %v9528_v61  ;;  %3667 = vst [vmem:[#allocation2 + $0x49] sm:$0x1] %v3659_v35  ;;  %3675 = vst [vmem:[#allocation2 + $0x48] sm:$0x4] %v3659_v35  ;;  %v3707_v31 = vrot.slane %v3622_v48, 1  ;;  %v10099_v18 = vadd.f32 %v13684_v62, %v3212_v27  ;;  %v3214_v1 = vpop.f32.mrb[59].mxu1  ;;  %v9540_v53 = vpack.c.bf16 %v7209_v15, %v7208_v58 }
 0x53f   : > { %9531 = vmatprep.subr.bf16.mxu0 %v9530_v30  ;;  %3683 = vst [vmem:[#allocation2 + $0x47] sm:$0x10] %v3659_v35  ;;  %3691 = vst [vmem:[#allocation2 + $0x46] sm:$0x40] %v3659_v35  ;;  %v3543_v39 = vmax.f32 %v3433_v44, 0.0 }
 0x540   : > { %v3723_v46 = vmax.f32 %v3622_v48, %v3707_v31  ;;  %v3438_v32 = vadd.f32 %v10099_v18, %v13175_v20 }
 0x541   : > { %v3217_v21 = vpop.f32.mrb[60].mxu1 }
 0x542   : > { %9533 = vmatpush3.bf16.msra.mxu0 %v9532_v52  ;;  %3731 = vst [vmem:[#allocation2 + $0x4d] sm:$0x1] %v3723_v46  ;;  %3739 = vst [vmem:[#allocation2 + $0x4c] sm:$0x4] %v3723_v46  ;;  %v10100_v47 = vadd.f32 %v13684_v62, %v3217_v21  ;;  %v3219_v20 = vpop.f32.mrb[61].mxu1 }
 0x543   : > { %9535 = vmatprep.subr.bf16.mxu0 %v9534_v33  ;;  %3747 = vst [vmem:[#allocation2 + $0x4b] sm:$0x10] %v3723_v46  ;;  %3755 = vst [vmem:[#allocation2 + $0x4a] sm:$0x40] %v3723_v46 }
 0x544   : > { %v3443_v12 = vadd.f32 %v10100_v47, %v13200_v49  ;;  %v3544_v49 = vmax.f32 %v3438_v32, 0.0 }
 0x545   : > { %v3222_v4 = vpop.f32.mrb[62].mxu1 }
 0x546   : > { %9537 = vmatpush3.bf16.msra.mxu0 %v9536_v11  ;;  %v3545_v56 = vmax.f32 %v3443_v12, 0.0  ;;  %v10101_v14 = vadd.f32 %v13684_v62, %v3222_v4  ;;  %v3224_v34 = vpop.f32.mrb[63].mxu1 }
 0x547   : > { %9539 = vmatprep.subr.bf16.mxu0 %v9538_v37 }
 0x548   : > { %v3623_v55 = vmax.f32 %v3543_v39, %v3545_v56  ;;  %v3448_v61 = vadd.f32 %v10101_v14, %v13197_v9 }
 0x549   : > { %v3227_v40 = vpop.f32.mrb[64].mxu1 }
 0x54a   : > { %9541 = vmatpush3.bf16.msra.mxu0 %v9540_v53  ;;  %v13861_v38 = vld [vmem:[#allocation2 + $0x49] sm:$0xff]  ;;  %v3644_v28 = vrot.slane %v3623_v55, 1  ;;  %v3546_v26 = vmax.f32 %v3448_v61, 0.0  ;;  %v10102_v5 = vadd.f32 %v13684_v62, %v3227_v40  ;;  %v3229_v8 = vpop.f32.mrb[65].mxu1 }
 0x54b   : > { %v13863_v45 = vld [vmem:[#allocation2 + $0x48] sm:$0xff]  ;;  %4062 = vmatprep.mubr.f32.mxu1 %v13861_v38 }
 0x54c   : > { %v13865_v30 = vld [vmem:[#allocation2 + $0x4a] sm:$0xff]  ;;  %4162 = vmatprep.mubr.f32.mxu0 %v13863_v45  ;;  %4063 = vmatmul.mubr.f32.gmra.mrb[102].mxu1 %v13863_v45  ;;  %v3660_v9 = vmax.f32 %v3623_v55, %v3644_v28  ;;  %v3624_v57 = vmax.f32 %v3544_v49, %v3546_v26  ;;  %v3453_v10 = vadd.f32 %v10102_v5, %v13222_v36  ;;  %v15924_v53 = vld [vmem:[#allocation56_spill] sm:$0xff] }
 0x54d   : > { %4525 = vst [vmem:[#allocation2 + $0x48] sm:$0xff] %v12370_v17  ;;  %4526 = vst [vmem:[#allocation2 + $0x50] sm:$0xff] %v12370_v17  ;;  %4163 = vmatmul.mubr.f32.gmra.mrb[100].mxu0 %v13815_v0  ;;  %v3232_v16 = vpop.f32.mrb[66].mxu1  ;;  %v15925_v61 = vld [vmem:[#allocation49_spill] sm:$0xff] }
 0x54e   : > { %3668 = vst [vmem:[#allocation2 + $0x61] sm:$0x1] %v3660_v9  ;;  %3676 = vst [vmem:[#allocation2 + $0x60] sm:$0x4] %v3660_v9  ;;  %v3708_v35 = vrot.slane %v3624_v57, 1  ;;  %v10103_v48 = vadd.f32 %v13684_v62, %v3232_v16  ;;  %v3234_v44 = vpop.f32.mrb[67].mxu1 }
 0x54f   : > { %3684 = vst [vmem:[#allocation2 + $0x5f] sm:$0x10] %v3660_v9  ;;  %3692 = vst [vmem:[#allocation2 + $0x5e] sm:$0x40] %v3660_v9  ;;  %v3547_v18 = vmax.f32 %v3453_v10, 0.0 }
 0x550   : > { %v3724_v52 = vmax.f32 %v3624_v57, %v3708_v35  ;;  %v3458_v27 = vadd.f32 %v10103_v48, %v13219_v42 }
 0x551   : > { %v3237_v33 = vpop.f32.mrb[68].mxu1 }
 0x552   : > { %3732 = vst [vmem:[#allocation2 + $0x65] sm:$0x1] %v3724_v52  ;;  %3740 = vst [vmem:[#allocation2 + $0x64] sm:$0x4] %v3724_v52  ;;  %v10104_v51 = vadd.f32 %v13684_v62, %v3237_v33  ;;  %v3239_v36 = vpop.f32.mrb[69].mxu1  ;;  %v3548_v58 = vmax.f32 %v3458_v27, 0.0 }
 0x553   : > { %3748 = vst [vmem:[#allocation2 + $0x63] sm:$0x10] %v3724_v52  ;;  %3756 = vst [vmem:[#allocation2 + $0x62] sm:$0x40] %v3724_v52 }
 0x554   : > { %v3463_v29 = vadd.f32 %v10104_v51, %v13244_v3 }
 0x555   : > { %v3242_v31 = vpop.f32.mrb[70].mxu1 }
 0x556   : > { %v3549_v1 = vmax.f32 %v3463_v29, 0.0  ;;  %v10105_v23 = vadd.f32 %v13684_v62, %v3242_v31  ;;  %v3244_v7 = vpop.f32.mrb[71].mxu1 }
 0x558   : > { %v3625_v46 = vmax.f32 %v3547_v18, %v3549_v1  ;;  %v3468_v32 = vadd.f32 %v10105_v23, %v13241_v24 }
 0x559   : > { %v3247_v42 = vpop.f32.mrb[72].mxu1 }
 0x55a   : > { %v13881_v11 = vld [vmem:[#allocation2 + $0x61] sm:$0xff]  ;;  %v3645_v15 = vrot.slane %v3625_v46, 1  ;;  %v3550_v47 = vmax.f32 %v3468_v32, 0.0  ;;  %v10106_v3 = vadd.f32 %v13684_v62, %v3247_v42  ;;  %v3249_v20 = vpop.f32.mrb[73].mxu1 }
 0x55b   : > { %v13883_v21 = vld [vmem:[#allocation2 + $0x60] sm:$0xff]  ;;  %4067 = vmatprep.mubr.f32.mxu1 %v13881_v11 }
 0x55c   : > { %v13885_v37 = vld [vmem:[#allocation2 + $0x62] sm:$0xff]  ;;  %4167 = vmatprep.mubr.f32.mxu0 %v13883_v21  ;;  %4068 = vmatmul.mubr.f32.gmra.mrb[104].mxu1 %v13883_v21  ;;  %v3661_v24 = vmax.f32 %v3625_v46, %v3645_v15  ;;  %v3626_v12 = vmax.f32 %v3548_v58, %v3550_v47  ;;  %v3473_v4 = vadd.f32 %v10106_v3, %v15924_v53  ;;  %v15926_v58 = vld [vmem:[#allocation57_spill] sm:$0xff] }
 0x55d   : > { %4528 = vst [vmem:[#allocation2 + $0x60] sm:$0xff] %v12370_v17  ;;  %4529 = vst [vmem:[#allocation2 + $0x68] sm:$0xff] %v12370_v17  ;;  %4168 = vmatmul.mubr.f32.gmra.mrb[102].mxu0 %v13865_v30  ;;  %v3252_v39 = vpop.f32.mrb[74].mxu1 }
 0x55e   : > { %3669 = vst [vmem:[#allocation2 + $0x79] sm:$0x1] %v3661_v24  ;;  %3677 = vst [vmem:[#allocation2 + $0x78] sm:$0x4] %v3661_v24  ;;  %v3709_v56 = vrot.slane %v3626_v12, 1  ;;  %v10107_v14 = vadd.f32 %v13684_v62, %v3252_v39  ;;  %v3254_v34 = vpop.f32.mrb[75].mxu1 }
 0x55f   : > { %3685 = vst [vmem:[#allocation2 + $0x77] sm:$0x10] %v3661_v24  ;;  %3693 = vst [vmem:[#allocation2 + $0x76] sm:$0x40] %v3661_v24  ;;  %v3551_v9 = vmax.f32 %v3473_v4, 0.0 }
 0x560   : > { %v3725_v55 = vmax.f32 %v3626_v12, %v3709_v56  ;;  %v3478_v40 = vadd.f32 %v10107_v14, %v15925_v61  ;;  %v15927_v14 = vld [vmem:[#allocation62_spill] sm:$0xff] }
 0x561   : > { %v3257_v49 = vpop.f32.mrb[76].mxu1 }
 0x562   : > { %3733 = vst [vmem:[#allocation2 + $0x7d] sm:$0x1] %v3725_v55  ;;  %3741 = vst [vmem:[#allocation2 + $0x7c] sm:$0x4] %v3725_v55  ;;  %v10108_v28 = vadd.f32 %v13684_v62, %v3257_v49  ;;  %v3259_v26 = vpop.f32.mrb[77].mxu1  ;;  %v3552_v51 = vmax.f32 %v3478_v40, 0.0 }
 0x563   : > { %3749 = vst [vmem:[#allocation2 + $0x7b] sm:$0x10] %v3725_v55  ;;  %3757 = vst [vmem:[#allocation2 + $0x7a] sm:$0x40] %v3725_v55 }
 0x564   : > { %v3483_v5 = vadd.f32 %v10108_v28, %v13275_v50 }
 0x565   : > { %v3262_v8 = vpop.f32.mrb[78].mxu1 }
 0x566   : > { %v3553_v57 = vmax.f32 %v3483_v5, 0.0  ;;  %v10109_v10 = vadd.f32 %v13684_v62, %v3262_v8  ;;  %v3264_v16 = vpop.f32.mrb[79].mxu1 }
 0x568   : > { %v3627_v35 = vmax.f32 %v3551_v9, %v3553_v57  ;;  %v3488_v48 = vadd.f32 %v10109_v10, %v13272_v22  ;;  %v15928_v10 = vld [vmem:[#allocation68_spill] sm:$0xff] }
 0x569   : > { %v3267_v44 = vpop.f32.mrb[80].mxu1 }
 0x56a   : > { %v13901_v52 = vld [vmem:[#allocation2 + $0x79] sm:$0xff]  ;;  %v3646_v36 = vrot.slane %v3627_v35, 1  ;;  %v3554_v29 = vmax.f32 %v3488_v48, 0.0  ;;  %v10110_v50 = vadd.f32 %v13684_v62, %v3267_v44  ;;  %v3269_v31 = vpop.f32.mrb[81].mxu1 }
 0x56b   : > { %v13903_v27 = vld [vmem:[#allocation2 + $0x78] sm:$0xff]  ;;  %4072 = vmatprep.mubr.f32.mxu1 %v13901_v52 }
 0x56c   : > { %v13905_v33 = vld [vmem:[#allocation2 + $0x7a] sm:$0xff]  ;;  %4172 = vmatprep.mubr.f32.mxu0 %v13903_v27  ;;  %4073 = vmatmul.mubr.f32.gmra.mrb[106].mxu1 %v13903_v27  ;;  %v3662_v22 = vmax.f32 %v3627_v35, %v3646_v36  ;;  %v3628_v18 = vmax.f32 %v3552_v51, %v3554_v29  ;;  %v3493_v1 = vadd.f32 %v10110_v50, %v13283_v2 }
 0x56d   : > { %4531 = vst [vmem:[#allocation2 + $0x78] sm:$0xff] %v12370_v17  ;;  %4532 = vst [vmem:[#allocation2 + $0x80] sm:$0xff] %v12370_v17  ;;  %4173 = vmatmul.mubr.f32.gmra.mrb[104].mxu0 %v13885_v37  ;;  %v3272_v23 = vpop.f32.mrb[82].mxu1  ;;  %v15929_v29 = vld [vmem:[#allocation63_spill] sm:$0xff] }
 0x56e   : > { %3670 = vst [vmem:[#allocation2 + $0x91] sm:$0x1] %v3662_v22  ;;  %3678 = vst [vmem:[#allocation2 + $0x90] sm:$0x4] %v3662_v22  ;;  %v3710_v7 = vrot.slane %v3628_v18, 1  ;;  %v10111_v46 = vadd.f32 %v13684_v62, %v3272_v23  ;;  %v3274_v32 = vpop.f32.mrb[83].mxu1 }
 0x56f   : > { %3686 = vst [vmem:[#allocation2 + $0x8f] sm:$0x10] %v3662_v22  ;;  %3694 = vst [vmem:[#allocation2 + $0x8e] sm:$0x40] %v3662_v22  ;;  %v3555_v12 = vmax.f32 %v3493_v1, 0.0 }
 0x570   : > { %v3726_v42 = vmax.f32 %v3628_v18, %v3710_v7  ;;  %v3498_v15 = vadd.f32 %v10111_v46, %v15926_v58 }
 0x571   : > { %v3277_v47 = vpop.f32.mrb[84].mxu1 }
 0x572   : > { %3734 = vst [vmem:[#allocation2 + $0x95] sm:$0x1] %v3726_v42  ;;  %3742 = vst [vmem:[#allocation2 + $0x94] sm:$0x4] %v3726_v42  ;;  %v10112_v3 = vadd.f32 %v13684_v62, %v3277_v47  ;;  %v3279_v2 = vpop.f32.mrb[85].mxu1  ;;  %v3556_v28 = vmax.f32 %v3498_v15, 0.0 }
 0x573   : > { %3750 = vst [vmem:[#allocation2 + $0x93] sm:$0x10] %v3726_v42  ;;  %3758 = vst [vmem:[#allocation2 + $0x92] sm:$0x40] %v3726_v42 }
 0x574   : > { %v3503_v20 = vadd.f32 %v10112_v3, %v13291_v25 }
 0x575   : > { %v3282_v24 = vpop.f32.mrb[86].mxu1 }
 0x576   : > { %v3557_v53 = vmax.f32 %v3503_v20, 0.0  ;;  %v10113_v4 = vadd.f32 %v13684_v62, %v3282_v24  ;;  %v3284_v39 = vpop.f32.mrb[87].mxu1 }
 0x578   : > { %v3629_v56 = vmax.f32 %v3555_v12, %v3557_v53  ;;  %v3508_v34 = vadd.f32 %v10113_v4, %v15927_v14 }
 0x579   : > { %v3287_v55 = vpop.f32.mrb[88].mxu1 }
 0x57a   : > { %v13921_v61 = vld [vmem:[#allocation2 + $0x91] sm:$0xff]  ;;  %v3647_v26 = vrot.slane %v3629_v56, 1  ;;  %v3558_v5 = vmax.f32 %v3508_v34, 0.0  ;;  %v10114_v25 = vadd.f32 %v13684_v62, %v3287_v55  ;;  %v3289_v8 = vpop.f32.mrb[89].mxu1  ;;  %v7230_v55 = vld [vmem:[%s15631_s1 + $0xd20] sm:$0xff] }
 0x57b   : > { %v13923_v40 = vld [vmem:[#allocation2 + $0x90] sm:$0xff]  ;;  %4077 = vmatprep.mubr.f32.mxu1 %v13921_v61  ;;  %v7235_v8 = vld [vmem:[%s15631_s1 + $0xd48] sm:$0xff] }
 0x57c   : > { %v13925_v49 = vld [vmem:[#allocation2 + $0x92] sm:$0xff]  ;;  %4177 = vmatprep.mubr.f32.mxu0 %v13923_v40  ;;  %4078 = vmatmul.mubr.f32.gmra.mrb[108].mxu1 %v13923_v40  ;;  %v3663_v9 = vmax.f32 %v3629_v56, %v3647_v26  ;;  %v3630_v57 = vmax.f32 %v3556_v28, %v3558_v5  ;;  %v3513_v16 = vadd.f32 %v10114_v25, %v15928_v10  ;;  %v7231_v28 = vld [vmem:[%s15631_s1 + $0xd28] sm:$0xff] }
 0x57d   : > { %4534 = vst [vmem:[#allocation2 + $0x90] sm:$0xff] %v12370_v17  ;;  %4535 = vst [vmem:[#allocation2 + $0x98] sm:$0xff] %v12370_v17  ;;  %4178 = vmatmul.mubr.f32.gmra.mrb[106].mxu0 %v13905_v33  ;;  %v3292_v35 = vpop.f32.mrb[90].mxu1  ;;  %v7232_v5 = vld [vmem:[%s15631_s1 + $0xd30] sm:$0xff]  ;;  %v7233_v25 = vld [vmem:[%s15631_s1 + $0xd38] sm:$0xff] }
 0x57e   : > { %3671 = vst [vmem:[#allocation2 + $0xa9] sm:$0x1] %v3663_v9  ;;  %3679 = vst [vmem:[#allocation2 + $0xa8] sm:$0x4] %v3663_v9  ;;  %v3711_v48 = vrot.slane %v3630_v57, 1  ;;  %v10115_v44 = vadd.f32 %v13684_v62, %v3292_v35  ;;  %v3294_v51 = vpop.f32.mrb[91].mxu1 }
 0x57f   : > { %3687 = vst [vmem:[#allocation2 + $0xa7] sm:$0x10] %v3663_v9  ;;  %3695 = vst [vmem:[#allocation2 + $0xa6] sm:$0x40] %v3663_v9  ;;  %v3559_v7 = vmax.f32 %v3513_v16, 0.0  ;;  %v7236_v35 = vld [vmem:[%s15631_s1 + $0xd50] sm:$0xff] }
 0x580   : > { %v3727_v36 = vmax.f32 %v3630_v57, %v3711_v48  ;;  %v3518_v50 = vadd.f32 %v10115_v44, %v15929_v29  ;;  %v7237_v48 = vld [vmem:[%s15631_s1 + $0xd58] sm:$0xff]  ;;  %v7238_v51 = vld [vmem:[%s15631_s1 + $0xd60] sm:$0xff] }
 0x581   : > { %v3297_v31 = vpop.f32.mrb[92].mxu1  ;;  %v9562_v44 = vpack.c.bf16 %v7237_v48, %v7236_v35  ;;  %v7241_v29 = vld [vmem:[%s15631_s1 + $0xd78] sm:$0xff]  ;;  %v7297_v35 = vld [vmem:[%s15631_s1 + $0xf30] sm:$0xff] }
 0x582   : > { %3735 = vst [vmem:[#allocation2 + $0xad] sm:$0x1] %v3727_v36  ;;  %3743 = vst [vmem:[#allocation2 + $0xac] sm:$0x4] %v3727_v36  ;;  %v10116_v22 = vadd.f32 %v13684_v62, %v3297_v31  ;;  %v3299_v18 = vpop.f32.mrb[93].mxu1  ;;  %v3560_v24 = vmax.f32 %v3518_v50, 0.0 }
 0x583   : > { %3751 = vst [vmem:[#allocation2 + $0xab] sm:$0x10] %v3727_v36  ;;  %3759 = vst [vmem:[#allocation2 + $0xaa] sm:$0x40] %v3727_v36  ;;  %v7239_v36 = vld [vmem:[%s15631_s1 + $0xd68] sm:$0xff]  ;;  %v7247_v31 = vld [vmem:[%s15631_s1 + $0xda0] sm:$0xff] }
 0x584   : > { %v3523_v1 = vadd.f32 %v10116_v22, %v13667_v54  ;;  %v7228_v54 = vld [vmem:[%s15631_s1 + $0xd10] sm:$0xff]  ;;  %v7248_v22 = vld [vmem:[%s15631_s1 + $0xda8] sm:$0xff]  ;;  %v7291_v18 = vld [vmem:[%s15631_s1 + $0xf00] sm:$0xff] }
 0x585   : > { %v3302_v23 = vpop.f32.mrb[94].mxu1  ;;  %v7298_v48 = vld [vmem:[%s15631_s1 + $0xf38] sm:$0xff] }
 0x586   : > { %v3561_v46 = vmax.f32 %v3523_v1, 0.0  ;;  %v10117_v32 = vadd.f32 %v13684_v62, %v3302_v23  ;;  %v3304_v42 = vpop.f32.mrb[95].mxu1  ;;  %v7292_v1 = vld [vmem:[%s15631_s1 + $0xf08] sm:$0xff]  ;;  %v9584_v23 = vpack.c.bf16 %v7248_v22, %v7247_v31 }
 0x587   : > { %v7284_v31 = vld [vmem:[%s15631_s1 + $0xec8] sm:$0xff] }
 0x588   : > { %v3631_v58 = vmax.f32 %v3559_v7, %v3561_v46  ;;  %v3528_v15 = vadd.f32 %v10117_v32, %v13659_v60  ;;  %v7229_v60 = vld [vmem:[%s15631_s1 + $0xd18] sm:$0xff]  ;;  %v9606_v7 = vpack.c.bf16 %v7292_v1, %v7291_v18  ;;  %v7275_v46 = vld [vmem:[%s15631_s1 + $0xe80] sm:$0xff]  ;;  %v7276_v32 = vld [vmem:[%s15631_s1 + $0xe88] sm:$0xff] }
 0x589   : > { %v7844_v20 = vpop.f32.mrb[96].mxu1  ;;  %v9546_v14 = vpack.c.bf16 %v7229_v60, %v7228_v54  ;;  %v9608_v42 = vpack.c.bf16 %v7276_v32, %v7275_v46  ;;  %v7277_v54 = vld [vmem:[%s15631_s1 + $0xe90] sm:$0xff]  ;;  %v7278_v60 = vld [vmem:[%s15631_s1 + $0xe98] sm:$0xff] }
 0x58a   : > { %v13941_v47 = vld [vmem:[#allocation2 + $0xa9] sm:$0xff]  ;;  %v3648_v12 = vrot.slane %v3631_v58, 1  ;;  %v3562_v53 = vmax.f32 %v3528_v15, 0.0  ;;  %v7845_v62 = vpop.f32.mrb[97].mxu1  ;;  %v7266_v15 = vld [vmem:[%s15631_s1 + $0xe38] sm:$0xff] }
 0x58b   : > { %v13943_v3 = vld [vmem:[#allocation2 + $0xa8] sm:$0xff]  ;;  %4082 = vmatprep.mubr.f32.mxu1 %v13941_v47  ;;  %v13959_v4 = vadd.f32 %v7845_v62, %v7844_v20  ;;  %v7293_v20 = vld [vmem:[%s15631_s1 + $0xf10] sm:$0xff]  ;;  %v9612_v62 = vpack.c.bf16 %v7278_v60, %v7277_v54  ;;  %v7258_v32 = vld [vmem:[%s15631_s1 + $0xdf8] sm:$0xff] }
 0x58c   : > { %v13945_v2 = vld [vmem:[#allocation2 + $0xaa] sm:$0xff]  ;;  %4182 = vmatprep.mubr.f32.mxu0 %v13943_v3  ;;  %4083 = vmatmul.mubr.f32.gmra.mrb[110].mxu1 %v13943_v3  ;;  %v3664_v39 = vmax.f32 %v3631_v58, %v3648_v12  ;;  %v3632_v56 = vmax.f32 %v3560_v24, %v3562_v53  ;;  %v7294_v24 = vld [vmem:[%s15631_s1 + $0xf18] sm:$0xff]  ;;  %v7287_v60 = vld [vmem:[%s15631_s1 + $0xee0] sm:$0xff] }
 0x58d   : > { %4537 = vst [vmem:[#allocation2 + $0xa8] sm:$0xff] %v12370_v17  ;;  %4538 = vst [vmem:[#allocation2 + $0xb0] sm:$0xff] %v12370_v17  ;;  %4183 = vmatmul.mubr.f32.gmra.mrb[108].mxu0 %v13925_v49  ;;  %4257 = vmatprep.mubr.f32.mxu1 %v13749_v59  ;;  %v9550_v59 = vpack.c.bf16 %v7231_v28, %v7230_v55  ;;  %v7265_v58 = vld [vmem:[%s15631_s1 + $0xe30] sm:$0xff]  ;;  %v9610_v53 = vpack.c.bf16 %v7294_v24, %v7293_v20  ;;  %v7252_v55 = vld [vmem:[%s15631_s1 + $0xdc8] sm:$0xff] }
 0x58e   : > { %3672 = vst [vmem:[#allocation2 + $0xc1] sm:$0x1] %v3664_v39  ;;  %3680 = vst [vmem:[#allocation2 + $0xc0] sm:$0x4] %v3664_v39  ;;  %v3712_v34 = vrot.slane %v3632_v56, 1  ;;  %v7295_v28 = vld [vmem:[%s15631_s1 + $0xf20] sm:$0xff] }
 0x58f   : > { %3688 = vst [vmem:[#allocation2 + $0xbf] sm:$0x10] %v3664_v39  ;;  %3696 = vst [vmem:[#allocation2 + $0xbe] sm:$0x40] %v3664_v39  ;;  %v7267_v39 = vld [vmem:[%s15631_s1 + $0xe40] sm:$0xff]  ;;  %v7273_v1 = vld [vmem:[%s15631_s1 + $0xe70] sm:$0xff] }
 0x590   : > { %4258 = vmatmul.mubr.f32.vlgmr.msra.gmra.mrb[112].mxu1 %v13747_v6  ;;  %v3728_v26 = vmax.f32 %v3632_v56, %v3712_v34  ;;  %v7234_v6 = vld [vmem:[%s15631_s1 + $0xd40] sm:$0xff]  ;;  %v7268_v56 = vld [vmem:[%s15631_s1 + $0xe48] sm:$0xff]  ;;  %v7257_v46 = vld [vmem:[%s15631_s1 + $0xdf0] sm:$0xff] }
 0x591   : > { %4262 = vmatprep.mubr.f32.mxu1 %v13815_v0  ;;  %9545 = vmatpush3.bf16.msra.mxu1 %v13714_v13  ;;  %v9554_v13 = vpack.c.bf16 %v7233_v25, %v7232_v5  ;;  %v9558_v16 = vpack.c.bf16 %v7235_v8, %v7234_v6  ;;  %v7251_v34 = vld [vmem:[%s15631_s1 + $0xdc0] sm:$0xff]  ;;  %v7269_v8 = vld [vmem:[%s15631_s1 + $0xe50] sm:$0xff] }
 0x592   : > { %9547 = vmatprep.subr.bf16.mxu1 %v9546_v14  ;;  %3736 = vst [vmem:[#allocation2 + $0xc5] sm:$0x1] %v3728_v26  ;;  %3744 = vst [vmem:[#allocation2 + $0xc4] sm:$0x4] %v3728_v26  ;;  %v7279_v25 = vld [vmem:[%s15631_s1 + $0xea0] sm:$0xff] }
 0x593   : > { %3752 = vst [vmem:[#allocation2 + $0xc3] sm:$0x10] %v3728_v26  ;;  %3760 = vst [vmem:[#allocation2 + $0xc2] sm:$0x40] %v3728_v26  ;;  %v7296_v26 = vld [vmem:[%s15631_s1 + $0xf28] sm:$0xff] }
 0x594   : > { %4263 = vmatmul.mubr.f32.gmra.mrb[114].mxu1 %v13811_v63  ;;  %v9614_v5 = vpack.c.bf16 %v7296_v26, %v7295_v28  ;;  %v4586_v24 = vld [vmem:[#allocation2 + $0x1] sm:$0xff] }
 0x595   : > { %4267 = vmatprep.mubr.f32.mxu1 %v13865_v30  ;;  %9549 = vmatpush3.bf16.msra.mxu1 %v9546_v14  ;;  %v9590_v14 = vpack.c.bf16 %v7268_v56, %v7267_v39  ;;  %v7323_v56 = vld [vmem:[%s15631_s1 + $0x1000] sm:$0xff] }
 0x596   : > { %9551 = vmatprep.subr.bf16.mxu1 %v9550_v59  ;;  %v7307_v26 = vld [vmem:[%s15631_s1 + $0xf80] sm:$0xff] }
 0x598   : > { %4268 = vmatmul.mubr.f32.gmra.mrb[116].mxu1 %v13861_v38 }
 0x599   : > { %4272 = vmatprep.mubr.f32.mxu1 %v13885_v37  ;;  %9553 = vmatpush3.bf16.msra.mxu1 %v9550_v59  ;;  %v9592_v59 = vpack.c.bf16 %v7252_v55, %v7251_v34  ;;  %v7305_v34 = vld [vmem:[%s15631_s1 + $0xf70] sm:$0xff]  ;;  %v7306_v55 = vld [vmem:[%s15631_s1 + $0xf78] sm:$0xff] }
 0x59a   : > { %v3792_v9 = vld [vmem:[#allocation2 + $0xc0] sm:$0xff]  ;;  %9555 = vmatprep.subr.bf16.mxu1 %v9554_v13 }
 0x59b   : > { %v3808_v57 = vld [vmem:[#allocation2 + $0xc2] sm:$0xff]  ;;  %4187 = vmatprep.mubr.f32.mxu0 %v3792_v9 }
 0x59c   : > { %v3800_v10 = vld [vmem:[#allocation2 + $0xc1] sm:$0xff]  ;;  %4188 = vmatmul.mubr.f32.gmra.mrb[110].mxu0 %v13945_v2  ;;  %4273 = vmatmul.mubr.f32.gmra.mrb[118].mxu1 %v13881_v11 }
 0x59d   : > { %4540 = vst [vmem:[#allocation2 + $0xc0] sm:$0xff] %v12370_v17  ;;  %4541 = vst [vmem:[#allocation2 + $0xc8] sm:$0xff] %v12370_v17  ;;  %4277 = vmatprep.mubr.f32.mxu1 %v13905_v33  ;;  %4362 = vmatprep.mubr.f32.mxu0 %v13811_v63  ;;  %v9566_v63 = vpack.c.bf16 %v7239_v36, %v7238_v51  ;;  %v14153_v51 = vld [vmem:[%s15632_s2 + $0x2] ss:$0 sm:$0xff]  ;;  %v9618_v36 = vpack.c.bf16 %v7298_v48, %v7297_v35  ;;  %v7325_v48 = vld [vmem:[%s15631_s1 + $0x1010] sm:$0xff] }
 0x59e   : > { %9557 = vmatpush3.bf16.msra.mxu1 %v9554_v13  ;;  %v7280_v13 = vld [vmem:[%s15631_s1 + $0xea8] sm:$0xff] }
 0x59f   : > { %9559 = vmatprep.subr.bf16.mxu1 %v9558_v16  ;;  %v9616_v6 = vpack.c.bf16 %v7280_v13, %v7279_v25  ;;  %v7290_v25 = vld [vmem:[%s15631_s1 + $0xef8] sm:$0xff]  ;;  %v7308_v13 = vld [vmem:[%s15631_s1 + $0xf88] sm:$0xff] }
 0x5a0   : > { %4278 = vmatmul.mubr.f32.gmra.mrb[120].mxu1 %v13901_v52  ;;  %4363 = vmatmul.mubr.f32.vlgmr.msra.gmra.mrb[112].mxu0 %v13813_v41  ;;  %v7240_v41 = vld [vmem:[%s15631_s1 + $0xd70] sm:$0xff] }
 0x5a1   : > { %4282 = vmatprep.mubr.f32.mxu1 %v13925_v49  ;;  %4367 = vmatprep.mubr.f32.mxu0 %v13861_v38  ;;  %v9570_v38 = vpack.c.bf16 %v7241_v29, %v7240_v41  ;;  %v7282_v41 = vld [vmem:[%s15631_s1 + $0xeb8] sm:$0xff]  ;;  %v4050_v29 = vadd.f32 %v13959_v4, %v14153_v51  ;;  %v7255_v4 = vld [vmem:[%s15631_s1 + $0xde0] sm:$0xff] }
 0x5a2   : > { %9561 = vmatpush3.bf16.msra.mxu1 %v9558_v16  ;;  %v7254_v16 = vld [vmem:[%s15631_s1 + $0xdd8] sm:$0xff] }
 0x5a3   : > { %9563 = vmatprep.subr.bf16.mxu1 %v9562_v44 }
 0x5a4   : > { %4283 = vmatmul.mubr.f32.gmra.mrb[122].mxu1 %v13921_v61  ;;  %4368 = vmatmul.mubr.f32.gmra.mrb[114].mxu0 %v13863_v45  ;;  %v7260_v45 = vld [vmem:[%s15631_s1 + $0xe08] sm:$0xff] }
 0x5a5   : > { %4287 = vmatprep.mubr.f32.mxu1 %v13945_v2  ;;  %4372 = vmatprep.mubr.f32.mxu0 %v13881_v11  ;;  %v7243_v11 = vld [vmem:[%s15631_s1 + $0xd80] sm:$0xff] }
 0x5a6   : > { %9565 = vmatpush3.bf16.msra.mxu1 %v9562_v44 }
 0x5a7   : > { %9567 = vmatprep.subr.bf16.mxu1 %v9566_v63 }
 0x5a8   : > { %4288 = vmatmul.mubr.f32.gmra.mrb[124].mxu1 %v13941_v47  ;;  %4373 = vmatmul.mubr.f32.gmra.mrb[116].mxu0 %v13883_v21 }
 0x5a9   : > { %4292 = vmatprep.mubr.f32.mxu1 %v3808_v57  ;;  %4377 = vmatprep.mubr.f32.mxu0 %v13901_v52 }
 0x5aa   : > { %9569 = vmatpush3.bf16.msra.mxu1 %v9566_v63  ;;  %v7281_v63 = vld [vmem:[%s15631_s1 + $0xeb0] sm:$0xff] }
 0x5ab   : > { %9571 = vmatprep.subr.bf16.mxu1 %v9570_v38 }
 0x5ac   : > { %4293 = vmatmul.mubr.f32.gmra.mrb[126].mxu1 %v3800_v10  ;;  %4378 = vmatmul.mubr.f32.gmra.mrb[118].mxu0 %v13903_v27  ;;  %v7245_v27 = vld [vmem:[%s15631_s1 + $0xd90] sm:$0xff] }
 0x5ad   : > { %4382 = vmatprep.mubr.f32.mxu0 %v13921_v61  ;;  %8840 = vmatprep.mubr.f32.mxu1 %v13815_v0  ;;  %v7259_v0 = vld [vmem:[%s15631_s1 + $0xe00] sm:$0xff] }
 0x5ae   : > { %9573 = vmatpush3.bf16.msra.mxu1 %v9570_v38 }
 0x5af   : > { %9607 = vmatprep.subr.bf16.mxu1 %v9606_v7 }
 0x5b0   : > { %4383 = vmatmul.mubr.f32.gmra.mrb[120].mxu0 %v13923_v40  ;;  %v7263_v40 = vld [vmem:[%s15631_s1 + $0xe20] sm:$0xff] }
 0x5b1   : > { %8841 = vmatmul.mubr.f32.vlgmr.msra.gmra.mrb[128].mxu1 %v13865_v30  ;;  %4387 = vmatprep.mubr.f32.mxu0 %v13941_v47  ;;  %v9574_v30 = vpack.c.bf16 %v7260_v45, %v7259_v0  ;;  %v9586_v47 = vpack.c.bf16 %v7266_v15, %v7265_v58  ;;  %v9620_v45 = vpack.c.bf16 %v7282_v41, %v7281_v63  ;;  %v7302_v58 = vld [vmem:[%s15631_s1 + $0xf58] sm:$0xff] }
 0x5b2   : > { %8843 = vmatprep.mubr.f32.mxu1 %v13885_v37  ;;  %v7262_v37 = vld [vmem:[%s15631_s1 + $0xe18] sm:$0xff]  ;;  %9609 = vmatpush3.bf16.msra.mxu1 %v9608_v42  ;;  %v7301_v42 = vld [vmem:[%s15631_s1 + $0xf50] sm:$0xff]  ;;  %v9604_v15 = vpack.c.bf16 %v7258_v32, %v7257_v46  ;;  %v7315_v46 = vld [vmem:[%s15631_s1 + $0xfc0] sm:$0xff] }
 0x5b3   : > { %9575 = vmatprep.subr.bf16.mxu0 %v9574_v30  ;;  %9611 = vmatprep.subr.bf16.mxu1 %v9610_v53  ;;  %v7271_v30 = vld [vmem:[%s15631_s1 + $0xe60] sm:$0xff]  ;;  %v7304_v53 = vld [vmem:[%s15631_s1 + $0xf68] sm:$0xff] }
 0x5b4   : > { %4388 = vmatmul.mubr.f32.gmra.mrb[122].mxu0 %v13943_v3  ;;  %v7249_v3 = vld [vmem:[%s15631_s1 + $0xdb0] sm:$0xff]  ;;  %v7316_v32 = vld [vmem:[%s15631_s1 + $0xfc8] sm:$0xff] }
 0x5b5   : > { %8844 = vmatmul.mubr.f32.gmra.mrb[130].mxu1 %v13905_v33  ;;  %4392 = vmatprep.mubr.f32.mxu0 %v3800_v10  ;;  %v7246_v33 = vld [vmem:[%s15631_s1 + $0xd98] sm:$0xff]  ;;  %v7253_v10 = vld [vmem:[%s15631_s1 + $0xdd0] sm:$0xff] }
 0x5b6   : > { %8846 = vmatprep.mubr.f32.mxu1 %v13925_v49  ;;  %v9580_v61 = vpack.c.bf16 %v7246_v33, %v7245_v27  ;;  %v7264_v49 = vld [vmem:[%s15631_s1 + $0xe28] sm:$0xff]  ;;  %9613 = vmatpush3.bf16.msra.mxu1 %v9612_v62  ;;  %v9596_v44 = vpack.c.bf16 %v7254_v16, %v7253_v10  ;;  %v7299_v33 = vld [vmem:[%s15631_s1 + $0xf40] sm:$0xff] }
 0x5b7   : > { %v9582_v50 = vpack.c.bf16 %v7264_v49, %v7263_v40  ;;  %9615 = vmatprep.subr.bf16.mxu1 %v9614_v5  ;;  %v7288_v62 = vld [vmem:[%s15631_s1 + $0xee8] sm:$0xff]  ;;  %v7289_v5 = vld [vmem:[%s15631_s1 + $0xef0] sm:$0xff] }
 0x5b8   : > { %4393 = vmatmul.mubr.f32.gmra.mrb[124].mxu0 %v3792_v9  ;;  %v7270_v9 = vld [vmem:[%s15631_s1 + $0xe58] sm:$0xff]  ;;  %v9632_v39 = vpack.c.bf16 %v7288_v62, %v7287_v60  ;;  %v7317_v60 = vld [vmem:[%s15631_s1 + $0xfd0] sm:$0xff] }
 0x5b9   : > { %8847 = vmatmul.mubr.f32.gmra.mrb[132].mxu1 %v13945_v2  ;;  %4397 = vmatprep.mubr.f32.mxu0 %v13830_v43  ;;  %v7244_v43 = vld [vmem:[%s15631_s1 + $0xd88] sm:$0xff]  ;;  %v7250_v2 = vld [vmem:[%s15631_s1 + $0xdb8] sm:$0xff] }
 0x5ba   : > { %8849 = vmatprep.mubr.f32.mxu1 %v3808_v57  ;;  %v9576_v21 = vpack.c.bf16 %v7244_v43, %v7243_v11  ;;  %v9588_v12 = vpack.c.bf16 %v7250_v2, %v7249_v3  ;;  %v9594_v57 = vpack.c.bf16 %v7270_v9, %v7269_v8  ;;  %9617 = vmatpush3.bf16.msra.mxu1 %v9616_v6  ;;  %v7272_v11 = vld [vmem:[%s15631_s1 + $0xe68] sm:$0xff]  ;;  %v7285_v3 = vld [vmem:[%s15631_s1 + $0xed0] sm:$0xff]  ;;  %v7286_v2 = vld [vmem:[%s15631_s1 + $0xed8] sm:$0xff] }
 0x5bb   : > { %9619 = vmatprep.subr.bf16.mxu1 %v9618_v36  ;;  %v9628_v20 = vpack.c.bf16 %v7286_v2, %v7285_v3  ;;  %v9636_v9 = vpack.c.bf16 %v7290_v25, %v7289_v5  ;;  %v7333_v2 = vld [vmem:[%s15631_s1 + $0x1050] sm:$0xff]  ;;  %v7318_v62 = vld [vmem:[%s15631_s1 + $0xfd8] sm:$0xff] }
 0x5bc   : > { %4398 = vmatmul.mubr.f32.gmra.mrb[126].mxu0 %v12370_v17  ;;  %v7337_v5 = vld [vmem:[%s15631_s1 + $0x1070] sm:$0xff]  ;;  %v7338_v25 = vld [vmem:[%s15631_s1 + $0x1078] sm:$0xff] }
 0x5bd   : > { %8850 = vmatmul.mubr.f32.gmra.mrb[134].mxu1 %v13832_v19  ;;  %9577 = vmatpush3.bf16.msra.mxu0 %v9576_v21  ;;  %v7261_v19 = vld [vmem:[%s15631_s1 + $0xe10] sm:$0xff] }
 0x5be   : > { %v9578_v52 = vpack.c.bf16 %v7262_v37, %v7261_v19  ;;  %v9598_v19 = vpack.c.bf16 %v7272_v11, %v7271_v30  ;;  %v7256_v37 = vld [vmem:[%s15631_s1 + $0xde8] sm:$0xff]  ;;  %9621 = vmatpush3.bf16.msra.mxu1 %v9620_v45  ;;  %4864 = vmatprep.mubr.f32.mxu0 %v4586_v24  ;;  %v7310_v30 = vld [vmem:[%s15631_s1 + $0xf98] sm:$0xff] }
 0x5bf   : > { %v9600_v40 = vpack.c.bf16 %v7256_v37, %v7255_v4  ;;  %v7328_v4 = vld [vmem:[%s15631_s1 + $0x1028] sm:$0xff] }
 0x5c0   : > { %9579 = vmatprep.subr.bf16.mxu0 %v9578_v52 }
 0x5c1   : > { %9581 = vmatpush3.bf16.msra.mxu0 %v9580_v61  ;;  %v7300_v61 = vld [vmem:[%s15631_s1 + $0xf48] sm:$0xff] }
 0x5c2   : > { %9583 = vmatprep.subr.bf16.mxu0 %v9582_v50  ;;  %v9622_v49 = vpack.c.bf16 %v7300_v61, %v7299_v33  ;;  %v7283_v50 = vld [vmem:[%s15631_s1 + $0xec0] sm:$0xff]  ;;  %v7329_v61 = vld [vmem:[%s15631_s1 + $0x1030] sm:$0xff] }
 0x5c3   : > { %v9624_v18 = vpack.c.bf16 %v7284_v31, %v7283_v50  ;;  %v7313_v50 = vld [vmem:[%s15631_s1 + $0xfb0] sm:$0xff]  ;;  %v7314_v31 = vld [vmem:[%s15631_s1 + $0xfb8] sm:$0xff] }
 0x5c4   : > { %9623 = vmatprep.subr.bf16.mxu1 %v9622_v49 }
 0x5c5   : > { %9585 = vmatpush3.bf16.msra.mxu0 %v9584_v23  ;;  %v7274_v23 = vld [vmem:[%s15631_s1 + $0xe78] sm:$0xff]  ;;  %9625 = vmatpush3.bf16.msra.mxu1 %v9624_v18  ;;  %v9652_v18 = vpack.c.bf16 %v7314_v31, %v7313_v50 }
 0x5c6   : > { %9587 = vmatprep.subr.bf16.mxu0 %v9586_v47  ;;  %v9602_v7 = vpack.c.bf16 %v7274_v23, %v7273_v1  ;;  %v9626_v47 = vpack.c.bf16 %v7302_v58, %v7301_v42  ;;  %v7331_v1 = vld [vmem:[%s15631_s1 + $0x1040] sm:$0xff]  ;;  %v7332_v23 = vld [vmem:[%s15631_s1 + $0x1048] sm:$0xff] }
 0x5c8   : > { %9627 = vmatprep.subr.bf16.mxu1 %v9626_v47 }
 0x5c9   : > { %9589 = vmatpush3.bf16.msra.mxu0 %v9588_v12  ;;  %9629 = vmatpush3.bf16.msra.mxu1 %v9628_v20  ;;  %v7303_v12 = vld [vmem:[%s15631_s1 + $0xf60] sm:$0xff]  ;;  %v7334_v20 = vld [vmem:[%s15631_s1 + $0x1058] sm:$0xff] }
 0x5ca   : > { %9591 = vmatprep.subr.bf16.mxu0 %v9590_v14  ;;  %v9630_v54 = vpack.c.bf16 %v7304_v53, %v7303_v12  ;;  %v7324_v14 = vld [vmem:[%s15631_s1 + $0x1008] sm:$0xff] }
 0x5cb   : > { %v9638_v28 = vpack.c.bf16 %v7324_v14, %v7323_v56  ;;  %v9660_v56 = vpack.c.bf16 %v7318_v62, %v7317_v60  ;;  %v7335_v14 = vld [vmem:[%s15631_s1 + $0x1060] sm:$0xff] }
 0x5cc   : > { %9631 = vmatprep.subr.bf16.mxu1 %v9630_v54  ;;  %v9658_v54 = vpack.c.bf16 %v7334_v20, %v7333_v2 }
 0x5cd   : > { %9593 = vmatpush3.bf16.msra.mxu0 %v9592_v59  ;;  %9633 = vmatpush3.bf16.msra.mxu1 %v9632_v39  ;;  %v9634_v59 = vpack.c.bf16 %v7306_v55, %v7305_v34  ;;  %v7336_v34 = vld [vmem:[%s15631_s1 + $0x1068] sm:$0xff] }
 0x5ce   : > { %9595 = vmatprep.subr.bf16.mxu0 %v9594_v57  ;;  %v9640_v57 = vpack.c.bf16 %v7308_v13, %v7307_v26  ;;  %v9662_v55 = vpack.c.bf16 %v7336_v34, %v7335_v14  ;;  %v7320_v26 = vld [vmem:[%s15631_s1 + $0xfe8] sm:$0xff]  ;;  %v9666_v13 = vpack.c.bf16 %v7338_v25, %v7337_v5 }
 0x5cf   : > { %9635 = vmatprep.subr.bf16.mxu1 %v9634_v59 }
 0x5d1   : > { %9597 = vmatpush3.bf16.msra.mxu0 %v9596_v44  ;;  %v7326_v44 = vld [vmem:[%s15631_s1 + $0x1018] sm:$0xff]  ;;  %9637 = vmatpush3.bf16.msra.mxu1 %v9636_v9 }
 0x5d2   : > { %9599 = vmatprep.subr.bf16.mxu0 %v9598_v19  ;;  %v9642_v41 = vpack.c.bf16 %v7326_v44, %v7325_v48  ;;  %v7327_v19 = vld [vmem:[%s15631_s1 + $0x1020] sm:$0xff] }
 0x5d3   : > { %v9646_v37 = vpack.c.bf16 %v7328_v4, %v7327_v19 }
 0x5d5   : > { %9601 = vmatpush3.bf16.msra.mxu0 %v9600_v40  ;;  %v7330_v40 = vld [vmem:[%s15631_s1 + $0x1038] sm:$0xff] }
 0x5d6   : > { %9603 = vmatprep.subr.bf16.mxu0 %v9602_v7  ;;  %v9650_v49 = vpack.c.bf16 %v7330_v40, %v7329_v61  ;;  %v9654_v7 = vpack.c.bf16 %v7332_v23, %v7331_v1  ;;  %v14362_v1 = vld [vmem:[#allocation2 + $0xd9] sm:$0xff] }
 0x5d7   : > { %v14364_v23 = vld [vmem:[#allocation2 + $0xda] sm:$0xff] }
 0x5d8   : > { %6816 = vst [vmem:[#allocation2 + $0xd8] sm:$0xff] %v12370_v17  ;;  %6817 = vst [vmem:[#allocation2 + $0xe0] sm:$0xff] %v12370_v17 }
 0x5d9   : > { %9605 = vmatpush3.bf16.msra.mxu0 %v9604_v15  ;;  %v9656_v15 = vpack.c.bf16 %v7316_v32, %v7315_v46 }
 0x5da   : > { %9639 = vmatprep.subr.bf16.mxu0 %v9638_v28  ;;  %v7319_v28 = vld [vmem:[%s15631_s1 + $0xfe0] sm:$0xff] }
 0x5db   : > { %v9664_v59 = vpack.c.bf16 %v7320_v26, %v7319_v28 }
 0x5dc   : > { %4865 = vmatmul.mubr.f32.vlgmr.msra.gmra.mrb[128].mxu0 %v12370_v17 }
 0x5dd   : > { %9641 = vmatpush3.bf16.msra.mxu0 %v9640_v57  ;;  %v7371_v57 = vld [vmem:[%s15631_s1 + $0x1180] sm:$0xff] }
 0x5de   : > { %9643 = vmatprep.subr.bf16.mxu0 %v9642_v41 }
 0x5ff   : > { %v7847_v38 = vpop.f32.mrb[98].mxu1 }
 0x600   : > { %v7900_v0 = vpop.f32.mrb[96].mxu0  ;;  %v7848_v43 = vpop.f32.mrb[99].mxu1 }
 0x601   : > { %v7901_v21 = vpop.f32.mrb[97].mxu0  ;;  %v7849_v52 = vadd.f32 %v7848_v43, %v7847_v38  ;;  %v7356_v38 = vld [vmem:[%s15631_s1 + $0x1108] sm:$0xff] }
 0x602   : > { %v7902_v27 = vadd.f32 %v7901_v21, %v7900_v0  ;;  %v7309_v0 = vld [vmem:[%s15631_s1 + $0xf90] sm:$0xff]  ;;  %v14271_v43 = vld [vmem:[#allocation2 + $0x2] sm:$0xff] }
 0x603   : > { %v4055_v10 = vadd.f32 %v7849_v52, %v14153_v51  ;;  %v9644_v21 = vpack.c.bf16 %v7310_v30, %v7309_v0  ;;  %6790 = vst [vmem:[#allocation2 + $0x8] sm:$0xff] %v12370_v17  ;;  %5333 = vst [vmem:[#allocation2] sm:$0xff] %v12370_v17  ;;  %v7311_v52 = vld [vmem:[%s15631_s1 + $0xfa0] sm:$0xff] }
 0x604   : > { %v14187_v22 = vadd.f32 %v7902_v27, %v4050_v29  ;;  %v7355_v29 = vld [vmem:[%s15631_s1 + $0x1100] sm:$0xff]  ;;  %v7312_v27 = vld [vmem:[%s15631_s1 + $0xfa8] sm:$0xff] }
 0x605   : > { %v9670_v45 = vpack.c.bf16 %v7356_v38, %v7355_v29  ;;  %9645 = vmatpush3.bf16.msra.mxu0 %v9644_v21  ;;  %v9648_v33 = vpack.c.bf16 %v7312_v27, %v7311_v52 }
 0x606   : > { %9647 = vmatprep.subr.bf16.mxu0 %v9646_v37 }
 0x607   : > { %9671 = vmatprep.subr.bf16.mxu1 %v9670_v45 }
 0x609   : > { %9649 = vmatpush3.bf16.msra.mxu0 %v9648_v33 }
 0x60a   : > { %9651 = vmatprep.subr.bf16.mxu0 %v9650_v49 }
 0x60d   : > { %9653 = vmatpush3.bf16.msra.mxu0 %v9652_v18 }
 0x60e   : > { %9655 = vmatprep.subr.bf16.mxu0 %v9654_v7 }
 0x60f   : > { %v7850_v6 = vpop.f32.mrb[100].mxu1 }
 0x610   : > { %v7903_v8 = vpop.f32.mrb[98].mxu0  ;;  %v7851_v16 = vpop.f32.mrb[101].mxu1 }
 0x611   : > { %v7904_v35 = vpop.f32.mrb[99].mxu0  ;;  %v7852_v36 = vadd.f32 %v7851_v16, %v7850_v6  ;;  %9657 = vmatpush3.bf16.msra.mxu0 %v9656_v15  ;;  %v7321_v6 = vld [vmem:[%s15631_s1 + $0xff0] sm:$0xff] }
 0x612   : > { %v7905_v63 = vadd.f32 %v7904_v35, %v7903_v8  ;;  %9659 = vmatprep.subr.bf16.mxu0 %v9658_v54  ;;  %v7322_v8 = vld [vmem:[%s15631_s1 + $0xff8] sm:$0xff] }
 0x613   : > { %v4060_v24 = vadd.f32 %v7852_v36, %v14153_v51  ;;  %v9668_v9 = vpack.c.bf16 %v7322_v8, %v7321_v6 }
 0x614   : > { %v14269_v11 = vadd.f32 %v7905_v63, %v4055_v10  ;;  %v7372_v10 = vld [vmem:[%s15631_s1 + $0x1188] sm:$0xff] }
 0x615   : > { %9661 = vmatpush3.bf16.msra.mxu0 %v9660_v56  ;;  %v14356_v16 = vpack.c.bf16 %v7372_v10, %v7371_v57 }
 0x616   : > { %9663 = vmatprep.subr.bf16.mxu0 %v9662_v55 }
 0x619   : > { %9665 = vmatpush3.bf16.msra.mxu0 %v9664_v59 }
 0x61a   : > { %9667 = vmatprep.subr.bf16.mxu0 %v9666_v13 }
 0x61d   : > { %9669 = vmatpush3.bf16.msra.mxu0 %v9668_v9 }
 0x61e   : > { %9703 = vmatprep.subr.bf16.mxu0 %v14356_v16 }
 0x61f   : > { %v7853_v42 = vpop.f32.mrb[102].mxu1 }
 0x620   : > { %v7906_v58 = vpop.f32.mrb[100].mxu0  ;;  %v7854_v47 = vpop.f32.mrb[103].mxu1 }
 0x621   : > { %v7907_v3 = vpop.f32.mrb[101].mxu0  ;;  %v7855_v12 = vadd.f32 %v7854_v47, %v7853_v42 }
 0x622   : > { %v7908_v53 = vadd.f32 %v7907_v3, %v7906_v58 }
 0x623   : > { %v4065_v63 = vadd.f32 %v7855_v12, %v14153_v51 }
 0x624   : > { %v14324_v39 = vadd.f32 %v7908_v53, %v4060_v24 }
 0x62f   : > { %v7856_v35 = vpop.f32.mrb[104].mxu1 }
 0x630   : > { %v7909_v48 = vpop.f32.mrb[102].mxu0  ;;  %v7857_v44 = vpop.f32.mrb[105].mxu1 }
 0x631   : > { %v7910_v36 = vpop.f32.mrb[103].mxu0  ;;  %v7858_v41 = vadd.f32 %v7857_v44, %v7856_v35 }
 0x632   : > { %v7911_v29 = vadd.f32 %v7910_v36, %v7909_v48 }
 0x633   : > { %v4070_v19 = vadd.f32 %v7858_v41, %v14153_v51 }
 0x634   : > { %v4170_v38 = vadd.f32 %v7911_v29, %v4065_v63 }
 0x63f   : > { %v7859_v0 = vpop.f32.mrb[106].mxu1 }
 0x640   : > { %v7912_v45 = vpop.f32.mrb[104].mxu0  ;;  %v7860_v30 = vpop.f32.mrb[107].mxu1 }
 0x641   : > { %v7913_v21 = vpop.f32.mrb[105].mxu0  ;;  %v7861_v4 = vadd.f32 %v7860_v30, %v7859_v0 }
 0x642   : > { %v7914_v37 = vadd.f32 %v7913_v21, %v7912_v45 }
 0x643   : > { %v4075_v49 = vadd.f32 %v7861_v4, %v14153_v51 }
 0x644   : > { %v4175_v52 = vadd.f32 %v7914_v37, %v4070_v19 }
 0x64f   : > { %v7862_v27 = vpop.f32.mrb[108].mxu1 }
 0x650   : > { %v7915_v33 = vpop.f32.mrb[106].mxu0  ;;  %v7863_v61 = vpop.f32.mrb[109].mxu1 }
 0x651   : > { %v7916_v40 = vpop.f32.mrb[107].mxu0  ;;  %v7864_v50 = vadd.f32 %v7863_v61, %v7862_v27 }
 0x652   : > { %v7917_v31 = vadd.f32 %v7916_v40, %v7915_v33 }
 0x653   : > { %v4080_v58 = vadd.f32 %v7864_v50, %v14153_v51 }
 0x654   : > { %v4180_v18 = vadd.f32 %v7917_v31, %v4075_v49 }
 0x65f   : > { %v7865_v7 = vpop.f32.mrb[110].mxu1 }
 0x660   : > { %v7918_v46 = vpop.f32.mrb[108].mxu0  ;;  %v7866_v32 = vpop.f32.mrb[111].mxu1 }
 0x661   : > { %v7919_v42 = vpop.f32.mrb[109].mxu0  ;;  %v7867_v15 = vadd.f32 %v7866_v32, %v7865_v7 }
 0x662   : > { %v7920_v47 = vadd.f32 %v7919_v42, %v7918_v46 }
 0x663   : > { %v7956_v2 = vpop.f32.mrb[112].mxu1  ;;  %v4085_v25 = vadd.f32 %v7867_v15, %v14153_v51 }
 0x664   : > { %v4185_v3 = vadd.f32 %v7920_v47, %v4080_v58  ;;  %v7957_v20 = vpop.f32.mrb[113].mxu1 }
 0x665   : > { %v7958_v24 = vadd.f32 %v7957_v20, %v7956_v2 }
 0x667   : > { %v4260_v12 = vadd.f32 %v7958_v24, %v14187_v22  ;;  %v7959_v53 = vpop.f32.mrb[114].mxu1 }
 0x668   : > { %v7960_v54 = vpop.f32.mrb[115].mxu1 }
 0x669   : > { %v7961_v60 = vadd.f32 %v7960_v54, %v7959_v53 }
 0x66b   : > { %v4265_v62 = vadd.f32 %v7961_v60, %v14269_v11  ;;  %v7962_v56 = vpop.f32.mrb[116].mxu1 }
 0x66c   : > { %v7963_v14 = vpop.f32.mrb[117].mxu1 }
 0x66d   : > { %v7964_v34 = vadd.f32 %v7963_v14, %v7962_v56 }
 0x66f   : > { %v4270_v55 = vadd.f32 %v7964_v34, %v14324_v39  ;;  %v7921_v28 = vpop.f32.mrb[110].mxu0  ;;  %v7965_v26 = vpop.f32.mrb[118].mxu1 }
 0x670   : > { %v7922_v59 = vpop.f32.mrb[111].mxu0  ;;  %v7966_v5 = vpop.f32.mrb[119].mxu1 }
 0x671   : > { %v7923_v13 = vadd.f32 %v7922_v59, %v7921_v28  ;;  %v7967_v6 = vadd.f32 %v7966_v5, %v7965_v26 }
 0x673   : > { %v4190_v8 = vadd.f32 %v7923_v13, %v4085_v25  ;;  %v4275_v22 = vadd.f32 %v7967_v6, %v4170_v38  ;;  %v7968_v9 = vpop.f32.mrb[120].mxu1  ;;  %v8012_v57 = vpop.f32.mrb[112].mxu0 }
 0x674   : > { %v7969_v10 = vpop.f32.mrb[121].mxu1  ;;  %v8013_v35 = vpop.f32.mrb[113].mxu0 }
 0x675   : > { %v7970_v11 = vadd.f32 %v7969_v10, %v7968_v9  ;;  %v8014_v48 = vadd.f32 %v8013_v35, %v8012_v57  ;;  %v7340_v9 = vld [vmem:[%s15631_s1 + $0x1088] sm:$0xff]  ;;  %v7357_v10 = vld [vmem:[%s15631_s1 + $0x1110] sm:$0xff]  ;;  %v7358_v35 = vld [vmem:[%s15631_s1 + $0x1118] sm:$0xff] }
 0x677   : > { %v4280_v44 = vadd.f32 %v7970_v11, %v4175_v52  ;;  %v7971_v36 = vpop.f32.mrb[122].mxu1  ;;  %v8015_v63 = vpop.f32.mrb[114].mxu0  ;;  %v4365_v39 = vadd.f32 %v8014_v48, %v4260_v12 }
 0x678   : > { %v7972_v41 = vpop.f32.mrb[123].mxu1  ;;  %v8016_v29 = vpop.f32.mrb[115].mxu0 }
 0x679   : > { %v7973_v0 = vadd.f32 %v7972_v41, %v7971_v36  ;;  %v8017_v45 = vadd.f32 %v8016_v29, %v8015_v63 }
 0x67b   : > { %v4285_v30 = vadd.f32 %v7973_v0, %v4180_v18  ;;  %v7974_v51 = vpop.f32.mrb[124].mxu1  ;;  %v8018_v21 = vpop.f32.mrb[116].mxu0  ;;  %v4370_v19 = vadd.f32 %v8017_v45, %v4265_v62  ;;  %v7341_v0 = vld [vmem:[%s15631_s1 + $0x1090] sm:$0xff] }
 0x67c   : > { %v7975_v4 = vpop.f32.mrb[125].mxu1  ;;  %v8019_v38 = vpop.f32.mrb[117].mxu0 }
 0x67d   : > { %v7976_v37 = vadd.f32 %v7975_v4, %v7974_v51  ;;  %v8020_v27 = vadd.f32 %v8019_v38, %v8018_v21  ;;  %v9674_v4 = vpack.c.bf16 %v7358_v35, %v7357_v10  ;;  %v7342_v38 = vld [vmem:[%s15631_s1 + $0x1098] sm:$0xff] }
 0x67f   : > { %v4290_v33 = vadd.f32 %v7976_v37, %v4185_v3  ;;  %v7977_v61 = vpop.f32.mrb[126].mxu1  ;;  %v8021_v40 = vpop.f32.mrb[118].mxu0  ;;  %v4375_v49 = vadd.f32 %v8020_v27, %v4270_v55  ;;  %v7359_v27 = vld [vmem:[%s15631_s1 + $0x1120] sm:$0xff] }
 0x680   : > { %v7978_v52 = vpop.f32.mrb[127].mxu1  ;;  %v8022_v50 = vpop.f32.mrb[119].mxu0 }
 0x681   : > { %v7979_v31 = vadd.f32 %v7978_v52, %v7977_v61  ;;  %v8023_v7 = vadd.f32 %v8022_v50, %v8021_v40  ;;  %v7343_v50 = vld [vmem:[%s15631_s1 + $0x10a0] sm:$0xff] }
 0x683   : > { %v14373_v46 = vadd.f32 %v7979_v31, %v4190_v8  ;;  %v8024_v32 = vpop.f32.mrb[120].mxu0  ;;  %v4380_v42 = vadd.f32 %v8023_v7, %v4275_v22  ;;  %v7339_v22 = vld [vmem:[%s15631_s1 + $0x1080] sm:$0xff] }
 0x684   : > { %v8842_v18 = vpop.f32.mrb[128].mxu1  ;;  %v8025_v58 = vpop.f32.mrb[121].mxu0  ;;  %v9672_v29 = vpack.c.bf16 %v7340_v9, %v7339_v22  ;;  %v7349_v22 = vld [vmem:[%s15631_s1 + $0x10d0] sm:$0xff] }
 0x685   : > { %v4475_v15 = vadd.f32 %v8842_v18, %v4370_v19  ;;  %v8026_v47 = vadd.f32 %v8025_v58, %v8024_v32  ;;  %v4469_v2 = vpop.f32.mrb[129].mxu1  ;;  %v7344_v32 = vld [vmem:[%s15631_s1 + $0x10a8] sm:$0xff]  ;;  %v7361_v18 = vld [vmem:[%s15631_s1 + $0x1130] sm:$0xff]  ;;  %v7362_v58 = vld [vmem:[%s15631_s1 + $0x1138] sm:$0xff] }
 0x686   : > { %v4470_v20 = vadd.f32 %v4469_v2, %v4365_v39  ;;  %v7345_v2 = vld [vmem:[%s15631_s1 + $0x10b0] sm:$0xff] }
 0x687   : > { %v14375_v24 = vmax.f32 %v4475_v15, 0.0  ;;  %v8027_v3 = vpop.f32.mrb[122].mxu0  ;;  %v4385_v12 = vadd.f32 %v8026_v47, %v4280_v44  ;;  %v9680_v47 = vpack.c.bf16 %v7344_v32, %v7343_v50  ;;  %v7378_v32 = vld [vmem:[%s15631_s1 + $0x11b8] sm:$0xff] }
 0x688   : > { %v14377_v53 = vmax.f32 %v4470_v20, 0.0  ;;  %v8845_v54 = vpop.f32.mrb[130].mxu1  ;;  %v8028_v60 = vpop.f32.mrb[123].mxu0 }
 0x689   : > { %4571 = vst [vmem:[#allocation2 + $0x31] sm:$0xff] %v14375_v24  ;;  %v4485_v62 = vadd.f32 %v8845_v54, %v4380_v42  ;;  %v8029_v56 = vadd.f32 %v8028_v60, %v8027_v3  ;;  %v4479_v14 = vpop.f32.mrb[131].mxu1  ;;  %v7346_v60 = vld [vmem:[%s15631_s1 + $0x10b8] sm:$0xff] }
 0x68a   : > { %4570 = vst [vmem:[#allocation2 + $0x19] sm:$0xff] %v14377_v53  ;;  %v4480_v34 = vadd.f32 %v4479_v14, %v4375_v49  ;;  %4869 = vmatprep.mubr.f32.mxu0 %v14377_v53  ;;  %v9676_v49 = vpack.c.bf16 %v7342_v38, %v7341_v0  ;;  %v7364_v14 = vld [vmem:[%s15631_s1 + $0x1148] sm:$0xff]  ;;  %v7351_v0 = vld [vmem:[%s15631_s1 + $0x10e0] sm:$0xff] }
 0x68b   : > { %v14382_v55 = vmax.f32 %v4485_v62, 0.0  ;;  %v8030_v28 = vpop.f32.mrb[124].mxu0  ;;  %v4390_v26 = vadd.f32 %v8029_v56, %v4285_v30  ;;  %v7363_v56 = vld [vmem:[%s15631_s1 + $0x1140] sm:$0xff] }
 0x68c   : > { %v14384_v59 = vmax.f32 %v4480_v34, 0.0  ;;  %v8848_v5 = vpop.f32.mrb[132].mxu1  ;;  %v8031_v25 = vpop.f32.mrb[125].mxu0  ;;  %v9684_v34 = vpack.c.bf16 %v7346_v60, %v7345_v2  ;;  %v7386_v2 = vld [vmem:[%s15631_s1 + $0x11f8] sm:$0xff]  ;;  %v7436_v60 = vld [vmem:[%s15631_s1 + $0x1380] sm:$0xff] }
 0x68d   : > { %4573 = vst [vmem:[#allocation2 + $0x61] sm:$0xff] %v14382_v55  ;;  %v4495_v13 = vadd.f32 %v8848_v5, %v4390_v26  ;;  %v8032_v6 = vadd.f32 %v8031_v25, %v8030_v28  ;;  %v4489_v8 = vpop.f32.mrb[133].mxu1  ;;  %v7347_v28 = vld [vmem:[%s15631_s1 + $0x10c0] sm:$0xff]  ;;  %v9686_v26 = vpack.c.bf16 %v7364_v14, %v7363_v56  ;;  %v7348_v5 = vld [vmem:[%s15631_s1 + $0x10c8] sm:$0xff]  ;;  %v7390_v14 = vld [vmem:[%s15631_s1 + $0x1210] sm:$0xff] }
 0x68e   : > { %4572 = vst [vmem:[#allocation2 + $0x49] sm:$0xff] %v14384_v59  ;;  %v4490_v57 = vadd.f32 %v4489_v8, %v4385_v12  ;;  %v9682_v12 = vpack.c.bf16 %v7362_v58, %v7361_v18  ;;  %v7366_v8 = vld [vmem:[%s15631_s1 + $0x1158] sm:$0xff]  ;;  %v9688_v9 = vpack.c.bf16 %v7348_v5, %v7347_v28  ;;  %v7384_v58 = vld [vmem:[%s15631_s1 + $0x11e8] sm:$0xff]  ;;  %v7420_v5 = vld [vmem:[%s15631_s1 + $0x1300] sm:$0xff] }
 0x68f   : > { %v14400_v11 = vmax.f32 %v4495_v13, 0.0  ;;  %v8033_v48 = vpop.f32.mrb[126].mxu0  ;;  %v4395_v44 = vadd.f32 %v8032_v6, %v4290_v33  ;;  %v7360_v33 = vld [vmem:[%s15631_s1 + $0x1128] sm:$0xff]  ;;  %v7365_v6 = vld [vmem:[%s15631_s1 + $0x1150] sm:$0xff]  ;;  %v7382_v18 = vld [vmem:[%s15631_s1 + $0x11d8] sm:$0xff] }
 0x690   : > { %v14402_v36 = vmax.f32 %v4490_v57, 0.0  ;;  %v8851_v63 = vpop.f32.mrb[134].mxu1  ;;  %v8034_v39 = vpop.f32.mrb[127].mxu0  ;;  %v14404_v41 = vld [vmem:[#allocation2 + $0x30] sm:$0xff]  ;;  %v7350_v57 = vld [vmem:[%s15631_s1 + $0x10d8] sm:$0xff]  ;;  %v7437_v56 = vld [vmem:[%s15631_s1 + $0x1388] sm:$0xff] }
 0x691   : > { %v14409_v45 = vld [vmem:[#allocation2 + $0x32] sm:$0xff]  ;;  %4575 = vst [vmem:[#allocation2 + $0x91] sm:$0xff] %v14400_v11  ;;  %v8035_v30 = vadd.f32 %v8034_v39, %v8033_v48  ;;  %v4499_v51 = vpop.f32.mrb[135].mxu1  ;;  %v14412_v19 = vld [vmem:[#allocation2 + $0x1a] sm:$0xff]  ;;  %v9690_v48 = vpack.c.bf16 %v7366_v8, %v7365_v6  ;;  %v9692_v39 = vpack.c.bf16 %v7350_v57, %v7349_v22  ;;  %v9766_v28 = vpack.c.bf16 %v7437_v56, %v7436_v60  ;;  %v7409_v8 = vld [vmem:[%s15631_s1 + $0x12a8] sm:$0xff] }
 0x692   : > { %v4602_v21 = vld [vmem:[#allocation2 + $0x18] sm:$0xff]  ;;  %6796 = vst [vmem:[#allocation2 + $0x38] sm:$0xff] %v12370_v17  ;;  %5339 = vst [vmem:[#allocation2 + $0x30] sm:$0xff] %v12370_v17  ;;  %v4500_v37 = vadd.f32 %v4499_v51, %v4395_v44  ;;  %v7367_v44 = vld [vmem:[%s15631_s1 + $0x1160] sm:$0xff] }
 0x693   : > { %4574 = vst [vmem:[#allocation2 + $0x79] sm:$0xff] %v14402_v36  ;;  %4969 = vmatprep.mubr.f32.mxu1 %v4602_v21  ;;  %4870 = vmatmul.mubr.f32.gmra.mrb[130].mxu0 %v4602_v21  ;;  %6793 = vst [vmem:[#allocation2 + $0x20] sm:$0xff] %v12370_v17  ;;  %v4400_v61 = vadd.f32 %v8035_v30, %v14373_v46  ;;  %v7352_v30 = vld [vmem:[%s15631_s1 + $0x10e8] sm:$0xff]  ;;  %v7369_v51 = vld [vmem:[%s15631_s1 + $0x1170] sm:$0xff] }
 0x694   : > { %5336 = vst [vmem:[#allocation2 + $0x18] sm:$0xff] %v12370_v17  ;;  %4970 = vmatmul.mubr.f32.vlgmr.msra.gmra.mrb[136].mxu1 %v14271_v43  ;;  %4874 = vmatprep.mubr.f32.mxu0 %v14375_v24  ;;  %v14431_v40 = vmax.f32 %v4500_v37, 0.0  ;;  %v14434_v52 = vld [vmem:[#allocation2 + $0x60] sm:$0xff]  ;;  %v9678_v43 = vpack.c.bf16 %v7360_v33, %v7359_v27  ;;  %v7370_v21 = vld [vmem:[%s15631_s1 + $0x1178] sm:$0xff]  ;;  %v7353_v37 = vld [vmem:[%s15631_s1 + $0x10f0] sm:$0xff] }
 0x695   : > { %4974 = vmatprep.mubr.f32.mxu1 %v14404_v41  ;;  %9673 = vmatpush3.bf16.msra.mxu1 %v9672_v29  ;;  %v14439_v31 = vld [vmem:[#allocation2 + $0x62] sm:$0xff]  ;;  %v4505_v7 = vadd.f32 %v8851_v63, %v4400_v61  ;;  %v14446_v42 = vld [vmem:[#allocation2 + $0x4a] sm:$0xff]  ;;  %v9698_v38 = vpack.c.bf16 %v7370_v21, %v7369_v51  ;;  %v7354_v27 = vld [vmem:[%s15631_s1 + $0x10f8] sm:$0xff] }
 0x696   : > { %9675 = vmatprep.subr.bf16.mxu1 %v9674_v4  ;;  %v14441_v46 = vld [vmem:[#allocation2 + $0x48] sm:$0xff]  ;;  %6802 = vst [vmem:[#allocation2 + $0x68] sm:$0xff] %v12370_v17  ;;  %5345 = vst [vmem:[#allocation2 + $0x60] sm:$0xff] %v12370_v17  ;;  %v9696_v4 = vpack.c.bf16 %v7352_v30, %v7351_v0  ;;  %v7373_v33 = vld [vmem:[%s15631_s1 + $0x1190] sm:$0xff] }
 0x697   : > { %4576 = vst [vmem:[#allocation2 + $0xa9] sm:$0xff] %v14431_v40  ;;  %4875 = vmatmul.mubr.f32.gmra.mrb[132].mxu0 %v14404_v41  ;;  %6799 = vst [vmem:[#allocation2 + $0x50] sm:$0xff] %v12370_v17  ;;  %v14460_v15 = vmax.f32 %v4505_v7, 0.0  ;;  %v7368_v63 = vld [vmem:[%s15631_s1 + $0x1168] sm:$0xff]  ;;  %v7374_v61 = vld [vmem:[%s15631_s1 + $0x1198] sm:$0xff] }
 0x698   : > { %5342 = vst [vmem:[#allocation2 + $0x48] sm:$0xff] %v12370_v17  ;;  %4975 = vmatmul.mubr.f32.gmra.mrb[138].mxu1 %v14412_v19  ;;  %4879 = vmatprep.mubr.f32.mxu0 %v14384_v59  ;;  %v14468_v20 = vld [vmem:[#allocation2 + $0x90] sm:$0xff]  ;;  %v9694_v29 = vpack.c.bf16 %v7368_v63, %v7367_v44  ;;  %v9706_v50 = vpack.c.bf16 %v7374_v61, %v7373_v33  ;;  %v7376_v7 = vld [vmem:[%s15631_s1 + $0x11a8] sm:$0xff]  ;;  %v7408_v6 = vld [vmem:[%s15631_s1 + $0x12a0] sm:$0xff] }
 0x699   : > { %4979 = vmatprep.mubr.f32.mxu1 %v14441_v46  ;;  %9677 = vmatpush3.bf16.msra.mxu1 %v9676_v49  ;;  %v14470_v3 = vld [vmem:[#allocation2 + $0x92] sm:$0xff]  ;;  %4577 = vst [vmem:[#allocation2 + $0xc1] sm:$0xff] %v14460_v15  ;;  %v9700_v49 = vpack.c.bf16 %v7354_v27, %v7353_v37  ;;  %v7440_v51 = vld [vmem:[%s15631_s1 + $0x13a0] sm:$0xff]  ;;  %v7401_v56 = vld [vmem:[%s15631_s1 + $0x1268] sm:$0xff] }
 0x69a   : > { %9679 = vmatprep.subr.bf16.mxu1 %v9678_v43  ;;  %v14473_v54 = vld [vmem:[#allocation2 + $0x78] sm:$0xff]  ;;  %6807 = vst [vmem:[#allocation2 + $0x90] sm:$0xff] %v12370_v17  ;;  %6808 = vst [vmem:[#allocation2 + $0x98] sm:$0xff] %v12370_v17  ;;  %v7377_v43 = vld [vmem:[%s15631_s1 + $0x11b0] sm:$0xff] }
 0x69b   : > { %v14478_v62 = vld [vmem:[#allocation2 + $0x7a] sm:$0xff]  ;;  %4880 = vmatmul.mubr.f32.gmra.mrb[134].mxu0 %v14441_v46  ;;  %v7438_v22 = vld [vmem:[%s15631_s1 + $0x1390] sm:$0xff] }
 0x69c   : > { %6805 = vst [vmem:[#allocation2 + $0x80] sm:$0xff] %v12370_v17  ;;  %5348 = vst [vmem:[#allocation2 + $0x78] sm:$0xff] %v12370_v17  ;;  %4980 = vmatmul.mubr.f32.gmra.mrb[140].mxu1 %v14409_v45  ;;  %4884 = vmatprep.mubr.f32.mxu0 %v14382_v55  ;;  %v7439_v57 = vld [vmem:[%s15631_s1 + $0x1398] sm:$0xff]  ;;  %v7422_v63 = vld [vmem:[%s15631_s1 + $0x1310] sm:$0xff] }
 0x69d   : > { %4984 = vmatprep.mubr.f32.mxu1 %v14434_v52  ;;  %9681 = vmatpush3.bf16.msra.mxu1 %v9680_v47  ;;  %v7385_v47 = vld [vmem:[%s15631_s1 + $0x11f0] sm:$0xff]  ;;  %v7411_v30 = vld [vmem:[%s15631_s1 + $0x12b8] sm:$0xff]  ;;  %v7424_v61 = vld [vmem:[%s15631_s1 + $0x1320] sm:$0xff] }
 0x69e   : > { %9683 = vmatprep.subr.bf16.mxu1 %v9682_v12  ;;  %v14500_v25 = vld [vmem:[#allocation2 + $0xa8] sm:$0xff]  ;;  %v7406_v12 = vld [vmem:[%s15631_s1 + $0x1290] sm:$0xff]  ;;  %v7395_v37 = vld [vmem:[%s15631_s1 + $0x1238] sm:$0xff] }
 0x69f   : > { %v14502_v13 = vld [vmem:[#allocation2 + $0xaa] sm:$0xff]  ;;  %4885 = vmatmul.mubr.f32.gmra.mrb[136].mxu0 %v14434_v52  ;;  %v7447_v60 = vld [vmem:[%s15631_s1 + $0x13d8] sm:$0xff] }
 0x6a0   : > { %6810 = vst [vmem:[#allocation2 + $0xa8] sm:$0xff] %v12370_v17  ;;  %6811 = vst [vmem:[#allocation2 + $0xb0] sm:$0xff] %v12370_v17  ;;  %4985 = vmatmul.mubr.f32.gmra.mrb[142].mxu1 %v14446_v42  ;;  %4889 = vmatprep.mubr.f32.mxu0 %v14402_v36  ;;  %v14522_v10 = vld [vmem:[#allocation2 + $0xc0] sm:$0xff]  ;;  %v7410_v0 = vld [vmem:[%s15631_s1 + $0x12b0] sm:$0xff] }
 0x6a1   : > { %4989 = vmatprep.mubr.f32.mxu1 %v14473_v54  ;;  %9685 = vmatpush3.bf16.msra.mxu1 %v9684_v34  ;;  %v14524_v35 = vld [vmem:[#allocation2 + $0xc2] sm:$0xff]  ;;  %v7391_v34 = vld [vmem:[%s15631_s1 + $0x1218] sm:$0xff]  ;;  %v9746_v21 = vpack.c.bf16 %v7411_v30, %v7410_v0 }
 0x6a2   : > { %9687 = vmatprep.subr.bf16.mxu1 %v9686_v26  ;;  %6813 = vst [vmem:[#allocation2 + $0xc0] sm:$0xff] %v12370_v17  ;;  %6814 = vst [vmem:[#allocation2 + $0xc8] sm:$0xff] %v12370_v17  ;;  %v9740_v26 = vpack.c.bf16 %v7391_v34, %v7390_v14  ;;  %v7468_v0 = vld [vmem:[%s15631_s1 + $0x1480] sm:$0xff] }
 0x6a3   : > { %4890 = vmatmul.mubr.f32.gmra.mrb[138].mxu0 %v14473_v54 }
 0x6a4   : > { %4990 = vmatmul.mubr.f32.gmra.mrb[144].mxu1 %v14439_v31  ;;  %4894 = vmatprep.mubr.f32.mxu0 %v14400_v11 }
 0x6a5   : > { %4994 = vmatprep.mubr.f32.mxu1 %v14468_v20  ;;  %9689 = vmatpush3.bf16.msra.mxu1 %v9688_v9  ;;  %v9742_v9 = vpack.c.bf16 %v7409_v8, %v7408_v6  ;;  %v7448_v6 = vld [vmem:[%s15631_s1 + $0x13e0] sm:$0xff] }
 0x6a6   : > { %9691 = vmatprep.subr.bf16.mxu1 %v9690_v48  ;;  %v9770_v48 = vpack.c.bf16 %v7439_v57, %v7438_v22  ;;  %v7449_v22 = vld [vmem:[%s15631_s1 + $0x13e8] sm:$0xff]  ;;  %v7403_v57 = vld [vmem:[%s15631_s1 + $0x1278] sm:$0xff] }
 0x6a7   : > { %4895 = vmatmul.mubr.f32.gmra.mrb[140].mxu0 %v14468_v20 }
 0x6a8   : > { %4995 = vmatmul.mubr.f32.gmra.mrb[146].mxu1 %v14478_v62  ;;  %4899 = vmatprep.mubr.f32.mxu0 %v14431_v40 }
 0x6a9   : > { %4999 = vmatprep.mubr.f32.mxu1 %v14500_v25  ;;  %9693 = vmatpush3.bf16.msra.mxu1 %v9692_v39  ;;  %v7423_v39 = vld [vmem:[%s15631_s1 + $0x1318] sm:$0xff] }
 0x6aa   : > { %9695 = vmatprep.subr.bf16.mxu1 %v9694_v29  ;;  %v9772_v29 = vpack.c.bf16 %v7423_v39, %v7422_v63  ;;  %v7450_v39 = vld [vmem:[%s15631_s1 + $0x13f0] sm:$0xff] }
 0x6ab   : > { %4900 = vmatmul.mubr.f32.gmra.mrb[142].mxu0 %v14500_v25 }
 0x6ac   : > { %5000 = vmatmul.mubr.f32.gmra.mrb[148].mxu1 %v14470_v3  ;;  %5074 = vmatprep.mubr.f32.mxu0 %v14412_v19  ;;  %v7375_v19 = vld [vmem:[%s15631_s1 + $0x11a0] sm:$0xff] }
 0x6ad   : > { %5004 = vmatprep.mubr.f32.mxu1 %v14522_v10  ;;  %9697 = vmatpush3.bf16.msra.mxu1 %v9696_v4  ;;  %v7441_v4 = vld [vmem:[%s15631_s1 + $0x13a8] sm:$0xff] }
 0x6ae   : > { %9699 = vmatprep.subr.bf16.mxu1 %v9698_v38  ;;  %v7394_v38 = vld [vmem:[%s15631_s1 + $0x1230] sm:$0xff]  ;;  %v9774_v27 = vpack.c.bf16 %v7441_v4, %v7440_v51  ;;  %v7469_v51 = vld [vmem:[%s15631_s1 + $0x1488] sm:$0xff] }
 0x6af   : > { %5075 = vmatmul.mubr.f32.vlgmr.msra.gmra.mrb[144].mxu0 %v14377_v53  ;;  %v9710_v53 = vpack.c.bf16 %v7376_v7, %v7375_v19  ;;  %v9748_v33 = vpack.c.bf16 %v7395_v37, %v7394_v38  ;;  %v7412_v19 = vld [vmem:[%s15631_s1 + $0x12c0] sm:$0xff]  ;;  %v7413_v7 = vld [vmem:[%s15631_s1 + $0x12c8] sm:$0xff]  ;;  %v7434_v4 = vld [vmem:[%s15631_s1 + $0x1370] sm:$0xff] }
 0x6b0   : > { %5005 = vmatmul.mubr.f32.gmra.mrb[150].mxu1 %v14502_v13  ;;  %5079 = vmatprep.mubr.f32.mxu0 %v14409_v45  ;;  %v7435_v38 = vld [vmem:[%s15631_s1 + $0x1378] sm:$0xff] }
 0x6b1   : > { %9701 = vmatpush3.bf16.msra.mxu1 %v9700_v49  ;;  %5179 = vmatprep.mubr.f32.mxu1 %v14375_v24  ;;  %v7425_v49 = vld [vmem:[%s15631_s1 + $0x1328] sm:$0xff]  ;;  %v9796_v37 = vpack.c.bf16 %v7435_v38, %v7434_v4 }
 0x6b2   : > { %9705 = vmatpush3.bf16.msra.mxu0 %v14356_v16  ;;  %v9714_v16 = vpack.c.bf16 %v7378_v32, %v7377_v43  ;;  %v9750_v43 = vpack.c.bf16 %v7413_v7, %v7412_v19  ;;  %v7443_v32 = vld [vmem:[%s15631_s1 + $0x13b8] sm:$0xff] }
 0x6b3   : > { %5080 = vmatmul.mubr.f32.gmra.mrb[146].mxu0 %v14375_v24  ;;  %9707 = vmatprep.subr.bf16.mxu0 %v9706_v50  ;;  %v7379_v24 = vld [vmem:[%s15631_s1 + $0x11c0] sm:$0xff] }
 0x6b4   : > { %5180 = vmatmul.mubr.f32.vlgmr.msra.gmra.mrb[152].mxu1 %v14404_v41  ;;  %5084 = vmatprep.mubr.f32.mxu0 %v14446_v42  ;;  %v7380_v41 = vld [vmem:[%s15631_s1 + $0x11c8] sm:$0xff] }
 0x6b5   : > { %5184 = vmatprep.mubr.f32.mxu1 %v14384_v59 }
 0x6b6   : > { %9709 = vmatpush3.bf16.msra.mxu0 %v9706_v50  ;;  %v9776_v50 = vpack.c.bf16 %v7425_v49, %v7424_v61  ;;  %v7387_v49 = vld [vmem:[%s15632_s2 + $0x3] ss:$0 sm:$0xff] }
 0x6b7   : > { %5085 = vmatmul.mubr.f32.gmra.mrb[148].mxu0 %v14384_v59  ;;  %9711 = vmatprep.subr.bf16.mxu0 %v9710_v53  ;;  %v9718_v59 = vpack.c.bf16 %v7380_v41, %v7379_v24  ;;  %v7397_v24 = vld [vmem:[%s15631_s1 + $0x1248] sm:$0xff] }
 0x6b8   : > { %5185 = vmatmul.mubr.f32.gmra.mrb[154].mxu1 %v14441_v46  ;;  %5089 = vmatprep.mubr.f32.mxu0 %v14439_v31  ;;  %v7381_v46 = vld [vmem:[%s15631_s1 + $0x11d0] sm:$0xff] }
 0x6b9   : > { %5189 = vmatprep.mubr.f32.mxu1 %v14382_v55 }
 0x6ba   : > { %9713 = vmatpush3.bf16.msra.mxu0 %v9710_v53  ;;  %v7442_v53 = vld [vmem:[%s15631_s1 + $0x13b0] sm:$0xff] }
 0x6bb   : > { %5090 = vmatmul.mubr.f32.gmra.mrb[150].mxu0 %v14382_v55  ;;  %9715 = vmatprep.subr.bf16.mxu0 %v9714_v16  ;;  %v9722_v55 = vpack.c.bf16 %v7382_v18, %v7381_v46  ;;  %v9778_v41 = vpack.c.bf16 %v7443_v32, %v7442_v53  ;;  %v7426_v46 = vld [vmem:[%s15631_s1 + $0x1330] sm:$0xff]  ;;  %v7427_v18 = vld [vmem:[%s15631_s1 + $0x1338] sm:$0xff] }
 0x6bc   : > { %5190 = vmatmul.mubr.f32.gmra.mrb[156].mxu1 %v14434_v52  ;;  %5094 = vmatprep.mubr.f32.mxu0 %v14478_v62  ;;  %v7383_v52 = vld [vmem:[%s15631_s1 + $0x11e0] sm:$0xff] }
 0x6bd   : > { %5194 = vmatprep.mubr.f32.mxu1 %v14402_v36 }
 0x6be   : > { %9717 = vmatpush3.bf16.msra.mxu0 %v9714_v16  ;;  %v7396_v16 = vld [vmem:[%s15631_s1 + $0x1240] sm:$0xff] }
 0x6bf   : > { %5095 = vmatmul.mubr.f32.gmra.mrb[152].mxu0 %v14402_v36  ;;  %9719 = vmatprep.subr.bf16.mxu0 %v9718_v59  ;;  %v9726_v36 = vpack.c.bf16 %v7384_v58, %v7383_v52  ;;  %v7414_v52 = vld [vmem:[%s15631_s1 + $0x12d0] sm:$0xff]  ;;  %v7415_v58 = vld [vmem:[%s15631_s1 + $0x12d8] sm:$0xff] }
 0x6c0   : > { %5195 = vmatmul.mubr.f32.gmra.mrb[158].mxu1 %v14473_v54  ;;  %5099 = vmatprep.mubr.f32.mxu0 %v14470_v3  ;;  %v7407_v54 = vld [vmem:[%s15631_s1 + $0x1298] sm:$0xff] }
 0x6c1   : > { %5199 = vmatprep.mubr.f32.mxu1 %v14400_v11 }
 0x6c2   : > { %9721 = vmatpush3.bf16.msra.mxu0 %v9718_v59  ;;  %v9752_v59 = vpack.c.bf16 %v7397_v24, %v7396_v16 }
 0x6c3   : > { %5100 = vmatmul.mubr.f32.gmra.mrb[154].mxu0 %v14400_v11  ;;  %9723 = vmatprep.subr.bf16.mxu0 %v9722_v55  ;;  %v9730_v11 = vpack.c.bf16 %v7386_v2, %v7385_v47  ;;  %v9754_v47 = vpack.c.bf16 %v7415_v58, %v7414_v52  ;;  %v7445_v2 = vld [vmem:[%s15631_s1 + $0x13c8] sm:$0xff] }
 0x6c4   : > { %5200 = vmatmul.mubr.f32.gmra.mrb[160].mxu1 %v14468_v20  ;;  %5104 = vmatprep.mubr.f32.mxu0 %v14502_v13  ;;  %v7388_v20 = vld [vmem:[%s15631_s1 + $0x1200] sm:$0xff] }
 0x6c5   : > { %5204 = vmatprep.mubr.f32.mxu1 %v14431_v40 }
 0x6c6   : > { %9725 = vmatpush3.bf16.msra.mxu0 %v9722_v55  ;;  %v9780_v55 = vpack.c.bf16 %v7427_v18, %v7426_v46 }
 0x6c7   : > { %5105 = vmatmul.mubr.f32.gmra.mrb[156].mxu0 %v14431_v40  ;;  %9727 = vmatprep.subr.bf16.mxu0 %v9726_v36 }
 0x6c8   : > { %5205 = vmatmul.mubr.f32.gmra.mrb[162].mxu1 %v14500_v25  ;;  %5109 = vmatprep.mubr.f32.mxu0 %v14524_v35  ;;  %v7421_v25 = vld [vmem:[%s15631_s1 + $0x1308] sm:$0xff] }
 0x6c9   : > { %5209 = vmatprep.mubr.f32.mxu1 %v14460_v15 }
 0x6ca   : > { %9729 = vmatpush3.bf16.msra.mxu0 %v9726_v36  ;;  %v7444_v36 = vld [vmem:[%s15631_s1 + $0x13c0] sm:$0xff] }
 0x6cb   : > { %5110 = vmatmul.mubr.f32.gmra.mrb[158].mxu0 %v14460_v15  ;;  %9731 = vmatprep.subr.bf16.mxu0 %v9730_v11 }
 0x6cc   : > { %5210 = vmatmul.mubr.f32.gmra.mrb[164].mxu1 %v14522_v10  ;;  %8884 = vmatprep.mubr.f32.mxu0 %v14409_v45  ;;  %v8092_v45 = vpop.f32.mrb[128].mxu0  ;;  %v7392_v10 = vld [vmem:[%s15631_s1 + $0x1220] sm:$0xff] }
 0x6cd   : > { %5214 = vmatprep.mubr.f32.mxu1 %v14362_v1  ;;  %v8093_v40 = vpop.f32.mrb[129].mxu0 }
 0x6ce   : > { %9733 = vmatpush3.bf16.msra.mxu0 %v9730_v11  ;;  %v14647_v1 = vadd.f32 %v8093_v40, %v8092_v45  ;;  %v7398_v11 = vld [vmem:[%s15631_s1 + $0x1250] sm:$0xff]  ;;  %v7399_v45 = vld [vmem:[%s15631_s1 + $0x1258] sm:$0xff]  ;;  %v9782_v40 = vpack.c.bf16 %v7445_v2, %v7444_v36 }
 0x6cf   : > { %9767 = vmatprep.subr.bf16.mxu0 %v9766_v28  ;;  %v7430_v28 = vld [vmem:[%s15631_s1 + $0x1350] sm:$0xff] }
 0x6d0   : > { %5215 = vmatmul.mubr.f32.gmra.mrb[166].mxu1 %v12370_v17  ;;  %v4867_v32 = vadd.f32 %v14647_v1, %v7387_v49 }
 0x6d1   : > { %8885 = vmatmul.mubr.f32.vlgmr.msra.gmra.mrb[160].mxu0 %v14446_v42  ;;  %v7404_v42 = vld [vmem:[%s15631_s1 + $0x1280] sm:$0xff] }
 0x6d2   : > { %8887 = vmatprep.mubr.f32.mxu0 %v14439_v31  ;;  %v7405_v31 = vld [vmem:[%s15631_s1 + $0x1288] sm:$0xff] }
 0x6d3   : > { %v9734_v15 = vpack.c.bf16 %v7405_v31, %v7404_v42  ;;  %v9756_v42 = vpack.c.bf16 %v7399_v45, %v7398_v11  ;;  %v7428_v31 = vld [vmem:[%s15631_s1 + $0x1340] sm:$0xff] }
 0x6d5   : > { %8888 = vmatmul.mubr.f32.gmra.mrb[162].mxu0 %v14478_v62  ;;  %9735 = vmatprep.subr.bf16.mxu1 %v9734_v15  ;;  %v9738_v62 = vpack.c.bf16 %v7407_v54, %v7406_v12  ;;  %v7429_v15 = vld [vmem:[%s15631_s1 + $0x1348] sm:$0xff]  ;;  %v7446_v12 = vld [vmem:[%s15631_s1 + $0x13d0] sm:$0xff] }
 0x6d6   : > { %8890 = vmatprep.mubr.f32.mxu0 %v14470_v3  ;;  %v9786_v14 = vpack.c.bf16 %v7447_v60, %v7446_v12 }
 0x6d9   : > { %8891 = vmatmul.mubr.f32.gmra.mrb[164].mxu0 %v14502_v13  ;;  %v9768_v13 = vpack.c.bf16 %v7421_v25, %v7420_v5  ;;  %v7418_v25 = vld [vmem:[%s15631_s1 + $0x12f0] sm:$0xff] }
 0x6da   : > { %8893 = vmatprep.mubr.f32.mxu0 %v14524_v35  ;;  %v7393_v35 = vld [vmem:[%s15631_s1 + $0x1228] sm:$0xff] }
 0x6db   : > { %9769 = vmatpush3.bf16.msra.mxu0 %v9768_v13  ;;  %v9744_v44 = vpack.c.bf16 %v7393_v35, %v7392_v10  ;;  %v7419_v13 = vld [vmem:[%s15631_s1 + $0x12f8] sm:$0xff]  ;;  %v9790_v10 = vpack.c.bf16 %v7449_v22, %v7448_v6 }
 0x6dc   : > { %9771 = vmatprep.subr.bf16.mxu0 %v9770_v48  ;;  %v9762_v8 = vpack.c.bf16 %v7419_v13, %v7418_v25  ;;  %v7432_v48 = vld [vmem:[%s15631_s1 + $0x1360] sm:$0xff] }
 0x6dd   : > { %8894 = vmatmul.mubr.f32.gmra.mrb[166].mxu0 %v14364_v23  ;;  %v7389_v23 = vld [vmem:[%s15631_s1 + $0x1208] sm:$0xff] }
 0x6de   : > { %v9736_v3 = vpack.c.bf16 %v7389_v23, %v7388_v20  ;;  %v9784_v20 = vpack.c.bf16 %v7429_v15, %v7428_v31  ;;  %v7416_v23 = vld [vmem:[%s15631_s1 + $0x12e0] sm:$0xff] }
 0x6df   : > { %9773 = vmatpush3.bf16.msra.mxu0 %v9772_v29  ;;  %v7451_v29 = vld [vmem:[%s15631_s1 + $0x13f8] sm:$0xff] }
 0x6e0   : > { %9737 = vmatpush3.bf16.msra.mxu1 %v9736_v3  ;;  %9775 = vmatprep.subr.bf16.mxu0 %v9774_v27  ;;  %v7417_v3 = vld [vmem:[%s15631_s1 + $0x12e8] sm:$0xff]  ;;  %v9794_v30 = vpack.c.bf16 %v7451_v29, %v7450_v39  ;;  %v7500_v27 = vld [vmem:[%s15631_s1 + $0x1580] sm:$0xff] }
 0x6e1   : > { %9739 = vmatprep.subr.bf16.mxu1 %v9738_v62  ;;  %v9758_v54 = vpack.c.bf16 %v7417_v3, %v7416_v23  ;;  %v7400_v62 = vld [vmem:[%s15631_s1 + $0x1260] sm:$0xff] }
 0x6e2   : > { %v9760_v34 = vpack.c.bf16 %v7401_v56, %v7400_v62 }
 0x6e3   : > { %9777 = vmatpush3.bf16.msra.mxu0 %v9776_v50 }
 0x6e4   : > { %9741 = vmatpush3.bf16.msra.mxu1 %v9740_v26  ;;  %9779 = vmatprep.subr.bf16.mxu0 %v9778_v41  ;;  %v7431_v26 = vld [vmem:[%s15631_s1 + $0x1358] sm:$0xff] }
 0x6e5   : > { %9743 = vmatprep.subr.bf16.mxu1 %v9742_v9  ;;  %v9788_v5 = vpack.c.bf16 %v7431_v26, %v7430_v28  ;;  %v7402_v9 = vld [vmem:[%s15631_s1 + $0x1270] sm:$0xff] }
 0x6e6   : > { %v9764_v35 = vpack.c.bf16 %v7403_v57, %v7402_v9 }
 0x6e7   : > { %9781 = vmatpush3.bf16.msra.mxu0 %v9780_v55 }
 0x6e8   : > { %9745 = vmatpush3.bf16.msra.mxu1 %v9744_v44  ;;  %9783 = vmatprep.subr.bf16.mxu0 %v9782_v40  ;;  %v7433_v44 = vld [vmem:[%s15631_s1 + $0x1368] sm:$0xff] }
 0x6e9   : > { %9747 = vmatprep.subr.bf16.mxu1 %v9746_v21  ;;  %v9792_v63 = vpack.c.bf16 %v7433_v44, %v7432_v48  ;;  %v9798_v21 = vpack.c.bf16 %v7469_v51, %v7468_v0 }
 0x6eb   : > { %9785 = vmatpush3.bf16.msra.mxu0 %v9784_v20 }
 0x6ec   : > { %9749 = vmatpush3.bf16.msra.mxu1 %v9748_v33  ;;  %9787 = vmatprep.subr.bf16.mxu0 %v9786_v14  ;;  %v7501_v33 = vld [vmem:[%s15631_s1 + $0x1588] sm:$0xff] }
 0x6ed   : > { %9751 = vmatprep.subr.bf16.mxu1 %v9750_v43  ;;  %v9830_v61 = vpack.c.bf16 %v7501_v33, %v7500_v27 }
 0x6ef   : > { %9789 = vmatpush3.bf16.msra.mxu0 %v9788_v5 }
 0x6f0   : > { %9753 = vmatpush3.bf16.msra.mxu1 %v9752_v59  ;;  %9791 = vmatprep.subr.bf16.mxu0 %v9790_v10 }
 0x6f1   : > { %9755 = vmatprep.subr.bf16.mxu1 %v9754_v47 }
 0x6f3   : > { %9793 = vmatpush3.bf16.msra.mxu0 %v9792_v63 }
 0x6f4   : > { %9757 = vmatpush3.bf16.msra.mxu1 %v9756_v42  ;;  %9795 = vmatprep.subr.bf16.mxu0 %v9794_v30 }
 0x6f5   : > { %9759 = vmatprep.subr.bf16.mxu1 %v9758_v54 }
 0x6f7   : > { %9797 = vmatpush3.bf16.msra.mxu0 %v9796_v37 }
 0x6f8   : > { %9761 = vmatpush3.bf16.msra.mxu1 %v9760_v34  ;;  %9831 = vmatprep.subr.bf16.mxu0 %v9830_v61 }
 0x6f9   : > { %9763 = vmatprep.subr.bf16.mxu1 %v9762_v8 }
 0x6fc   : > { %9765 = vmatpush3.bf16.msra.mxu1 %v9764_v35 }
 0x6fd   : > { %9799 = vmatprep.subr.bf16.mxu1 %v9798_v21 }
 0x766   : > { %v8095_v50 = vpop.f32.mrb[130].mxu0 }
 0x767   : > { %v8148_v19 = vpop.f32.mrb[136].mxu1  ;;  %v8096_v7 = vpop.f32.mrb[131].mxu0 }
 0x768   : > { %v8097_v53 = vadd.f32 %v8096_v7, %v8095_v50  ;;  %v8149_v43 = vpop.f32.mrb[137].mxu1 }
 0x769   : > { %v8150_v16 = vadd.f32 %v8149_v43, %v8148_v19 }
 0x76a   : > { %v8098_v24 = vpop.f32.mrb[132].mxu0  ;;  %v4872_v52 = vadd.f32 %v8097_v53, %v7387_v49 }
 0x76b   : > { %v4972_v41 = vadd.f32 %v8150_v16, %v4867_v32  ;;  %v8151_v59 = vpop.f32.mrb[138].mxu1  ;;  %v8099_v46 = vpop.f32.mrb[133].mxu0 }
 0x76c   : > { %v8100_v18 = vadd.f32 %v8099_v46, %v8098_v24  ;;  %v8152_v55 = vpop.f32.mrb[139].mxu1 }
 0x76d   : > { %v8153_v58 = vadd.f32 %v8152_v55, %v8151_v59 }
 0x76e   : > { %v8101_v36 = vpop.f32.mrb[134].mxu0  ;;  %v4877_v42 = vadd.f32 %v8100_v18, %v7387_v49 }
 0x76f   : > { %v4977_v47 = vadd.f32 %v8153_v58, %v4872_v52  ;;  %v8154_v2 = vpop.f32.mrb[140].mxu1  ;;  %v8102_v11 = vpop.f32.mrb[135].mxu0 }
 0x770   : > { %v8103_v45 = vadd.f32 %v8102_v11, %v8101_v36  ;;  %v8155_v40 = vpop.f32.mrb[141].mxu1 }
 0x771   : > { %v8156_v31 = vadd.f32 %v8155_v40, %v8154_v2 }
 0x772   : > { %v8104_v15 = vpop.f32.mrb[136].mxu0  ;;  %v4882_v54 = vadd.f32 %v8103_v45, %v7387_v49 }
 0x773   : > { %v4982_v20 = vadd.f32 %v8156_v31, %v4877_v42  ;;  %v8157_v1 = vpop.f32.mrb[142].mxu1  ;;  %v8105_v23 = vpop.f32.mrb[137].mxu0 }
 0x774   : > { %v8106_v3 = vadd.f32 %v8105_v23, %v8104_v15  ;;  %v8158_v12 = vpop.f32.mrb[143].mxu1 }
 0x775   : > { %v8159_v60 = vadd.f32 %v8158_v12, %v8157_v1 }
 0x776   : > { %v8107_v62 = vpop.f32.mrb[138].mxu0  ;;  %v4887_v5 = vadd.f32 %v8106_v3, %v7387_v49 }
 0x777   : > { %v4987_v56 = vadd.f32 %v8159_v60, %v4882_v54  ;;  %v8160_v14 = vpop.f32.mrb[144].mxu1  ;;  %v8108_v34 = vpop.f32.mrb[139].mxu0 }
 0x778   : > { %v8109_v28 = vadd.f32 %v8108_v34, %v8107_v62  ;;  %v8161_v26 = vpop.f32.mrb[145].mxu1 }
 0x779   : > { %v8162_v25 = vadd.f32 %v8161_v26, %v8160_v14 }
 0x77a   : > { %v8110_v13 = vpop.f32.mrb[140].mxu0  ;;  %v4892_v10 = vadd.f32 %v8109_v28, %v7387_v49 }
 0x77b   : > { %v4992_v6 = vadd.f32 %v8162_v25, %v4887_v5  ;;  %v8163_v8 = vpop.f32.mrb[146].mxu1  ;;  %v8111_v22 = vpop.f32.mrb[141].mxu0 }
 0x77c   : > { %v8112_v9 = vadd.f32 %v8111_v22, %v8110_v13  ;;  %v8164_v57 = vpop.f32.mrb[147].mxu1 }
 0x77d   : > { %v8165_v35 = vadd.f32 %v8164_v57, %v8163_v8 }
 0x77e   : > { %v8113_v48 = vpop.f32.mrb[142].mxu0  ;;  %v4897_v30 = vadd.f32 %v8112_v9, %v7387_v49 }
 0x77f   : > { %v4997_v44 = vadd.f32 %v8165_v35, %v4892_v10  ;;  %v8166_v63 = vpop.f32.mrb[148].mxu1  ;;  %v8114_v39 = vpop.f32.mrb[143].mxu0 }
 0x780   : > { %v8115_v29 = vadd.f32 %v8114_v39, %v8113_v48  ;;  %v8167_v0 = vpop.f32.mrb[149].mxu1 }
 0x781   : > { %v8168_v51 = vadd.f32 %v8167_v0, %v8166_v63 }
 0x782   : > { %v8204_v21 = vpop.f32.mrb[144].mxu0  ;;  %v4902_v61 = vadd.f32 %v8115_v29, %v7387_v49 }
 0x783   : > { %v5002_v4 = vadd.f32 %v8168_v51, %v4897_v30  ;;  %v8169_v38 = vpop.f32.mrb[150].mxu1  ;;  %v8205_v37 = vpop.f32.mrb[145].mxu0 }
 0x784   : > { %v8170_v27 = vpop.f32.mrb[151].mxu1  ;;  %v8206_v33 = vadd.f32 %v8205_v37, %v8204_v21 }
 0x785   : > { %v8171_v50 = vadd.f32 %v8170_v27, %v8169_v38 }
 0x786   : > { %v5077_v19 = vadd.f32 %v8206_v33, %v4972_v41  ;;  %v8207_v7 = vpop.f32.mrb[146].mxu0 }
 0x787   : > { %v5007_v53 = vadd.f32 %v8171_v50, %v4902_v61  ;;  %v8260_v43 = vpop.f32.mrb[152].mxu1  ;;  %v8208_v32 = vpop.f32.mrb[147].mxu0 }
 0x788   : > { %v8209_v16 = vadd.f32 %v8208_v32, %v8207_v7  ;;  %v8261_v24 = vpop.f32.mrb[153].mxu1 }
 0x789   : > { %v8262_v59 = vadd.f32 %v8261_v24, %v8260_v43 }
 0x78a   : > { %v5082_v46 = vadd.f32 %v8209_v16, %v4977_v47  ;;  %v8210_v18 = vpop.f32.mrb[148].mxu0 }
 0x78b   : > { %v8263_v55 = vpop.f32.mrb[154].mxu1  ;;  %v8211_v52 = vpop.f32.mrb[149].mxu0  ;;  %v5182_v58 = vadd.f32 %v8262_v59, %v5077_v19 }
 0x78c   : > { %v8212_v36 = vadd.f32 %v8211_v52, %v8210_v18  ;;  %v8264_v2 = vpop.f32.mrb[155].mxu1 }
 0x78d   : > { %v8265_v11 = vadd.f32 %v8264_v2, %v8263_v55 }
 0x78e   : > { %v5087_v45 = vadd.f32 %v8212_v36, %v4982_v20  ;;  %v8213_v40 = vpop.f32.mrb[150].mxu0 }
 0x78f   : > { %v8266_v49 = vpop.f32.mrb[156].mxu1  ;;  %v8214_v42 = vpop.f32.mrb[151].mxu0  ;;  %v5187_v41 = vadd.f32 %v8265_v11, %v5082_v46 }
 0x790   : > { %v8215_v31 = vadd.f32 %v8214_v42, %v8213_v40  ;;  %v8267_v15 = vpop.f32.mrb[157].mxu1 }
 0x791   : > { %v8268_v1 = vadd.f32 %v8267_v15, %v8266_v49 }
 0x792   : > { %v5092_v23 = vadd.f32 %v8215_v31, %v4987_v56  ;;  %v8216_v3 = vpop.f32.mrb[152].mxu0 }
 0x793   : > { %v8269_v12 = vpop.f32.mrb[158].mxu1  ;;  %v8217_v54 = vpop.f32.mrb[153].mxu0  ;;  %v5192_v47 = vadd.f32 %v8268_v1, %v5087_v45 }
 0x794   : > { %v8218_v60 = vadd.f32 %v8217_v54, %v8216_v3  ;;  %v8270_v62 = vpop.f32.mrb[159].mxu1 }
 0x795   : > { %v8271_v14 = vadd.f32 %v8270_v62, %v8269_v12 }
 0x796   : > { %v5097_v34 = vadd.f32 %v8218_v60, %v4992_v6  ;;  %v8219_v28 = vpop.f32.mrb[154].mxu0 }
 0x797   : > { %v8272_v26 = vpop.f32.mrb[160].mxu1  ;;  %v8220_v5 = vpop.f32.mrb[155].mxu0  ;;  %v5197_v20 = vadd.f32 %v8271_v14, %v5092_v23  ;;  %v7452_v14 = vld [vmem:[%s15631_s1 + $0x1400] sm:$0xff] }
 0x798   : > { %v8221_v25 = vadd.f32 %v8220_v5, %v8219_v28  ;;  %v8273_v13 = vpop.f32.mrb[161].mxu1  ;;  %v7470_v28 = vld [vmem:[%s15631_s1 + $0x1490] sm:$0xff] }
 0x799   : > { %v8274_v8 = vadd.f32 %v8273_v13, %v8272_v26  ;;  %v7471_v26 = vld [vmem:[%s15631_s1 + $0x1498] sm:$0xff] }
 0x79a   : > { %v5102_v22 = vadd.f32 %v8221_v25, %v4997_v44  ;;  %v8222_v9 = vpop.f32.mrb[156].mxu0  ;;  %v7454_v25 = vld [vmem:[%s15631_s1 + $0x1410] sm:$0xff]  ;;  %v7455_v13 = vld [vmem:[%s15631_s1 + $0x1418] sm:$0xff] }
 0x79b   : > { %v8275_v57 = vpop.f32.mrb[162].mxu1  ;;  %v8223_v10 = vpop.f32.mrb[157].mxu0  ;;  %v5202_v56 = vadd.f32 %v8274_v8, %v5097_v34  ;;  %v7453_v34 = vld [vmem:[%s15631_s1 + $0x1408] sm:$0xff]  ;;  %v7484_v8 = vld [vmem:[%s15631_s1 + $0x1500] sm:$0xff] }
 0x79c   : > { %v8224_v35 = vadd.f32 %v8223_v10, %v8222_v9  ;;  %v8276_v48 = vpop.f32.mrb[163].mxu1  ;;  %v7472_v10 = vld [vmem:[%s15631_s1 + $0x14a0] sm:$0xff] }
 0x79d   : > { %v8277_v63 = vadd.f32 %v8276_v48, %v8275_v57  ;;  %v9800_v57 = vpack.c.bf16 %v7453_v34, %v7452_v14 }
 0x79e   : > { %v5107_v39 = vadd.f32 %v8224_v35, %v5002_v4  ;;  %v8225_v29 = vpop.f32.mrb[158].mxu0  ;;  %v7502_v35 = vld [vmem:[%s15631_s1 + $0x1590] sm:$0xff] }
 0x79f   : > { %v8278_v0 = vpop.f32.mrb[164].mxu1  ;;  %v8226_v30 = vpop.f32.mrb[159].mxu0  ;;  %v5207_v6 = vadd.f32 %v8277_v63, %v5102_v22  ;;  %v7485_v22 = vld [vmem:[%s15631_s1 + $0x1508] sm:$0xff] }
 0x7a0   : > { %v8227_v51 = vadd.f32 %v8226_v30, %v8225_v29  ;;  %v8279_v21 = vpop.f32.mrb[165].mxu1  ;;  %v7503_v29 = vld [vmem:[%s15631_s1 + $0x1598] sm:$0xff] }
 0x7a1   : > { %v8280_v38 = vadd.f32 %v8279_v21, %v8278_v0  ;;  %v7486_v21 = vld [vmem:[%s15631_s1 + $0x1510] sm:$0xff] }
 0x7a2   : > { %v5112_v37 = vadd.f32 %v8227_v51, %v5007_v53  ;;  %v7457_v51 = vld [vmem:[%s15631_s1 + $0x1428] sm:$0xff] }
 0x7a3   : > { %v8281_v27 = vpop.f32.mrb[166].mxu1  ;;  %v5212_v33 = vadd.f32 %v8280_v38, %v5107_v39  ;;  %v9802_v39 = vpack.c.bf16 %v7471_v26, %v7470_v28  ;;  %v7487_v38 = vld [vmem:[%s15631_s1 + $0x1518] sm:$0xff] }
 0x7a4   : > { %v8886_v61 = vpop.f32.mrb[160].mxu0  ;;  %v8282_v44 = vpop.f32.mrb[167].mxu1 }
 0x7a5   : > { %v5292_v50 = vadd.f32 %v8886_v61, %v5187_v41  ;;  %v8283_v19 = vadd.f32 %v8282_v44, %v8281_v27  ;;  %v5286_v7 = vpop.f32.mrb[161].mxu0  ;;  %v9804_v27 = vpack.c.bf16 %v7455_v13, %v7454_v25  ;;  %v7474_v61 = vld [vmem:[%s15631_s1 + $0x14b0] sm:$0xff]  ;;  %v7475_v44 = vld [vmem:[%s15631_s1 + $0x14b8] sm:$0xff] }
 0x7a6   : > { %v5287_v43 = vadd.f32 %v5286_v7, %v5182_v58  ;;  %v7462_v25 = vld [vmem:[%s15631_s1 + $0x1450] sm:$0xff]  ;;  %v7463_v13 = vld [vmem:[%s15631_s1 + $0x1458] sm:$0xff] }
 0x7a7   : > { %v5326_v32 = vmax.f32 %v5292_v50, 0.0  ;;  %v5217_v16 = vadd.f32 %v8283_v19, %v5112_v37  ;;  %v9834_v19 = vpack.c.bf16 %v7503_v29, %v7502_v35  ;;  %v7481_v29 = vld [vmem:[%s15631_s1 + $0x14e8] sm:$0xff] }
 0x7a8   : > { %v5325_v24 = vmax.f32 %v5287_v43, 0.0  ;;  %v8889_v4 = vpop.f32.mrb[162].mxu0  ;;  %v7504_v43 = vld [vmem:[%s15631_s1 + $0x15a0] sm:$0xff] }
 0x7a9   : > { %v5302_v59 = vadd.f32 %v8889_v4, %v5197_v20  ;;  %v5296_v46 = vpop.f32.mrb[163].mxu0  ;;  %v7488_v4 = vld [vmem:[%s15631_s1 + $0x1520] sm:$0xff] }
 0x7aa   : > { %v5387_v18 = vmax.f32 %v5325_v24, %v5326_v32  ;;  %v5297_v55 = vadd.f32 %v5296_v46, %v5192_v47  ;;  %v7505_v32 = vld [vmem:[%s15631_s1 + $0x15a8] sm:$0xff]  ;;  %v7459_v24 = vld [vmem:[%s15631_s1 + $0x1438] sm:$0xff] }
 0x7ab   : > { %v5328_v52 = vmax.f32 %v5302_v59, 0.0  ;;  %v7489_v59 = vld [vmem:[%s15631_s1 + $0x1528] sm:$0xff] }
 0x7ac   : > { %v5395_v36 = vrot.slane %v5387_v18, 1  ;;  %v5327_v2 = vmax.f32 %v5297_v55, 0.0  ;;  %v8892_v53 = vpop.f32.mrb[164].mxu0 }
 0x7ad   : > { %v5312_v11 = vadd.f32 %v8892_v53, %v5207_v6  ;;  %v5306_v45 = vpop.f32.mrb[165].mxu0  ;;  %v7456_v6 = vld [vmem:[%s15631_s1 + $0x1420] sm:$0xff] }
 0x7ae   : > { %v5403_v40 = vmax.f32 %v5387_v18, %v5395_v36  ;;  %v5388_v49 = vmax.f32 %v5327_v2, %v5328_v52  ;;  %v5307_v42 = vadd.f32 %v5306_v45, %v5202_v56  ;;  %v7473_v56 = vld [vmem:[%s15631_s1 + $0x14a8] sm:$0xff]  ;;  %v9808_v55 = vpack.c.bf16 %v7457_v51, %v7456_v6  ;;  %v7476_v36 = vld [vmem:[%s15631_s1 + $0x14c0] sm:$0xff] }
 0x7af   : > { %v5330_v41 = vmax.f32 %v5312_v11, 0.0  ;;  %v9806_v50 = vpack.c.bf16 %v7473_v56, %v7472_v10  ;;  %v9836_v52 = vpack.c.bf16 %v7487_v38, %v7486_v21  ;;  %v7477_v2 = vld [vmem:[%s15631_s1 + $0x14c8] sm:$0xff]  ;;  %v9810_v11 = vpack.c.bf16 %v7475_v44, %v7474_v61  ;;  %v7480_v56 = vld [vmem:[%s15631_s1 + $0x14e0] sm:$0xff]  ;;  %v7495_v61 = vld [vmem:[%s15631_s1 + $0x1558] sm:$0xff] }
 0x7b0   : > { %5407 = vst [vmem:[#allocation2 + $0x19] sm:$0x1] %v5403_v40  ;;  %5411 = vst [vmem:[#allocation2 + $0x18] sm:$0x4] %v5403_v40  ;;  %v5396_v58 = vrot.slane %v5388_v49, 1  ;;  %v5329_v31 = vmax.f32 %v5307_v42, 0.0  ;;  %v9838_v45 = vpack.c.bf16 %v7505_v32, %v7504_v43  ;;  %v9814_v14 = vpack.c.bf16 %v7477_v2, %v7476_v36 }
 0x7b1   : > { %5415 = vst [vmem:[#allocation2 + $0x17] sm:$0x10] %v5403_v40  ;;  %5419 = vst [vmem:[#allocation2 + $0x16] sm:$0x40] %v5403_v40  ;;  %v8895_v15 = vpop.f32.mrb[166].mxu0  ;;  %v7506_v40 = vld [vmem:[%s15631_s1 + $0x15b0] sm:$0xff]  ;;  %v9820_v6 = vpack.c.bf16 %v7463_v13, %v7462_v25 }
 0x7b2   : > { %v5322_v1 = vadd.f32 %v8895_v15, %v5217_v16  ;;  %v5316_v23 = vpop.f32.mrb[167].mxu0  ;;  %v5404_v3 = vmax.f32 %v5388_v49, %v5396_v58  ;;  %v5389_v12 = vmax.f32 %v5329_v31, %v5330_v41  ;;  %v7458_v16 = vld [vmem:[%s15631_s1 + $0x1430] sm:$0xff]  ;;  %v7507_v49 = vld [vmem:[%s15631_s1 + $0x15b8] sm:$0xff]  ;;  %v7460_v41 = vld [vmem:[%s15631_s1 + $0x1440] sm:$0xff] }
 0x7b3   : > { %v5317_v54 = vadd.f32 %v5316_v23, %v5212_v33  ;;  %v9832_v33 = vpack.c.bf16 %v7485_v22, %v7484_v8  ;;  %v7461_v58 = vld [vmem:[%s15631_s1 + $0x1448] sm:$0xff]  ;;  %v7490_v31 = vld [vmem:[%s15631_s1 + $0x1530] sm:$0xff]  ;;  %v7491_v15 = vld [vmem:[%s15631_s1 + $0x1538] sm:$0xff]  ;;  %v9812_v23 = vpack.c.bf16 %v7459_v24, %v7458_v16  ;;  %v9842_v26 = vpack.c.bf16 %v7507_v49, %v7506_v40 }
 0x7b4   : > { %v5332_v47 = vmax.f32 %v5322_v1, 0.0  ;;  %5408 = vst [vmem:[#allocation2 + $0x31] sm:$0x1] %v5404_v3  ;;  %5412 = vst [vmem:[#allocation2 + $0x30] sm:$0x4] %v5404_v3  ;;  %v5397_v60 = vrot.slane %v5389_v12, 1  ;;  %v9844_v10 = vpack.c.bf16 %v7491_v15, %v7490_v31 }
 0x7b5   : > { %5416 = vst [vmem:[#allocation2 + $0x2f] sm:$0x10] %v5404_v3  ;;  %5420 = vst [vmem:[#allocation2 + $0x2e] sm:$0x40] %v5404_v3  ;;  %v5331_v62 = vmax.f32 %v5317_v54, 0.0  ;;  %v9840_v3 = vpack.c.bf16 %v7489_v59, %v7488_v4  ;;  %v7479_v54 = vld [vmem:[%s15631_s1 + $0x14d8] sm:$0xff] }
 0x7b6   : > { %v5405_v5 = vmax.f32 %v5389_v12, %v5397_v60  ;;  %v7478_v12 = vld [vmem:[%s15631_s1 + $0x14d0] sm:$0xff]  ;;  %v7509_v60 = vld [vmem:[%s15631_s1 + $0x15c8] sm:$0xff]  ;;  %v7492_v8 = vld [vmem:[%s15631_s1 + $0x1540] sm:$0xff] }
 0x7b7   : > { %v5390_v20 = vmax.f32 %v5331_v62, %v5332_v47  ;;  %v7508_v47 = vld [vmem:[%s15631_s1 + $0x15c0] sm:$0xff]  ;;  %v7493_v22 = vld [vmem:[%s15631_s1 + $0x1548] sm:$0xff]  ;;  %v7482_v44 = vld [vmem:[%s15631_s1 + $0x14f0] sm:$0xff] }
 0x7b8   : > { %v10543_v9 = vld [vmem:[#allocation2 + $0x1] ss:$24 sps:$4 sm:$0xff]   ;;  %5409 = vst [vmem:[#allocation2 + $0x49] sm:$0x1] %v5405_v5  ;;  %5413 = vst [vmem:[#allocation2 + $0x48] sm:$0x4] %v5405_v5  ;;  %v9848_v51 = vpack.c.bf16 %v7493_v22, %v7492_v8 }
 0x7b9   : > { %5417 = vst [vmem:[#allocation2 + $0x47] sm:$0x10] %v5405_v5  ;;  %5421 = vst [vmem:[#allocation2 + $0x46] sm:$0x40] %v5405_v5  ;;  %v5398_v48 = vrot.slane %v5390_v20, 1  ;;  %5761 = vmatprep.mubr.f32.mxu1 %v10543_v9  ;;  %v7464_v21 = vld [vmem:[%s15631_s1 + $0x1460] sm:$0xff] }
 0x7ba   : > { %v10544_v63 = vld [vmem:[#allocation2] ss:$24 sps:$4 sm:$0xff]   ;;  %v7465_v38 = vld [vmem:[%s15631_s1 + $0x1468] sm:$0xff]  ;;  %v7466_v43 = vld [vmem:[%s15631_s1 + $0x1470] sm:$0xff] }
 0x7bb   : > { %v10546_v0 = vld [vmem:[#allocation2 + $0x2] ss:$24 sps:$4 sm:$0xff]   ;;  %v5406_v30 = vmax.f32 %v5390_v20, %v5398_v48  ;;  %5762 = vmatmul.mubr.f32.vlgmr.msra.gmra.mrb[168].mxu1 %v10544_v63  ;;  %v9818_v63 = vpack.c.bf16 %v7479_v54, %v7478_v12  ;;  %v9824_v16 = vpack.c.bf16 %v7465_v38, %v7464_v21  ;;  %v7530_v13 = vld [vmem:[%s15631_s1 + $0x1670] sm:$0xff] }
 0x7bc   : > { %6080 = vst [vmem:[#allocation2] sm:$0xff] %v12370_v17  ;;  %9801 = vmatpush3.bf16.msra.mxu1 %v9800_v57  ;;  %v10545_v37 = vld [vmem:[#allocation2 + $0x18] ss:$24 sps:$4 sm:$0xff]   ;;  %v9816_v57 = vpack.c.bf16 %v7461_v58, %v7460_v41  ;;  %v7516_v2 = vld [vmem:[%s15631_s1 + $0x1600] sm:$0xff] }
 0x7bd   : > { %5410 = vst [vmem:[#allocation2 + $0x61] sm:$0x1] %v5406_v30  ;;  %5414 = vst [vmem:[#allocation2 + $0x60] sm:$0x4] %v5406_v30  ;;  %9803 = vmatprep.subr.bf16.mxu1 %v9802_v39  ;;  %v10549_v7 = vld [vmem:[#allocation2 + $0x1a] ss:$24 sps:$4 sm:$0xff]   ;;  %5836 = vmatprep.mubr.f32.mxu0 %v10545_v37  ;;  %v9846_v39 = vpack.c.bf16 %v7509_v60, %v7508_v47  ;;  %v9822_v37 = vpack.c.bf16 %v7481_v29, %v7480_v56 }
 0x7be   : > { %5418 = vst [vmem:[#allocation2 + $0x5f] sm:$0x10] %v5406_v30  ;;  %5422 = vst [vmem:[#allocation2 + $0x5e] sm:$0x40] %v5406_v30  ;;  %5837 = vmatmul.mubr.f32.vlgmr.msra.gmra.mrb[168].mxu0 %v10546_v0  ;;  %v14930_v46 = vld [vmem:[#allocation2 + $0x19] ss:$24 sps:$4 sm:$0xff]  }
 0x7bf   : > { %9833 = vmatpush3.bf16.msra.mxu0 %v9832_v33  ;;  %6083 = vst [vmem:[#allocation2 + $0x18] sm:$0xff] %v12370_v17  ;;  %v7510_v0 = vld [vmem:[%s15631_s1 + $0x15d0] sm:$0xff]  ;;  %v7511_v30 = vld [vmem:[%s15631_s1 + $0x15d8] sm:$0xff]  ;;  %v7524_v60 = vld [vmem:[%s15631_s1 + $0x1640] sm:$0xff] }
 0x7c0   : > { %9805 = vmatpush3.bf16.msra.mxu1 %v9804_v27  ;;  %v10547_v18 = vld [vmem:[#allocation2 + $0x31] ss:$24 sps:$4 sm:$0xff]   ;;  %9835 = vmatprep.subr.bf16.mxu0 %v9834_v19  ;;  %v9850_v27 = vpack.c.bf16 %v7511_v30, %v7510_v0  ;;  %v7512_v19 = vld [vmem:[%s15631_s1 + $0x15e0] sm:$0xff]  ;;  %v7467_v32 = vld [vmem:[%s15631_s1 + $0x1478] sm:$0xff] }
 0x7c1   : > { %9807 = vmatprep.subr.bf16.mxu1 %v9806_v50  ;;  %v10548_v53 = vld [vmem:[#allocation2 + $0x30] ss:$24 sps:$4 sm:$0xff]   ;;  %5766 = vmatprep.mubr.f32.mxu1 %v10547_v18  ;;  %v7483_v50 = vld [vmem:[%s15631_s1 + $0x14f8] sm:$0xff]  ;;  %v7496_v18 = vld [vmem:[%s15631_s1 + $0x1560] sm:$0xff] }
 0x7c2   : > { %5767 = vmatmul.mubr.f32.gmra.mrb[170].mxu1 %v10548_v53  ;;  %v10551_v42 = vld [vmem:[#allocation2 + $0x32] ss:$24 sps:$4 sm:$0xff]   ;;  %v9826_v4 = vpack.c.bf16 %v7483_v50, %v7482_v44  ;;  %v7515_v36 = vld [vmem:[%s15631_s1 + $0x15f8] sm:$0xff]  ;;  %v7581_v0 = vld [vmem:[%s15631_s1 + $0x1780] sm:$0xff] }
 0x7c3   : > { %9837 = vmatpush3.bf16.msra.mxu0 %v9836_v52  ;;  %5911 = vmatprep.mubr.f32.mxu1 %v10549_v7  ;;  %v10552_v62 = vld [vmem:[#allocation2 + $0x31] ss:$24 sps:$4 sm:$0xff]   ;;  %v7499_v41 = vld [vmem:[%s15631_s1 + $0x1578] sm:$0xff] }
 0x7c4   : > { %9809 = vmatpush3.bf16.msra.mxu1 %v9808_v55  ;;  %9839 = vmatprep.subr.bf16.mxu0 %v9838_v45  ;;  %v14973_v5 = vld [vmem:[#allocation2 + $0x30] ss:$24 sps:$4 sm:$0xff]   ;;  %v7519_v31 = vld [vmem:[%s15631_s1 + $0x1618] sm:$0xff] }
 0x7c5   : > { %v10550_v1 = vld [vmem:[#allocation2 + $0x48] ss:$24 sps:$4 sm:$0xff]   ;;  %9811 = vmatprep.subr.bf16.mxu1 %v9810_v11  ;;  %v7494_v33 = vld [vmem:[%s15631_s1 + $0x1550] sm:$0xff]  ;;  %v9828_v11 = vpack.c.bf16 %v7467_v32, %v7466_v43  ;;  %v7523_v54 = vld [vmem:[%s15631_s1 + $0x1638] sm:$0xff] }
 0x7c6   : > { %v14969_v34 = vld [vmem:[#allocation2 + $0x4a] ss:$24 sps:$4 sm:$0xff]   ;;  %5841 = vmatprep.mubr.f32.mxu0 %v10550_v1  ;;  %v9852_v24 = vpack.c.bf16 %v7495_v61, %v7494_v33  ;;  %v7514_v52 = vld [vmem:[%s15631_s1 + $0x15f0] sm:$0xff]  ;;  %v7531_v8 = vld [vmem:[%s15631_s1 + $0x1678] sm:$0xff] }
 0x7c7   : > { %v14971_v28 = vld [vmem:[#allocation2 + $0x49] ss:$24 sps:$4 sm:$0xff]   ;;  %5842 = vmatmul.mubr.f32.gmra.mrb[170].mxu0 %v10551_v42  ;;  %v9858_v40 = vpack.c.bf16 %v7515_v36, %v7514_v52  ;;  %v7498_v42 = vld [vmem:[%s15631_s1 + $0x1570] sm:$0xff]  ;;  %v9890_v22 = vpack.c.bf16 %v7531_v8, %v7530_v13  ;;  %v7568_v21 = vld [vmem:[%s15631_s1 + $0x1718] sm:$0xff] }
 0x7c8   : > { %v14975_v20 = vld [vmem:[#allocation2 + $0x61] ss:$24 sps:$4 sm:$0xff]   ;;  %v14989_v9 = vld [vmem:[#allocation2 + $0x32] ss:$24 sps:$4 sm:$0xff]   ;;  %9813 = vmatpush3.bf16.msra.mxu1 %v9812_v23  ;;  %9841 = vmatpush3.bf16.msra.mxu0 %v9840_v3  ;;  %v9860_v15 = vpack.c.bf16 %v7499_v41, %v7498_v42 }
 0x7c9   : > { %6086 = vst [vmem:[#allocation2 + $0x30] sm:$0xff] %v12370_v17  ;;  %6089 = vst [vmem:[#allocation2 + $0x48] sm:$0xff] %v12370_v17  ;;  %v14996_v35 = vld [vmem:[#allocation2 + $0x60] ss:$24 sps:$4 sm:$0xff]   ;;  %5986 = vmatprep.mubr.f32.mxu0 %v10552_v62  ;;  %9815 = vmatprep.subr.bf16.mxu1 %v9814_v14  ;;  %v7513_v7 = vld [vmem:[%s15631_s1 + $0x15e8] sm:$0xff] }
 0x7ca   : > { %v14998_v48 = vld [vmem:[#allocation2 + $0x62] ss:$24 sps:$4 sm:$0xff]   ;;  %9843 = vmatprep.subr.bf16.mxu0 %v9842_v26  ;;  %v9854_v59 = vpack.c.bf16 %v7513_v7, %v7512_v19  ;;  %v7497_v55 = vld [vmem:[%s15631_s1 + $0x1568] sm:$0xff]  ;;  %v7518_v58 = vld [vmem:[%s15631_s1 + $0x1610] sm:$0xff] }
 0x7cb   : > { %6092 = vst [vmem:[#allocation2 + $0x60] sm:$0xff] %v12370_v17  ;;  %6095 = vst [vmem:[#allocation2 + $0x78] sm:$0xff] %v12370_v17  ;;  %v7517_v53 = vld [vmem:[%s15631_s1 + $0x1608] sm:$0xff]  ;;  %v9856_v45 = vpack.c.bf16 %v7497_v55, %v7496_v18  ;;  %v9866_v1 = vpack.c.bf16 %v7519_v31, %v7518_v58  ;;  %v7520_v23 = vld [vmem:[%s15631_s1 + $0x1620] sm:$0xff] }
 0x7cc   : > { %9817 = vmatpush3.bf16.msra.mxu1 %v9816_v57  ;;  %9845 = vmatpush3.bf16.msra.mxu0 %v9844_v10  ;;  %v9862_v49 = vpack.c.bf16 %v7517_v53, %v7516_v2  ;;  %v7521_v3 = vld [vmem:[%s15631_s1 + $0x1628] sm:$0xff]  ;;  %v7549_v10 = vld [vmem:[%s15631_s1 + $0x1680] sm:$0xff]  ;;  %v7551_v38 = vld [vmem:[%s15631_s1 + $0x1690] sm:$0xff] }
 0x7cd   : > { %9819 = vmatprep.subr.bf16.mxu1 %v9818_v63  ;;  %9847 = vmatprep.subr.bf16.mxu0 %v9846_v39  ;;  %v9870_v12 = vpack.c.bf16 %v7521_v3, %v7520_v23  ;;  %v7525_v62 = vld [vmem:[%s15631_s1 + $0x1648] sm:$0xff]  ;;  %v7599_v61 = vld [vmem:[%s15631_s1 + $0x1810] sm:$0xff]  ;;  %v7600_v44 = vld [vmem:[%s15631_s1 + $0x1818] sm:$0xff] }
 0x7ce   : > { %v9878_v14 = vpack.c.bf16 %v7525_v62, %v7524_v60  ;;  %v7566_v57 = vld [vmem:[%s15631_s1 + $0x1708] sm:$0xff]  ;;  %v7583_v50 = vld [vmem:[%s15631_s1 + $0x1790] sm:$0xff]  ;;  %v9930_v19 = vpack.c.bf16 %v7600_v44, %v7599_v61  ;;  %v7584_v7 = vld [vmem:[%s15631_s1 + $0x1798] sm:$0xff] }
 0x7cf   : > { %v7598_v63 = vld [vmem:[%s15631_s1 + $0x1808] sm:$0xff]  ;;  %v7569_v43 = vld [vmem:[%s15631_s1 + $0x1720] sm:$0xff]  ;;  %v7556_v41 = vld [vmem:[%s15631_s1 + $0x16b8] sm:$0xff] }
 0x7d0   : > { %9821 = vmatpush3.bf16.msra.mxu1 %v9820_v6  ;;  %9849 = vmatpush3.bf16.msra.mxu0 %v9848_v51  ;;  %v7582_v30 = vld [vmem:[%s15631_s1 + $0x1788] sm:$0xff]  ;;  %v7567_v6 = vld [vmem:[%s15631_s1 + $0x1710] sm:$0xff]  ;;  %v7601_v18 = vld [vmem:[%s15631_s1 + $0x1820] sm:$0xff] }
 0x7d1   : > { %9823 = vmatprep.subr.bf16.mxu1 %v9822_v37  ;;  %9851 = vmatprep.subr.bf16.mxu0 %v9850_v27  ;;  %v9928_v51 = vpack.c.bf16 %v7582_v30, %v7581_v0  ;;  %v7552_v37 = vld [vmem:[%s15631_s1 + $0x1698] sm:$0xff]  ;;  %v9898_v27 = vpack.c.bf16 %v7568_v21, %v7567_v6  ;;  %v7570_v32 = vld [vmem:[%s15631_s1 + $0x1728] sm:$0xff]  ;;  %v7585_v52 = vld [vmem:[%s15631_s1 + $0x17a0] sm:$0xff] }
 0x7d2   : > { %v9900_v33 = vpack.c.bf16 %v7552_v37, %v7551_v38  ;;  %v7602_v55 = vld [vmem:[%s15631_s1 + $0x1828] sm:$0xff]  ;;  %v7603_v58 = vld [vmem:[%s15631_s1 + $0x1830] sm:$0xff]  ;;  %v7604_v31 = vld [vmem:[%s15631_s1 + $0x1838] sm:$0xff] }
 0x7d3   : > { %v7586_v36 = vld [vmem:[%s15631_s1 + $0x17a8] sm:$0xff]  ;;  %v9934_v53 = vpack.c.bf16 %v7602_v55, %v7601_v18  ;;  %v7588_v23 = vld [vmem:[%s15631_s1 + $0x17b8] sm:$0xff]  ;;  %v7557_v60 = vld [vmem:[%s15631_s1 + $0x16c0] sm:$0xff] }
 0x7d4   : > { %9825 = vmatpush3.bf16.msra.mxu1 %v9824_v16  ;;  %9853 = vmatpush3.bf16.msra.mxu0 %v9852_v24  ;;  %v9932_v16 = vpack.c.bf16 %v7584_v7, %v7583_v50  ;;  %v9902_v24 = vpack.c.bf16 %v7570_v32, %v7569_v43  ;;  %v7558_v62 = vld [vmem:[%s15631_s1 + $0x16c8] sm:$0xff]  ;;  %v7575_v13 = vld [vmem:[%s15631_s1 + $0x1750] sm:$0xff]  ;;  %v7576_v8 = vld [vmem:[%s15631_s1 + $0x1758] sm:$0xff] }
 0x7d5   : > { %9827 = vmatprep.subr.bf16.mxu1 %v9826_v4  ;;  %9855 = vmatprep.subr.bf16.mxu0 %v9854_v59  ;;  %v7553_v4 = vld [vmem:[%s15631_s1 + $0x16a0] sm:$0xff]  ;;  %v7554_v59 = vld [vmem:[%s15631_s1 + $0x16a8] sm:$0xff]  ;;  %v7579_v50 = vld [vmem:[%s15631_s1 + $0x1770] sm:$0xff] }
 0x7d6   : > { %v9904_v2 = vpack.c.bf16 %v7554_v59, %v7553_v4  ;;  %v7578_v30 = vld [vmem:[%s15631_s1 + $0x1768] sm:$0xff]  ;;  %v7561_v6 = vld [vmem:[%s15631_s1 + $0x16e0] sm:$0xff]  ;;  %v7563_v32 = vld [vmem:[%s15631_s1 + $0x16f0] sm:$0xff] }
 0x7d7   : > { %v7609_v37 = vld [vmem:[%s15631_s1 + $0x1860] sm:$0xff]  ;;  %v7594_v44 = vld [vmem:[%s15631_s1 + $0x17e8] sm:$0xff]  ;;  %v7612_v59 = vld [vmem:[%s15631_s1 + $0x1878] sm:$0xff] }
 0x7d8   : > { %9829 = vmatpush3.bf16.msra.mxu1 %v9828_v11  ;;  %9857 = vmatpush3.bf16.msra.mxu0 %v9856_v45  ;;  %v7571_v11 = vld [vmem:[%s15631_s1 + $0x1730] sm:$0xff]  ;;  %v7572_v45 = vld [vmem:[%s15631_s1 + $0x1738] sm:$0xff] }
 0x7d9   : > { %9859 = vmatprep.subr.bf16.mxu0 %v9858_v40  ;;  %9863 = vmatprep.subr.bf16.mxu1 %v9862_v49  ;;  %v7555_v40 = vld [vmem:[%s15631_s1 + $0x16b0] sm:$0xff]  ;;  %v9906_v42 = vpack.c.bf16 %v7572_v45, %v7571_v11  ;;  %v7596_v55 = vld [vmem:[%s15631_s1 + $0x17f8] sm:$0xff]  ;;  %v7661_v45 = vld [vmem:[%s15631_s1 + $0x1a00] sm:$0xff] }
 0x7da   : > { %v9908_v3 = vpack.c.bf16 %v7556_v41, %v7555_v40  ;;  %v7595_v18 = vld [vmem:[%s15631_s1 + $0x17f0] sm:$0xff]  ;;  %v7662_v40 = vld [vmem:[%s15631_s1 + $0x1a08] sm:$0xff] }
 0x7db   : > { %5912 = vmatmul.mubr.f32.vlgmr.msra.gmra.mrb[172].mxu1 %v14930_v46  ;;  %v7522_v46 = vld [vmem:[%s15631_s1 + $0x1630] sm:$0xff] }
 0x7dc   : > { %5916 = vmatprep.mubr.f32.mxu1 %v14969_v34  ;;  %9861 = vmatpush3.bf16.msra.mxu0 %v9860_v15  ;;  %v9874_v47 = vpack.c.bf16 %v7523_v54, %v7522_v46  ;;  %v7526_v34 = vld [vmem:[%s15631_s1 + $0x1650] sm:$0xff]  ;;  %v9938_v15 = vpack.c.bf16 %v7604_v31, %v7603_v58  ;;  %v7573_v46 = vld [vmem:[%s15631_s1 + $0x1740] sm:$0xff]  ;;  %v7574_v54 = vld [vmem:[%s15631_s1 + $0x1748] sm:$0xff] }
 0x7dd   : > { %9865 = vmatpush3.bf16.msra.mxu1 %v9862_v49  ;;  %v9936_v49 = vpack.c.bf16 %v7586_v36, %v7585_v52  ;;  %v9956_v36 = vpack.c.bf16 %v7596_v55, %v7595_v18  ;;  %v7532_v31 = vld [vmem:[%s15632_s2 + $0x4] ss:$0 sm:$0xff] }
 0x7de   : > { %9867 = vmatprep.subr.bf16.mxu1 %v9866_v1 }
 0x7df   : > { %5917 = vmatmul.mubr.f32.gmra.mrb[174].mxu1 %v14971_v28  ;;  %5987 = vmatmul.mubr.f32.vlgmr.msra.gmra.mrb[172].mxu0 %v14973_v5  ;;  %v7527_v28 = vld [vmem:[%s15631_s1 + $0x1658] sm:$0xff]  ;;  %v7528_v5 = vld [vmem:[%s15631_s1 + $0x1660] sm:$0xff] }
 0x7e0   : > { %5991 = vmatprep.mubr.f32.mxu0 %v14975_v20  ;;  %8928 = vmatprep.mubr.f32.mxu1 %v14989_v9  ;;  %v9882_v26 = vpack.c.bf16 %v7527_v28, %v7526_v34  ;;  %v7529_v20 = vld [vmem:[%s15631_s1 + $0x1668] sm:$0xff]  ;;  %v7565_v9 = vld [vmem:[%s15631_s1 + $0x1700] sm:$0xff] }
 0x7e1   : > { %9869 = vmatpush3.bf16.msra.mxu1 %v9866_v1  ;;  %v9886_v25 = vpack.c.bf16 %v7529_v20, %v7528_v5  ;;  %v9894_v56 = vpack.c.bf16 %v7566_v57, %v7565_v9  ;;  %v7587_v1 = vld [vmem:[%s15631_s1 + $0x17b0] sm:$0xff]  ;;  %v7605_v34 = vld [vmem:[%s15631_s1 + $0x1840] sm:$0xff]  ;;  %v7606_v28 = vld [vmem:[%s15631_s1 + $0x1848] sm:$0xff] }
 0x7e2   : > { %9871 = vmatprep.subr.bf16.mxu1 %v9870_v12  ;;  %v7589_v5 = vld [vmem:[%s15631_s1 + $0x17c0] sm:$0xff]  ;;  %v7590_v20 = vld [vmem:[%s15631_s1 + $0x17c8] sm:$0xff]  ;;  %v7559_v9 = vld [vmem:[%s15631_s1 + $0x16d0] sm:$0xff] }
 0x7e3   : > { %5992 = vmatmul.mubr.f32.gmra.mrb[174].mxu0 %v14996_v35  ;;  %v7550_v35 = vld [vmem:[%s15631_s1 + $0x1688] sm:$0xff]  ;;  %9895 = vmatprep.subr.bf16.mxu0 %v9894_v56  ;;  %v7560_v57 = vld [vmem:[%s15631_s1 + $0x16d8] sm:$0xff]  ;;  %v7607_v56 = vld [vmem:[%s15631_s1 + $0x1850] sm:$0xff] }
 0x7e4   : > { %v9896_v39 = vpack.c.bf16 %v7550_v35, %v7549_v10  ;;  %v9916_v10 = vpack.c.bf16 %v7560_v57, %v7559_v9  ;;  %v7608_v35 = vld [vmem:[%s15631_s1 + $0x1858] sm:$0xff] }
 0x7e5   : > { %9873 = vmatpush3.bf16.msra.mxu1 %v9870_v12  ;;  %v9940_v12 = vpack.c.bf16 %v7588_v23, %v7587_v1 }
 0x7e6   : > { %9875 = vmatprep.subr.bf16.mxu1 %v9874_v47  ;;  %9897 = vmatpush3.bf16.msra.mxu0 %v9896_v39  ;;  %v7592_v39 = vld [vmem:[%s15631_s1 + $0x17d8] sm:$0xff] }
 0x7e7   : > { %9899 = vmatprep.subr.bf16.mxu0 %v9898_v27  ;;  %v7610_v27 = vld [vmem:[%s15631_s1 + $0x1868] sm:$0xff] }
 0x7e8   : > { %v9950_v61 = vpack.c.bf16 %v7610_v27, %v7609_v37 }
 0x7e9   : > { %9877 = vmatpush3.bf16.msra.mxu1 %v9874_v47  ;;  %v9910_v47 = vpack.c.bf16 %v7574_v54, %v7573_v46 }
 0x7ea   : > { %9879 = vmatprep.subr.bf16.mxu1 %v9878_v14  ;;  %9901 = vmatpush3.bf16.msra.mxu0 %v9900_v33  ;;  %v7593_v33 = vld [vmem:[%s15631_s1 + $0x17e0] sm:$0xff] }
 0x7eb   : > { %9903 = vmatprep.subr.bf16.mxu0 %v9902_v24  ;;  %v9952_v7 = vpack.c.bf16 %v7594_v44, %v7593_v33  ;;  %v7611_v24 = vld [vmem:[%s15631_s1 + $0x1870] sm:$0xff]  ;;  %v7613_v33 = vld [vmem:[%s15631_s1 + $0x1880] sm:$0xff] }
 0x7ec   : > { %v9954_v52 = vpack.c.bf16 %v7612_v59, %v7611_v24  ;;  %v7645_v44 = vld [vmem:[%s15631_s1 + $0x1980] sm:$0xff]  ;;  %v7616_v59 = vld [vmem:[%s15631_s1 + $0x1898] sm:$0xff] }
 0x7ed   : > { %9881 = vmatpush3.bf16.msra.mxu1 %v9878_v14  ;;  %v9912_v14 = vpack.c.bf16 %v7558_v62, %v7557_v60 }
 0x7ee   : > { %9883 = vmatprep.subr.bf16.mxu1 %v9882_v26  ;;  %9905 = vmatpush3.bf16.msra.mxu0 %v9904_v2  ;;  %v7629_v2 = vld [vmem:[%s15631_s1 + $0x1900] sm:$0xff] }
 0x7ef   : > { %9907 = vmatprep.subr.bf16.mxu0 %v9906_v42 }
 0x7f1   : > { %9885 = vmatpush3.bf16.msra.mxu1 %v9882_v26  ;;  %v9942_v26 = vpack.c.bf16 %v7606_v28, %v7605_v34 }
 0x7f2   : > { %9887 = vmatprep.subr.bf16.mxu1 %v9886_v25  ;;  %9909 = vmatpush3.bf16.msra.mxu0 %v9908_v3 }
 0x7f3   : > { %9911 = vmatprep.subr.bf16.mxu0 %v9910_v47 }
 0x7f5   : > { %9889 = vmatpush3.bf16.msra.mxu1 %v9886_v25  ;;  %v9944_v25 = vpack.c.bf16 %v7590_v20, %v7589_v5 }
 0x7f6   : > { %9891 = vmatprep.subr.bf16.mxu1 %v9890_v22  ;;  %9913 = vmatpush3.bf16.msra.mxu0 %v9912_v14 }
 0x7f9   : > { %9893 = vmatpush3.bf16.msra.mxu1 %v9890_v22  ;;  %v9914_v22 = vpack.c.bf16 %v7576_v8, %v7575_v13 }
 0x7fb   : > { %9915 = vmatprep.subr.bf16.mxu0 %v9914_v22 }
 0x7fc   : > { %8929 = vmatmul.mubr.f32.vlgmr.msra.gmra.mrb[176].mxu1 %v14998_v48  ;;  %v7597_v48 = vld [vmem:[%s15631_s1 + $0x1800] sm:$0xff]  ;;  %9917 = vmatpush3.bf16.msra.mxu0 %v9916_v10 }
 0x7fd   : > { %v9926_v29 = vpack.c.bf16 %v7598_v63, %v7597_v48  ;;  %v9946_v48 = vpack.c.bf16 %v7608_v35, %v7607_v56  ;;  %v7591_v63 = vld [vmem:[%s15631_s1 + $0x17d0] sm:$0xff] }
 0x7fe   : > { %v9948_v0 = vpack.c.bf16 %v7592_v39, %v7591_v63 }
 0x7ff   : > { %9927 = vmatprep.subr.bf16.mxu1 %v9926_v29  ;;  %v7577_v29 = vld [vmem:[%s15631_s1 + $0x1760] sm:$0xff] }
 0x800   : > { %9929 = vmatpush3.bf16.msra.mxu1 %v9928_v51  ;;  %v7562_v51 = vld [vmem:[%s15631_s1 + $0x16e8] sm:$0xff]  ;;  %v9918_v21 = vpack.c.bf16 %v7578_v30, %v7577_v29 }
 0x801   : > { %9931 = vmatprep.subr.bf16.mxu1 %v9930_v19  ;;  %v9920_v38 = vpack.c.bf16 %v7562_v51, %v7561_v6  ;;  %v7580_v19 = vld [vmem:[%s15631_s1 + $0x1778] sm:$0xff] }
 0x802   : > { %9919 = vmatprep.subr.bf16.mxu0 %v9918_v21  ;;  %v9922_v43 = vpack.c.bf16 %v7580_v19, %v7579_v50  ;;  %v7646_v50 = vld [vmem:[%s15631_s1 + $0x1988] sm:$0xff]  ;;  %v7631_v19 = vld [vmem:[%s15631_s1 + $0x1910] sm:$0xff] }
 0x803   : > { %9921 = vmatpush3.bf16.msra.mxu0 %v9920_v38 }
 0x804   : > { %9933 = vmatpush3.bf16.msra.mxu1 %v9932_v16  ;;  %v7564_v16 = vld [vmem:[%s15631_s1 + $0x16f8] sm:$0xff]  ;;  %9923 = vmatprep.subr.bf16.mxu0 %v9922_v43  ;;  %v7663_v43 = vld [vmem:[%s15631_s1 + $0x1a10] sm:$0xff] }
 0x805   : > { %9935 = vmatprep.subr.bf16.mxu1 %v9934_v53  ;;  %v9924_v4 = vpack.c.bf16 %v7564_v16, %v7563_v32  ;;  %v7630_v53 = vld [vmem:[%s15631_s1 + $0x1908] sm:$0xff]  ;;  %v7664_v32 = vld [vmem:[%s15631_s1 + $0x1a18] sm:$0xff] }
 0x806   : > { %v9958_v11 = vpack.c.bf16 %v7630_v53, %v7629_v2  ;;  %v7647_v53 = vld [vmem:[%s15631_s1 + $0x1990] sm:$0xff] }
 0x807   : > { %9925 = vmatpush3.bf16.msra.mxu0 %v9924_v4  ;;  %v7615_v4 = vld [vmem:[%s15631_s1 + $0x1890] sm:$0xff] }
 0x808   : > { %9937 = vmatpush3.bf16.msra.mxu1 %v9936_v49  ;;  %9959 = vmatprep.subr.bf16.mxu0 %v9958_v11  ;;  %v9990_v49 = vpack.c.bf16 %v7662_v40, %v7661_v45  ;;  %v7648_v11 = vld [vmem:[%s15631_s1 + $0x1998] sm:$0xff] }
 0x809   : > { %9939 = vmatprep.subr.bf16.mxu1 %v9938_v15 }
 0x80c   : > { %9941 = vmatpush3.bf16.msra.mxu1 %v9940_v12 }
 0x80d   : > { %9943 = vmatprep.subr.bf16.mxu1 %v9942_v26 }
 0x810   : > { %9945 = vmatpush3.bf16.msra.mxu1 %v9944_v25 }
 0x811   : > { %9947 = vmatprep.subr.bf16.mxu1 %v9946_v48 }
 0x814   : > { %9949 = vmatpush3.bf16.msra.mxu1 %v9948_v0 }
 0x815   : > { %9951 = vmatprep.subr.bf16.mxu1 %v9950_v61  ;;  %v7614_v61 = vld [vmem:[%s15631_s1 + $0x1888] sm:$0xff] }
 0x816   : > { %v9960_v24 = vpack.c.bf16 %v7614_v61, %v7613_v33 }
 0x818   : > { %9953 = vmatpush3.bf16.msra.mxu1 %v9952_v7  ;;  %v7632_v7 = vld [vmem:[%s15631_s1 + $0x1918] sm:$0xff] }
 0x819   : > { %9955 = vmatprep.subr.bf16.mxu1 %v9954_v52  ;;  %v9962_v55 = vpack.c.bf16 %v7632_v7, %v7631_v19  ;;  %v7633_v52 = vld [vmem:[%s15631_s1 + $0x1920] sm:$0xff]  ;;  %v7639_v19 = vld [vmem:[%s15631_s1 + $0x1950] sm:$0xff]  ;;  %v7640_v7 = vld [vmem:[%s15631_s1 + $0x1958] sm:$0xff] }
 0x81c   : > { %9957 = vmatpush3.bf16.msra.mxu1 %v9956_v36  ;;  %v7634_v36 = vld [vmem:[%s15631_s1 + $0x1928] sm:$0xff] }
 0x81d   : > { %9991 = vmatprep.subr.bf16.mxu1 %v9990_v49  ;;  %v9992_v49 = vpack.c.bf16 %v7646_v50, %v7645_v44 }
 0x88e   : > { %v8340_v42 = vpop.f32.mrb[168].mxu1 }
 0x88f   : > { %v8341_v41 = vpop.f32.mrb[169].mxu1 }
 0x890   : > { %v8342_v58 = vadd.f32 %v8341_v41, %v8340_v42  ;;  %v7665_v42 = vld [vmem:[%s15631_s1 + $0x1a20] sm:$0xff] }
 0x891   : > { %v8378_v15 = vpop.f32.mrb[168].mxu0 }
 0x892   : > { %v8379_v1 = vpop.f32.mrb[169].mxu0  ;;  %v5764_v23 = vadd.f32 %v8342_v58, %v7532_v31  ;;  %v9994_v58 = vpack.c.bf16 %v7664_v32, %v7663_v43  ;;  %v7653_v32 = vld [vmem:[%s15631_s1 + $0x19c0] sm:$0xff] }
 0x893   : > { %v8380_v3 = vadd.f32 %v8379_v1, %v8378_v15  ;;  %v7618_v15 = vld [vmem:[%s15631_s1 + $0x18a8] sm:$0xff] }
 0x894   : > { %v7666_v1 = vld [vmem:[%s15631_s1 + $0x1a28] sm:$0xff] }
 0x895   : > { %v5839_v12 = vadd.f32 %v8380_v3, %v5764_v23  ;;  %v8343_v46 = vpop.f32.mrb[170].mxu1  ;;  %v9964_v3 = vpack.c.bf16 %v7616_v59, %v7615_v4  ;;  %v7671_v4 = vld [vmem:[%s15631_s1 + $0x1a50] sm:$0xff]  ;;  %v9978_v59 = vpack.c.bf16 %v7640_v7, %v7639_v19  ;;  %v7692_v19 = vld [vmem:[%s15631_s1 + $0x1af8] sm:$0xff] }
 0x896   : > { %v8344_v54 = vpop.f32.mrb[171].mxu1 }
 0x897   : > { %v8345_v47 = vadd.f32 %v8344_v54, %v8343_v46  ;;  %v7636_v46 = vld [vmem:[%s15631_s1 + $0x1938] sm:$0xff] }
 0x899   : > { %v5769_v14 = vadd.f32 %v8345_v47, %v7532_v31  ;;  %v7617_v31 = vld [vmem:[%s15631_s1 + $0x18a0] sm:$0xff]  ;;  %v9966_v47 = vpack.c.bf16 %v7634_v36, %v7633_v52 }
 0x89a   : > { %v8381_v60 = vpop.f32.mrb[170].mxu0  ;;  %v7641_v36 = vld [vmem:[%s15631_s1 + $0x1960] sm:$0xff] }
 0x89b   : > { %v8382_v62 = vpop.f32.mrb[171].mxu0 }
 0x89c   : > { %v8383_v34 = vadd.f32 %v8382_v62, %v8381_v60  ;;  %v7649_v60 = vld [vmem:[%s15631_s1 + $0x19a0] sm:$0xff]  ;;  %v7650_v62 = vld [vmem:[%s15631_s1 + $0x19a8] sm:$0xff] }
 0x89e   : > { %v5844_v28 = vadd.f32 %v8383_v34, %v5769_v14  ;;  %v9996_v34 = vpack.c.bf16 %v7648_v11, %v7647_v53  ;;  %v7655_v11 = vld [vmem:[%s15631_s1 + $0x19d0] sm:$0xff] }
 0x8ae   : > { %v8416_v26 = vpop.f32.mrb[172].mxu1 }
 0x8af   : > { %v8417_v5 = vpop.f32.mrb[173].mxu1 }
 0x8b0   : > { %v8418_v20 = vadd.f32 %v8417_v5, %v8416_v26  ;;  %v7668_v26 = vld [vmem:[%s15631_s1 + $0x1a38] sm:$0xff]  ;;  %v9998_v5 = vpack.c.bf16 %v7666_v1, %v7665_v42  ;;  %v7674_v42 = vld [vmem:[%s15631_s1 + $0x1a68] sm:$0xff]  ;;  %v7643_v1 = vld [vmem:[%s15631_s1 + $0x1970] sm:$0xff] }
 0x8b2   : > { %v5914_v25 = vadd.f32 %v8418_v20, %v5839_v12  ;;  %v8419_v13 = vpop.f32.mrb[174].mxu1  ;;  %v8454_v8 = vpop.f32.mrb[172].mxu0  ;;  %v7635_v12 = vld [vmem:[%s15631_s1 + $0x1930] sm:$0xff] }
 0x8b3   : > { %v8420_v22 = vpop.f32.mrb[175].mxu1  ;;  %v8455_v9 = vpop.f32.mrb[173].mxu0  ;;  %v7619_v20 = vld [vmem:[%s15631_s1 + $0x18b0] sm:$0xff] }
 0x8b4   : > { %v8421_v57 = vadd.f32 %v8420_v22, %v8419_v13  ;;  %v8456_v10 = vadd.f32 %v8455_v9, %v8454_v8  ;;  %v9968_v22 = vpack.c.bf16 %v7618_v15, %v7617_v31  ;;  %v7637_v9 = vld [vmem:[%s15631_s1 + $0x1940] sm:$0xff]  ;;  %v7626_v31 = vld [vmem:[%s15631_s1 + $0x18e8] sm:$0xff] }
 0x8b6   : > { %v5919_v56 = vadd.f32 %v8421_v57, %v5844_v28  ;;  %v8457_v35 = vpop.f32.mrb[174].mxu0  ;;  %v5989_v48 = vadd.f32 %v8456_v10, %v5914_v25  ;;  %v7667_v28 = vld [vmem:[%s15631_s1 + $0x1a30] sm:$0xff]  ;;  %v7620_v25 = vld [vmem:[%s15631_s1 + $0x18b8] sm:$0xff]  ;;  %v9970_v57 = vpack.c.bf16 %v7636_v46, %v7635_v12  ;;  %v7657_v12 = vld [vmem:[%s15631_s1 + $0x19e0] sm:$0xff] }
 0x8b7   : > { %v8458_v63 = vpop.f32.mrb[175].mxu0  ;;  %v7651_v10 = vld [vmem:[%s15631_s1 + $0x19b0] sm:$0xff]  ;;  %v7658_v46 = vld [vmem:[%s15631_s1 + $0x19e8] sm:$0xff] }
 0x8b8   : > { %v8459_v39 = vadd.f32 %v8458_v63, %v8457_v35  ;;  %v7638_v35 = vld [vmem:[%s15631_s1 + $0x1948] sm:$0xff]  ;;  %v7669_v63 = vld [vmem:[%s15631_s1 + $0x1a40] sm:$0xff] }
 0x8b9   : > { %v9974_v33 = vpack.c.bf16 %v7638_v35, %v7637_v9 }
 0x8ba   : > { %v5994_v29 = vadd.f32 %v8459_v39, %v5919_v56  ;;  %v7652_v56 = vld [vmem:[%s15631_s1 + $0x19b8] sm:$0xff]  ;;  %v7670_v39 = vld [vmem:[%s15631_s1 + $0x1a48] sm:$0xff] }
 0x8bb   : > { %v10004_v50 = vpack.c.bf16 %v7652_v56, %v7651_v10  ;;  %v10006_v43 = vpack.c.bf16 %v7670_v39, %v7669_v63  ;;  %v7679_v10 = vld [vmem:[%s15631_s1 + $0x1a90] sm:$0xff]  ;;  %v7680_v56 = vld [vmem:[%s15631_s1 + $0x1a98] sm:$0xff]  ;;  %v7682_v63 = vld [vmem:[%s15631_s1 + $0x1aa8] sm:$0xff] }
 0x8bc   : > { %v10026_v35 = vpack.c.bf16 %v7680_v56, %v7679_v10 }
 0x8cf   : > { %v8930_v0 = vpop.f32.mrb[176].mxu1 }
 0x8d0   : > { %v6069_v30 = vadd.f32 %v8930_v0, %v5994_v29  ;;  %v6063_v6 = vpop.f32.mrb[177].mxu1 }
 0x8d1   : > { %v6064_v51 = vadd.f32 %v6063_v6, %v5989_v48  ;;  %v10000_v48 = vpack.c.bf16 %v7650_v62, %v7649_v60  ;;  %v7621_v6 = vld [vmem:[%s15631_s1 + $0x18c0] sm:$0xff]  ;;  %v7676_v60 = vld [vmem:[%s15631_s1 + $0x1a78] sm:$0xff] }
 0x8d2   : > { %v6073_v21 = vmax.f32 %v6069_v30, 0.0  ;;  %v10002_v30 = vpack.c.bf16 %v7668_v26, %v7667_v28  ;;  %v10016_v28 = vpack.c.bf16 %v7658_v46, %v7657_v12  ;;  %v7677_v26 = vld [vmem:[%s15631_s1 + $0x1a80] sm:$0xff] }
 0x8d3   : > { %v6072_v38 = vmax.f32 %v6064_v51, 0.0  ;;  %v7622_v51 = vld [vmem:[%s15631_s1 + $0x18c8] sm:$0xff] }
 0x8d4   : > { %v6077_v37 = vcombine.high %v6073_v21, %v6073_v21  ;;  %6136 = vst [vmem:[#allocation2 + $0x49] sm:$0xf] %v6073_v21 }
 0x8d5   : > { %v6076_v27 = vcombine.high %v6072_v38, %v6072_v38  ;;  %6134 = vst [vmem:[#allocation2 + $0x19] sm:$0xf] %v6072_v38 }
 0x8d6   : > { %6137 = vst [vmem:[#allocation2 + $0x61] sm:$0xf] %v6077_v37  ;;  %v9972_v37 = vpack.c.bf16 %v7620_v25, %v7619_v20  ;;  %v7659_v25 = vld [vmem:[%s15631_s1 + $0x19f0] sm:$0xff] }
 0x8d7   : > { %6135 = vst [vmem:[#allocation2 + $0x31] sm:$0xf] %v6076_v27 }
 0x8dc   : > { %v10561_v16 = vld [vmem:[#allocation2 + $0x1] ss:$24 sps:$4 sm:$0xff]  }
 0x8dd   : > { %v10562_v18 = vld [vmem:[#allocation2] ss:$24 sps:$4 sm:$0xff]   ;;  %6476 = vmatprep.mubr.f32.mxu0 %v10561_v16  ;;  %v7654_v16 = vld [vmem:[%s15631_s1 + $0x19c8] sm:$0xff] }
 0x8de   : > { %v10563_v2 = vld [vmem:[#allocation2 + $0x31] ss:$24 sps:$4 sm:$0xff]   ;;  %6477 = vmatmul.mubr.f32.vlgmr.msra.gmra.mrb[176].mxu0 %v10562_v18  ;;  %v10565_v40 = vld [vmem:[#allocation2 + $0x2] ss:$24 sps:$4 sm:$0xff]   ;;  %v10008_v52 = vpack.c.bf16 %v7654_v16, %v7653_v32 }
 0x8df   : > { %v10564_v45 = vld [vmem:[#allocation2 + $0x18] ss:$24 sps:$4 sm:$0xff]   ;;  %9961 = vmatpush3.bf16.msra.mxu0 %v9960_v24  ;;  %6481 = vmatprep.mubr.f32.mxu0 %v10563_v2  ;;  %6789 = vst [vmem:[#allocation2] sm:$0xff] %v12370_v17  ;;  %v10566_v41 = vld [vmem:[#allocation2 + $0x48] ss:$24 sps:$4 sm:$0xff]   ;;  %v9976_v24 = vpack.c.bf16 %v7622_v51, %v7621_v6 }
 0x8e0   : > { %6551 = vmatprep.mubr.f32.mxu1 %v10564_v45  ;;  %9963 = vmatprep.subr.bf16.mxu0 %v9962_v55  ;;  %v10567_v23 = vld [vmem:[#allocation2 + $0x30] ss:$24 sps:$4 sm:$0xff]   ;;  %v15432_v21 = vld [vmem:[#allocation2 + $0x61] ss:$24 sps:$4 sm:$0xff]   ;;  %v7693_v32 = vld [vmem:[%s15632_s2 + $0x5] ss:$0 sm:$0xff] }
 0x8e1   : > { %6552 = vmatmul.mubr.f32.vlgmr.msra.gmra.mrb[178].mxu1 %v10565_v40  ;;  %v10568_v54 = vld [vmem:[#allocation2 + $0x1a] ss:$24 sps:$4 sm:$0xff]   ;;  %v15422_v29 = vld [vmem:[#allocation2 + $0x4a] ss:$24 sps:$4 sm:$0xff]  }
 0x8e2   : > { %9993 = vmatpush3.bf16.msra.mxu1 %v9992_v49  ;;  %6556 = vmatprep.mubr.f32.mxu1 %v10566_v41  ;;  %v10569_v14 = vld [vmem:[#allocation2 + $0x32] ss:$24 sps:$4 sm:$0xff]   ;;  %v15440_v61 = vld [vmem:[#allocation2 + $0x60] ss:$24 sps:$4 sm:$0xff]  }
 0x8e3   : > { %6482 = vmatmul.mubr.f32.gmra.mrb[178].mxu0 %v10567_v23  ;;  %9995 = vmatprep.subr.bf16.mxu1 %v9994_v58  ;;  %v15401_v13 = vld [vmem:[#allocation2 + $0x19] ss:$24 sps:$4 sm:$0xff]   ;;  %v15434_v38 = vld [vmem:[#allocation2 + $0x49] ss:$24 sps:$4 sm:$0xff]  }
 0x8e4   : > { %9965 = vmatpush3.bf16.msra.mxu0 %v9964_v3  ;;  %6626 = vmatprep.mubr.f32.mxu0 %v10568_v54  ;;  %v10570_v8 = vld [vmem:[#allocation2 + $0x31] ss:$24 sps:$4 sm:$0xff]   ;;  %6792 = vst [vmem:[#allocation2 + $0x18] sm:$0xff] %v12370_v17  ;;  %v15442_v44 = vld [vmem:[#allocation2 + $0x62] ss:$24 sps:$4 sm:$0xff]  }
 0x8e5   : > { %6557 = vmatmul.mubr.f32.gmra.mrb[180].mxu1 %v10569_v14  ;;  %9967 = vmatprep.subr.bf16.mxu0 %v9966_v47  ;;  %v15424_v0 = vld [vmem:[#allocation2 + $0x30] ss:$24 sps:$4 sm:$0xff]   ;;  %6801 = vst [vmem:[#allocation2 + $0x60] sm:$0xff] %v12370_v17  ;;  %6804 = vst [vmem:[#allocation2 + $0x78] sm:$0xff] %v12370_v17  ;;  %v7624_v55 = vld [vmem:[%s15631_s1 + $0x18d8] sm:$0xff] }
 0x8e6   : > { %9997 = vmatpush3.bf16.msra.mxu1 %v9996_v34  ;;  %6701 = vmatprep.mubr.f32.mxu1 %v10570_v8  ;;  %v15436_v27 = vld [vmem:[#allocation2 + $0x32] ss:$24 sps:$4 sm:$0xff]   ;;  %v7656_v45 = vld [vmem:[%s15631_s1 + $0x19d8] sm:$0xff]  ;;  %v7673_v49 = vld [vmem:[%s15631_s1 + $0x1a60] sm:$0xff] }
 0x8e7   : > { %9999 = vmatprep.subr.bf16.mxu1 %v9998_v5  ;;  %6798 = vst [vmem:[#allocation2 + $0x48] sm:$0xff] %v12370_v17  ;;  %6795 = vst [vmem:[#allocation2 + $0x30] sm:$0xff] %v12370_v17  ;;  %v7672_v17 = vld [vmem:[%s15631_s1 + $0x1a58] sm:$0xff]  ;;  %v7623_v18 = vld [vmem:[%s15631_s1 + $0x18d0] sm:$0xff]  ;;  %v10012_v15 = vpack.c.bf16 %v7656_v45, %v7655_v11  ;;  %v10014_v3 = vpack.c.bf16 %v7674_v42, %v7673_v49 }
 0x8e8   : > { %9969 = vmatpush3.bf16.msra.mxu0 %v9968_v22  ;;  %v7642_v2 = vld [vmem:[%s15631_s1 + $0x1968] sm:$0xff]  ;;  %v10010_v53 = vpack.c.bf16 %v7672_v17, %v7671_v4  ;;  %v9980_v40 = vpack.c.bf16 %v7624_v55, %v7623_v18  ;;  %v7625_v58 = vld [vmem:[%s15631_s1 + $0x18e0] sm:$0xff]  ;;  %v7644_v23 = vld [vmem:[%s15631_s1 + $0x1978] sm:$0xff] }
 0x8e9   : > { %9971 = vmatprep.subr.bf16.mxu0 %v9970_v57  ;;  %v9982_v41 = vpack.c.bf16 %v7642_v2, %v7641_v36  ;;  %v9984_v54 = vpack.c.bf16 %v7626_v31, %v7625_v58  ;;  %v7675_v47 = vld [vmem:[%s15631_s1 + $0x1a70] sm:$0xff]  ;;  %v9986_v62 = vpack.c.bf16 %v7644_v23, %v7643_v1  ;;  %v7628_v34 = vld [vmem:[%s15631_s1 + $0x18f8] sm:$0xff]  ;;  %v7678_v5 = vld [vmem:[%s15631_s1 + $0x1a88] sm:$0xff] }
 0x8ea   : > { %10001 = vmatpush3.bf16.msra.mxu1 %v10000_v48  ;;  %v7627_v14 = vld [vmem:[%s15631_s1 + $0x18f0] sm:$0xff]  ;;  %v10018_v20 = vpack.c.bf16 %v7676_v60, %v7675_v47  ;;  %v7660_v8 = vld [vmem:[%s15631_s1 + $0x19f8] sm:$0xff]  ;;  %v10022_v9 = vpack.c.bf16 %v7678_v5, %v7677_v26  ;;  %v7681_v48 = vld [vmem:[%s15631_s1 + $0x1aa0] sm:$0xff] }
 0x8eb   : > { %10003 = vmatprep.subr.bf16.mxu1 %v10002_v30  ;;  %v9988_v22 = vpack.c.bf16 %v7628_v34, %v7627_v14  ;;  %v10020_v57 = vpack.c.bf16 %v7660_v8, %v7659_v25  ;;  %v10030_v39 = vpack.c.bf16 %v7682_v63, %v7681_v48  ;;  %v7683_v30 = vld [vmem:[%s15631_s1 + $0x1ab0] sm:$0xff]  ;;  %v7684_v6 = vld [vmem:[%s15631_s1 + $0x1ab8] sm:$0xff] }
 0x8ec   : > { %9973 = vmatpush3.bf16.msra.mxu0 %v9972_v37 }
 0x8ed   : > { %9975 = vmatprep.subr.bf16.mxu0 %v9974_v33  ;;  %v7690_v33 = vld [vmem:[%s15631_s1 + $0x1ae8] sm:$0xff] }
 0x8ee   : > { %10005 = vmatpush3.bf16.msra.mxu1 %v10004_v50  ;;  %v7691_v50 = vld [vmem:[%s15631_s1 + $0x1af0] sm:$0xff] }
 0x8ef   : > { %10007 = vmatprep.subr.bf16.mxu1 %v10006_v43  ;;  %v10050_v7 = vpack.c.bf16 %v7692_v19, %v7691_v50 }
 0x8f0   : > { %9977 = vmatpush3.bf16.msra.mxu0 %v9976_v24 }
 0x8f1   : > { %9979 = vmatprep.subr.bf16.mxu0 %v9978_v59 }
 0x8f2   : > { %10009 = vmatpush3.bf16.msra.mxu1 %v10008_v52 }
 0x8f3   : > { %10011 = vmatprep.subr.bf16.mxu1 %v10010_v53 }
 0x8f4   : > { %9981 = vmatpush3.bf16.msra.mxu0 %v9980_v40 }
 0x8f5   : > { %9983 = vmatprep.subr.bf16.mxu0 %v9982_v41 }
 0x8f6   : > { %10013 = vmatpush3.bf16.msra.mxu1 %v10012_v15 }
 0x8f7   : > { %10015 = vmatprep.subr.bf16.mxu1 %v10014_v3 }
 0x8f8   : > { %9985 = vmatpush3.bf16.msra.mxu0 %v9984_v54 }
 0x8f9   : > { %9987 = vmatprep.subr.bf16.mxu0 %v9986_v62 }
 0x8fa   : > { %10017 = vmatpush3.bf16.msra.mxu1 %v10016_v28 }
 0x8fb   : > { %10019 = vmatprep.subr.bf16.mxu1 %v10018_v20 }
 0x8fc   : > { %9989 = vmatpush3.bf16.msra.mxu0 %v9988_v22 }
 0x8fd   : > { %10023 = vmatprep.subr.bf16.mxu0 %v10022_v9 }
 0x8fe   : > { %10021 = vmatpush3.bf16.msra.mxu1 %v10020_v57 }
 0x8ff   : > { %6627 = vmatmul.mubr.f32.vlgmr.msra.gmra.mrb[180].mxu0 %v15401_v13  ;;  %v10034_v13 = vpack.c.bf16 %v7684_v6, %v7683_v30 }
 0x900   : > { %6631 = vmatprep.mubr.f32.mxu0 %v15422_v29  ;;  %10025 = vmatpush3.bf16.msra.mxu0 %v10022_v9  ;;  %v7685_v29 = vld [vmem:[%s15631_s1 + $0x1ac0] sm:$0xff] }
 0x901   : > { %6702 = vmatmul.mubr.f32.vlgmr.msra.gmra.mrb[182].mxu1 %v15424_v0  ;;  %10027 = vmatprep.subr.bf16.mxu0 %v10026_v35  ;;  %v7686_v0 = vld [vmem:[%s15631_s1 + $0x1ac8] sm:$0xff] }
 0x902   : > { %6706 = vmatprep.mubr.f32.mxu1 %v15432_v21  ;;  %v10038_v51 = vpack.c.bf16 %v7686_v0, %v7685_v29  ;;  %v7687_v21 = vld [vmem:[%s15631_s1 + $0x1ad0] sm:$0xff] }
 0x903   : > { %6632 = vmatmul.mubr.f32.gmra.mrb[182].mxu0 %v15434_v38  ;;  %v7688_v38 = vld [vmem:[%s15631_s1 + $0x1ad8] sm:$0xff] }
 0x904   : > { %10029 = vmatpush3.bf16.msra.mxu0 %v10026_v35  ;;  %8963 = vmatprep.mubr.f32.mxu0 %v15436_v27  ;;  %v10042_v37 = vpack.c.bf16 %v7688_v38, %v7687_v21  ;;  %v7689_v27 = vld [vmem:[%s15631_s1 + $0x1ae0] sm:$0xff] }
 0x905   : > { %6707 = vmatmul.mubr.f32.gmra.mrb[184].mxu1 %v15440_v61  ;;  %10031 = vmatprep.subr.bf16.mxu0 %v10030_v39  ;;  %v10046_v61 = vpack.c.bf16 %v7690_v33, %v7689_v27 }
 0x908   : > { %10033 = vmatpush3.bf16.msra.mxu0 %v10030_v39 }
 0x909   : > { %10035 = vmatprep.subr.bf16.mxu0 %v10034_v13 }
 0x90c   : > { %10037 = vmatpush3.bf16.msra.mxu0 %v10034_v13 }
 0x90d   : > { %10039 = vmatprep.subr.bf16.mxu0 %v10038_v51 }
 0x910   : > { %10041 = vmatpush3.bf16.msra.mxu0 %v10038_v51 }
 0x911   : > { %10043 = vmatprep.subr.bf16.mxu0 %v10042_v37 }
 0x914   : > { %10045 = vmatpush3.bf16.msra.mxu0 %v10042_v37 }
 0x915   : > { %10047 = vmatprep.subr.bf16.mxu0 %v10046_v61 }
 0x918   : > { %10049 = vmatpush3.bf16.msra.mxu0 %v10046_v61 }
 0x919   : > { %10051 = vmatprep.subr.bf16.mxu0 %v10050_v7 }
 0x91c   : > { %10053 = vmatpush3.bf16.msra.mxu0 %v10050_v7 }
 0x91f   : > { %8964 = vmatmul.mubr.f32.vlgmr.msra.gmra.mrb[184].mxu0 %v15442_v44 }
 0x9b1   : > { %v8510_v43 = vpop.f32.mrb[176].mxu0 }
 0x9b2   : > { %v8511_v16 = vpop.f32.mrb[177].mxu0 }
 0x9b3   : > { %v8512_v24 = vadd.f32 %v8511_v16, %v8510_v43 }
 0x9b4   : > { %v8548_v4 = vpop.f32.mrb[178].mxu1 }
 0x9b5   : > { %v6479_v17 = vadd.f32 %v8512_v24, %v7693_v32  ;;  %v8549_v59 = vpop.f32.mrb[179].mxu1 }
 0x9b6   : > { %v8550_v18 = vadd.f32 %v8549_v59, %v8548_v4  ;;  %v8513_v55 = vpop.f32.mrb[178].mxu0 }
 0x9b7   : > { %v8514_v52 = vpop.f32.mrb[179].mxu0 }
 0x9b8   : > { %v6554_v36 = vadd.f32 %v8550_v18, %v6479_v17  ;;  %v8515_v2 = vadd.f32 %v8514_v52, %v8513_v55  ;;  %v8551_v53 = vpop.f32.mrb[180].mxu1 }
 0x9b9   : > { %v8552_v11 = vpop.f32.mrb[181].mxu1 }
 0x9ba   : > { %v6484_v45 = vadd.f32 %v8515_v2, %v7693_v32  ;;  %v8553_v40 = vadd.f32 %v8552_v11, %v8551_v53 }
 0x9bc   : > { %v6559_v44 = vadd.f32 %v8553_v40, %v6484_v45 }
 0x9d2   : > { %v8586_v49 = vpop.f32.mrb[180].mxu0 }
 0x9d3   : > { %v8587_v42 = vpop.f32.mrb[181].mxu0 }
 0x9d4   : > { %v8588_v41 = vadd.f32 %v8587_v42, %v8586_v49  ;;  %v8624_v58 = vpop.f32.mrb[182].mxu1 }
 0x9d5   : > { %v8625_v31 = vpop.f32.mrb[183].mxu1 }
 0x9d6   : > { %v6629_v15 = vadd.f32 %v8588_v41, %v6554_v36  ;;  %v8626_v1 = vadd.f32 %v8625_v31, %v8624_v58  ;;  %v8589_v23 = vpop.f32.mrb[182].mxu0 }
 0x9d7   : > { %v8590_v3 = vpop.f32.mrb[183].mxu0 }
 0x9d8   : > { %v8591_v12 = vadd.f32 %v8590_v3, %v8589_v23  ;;  %v8627_v46 = vpop.f32.mrb[184].mxu1  ;;  %v6704_v54 = vadd.f32 %v8626_v1, %v6629_v15 }
 0x9d9   : > { %v8628_v47 = vpop.f32.mrb[185].mxu1 }
 0x9da   : > { %v6634_v60 = vadd.f32 %v8591_v12, %v6559_v44  ;;  %v8629_v62 = vadd.f32 %v8628_v47, %v8627_v46 }
 0x9dc   : > { %v6709_v14 = vadd.f32 %v8629_v62, %v6634_v60 }
 0x9f2   : > { %v8965_v34 = vpop.f32.mrb[184].mxu0 }
 0x9f3   : > { %v6784_v28 = vadd.f32 %v8965_v34, %v6709_v14  ;;  %v6778_v26 = vpop.f32.mrb[185].mxu0 }
 0x9f4   : > { %v6779_v5 = vadd.f32 %v6778_v26, %v6704_v54 }
 0x9f5   : > { %v6788_v20 = vmax.f32 %v6784_v28, 0.0 }
 0x9f6   : > { %v6787_v25 = vmax.f32 %v6779_v5, 0.0 }
 0x9f7   : > { %v6846_v8 = vcombine.high %v6788_v20, %v6788_v20 }
 0x9f8   : > { %v6845_v22 = vcombine.high %v6787_v25, %v6787_v25 }
 0x9f9   : > { %v6850_v9 = vmax.f32 %v6788_v20, %v6846_v8 }
 0x9fa   : > { %v6849_v57 = vmax.f32 %v6787_v25, %v6845_v22 }
 0x9fb   : > { %v7711_v10 = vrot.slane %v6850_v9, 9 }
 0x9fc   : > { %v7710_v56 = vrot.slane %v6849_v57, 9 }
 0x9fd   : > { %v6860_v35 = vmax.f32 %v6850_v9, %v7711_v10 }
 0x9fe   : > { %v6859_v48 = vmax.f32 %v6849_v57, %v7710_v56 }
 0x9ff   : > { %6862 = vst [vmem:[#allocation2 + $0x31] sm:$0x1] %v6860_v35  ;;  %6864 = vst [vmem:[#allocation2 + $0x30] sm:$0x4] %v6860_v35 }
 0xa00   : > { %6861 = vst [vmem:[#allocation2 + $0x19] sm:$0x1] %v6859_v48  ;;  %6863 = vst [vmem:[#allocation2 + $0x18] sm:$0x4] %v6859_v48 }
 0xa06   : > { %v6866_v63 = vld [vmem:[#allocation2 + $0x31] sm:$0x3] }
 0xa07   : > { %v6865_v39 = vld [vmem:[#allocation2 + $0x19] sm:$0x3] }
 0xa08   : > { %v6867_v30 = vadd.f32 %v6866_v63, %v6865_v39 }
 0xa0a   : > { %v6869_v6 = vsel %vm6868_vm0, %v6867_v30, 0.0 }
 0xa0b   : > { %v6870_v13 = vrot.slane %v6869_v6, 4 }
 0xa0d   : > { %v6871_v29 = vadd.f32 %v6870_v13, %v6869_v6 }
 0xa0f   : > { %v6872_v0 = vrot.slane %v6871_v29, 2 }
 0xa11   : > { %v6873_v51 = vadd.f32 %v6872_v0, %v6871_v29 }
 0xa13   : > { %v6874_v21 = vrot.slane %v6873_v51, 1 }
 0xa15   : > { %v6875_v38 = vadd.f32 %v6874_v21, %v6873_v51 }
 0xa17   : > { %v6876_v37 = vmul.f32 0.25, %v6875_v38 }
 0xa19   : > { %6877 = vst [vmem:[%s162_s4] sm:$0x1] %v6876_v37 }
 0xa1a   : > { %10599 = shalt.err (!%p10596_p3)
}
 0xa1b   : > { %s10600_s17 = scalar_lea.hbm %s15588_s8, 16  ;;  %s10604_s24 = scalar_lea.hbm %s15633_s3, 32 }
 0xa1c   : > { %p10601_p4 = scmp.ne.s32.totalorder %s15588_s8, %s10600_s17  ;;  %p10605_p9 = scmp.lt.u32.totalorder %s15588_s8, %s15633_s3 }
 0xa1d   : > { %p10606_p10 = scmp.lt.u32.totalorder %s10604_s24, %s10600_s17  ;;  %p10608_p12 = scmp.lt.u32.totalorder %s10600_s17, %s15588_s8 }
 0xa1e   : > { %p10602_p7 = pnand %p10601_p4, %p10711_p5 }
 0xa1f   : > { %p10607_p11 = por %p10606_p10, %p10605_p9 }
 0xa20   : > { %p10603_p8 = pneg %p10602_p7 }
 0xa21   : > { %p10609_p13 = por %p10608_p12, %p10607_p11 }
 0xa23   : > { %p10610_p0 = pnand %p10609_p13, %p10603_p8 }
 0xa25   : > { %10613 = shalt.err (!%p10610_p0)
}
 0xa26   : > { %10502 = dma.vmem_to_hbm [thread:$0]  (%p10711_p5), %s15590_s5, 16, %s15588_s8, %s6879_s9  }
 0xa27 PF: > { %p10508_p1 = scmp.ge.s32.totalorder %s10648_s15, 2  ;;  %s6903_s28 = sand.u32 1, %s10636_s12  }
 0xa28   : > { %s6904_s29 = scalar_lea.sflag [#allocation4], %s6903_s28 }
 0xa29   : > { %p10505_p2 = pnand %p10508_p1, %p10715_p6 }
 0xa2b   : > { %10631 = dma.done.wait (!%p10505_p2), %s6904_s29, 16  }
 0xa2c   : > { %10633 = vsyncadd (!%p10505_p2), %s6904_s29, 4294967280  ;;  %p13_p3 = scmp.ge.s32.totalorder %s10698_s18, 4   ;;  %s15930_s12 = smov %s10640_s13 }
 0xa2d   : > { %s15931_s13 = smov %s10644_s14  ;;  %s15932_s14 = smov %s10709_s21 }
 0xa2e   : > { %s15933_s15 = smov %s10698_s18  ;;  %15 = sbr.rel (!%p13_p3) target bundleno = 3 (0x3), region = 74 }
 0xa35   :  { %6908 = vsyncpa [#allocation4], 1 }
 0xa36   :  { %6910 = vsyncpa [#allocation4 + $0x1], 1 }

</bundles_post_ra>
